<compile_context>
chip_gen: v7x
topology: tpu7x:2x2x1
jax: 0.10.0
libtpu: 0.0.40
codegen_flags: <defaults>
</compile_context>

<pallas_src>
import jax
import jax.numpy as jnp
from jax.experimental import pallas as pl
from jax.experimental.pallas import tpu as pltpu

BN_EPS = 1e-5
VMEM_LIMIT_BYTES = 32 * 1024 * 1024   # explicit scoped-VMEM cap (safe on v5e/v6e/v7x)
MAX_TILE_M = 512                      # rows per tile (multiple of 8)


def _round_up(x, m):
    return (x + m - 1) // m * m


# ---------------------------------------------------------------------------
# Pallas kernels
# ---------------------------------------------------------------------------
def _matmul_stats_kernel(p_ref, w_ref, y_ref, stats_ref):
    """Pass 1: bf16 MXU matmul + per-tile partial channel statistics.

    p_ref    : (TILE_M, K)    bf16 im2col patches (or raw activations for 1x1)
    w_ref    : (K, Cout)      bf16 conv weights (same block every grid step)
    y_ref    : (TILE_M, Cout) f32 pre-activation output tile
    stats_ref: (2, Cout)      f32 partial stats for THIS tile
                              (row 0 = sum, row 1 = sum of squares)
    """
    y = jnp.dot(p_ref[...], w_ref[...], preferred_element_type=jnp.float32)
    y_ref[...] = y
    s1 = jnp.sum(y, axis=0, keepdims=True)
    s2 = jnp.sum(y * y, axis=0, keepdims=True)
    stats_ref[...] = jnp.concatenate([s1, s2], axis=0)


def _bn_relu_kernel(y_ref, sc_ref, sh_ref, o_ref):
    """Pass 2: folded BatchNorm affine + ReLU.

    y_ref : (TILE_M, Cout) f32
    sc_ref: (1, Cout)      f32 scale  = gamma * rsqrt(var + eps)
    sh_ref: (1, Cout)      f32 shift  = beta - mean * scale
    o_ref : (TILE_M, Cout) f32 or bf16
    """
    o = jnp.maximum(y_ref[...] * sc_ref[...] + sh_ref[...], 0.0)
    o_ref[...] = o.astype(o_ref.dtype)


def _maxpool_kernel(x_ref, o_ref):
    """Max over the 9 stacked 3x3-window taps. x: (9, TILE_M, C) -> o: (TILE_M, C)."""
    o_ref[...] = jnp.max(x_ref[...], axis=0)


# ---------------------------------------------------------------------------
# Wrappers (glue in plain JAX, hot path in Pallas)
# ---------------------------------------------------------------------------
def _im2col(x_nhwc, kernel_size, stride, padding):
    KH, KW = kernel_size
    SH, SW = stride
    PH, PW = padding
    N, H, W, Cin = x_nhwc.shape
    xp = jnp.pad(x_nhwc, ((0, 0), (PH, PH), (PW, PW), (0, 0)))
    Hout = (H + 2 * PH - KH) // SH + 1
    Wout = (W + 2 * PW - KW) // SW + 1
    cols = []
    for kh in range(KH):
        for kw in range(KW):
            cols.append(xp[:, kh:kh + SH * Hout:SH, kw:kw + SW * Wout:SW, :])
    # (N, Hout, Wout, KH*KW, Cin) -> (N*Hout*Wout, KH*KW*Cin)
    patches = jnp.stack(cols, axis=3).reshape(N * Hout * Wout, KH * KW * Cin)
    return patches, (N, Hout, Wout)


def _choose_tile_m(M, K, Cout):
    """Pick a row-tile size that keeps double-buffered tiles well inside VMEM."""
    budget = 16 * 1024 * 1024
    # per-row bytes: bf16 patches (2*K) + f32 y tile (4*Cout), x2 for double buffer
    per_row = 2 * (2 * K + 4 * Cout)
    tile = budget // max(per_row, 1)
    tile = max(8, min(MAX_TILE_M, tile))
    tile = min(tile, _round_up(M, 8))
    return _round_up(tile, 8)


def conv_bn_relu(x_nhwc, params, kernel_size, stride, padding,
                 out_dtype=jnp.float32):
    """One ConvolutionBlock (conv -> train-mode BN -> ReLU). Returns NHWC output."""
    w, _b, gamma, beta = params  # conv bias cancels under train-mode BN: dropped.
    KH, KW, Cin, Cout = w.shape

    if (KH, KW) == (1, 1) and stride == (1, 1) and padding == (0, 0):
        # 1x1 conv: no im2col needed, the activation IS the patch matrix.
        N, H, W_, _ = x_nhwc.shape
        patches = x_nhwc.reshape(N * H * W_, Cin)
        N_out, Hout, Wout = N, H, W_
    else:
        patches, (N_out, Hout, Wout) = _im2col(x_nhwc, kernel_size, stride, padding)

    M, K = patches.shape
    w2 = w.reshape(K, Cout)

    tile_m = _choose_tile_m(M, K, Cout)
    M_pad = _round_up(M, tile_m)
    if M_pad != M:
        # Zero rows contribute exactly 0 to sum / sum-of-squares (no bias term),
        # so stats stay correct as long as we divide by the real M below.
        patches = jnp.pad(patches, ((0, M_pad - M), (0, 0)))
    num_tiles = M_pad // tile_m

    patches_bf = patches.astype(jnp.bfloat16)
    w_bf = w2.astype(jnp.bfloat16)

    # ---- pass 1: tiled matmul + per-tile partial BN statistics ----------------
    y, part_stats = pl.pallas_call(
        _matmul_stats_kernel,
        out_shape=(
            jax.ShapeDtypeStruct((M_pad, Cout), jnp.float32),
            jax.ShapeDtypeStruct((num_tiles, 2, Cout), jnp.float32),
        ),
        grid=(num_tiles,),
        in_specs=[
            pl.BlockSpec((tile_m, K), lambda i: (i, 0)),
            pl.BlockSpec((K, Cout), lambda i: (0, 0)),
        ],
        out_specs=(
            pl.BlockSpec((tile_m, Cout), lambda i: (i, 0)),
            pl.BlockSpec((None, 2, Cout), lambda i: (i, 0, 0)),  # per-tile partials
        ),
        compiler_params=pltpu.CompilerParams(
            dimension_semantics=("parallel",),   # no resident accumulator -> megacore OK
            vmem_limit_bytes=VMEM_LIMIT_BYTES,
        ),
    )(patches_bf, w_bf)

    # ---- tiny per-channel reduction -> folded BN scale / shift (plain JAX) ----
    stats = jnp.sum(part_stats, axis=0)          # (2, Cout)
    m_real = jnp.float32(M)
    mean = stats[0:1, :] / m_real
    ex2 = stats[1:2, :] / m_real
    var = jnp.maximum(ex2 - mean * mean, 0.0)
    inv_std = jax.lax.rsqrt(var + BN_EPS)
    scale = gamma.reshape(1, Cout) * inv_std
    shift = beta.reshape(1, Cout) - mean * scale

    # ---- pass 2: tiled elementwise normalize + ReLU ---------------------------
    out = pl.pallas_call(
        _bn_relu_kernel,
        out_shape=jax.ShapeDtypeStruct((M_pad, Cout), out_dtype),
        grid=(num_tiles,),
        in_specs=[
            pl.BlockSpec((tile_m, Cout), lambda i: (i, 0)),
            pl.BlockSpec((1, Cout), lambda i: (0, 0)),
            pl.BlockSpec((1, Cout), lambda i: (0, 0)),
        ],
        out_specs=pl.BlockSpec((tile_m, Cout), lambda i: (i, 0)),
        compiler_params=pltpu.CompilerParams(
            dimension_semantics=("parallel",),
            vmem_limit_bytes=VMEM_LIMIT_BYTES,
        ),
    )(y, scale, shift)

    return out[:M].reshape(N_out, Hout, Wout, Cout)


def maxpool_3x3_s2(x_nhwc):
    """MaxPool2d(kernel=3, stride=2, no padding). Returns NHWC output."""
    N, H, W, C = x_nhwc.shape
    Hout = (H - 3) // 2 + 1
    Wout = (W - 3) // 2 + 1
    taps = []
    for kh in range(3):
        for kw in range(3):
            taps.append(x_nhwc[:, kh:kh + 2 * Hout:2, kw:kw + 2 * Wout:2, :])
    # (9, M, C): keep C on the lane dimension for lane-dense loads/stores.
    M = N * Hout * Wout
    stacked = jnp.stack(taps, axis=0).reshape(9, M, C)

    # Row-tile sized so the (9, tile, C) block (double-buffered) stays in VMEM.
    budget = 16 * 1024 * 1024
    per_row = 2 * (9 + 1) * 4 * C
    tile_m = max(8, min(MAX_TILE_M, budget // max(per_row, 1)))
    tile_m = _round_up(min(tile_m, _round_up(M, 8)), 8)
    M_pad = _round_up(M, tile_m)
    if M_pad != M:
        stacked = jnp.pad(stacked, ((0, 0), (0, M_pad - M), (0, 0)))
    num_tiles = M_pad // tile_m

    out = pl.pallas_call(
        _maxpool_kernel,
        out_shape=jax.ShapeDtypeStruct((M_pad, C), jnp.float32),
        grid=(num_tiles,),
        in_specs=[pl.BlockSpec((9, tile_m, C), lambda i: (0, i, 0))],
        out_specs=pl.BlockSpec((tile_m, C), lambda i: (i, 0)),
        compiler_params=pltpu.CompilerParams(
            dimension_semantics=("parallel",),
            vmem_limit_bytes=VMEM_LIMIT_BYTES,
        ),
    )(stacked)
    return out[:M].reshape(N, Hout, Wout, C)


# ---------------------------------------------------------------------------
# Parameter construction (deterministic, synthetic)
# ---------------------------------------------------------------------------
def _make_conv_block_params(key, cin, cout, kernel_size):
    KH, KW = kernel_size
    kw_, kb_, kg_, kbt_ = jax.random.split(key, 4)
    fan_in = cin * KH * KW
    scale = 1.0 / jnp.sqrt(jnp.float32(fan_in))
    w = jax.random.normal(kw_, (KH, KW, cin, cout), jnp.float32) * scale
    # Conv bias is kept for API parity but is a mathematical no-op under
    # train-mode BatchNorm (the batch mean absorbs it), so kernels ignore it.
    b = jax.random.normal(kb_, (cout,), jnp.float32) * scale
    gamma = 1.0 + 0.1 * jax.random.normal(kg_, (cout,), jnp.float32)
    beta = 0.1 * jax.random.normal(kbt_, (cout,), jnp.float32)
    return (w, b, gamma, beta)


def make_reduction_block_b_params(key, in_channels):
    keys = jax.random.split(key, 6)
    params = {
        # branch1: 1x1 -> (1,7) -> (7,1) -> 3x3 s2
        "b1_l1": _make_conv_block_params(keys[0], in_channels, 192, (1, 1)),
        "b1_l2": _make_conv_block_params(keys[1], 192, 192, (1, 7)),
        "b1_l3": _make_conv_block_params(keys[2], 192, 192, (7, 1)),
        "b1_l4": _make_conv_block_params(keys[3], 192, 192, (3, 3)),
        # branch2: 1x1 -> 3x3 s2
        "b2_l1": _make_conv_block_params(keys[4], in_channels, 192, (1, 1)),
        "b2_l2": _make_conv_block_params(keys[5], 192, 320, (3, 3)),
    }
    return params


# ---------------------------------------------------------------------------
# ReductionBlock_B forward
# ---------------------------------------------------------------------------
@jax.jit
def reduction_block_b(x_nchw, params):
    x = jnp.transpose(x_nchw, (0, 2, 3, 1))  # NCHW -> NHWC
    bf = jnp.bfloat16  # intermediate activations feed a bf16 MXU matmul anyway
    f32 = jnp.float32

    # branch1
    b1 = conv_bn_relu(x, params["b1_l1"], (1, 1), (1, 1), (0, 0), out_dtype=bf)
    b1 = conv_bn_relu(b1, params["b1_l2"], (1, 7), (1, 1), (0, 3), out_dtype=bf)
    b1 = conv_bn_relu(b1, params["b1_l3"], (7, 1), (1, 1), (3, 0), out_dtype=bf)
    b1 = conv_bn_relu(b1, params["b1_l4"], (3, 3), (2, 2), (0, 0), out_dtype=f32)

    # branch2
    b2 = conv_bn_relu(x, params["b2_l1"], (1, 1), (1, 1), (0, 0), out_dtype=bf)
    b2 = conv_bn_relu(b2, params["b2_l2"], (3, 3), (2, 2), (0, 0), out_dtype=f32)

    # branch3
    b3 = maxpool_3x3_s2(x)

    out = jnp.concatenate([b1, b2, b3], axis=-1)     # NHWC channel concat
    return jnp.transpose(out, (0, 3, 1, 2))          # back to NCHW


# ---------------------------------------------------------------------------
if __name__ == "__main__":
    key = jax.random.PRNGKey(0)
    k_x, k_p = jax.random.split(key)

    N, C, H, W = 2, 8, 16, 16
    x = jax.random.normal(k_x, (N, C, H, W), jnp.float32)
    params = make_reduction_block_b_params(k_p, C)

    out = reduction_block_b(x, params)
    out = jax.block_until_ready(out)

    expected_c = 192 + 320 + C
    expected_hw = (H - 3) // 2 + 1
    assert out.shape == (N, expected_c, expected_hw, expected_hw), out.shape
    assert jnp.isfinite(out).all()
    print("KERNEL_OK")
</pallas_src>

<mosaic_0001>
module attributes {stable_mosaic.version = 11 : i64} {
  func.func @_matmul_stats_kernel(%arg0: i32, %arg1: memref<512x8xbf16, #tpu.memory_space<vmem>>, %arg2: memref<8x192xbf16, #tpu.memory_space<vmem>>, %arg3: memref<512x192xf32, #tpu.memory_space<vmem>>, %arg4: memref<1x2x192xf32, #tpu.memory_space<vmem>>) attributes {dimension_semantics = [#tpu.dimension_semantics<parallel>], iteration_bounds = array<i64: 1>, scalar_prefetch = 0 : i64, scratch_operands = 0 : i64, tpu.core_type = #tpu.core_type<tc>, window_params = [{transform_indices = @transform_0, window_bounds = array<i64: 512, 8>}, {pipeline_mode = #tpu.pipeline_mode<synchronous>, transform_indices = @transform_1, window_bounds = array<i64: 8, 192>}, {transform_indices = @transform_2, window_bounds = array<i64: 512, 192>}, {transform_indices = @transform_3, window_bounds = array<i64: 1, 2, 192>}]} {
    %c0 = arith.constant 0 : index
    %c0_0 = arith.constant 0 : index
    %0 = vector.load %arg1[%c0, %c0_0] : memref<512x8xbf16, #tpu.memory_space<vmem>>, vector<512x8xbf16>
    %c0_1 = arith.constant 0 : index
    %c0_2 = arith.constant 0 : index
    %1 = vector.load %arg2[%c0_1, %c0_2] : memref<8x192xbf16, #tpu.memory_space<vmem>>, vector<8x192xbf16>
    %cst = arith.constant dense<0.000000e+00> : vector<512x192xf32>
    %2 = tpu.matmul %0, %1, %cst {dimension_numbers = #tpu.dot_dimension_numbers<[1], [0], [0], [1], [0, 0, 1, 1], [], []>} : vector<512x8xbf16>, vector<8x192xbf16>, vector<512x192xf32> -> vector<512x192xf32>
    %c0_3 = arith.constant 0 : index
    %c0_4 = arith.constant 0 : index
    %3 = vector.load %arg3[%c0_3, %c0_4] : memref<512x192xf32, #tpu.memory_space<vmem>>, vector<512x192xf32>
    tpu.vector_store %arg3[%c0_3, %c0_4], %2 {strides = array<i32>} : memref<512x192xf32, #tpu.memory_space<vmem>>, vector<512x192xf32>,
    %cst_5 = arith.constant dense<0.000000e+00> : vector<192xf32>
    %4 = vector.multi_reduction <add>, %2, %cst_5 [0] : vector<512x192xf32> to vector<192xf32>
    %5 = vector.shape_cast %4 : vector<192xf32> to vector<1x192xf32>
    %6 = arith.mulf %2, %2 : vector<512x192xf32>
    %cst_6 = arith.constant dense<0.000000e+00> : vector<192xf32>
    %7 = vector.multi_reduction <add>, %6, %cst_6 [0] : vector<512x192xf32> to vector<192xf32>
    %8 = vector.shape_cast %7 : vector<192xf32> to vector<1x192xf32>
    %9 = tpu.concatenate %5, %8 in 0 : vector<1x192xf32>, vector<1x192xf32> -> vector<2x192xf32>
    %c0_7 = arith.constant 0 : index
    %c0_8 = arith.constant 0 : index
    %c0_9 = arith.constant 0 : index
    %10 = vector.load %arg4[%c0_7, %c0_8, %c0_9] : memref<1x2x192xf32, #tpu.memory_space<vmem>>, vector<1x2x192xf32>
    %11 = vector.shape_cast %10 : vector<1x2x192xf32> to vector<2x192xf32>
    %12 = vector.shape_cast %9 : vector<2x192xf32> to vector<1x2x192xf32>
    tpu.vector_store %arg4[%c0_7, %c0_8, %c0_9], %12 {strides = array<i32>} : memref<1x2x192xf32, #tpu.memory_space<vmem>>, vector<1x2x192xf32>,
    return
  }
  func.func @transform_0(%arg0: i32) -> (i32, i32) {
    %c0_i32 = arith.constant 0 : i32
    %c0_i32_0 = arith.constant 0 : i32
    return %arg0, %c0_i32 : i32, i32
  }
  func.func @transform_1(%arg0: i32) -> (i32, i32) {
    %c0_i32 = arith.constant 0 : i32
    %c0_i32_0 = arith.constant 0 : i32
    %c0_i32_1 = arith.constant 0 : i32
    return %c0_i32, %c0_i32_0 : i32, i32
  }
  func.func @transform_2(%arg0: i32) -> (i32, i32) {
    %c0_i32 = arith.constant 0 : i32
    %c0_i32_0 = arith.constant 0 : i32
    return %arg0, %c0_i32 : i32, i32
  }
  func.func @transform_3(%arg0: i32) -> (i32, i32, i32) {
    %c0_i32 = arith.constant 0 : i32
    %c0_i32_0 = arith.constant 0 : i32
    %c0_i32_1 = arith.constant 0 : i32
    return %arg0, %c0_i32, %c0_i32_0 : i32, i32, i32
  }
}

module attributes {stable_mosaic.version = 11 : i64} {
  func.func @_bn_relu_kernel(%arg0: i32, %arg1: memref<512x192xf32, #tpu.memory_space<vmem>>, %arg2: memref<1x192xf32, #tpu.memory_space<vmem>>, %arg3: memref<1x192xf32, #tpu.memory_space<vmem>>, %arg4: memref<512x192xbf16, #tpu.memory_space<vmem>>) attributes {dimension_semantics = [#tpu.dimension_semantics<parallel>], iteration_bounds = array<i64: 1>, scalar_prefetch = 0 : i64, scratch_operands = 0 : i64, tpu.core_type = #tpu.core_type<tc>, window_params = [{transform_indices = @transform_0, window_bounds = array<i64: 512, 192>}, {pipeline_mode = #tpu.pipeline_mode<synchronous>, transform_indices = @transform_1, window_bounds = array<i64: 1, 192>}, {pipeline_mode = #tpu.pipeline_mode<synchronous>, transform_indices = @transform_2, window_bounds = array<i64: 1, 192>}, {transform_indices = @transform_3, window_bounds = array<i64: 512, 192>}]} {
    %c0 = arith.constant 0 : index
    %c0_0 = arith.constant 0 : index
    %0 = vector.load %arg1[%c0, %c0_0] : memref<512x192xf32, #tpu.memory_space<vmem>>, vector<512x192xf32>
    %c0_1 = arith.constant 0 : index
    %c0_2 = arith.constant 0 : index
    %1 = vector.load %arg2[%c0_1, %c0_2] : memref<1x192xf32, #tpu.memory_space<vmem>>, vector<1x192xf32>
    %2 = vector.broadcast %1 : vector<1x192xf32> to vector<512x192xf32>
    %3 = arith.mulf %0, %2 : vector<512x192xf32>
    %c0_3 = arith.constant 0 : index
    %c0_4 = arith.constant 0 : index
    %4 = vector.load %arg3[%c0_3, %c0_4] : memref<1x192xf32, #tpu.memory_space<vmem>>, vector<1x192xf32>
    %5 = vector.broadcast %4 : vector<1x192xf32> to vector<512x192xf32>
    %6 = arith.addf %3, %5 : vector<512x192xf32>
    %cst = arith.constant 0.000000e+00 : f32
    %7 = vector.broadcast %cst : f32 to vector<512x192xf32>
    %8 = arith.maximumf %6, %7 : vector<512x192xf32>
    %9 = arith.truncf %8 : vector<512x192xf32> to vector<512x192xbf16>
    %c0_5 = arith.constant 0 : index
    %c0_6 = arith.constant 0 : index
    %10 = vector.load %arg4[%c0_5, %c0_6] : memref<512x192xbf16, #tpu.memory_space<vmem>>, vector<512x192xbf16>
    tpu.vector_store %arg4[%c0_5, %c0_6], %9 {strides = array<i32>} : memref<512x192xbf16, #tpu.memory_space<vmem>>, vector<512x192xbf16>,
    return
  }
  func.func @transform_0(%arg0: i32) -> (i32, i32) {
    %c0_i32 = arith.constant 0 : i32
    %c0_i32_0 = arith.constant 0 : i32
    return %arg0, %c0_i32 : i32, i32
  }
  func.func @transform_1(%arg0: i32) -> (i32, i32) {
    %c0_i32 = arith.constant 0 : i32
    %c0_i32_0 = arith.constant 0 : i32
    %c0_i32_1 = arith.constant 0 : i32
    return %c0_i32, %c0_i32_0 : i32, i32
  }
  func.func @transform_2(%arg0: i32) -> (i32, i32) {
    %c0_i32 = arith.constant 0 : i32
    %c0_i32_0 = arith.constant 0 : i32
    %c0_i32_1 = arith.constant 0 : i32
    return %c0_i32, %c0_i32_0 : i32, i32
  }
  func.func @transform_3(%arg0: i32) -> (i32, i32) {
    %c0_i32 = arith.constant 0 : i32
    %c0_i32_0 = arith.constant 0 : i32
    return %arg0, %c0_i32 : i32, i32
  }
}

module attributes {stable_mosaic.version = 11 : i64} {
  func.func @_matmul_stats_kernel(%arg0: i32, %arg1: memref<512x1344xbf16, #tpu.memory_space<vmem>>, %arg2: memref<1344x192xbf16, #tpu.memory_space<vmem>>, %arg3: memref<512x192xf32, #tpu.memory_space<vmem>>, %arg4: memref<1x2x192xf32, #tpu.memory_space<vmem>>) attributes {dimension_semantics = [#tpu.dimension_semantics<parallel>], iteration_bounds = array<i64: 1>, scalar_prefetch = 0 : i64, scratch_operands = 0 : i64, tpu.core_type = #tpu.core_type<tc>, window_params = [{transform_indices = @transform_0, window_bounds = array<i64: 512, 1344>}, {pipeline_mode = #tpu.pipeline_mode<synchronous>, transform_indices = @transform_1, window_bounds = array<i64: 1344, 192>}, {transform_indices = @transform_2, window_bounds = array<i64: 512, 192>}, {transform_indices = @transform_3, window_bounds = array<i64: 1, 2, 192>}]} {
    %c0 = arith.constant 0 : index
    %c0_0 = arith.constant 0 : index
    %0 = vector.load %arg1[%c0, %c0_0] : memref<512x1344xbf16, #tpu.memory_space<vmem>>, vector<512x1344xbf16>
    %c0_1 = arith.constant 0 : index
    %c0_2 = arith.constant 0 : index
    %1 = vector.load %arg2[%c0_1, %c0_2] : memref<1344x192xbf16, #tpu.memory_space<vmem>>, vector<1344x192xbf16>
    %cst = arith.constant dense<0.000000e+00> : vector<512x192xf32>
    %2 = tpu.matmul %0, %1, %cst {dimension_numbers = #tpu.dot_dimension_numbers<[1], [0], [0], [1], [0, 0, 1, 1], [], []>} : vector<512x1344xbf16>, vector<1344x192xbf16>, vector<512x192xf32> -> vector<512x192xf32>
    %c0_3 = arith.constant 0 : index
    %c0_4 = arith.constant 0 : index
    %3 = vector.load %arg3[%c0_3, %c0_4] : memref<512x192xf32, #tpu.memory_space<vmem>>, vector<512x192xf32>
    tpu.vector_store %arg3[%c0_3, %c0_4], %2 {strides = array<i32>} : memref<512x192xf32, #tpu.memory_space<vmem>>, vector<512x192xf32>,
    %cst_5 = arith.constant dense<0.000000e+00> : vector<192xf32>
    %4 = vector.multi_reduction <add>, %2, %cst_5 [0] : vector<512x192xf32> to vector<192xf32>
    %5 = vector.shape_cast %4 : vector<192xf32> to vector<1x192xf32>
    %6 = arith.mulf %2, %2 : vector<512x192xf32>
    %cst_6 = arith.constant dense<0.000000e+00> : vector<192xf32>
    %7 = vector.multi_reduction <add>, %6, %cst_6 [0] : vector<512x192xf32> to vector<192xf32>
    %8 = vector.shape_cast %7 : vector<192xf32> to vector<1x192xf32>
    %9 = tpu.concatenate %5, %8 in 0 : vector<1x192xf32>, vector<1x192xf32> -> vector<2x192xf32>
    %c0_7 = arith.constant 0 : index
    %c0_8 = arith.constant 0 : index
    %c0_9 = arith.constant 0 : index
    %10 = vector.load %arg4[%c0_7, %c0_8, %c0_9] : memref<1x2x192xf32, #tpu.memory_space<vmem>>, vector<1x2x192xf32>
    %11 = vector.shape_cast %10 : vector<1x2x192xf32> to vector<2x192xf32>
    %12 = vector.shape_cast %9 : vector<2x192xf32> to vector<1x2x192xf32>
    tpu.vector_store %arg4[%c0_7, %c0_8, %c0_9], %12 {strides = array<i32>} : memref<1x2x192xf32, #tpu.memory_space<vmem>>, vector<1x2x192xf32>,
    return
  }
  func.func @transform_0(%arg0: i32) -> (i32, i32) {
    %c0_i32 = arith.constant 0 : i32
    %c0_i32_0 = arith.constant 0 : i32
    return %arg0, %c0_i32 : i32, i32
  }
  func.func @transform_1(%arg0: i32) -> (i32, i32) {
    %c0_i32 = arith.constant 0 : i32
    %c0_i32_0 = arith.constant 0 : i32
    %c0_i32_1 = arith.constant 0 : i32
    return %c0_i32, %c0_i32_0 : i32, i32
  }
  func.func @transform_2(%arg0: i32) -> (i32, i32) {
    %c0_i32 = arith.constant 0 : i32
    %c0_i32_0 = arith.constant 0 : i32
    return %arg0, %c0_i32 : i32, i32
  }
  func.func @transform_3(%arg0: i32) -> (i32, i32, i32) {
    %c0_i32 = arith.constant 0 : i32
    %c0_i32_0 = arith.constant 0 : i32
    %c0_i32_1 = arith.constant 0 : i32
    return %arg0, %c0_i32, %c0_i32_0 : i32, i32, i32
  }
}

module attributes {stable_mosaic.version = 11 : i64} {
  func.func @_matmul_stats_kernel(%arg0: i32, %arg1: memref<104x1728xbf16, #tpu.memory_space<vmem>>, %arg2: memref<1728x192xbf16, #tpu.memory_space<vmem>>, %arg3: memref<104x192xf32, #tpu.memory_space<vmem>>, %arg4: memref<1x2x192xf32, #tpu.memory_space<vmem>>) attributes {dimension_semantics = [#tpu.dimension_semantics<parallel>], iteration_bounds = array<i64: 1>, scalar_prefetch = 0 : i64, scratch_operands = 0 : i64, tpu.core_type = #tpu.core_type<tc>, window_params = [{transform_indices = @transform_0, window_bounds = array<i64: 104, 1728>}, {pipeline_mode = #tpu.pipeline_mode<synchronous>, transform_indices = @transform_1, window_bounds = array<i64: 1728, 192>}, {transform_indices = @transform_2, window_bounds = array<i64: 104, 192>}, {transform_indices = @transform_3, window_bounds = array<i64: 1, 2, 192>}]} {
    %c0 = arith.constant 0 : index
    %c0_0 = arith.constant 0 : index
    %0 = vector.load %arg1[%c0, %c0_0] : memref<104x1728xbf16, #tpu.memory_space<vmem>>, vector<104x1728xbf16>
    %c0_1 = arith.constant 0 : index
    %c0_2 = arith.constant 0 : index
    %1 = vector.load %arg2[%c0_1, %c0_2] : memref<1728x192xbf16, #tpu.memory_space<vmem>>, vector<1728x192xbf16>
    %cst = arith.constant dense<0.000000e+00> : vector<104x192xf32>
    %2 = tpu.matmul %0, %1, %cst {dimension_numbers = #tpu.dot_dimension_numbers<[1], [0], [0], [1], [0, 0, 1, 1], [], []>} : vector<104x1728xbf16>, vector<1728x192xbf16>, vector<104x192xf32> -> vector<104x192xf32>
    %c0_3 = arith.constant 0 : index
    %c0_4 = arith.constant 0 : index
    %3 = vector.load %arg3[%c0_3, %c0_4] : memref<104x192xf32, #tpu.memory_space<vmem>>, vector<104x192xf32>
    tpu.vector_store %arg3[%c0_3, %c0_4], %2 {strides = array<i32>} : memref<104x192xf32, #tpu.memory_space<vmem>>, vector<104x192xf32>,
    %cst_5 = arith.constant dense<0.000000e+00> : vector<192xf32>
    %4 = vector.multi_reduction <add>, %2, %cst_5 [0] : vector<104x192xf32> to vector<192xf32>
    %5 = vector.shape_cast %4 : vector<192xf32> to vector<1x192xf32>
    %6 = arith.mulf %2, %2 : vector<104x192xf32>
    %cst_6 = arith.constant dense<0.000000e+00> : vector<192xf32>
    %7 = vector.multi_reduction <add>, %6, %cst_6 [0] : vector<104x192xf32> to vector<192xf32>
    %8 = vector.shape_cast %7 : vector<192xf32> to vector<1x192xf32>
    %9 = tpu.concatenate %5, %8 in 0 : vector<1x192xf32>, vector<1x192xf32> -> vector<2x192xf32>
    %c0_7 = arith.constant 0 : index
    %c0_8 = arith.constant 0 : index
    %c0_9 = arith.constant 0 : index
    %10 = vector.load %arg4[%c0_7, %c0_8, %c0_9] : memref<1x2x192xf32, #tpu.memory_space<vmem>>, vector<1x2x192xf32>
    %11 = vector.shape_cast %10 : vector<1x2x192xf32> to vector<2x192xf32>
    %12 = vector.shape_cast %9 : vector<2x192xf32> to vector<1x2x192xf32>
    tpu.vector_store %arg4[%c0_7, %c0_8, %c0_9], %12 {strides = array<i32>} : memref<1x2x192xf32, #tpu.memory_space<vmem>>, vector<1x2x192xf32>,
    return
  }
  func.func @transform_0(%arg0: i32) -> (i32, i32) {
    %c0_i32 = arith.constant 0 : i32
    %c0_i32_0 = arith.constant 0 : i32
    return %arg0, %c0_i32 : i32, i32
  }
  func.func @transform_1(%arg0: i32) -> (i32, i32) {
    %c0_i32 = arith.constant 0 : i32
    %c0_i32_0 = arith.constant 0 : i32
    %c0_i32_1 = arith.constant 0 : i32
    return %c0_i32, %c0_i32_0 : i32, i32
  }
  func.func @transform_2(%arg0: i32) -> (i32, i32) {
    %c0_i32 = arith.constant 0 : i32
    %c0_i32_0 = arith.constant 0 : i32
    return %arg0, %c0_i32 : i32, i32
  }
  func.func @transform_3(%arg0: i32) -> (i32, i32, i32) {
    %c0_i32 = arith.constant 0 : i32
    %c0_i32_0 = arith.constant 0 : i32
    %c0_i32_1 = arith.constant 0 : i32
    return %arg0, %c0_i32, %c0_i32_0 : i32, i32, i32
  }
}

module attributes {stable_mosaic.version = 11 : i64} {
  func.func @_bn_relu_kernel(%arg0: i32, %arg1: memref<104x192xf32, #tpu.memory_space<vmem>>, %arg2: memref<1x192xf32, #tpu.memory_space<vmem>>, %arg3: memref<1x192xf32, #tpu.memory_space<vmem>>, %arg4: memref<104x192xf32, #tpu.memory_space<vmem>>) attributes {dimension_semantics = [#tpu.dimension_semantics<parallel>], iteration_bounds = array<i64: 1>, scalar_prefetch = 0 : i64, scratch_operands = 0 : i64, tpu.core_type = #tpu.core_type<tc>, window_params = [{transform_indices = @transform_0, window_bounds = array<i64: 104, 192>}, {pipeline_mode = #tpu.pipeline_mode<synchronous>, transform_indices = @transform_1, window_bounds = array<i64: 1, 192>}, {pipeline_mode = #tpu.pipeline_mode<synchronous>, transform_indices = @transform_2, window_bounds = array<i64: 1, 192>}, {transform_indices = @transform_3, window_bounds = array<i64: 104, 192>}]} {
    %c0 = arith.constant 0 : index
    %c0_0 = arith.constant 0 : index
    %0 = vector.load %arg1[%c0, %c0_0] : memref<104x192xf32, #tpu.memory_space<vmem>>, vector<104x192xf32>
    %c0_1 = arith.constant 0 : index
    %c0_2 = arith.constant 0 : index
    %1 = vector.load %arg2[%c0_1, %c0_2] : memref<1x192xf32, #tpu.memory_space<vmem>>, vector<1x192xf32>
    %2 = vector.broadcast %1 : vector<1x192xf32> to vector<104x192xf32>
    %3 = arith.mulf %0, %2 : vector<104x192xf32>
    %c0_3 = arith.constant 0 : index
    %c0_4 = arith.constant 0 : index
    %4 = vector.load %arg3[%c0_3, %c0_4] : memref<1x192xf32, #tpu.memory_space<vmem>>, vector<1x192xf32>
    %5 = vector.broadcast %4 : vector<1x192xf32> to vector<104x192xf32>
    %6 = arith.addf %3, %5 : vector<104x192xf32>
    %cst = arith.constant 0.000000e+00 : f32
    %7 = vector.broadcast %cst : f32 to vector<104x192xf32>
    %8 = arith.maximumf %6, %7 : vector<104x192xf32>
    %c0_5 = arith.constant 0 : index
    %c0_6 = arith.constant 0 : index
    %9 = vector.load %arg4[%c0_5, %c0_6] : memref<104x192xf32, #tpu.memory_space<vmem>>, vector<104x192xf32>
    tpu.vector_store %arg4[%c0_5, %c0_6], %8 {strides = array<i32>} : memref<104x192xf32, #tpu.memory_space<vmem>>, vector<104x192xf32>,
    return
  }
  func.func @transform_0(%arg0: i32) -> (i32, i32) {
    %c0_i32 = arith.constant 0 : i32
    %c0_i32_0 = arith.constant 0 : i32
    return %arg0, %c0_i32 : i32, i32
  }
  func.func @transform_1(%arg0: i32) -> (i32, i32) {
    %c0_i32 = arith.constant 0 : i32
    %c0_i32_0 = arith.constant 0 : i32
    %c0_i32_1 = arith.constant 0 : i32
    return %c0_i32, %c0_i32_0 : i32, i32
  }
  func.func @transform_2(%arg0: i32) -> (i32, i32) {
    %c0_i32 = arith.constant 0 : i32
    %c0_i32_0 = arith.constant 0 : i32
    %c0_i32_1 = arith.constant 0 : i32
    return %c0_i32, %c0_i32_0 : i32, i32
  }
  func.func @transform_3(%arg0: i32) -> (i32, i32) {
    %c0_i32 = arith.constant 0 : i32
    %c0_i32_0 = arith.constant 0 : i32
    return %arg0, %c0_i32 : i32, i32
  }
}

module attributes {stable_mosaic.version = 11 : i64} {
  func.func @_matmul_stats_kernel(%arg0: i32, %arg1: memref<104x1728xbf16, #tpu.memory_space<vmem>>, %arg2: memref<1728x320xbf16, #tpu.memory_space<vmem>>, %arg3: memref<104x320xf32, #tpu.memory_space<vmem>>, %arg4: memref<1x2x320xf32, #tpu.memory_space<vmem>>) attributes {dimension_semantics = [#tpu.dimension_semantics<parallel>], iteration_bounds = array<i64: 1>, scalar_prefetch = 0 : i64, scratch_operands = 0 : i64, tpu.core_type = #tpu.core_type<tc>, window_params = [{transform_indices = @transform_0, window_bounds = array<i64: 104, 1728>}, {pipeline_mode = #tpu.pipeline_mode<synchronous>, transform_indices = @transform_1, window_bounds = array<i64: 1728, 320>}, {transform_indices = @transform_2, window_bounds = array<i64: 104, 320>}, {transform_indices = @transform_3, window_bounds = array<i64: 1, 2, 320>}]} {
    %c0 = arith.constant 0 : index
    %c0_0 = arith.constant 0 : index
    %0 = vector.load %arg1[%c0, %c0_0] : memref<104x1728xbf16, #tpu.memory_space<vmem>>, vector<104x1728xbf16>
    %c0_1 = arith.constant 0 : index
    %c0_2 = arith.constant 0 : index
    %1 = vector.load %arg2[%c0_1, %c0_2] : memref<1728x320xbf16, #tpu.memory_space<vmem>>, vector<1728x320xbf16>
    %cst = arith.constant dense<0.000000e+00> : vector<104x320xf32>
    %2 = tpu.matmul %0, %1, %cst {dimension_numbers = #tpu.dot_dimension_numbers<[1], [0], [0], [1], [0, 0, 1, 1], [], []>} : vector<104x1728xbf16>, vector<1728x320xbf16>, vector<104x320xf32> -> vector<104x320xf32>
    %c0_3 = arith.constant 0 : index
    %c0_4 = arith.constant 0 : index
    %3 = vector.load %arg3[%c0_3, %c0_4] : memref<104x320xf32, #tpu.memory_space<vmem>>, vector<104x320xf32>
    tpu.vector_store %arg3[%c0_3, %c0_4], %2 {strides = array<i32>} : memref<104x320xf32, #tpu.memory_space<vmem>>, vector<104x320xf32>,
    %cst_5 = arith.constant dense<0.000000e+00> : vector<320xf32>
    %4 = vector.multi_reduction <add>, %2, %cst_5 [0] : vector<104x320xf32> to vector<320xf32>
    %5 = vector.shape_cast %4 : vector<320xf32> to vector<1x320xf32>
    %6 = arith.mulf %2, %2 : vector<104x320xf32>
    %cst_6 = arith.constant dense<0.000000e+00> : vector<320xf32>
    %7 = vector.multi_reduction <add>, %6, %cst_6 [0] : vector<104x320xf32> to vector<320xf32>
    %8 = vector.shape_cast %7 : vector<320xf32> to vector<1x320xf32>
    %9 = tpu.concatenate %5, %8 in 0 : vector<1x320xf32>, vector<1x320xf32> -> vector<2x320xf32>
    %c0_7 = arith.constant 0 : index
    %c0_8 = arith.constant 0 : index
    %c0_9 = arith.constant 0 : index
    %10 = vector.load %arg4[%c0_7, %c0_8, %c0_9] : memref<1x2x320xf32, #tpu.memory_space<vmem>>, vector<1x2x320xf32>
    %11 = vector.shape_cast %10 : vector<1x2x320xf32> to vector<2x320xf32>
    %12 = vector.shape_cast %9 : vector<2x320xf32> to vector<1x2x320xf32>
    tpu.vector_store %arg4[%c0_7, %c0_8, %c0_9], %12 {strides = array<i32>} : memref<1x2x320xf32, #tpu.memory_space<vmem>>, vector<1x2x320xf32>,
    return
  }
  func.func @transform_0(%arg0: i32) -> (i32, i32) {
    %c0_i32 = arith.constant 0 : i32
    %c0_i32_0 = arith.constant 0 : i32
    return %arg0, %c0_i32 : i32, i32
  }
  func.func @transform_1(%arg0: i32) -> (i32, i32) {
    %c0_i32 = arith.constant 0 : i32
    %c0_i32_0 = arith.constant 0 : i32
    %c0_i32_1 = arith.constant 0 : i32
    return %c0_i32, %c0_i32_0 : i32, i32
  }
  func.func @transform_2(%arg0: i32) -> (i32, i32) {
    %c0_i32 = arith.constant 0 : i32
    %c0_i32_0 = arith.constant 0 : i32
    return %arg0, %c0_i32 : i32, i32
  }
  func.func @transform_3(%arg0: i32) -> (i32, i32, i32) {
    %c0_i32 = arith.constant 0 : i32
    %c0_i32_0 = arith.constant 0 : i32
    %c0_i32_1 = arith.constant 0 : i32
    return %arg0, %c0_i32, %c0_i32_0 : i32, i32, i32
  }
}

module attributes {stable_mosaic.version = 11 : i64} {
  func.func @_bn_relu_kernel(%arg0: i32, %arg1: memref<104x320xf32, #tpu.memory_space<vmem>>, %arg2: memref<1x320xf32, #tpu.memory_space<vmem>>, %arg3: memref<1x320xf32, #tpu.memory_space<vmem>>, %arg4: memref<104x320xf32, #tpu.memory_space<vmem>>) attributes {dimension_semantics = [#tpu.dimension_semantics<parallel>], iteration_bounds = array<i64: 1>, scalar_prefetch = 0 : i64, scratch_operands = 0 : i64, tpu.core_type = #tpu.core_type<tc>, window_params = [{transform_indices = @transform_0, window_bounds = array<i64: 104, 320>}, {pipeline_mode = #tpu.pipeline_mode<synchronous>, transform_indices = @transform_1, window_bounds = array<i64: 1, 320>}, {pipeline_mode = #tpu.pipeline_mode<synchronous>, transform_indices = @transform_2, window_bounds = array<i64: 1, 320>}, {transform_indices = @transform_3, window_bounds = array<i64: 104, 320>}]} {
    %c0 = arith.constant 0 : index
    %c0_0 = arith.constant 0 : index
    %0 = vector.load %arg1[%c0, %c0_0] : memref<104x320xf32, #tpu.memory_space<vmem>>, vector<104x320xf32>
    %c0_1 = arith.constant 0 : index
    %c0_2 = arith.constant 0 : index
    %1 = vector.load %arg2[%c0_1, %c0_2] : memref<1x320xf32, #tpu.memory_space<vmem>>, vector<1x320xf32>
    %2 = vector.broadcast %1 : vector<1x320xf32> to vector<104x320xf32>
    %3 = arith.mulf %0, %2 : vector<104x320xf32>
    %c0_3 = arith.constant 0 : index
    %c0_4 = arith.constant 0 : index
    %4 = vector.load %arg3[%c0_3, %c0_4] : memref<1x320xf32, #tpu.memory_space<vmem>>, vector<1x320xf32>
    %5 = vector.broadcast %4 : vector<1x320xf32> to vector<104x320xf32>
    %6 = arith.addf %3, %5 : vector<104x320xf32>
    %cst = arith.constant 0.000000e+00 : f32
    %7 = vector.broadcast %cst : f32 to vector<104x320xf32>
    %8 = arith.maximumf %6, %7 : vector<104x320xf32>
    %c0_5 = arith.constant 0 : index
    %c0_6 = arith.constant 0 : index
    %9 = vector.load %arg4[%c0_5, %c0_6] : memref<104x320xf32, #tpu.memory_space<vmem>>, vector<104x320xf32>
    tpu.vector_store %arg4[%c0_5, %c0_6], %8 {strides = array<i32>} : memref<104x320xf32, #tpu.memory_space<vmem>>, vector<104x320xf32>,
    return
  }
  func.func @transform_0(%arg0: i32) -> (i32, i32) {
    %c0_i32 = arith.constant 0 : i32
    %c0_i32_0 = arith.constant 0 : i32
    return %arg0, %c0_i32 : i32, i32
  }
  func.func @transform_1(%arg0: i32) -> (i32, i32) {
    %c0_i32 = arith.constant 0 : i32
    %c0_i32_0 = arith.constant 0 : i32
    %c0_i32_1 = arith.constant 0 : i32
    return %c0_i32, %c0_i32_0 : i32, i32
  }
  func.func @transform_2(%arg0: i32) -> (i32, i32) {
    %c0_i32 = arith.constant 0 : i32
    %c0_i32_0 = arith.constant 0 : i32
    %c0_i32_1 = arith.constant 0 : i32
    return %c0_i32, %c0_i32_0 : i32, i32
  }
  func.func @transform_3(%arg0: i32) -> (i32, i32) {
    %c0_i32 = arith.constant 0 : i32
    %c0_i32_0 = arith.constant 0 : i32
    return %arg0, %c0_i32 : i32, i32
  }
}

module attributes {stable_mosaic.version = 11 : i64} {
  func.func @_maxpool_kernel(%arg0: i32, %arg1: memref<9x104x8xf32, #tpu.memory_space<vmem>>, %arg2: memref<104x8xf32, #tpu.memory_space<vmem>>) attributes {dimension_semantics = [#tpu.dimension_semantics<parallel>], iteration_bounds = array<i64: 1>, scalar_prefetch = 0 : i64, scratch_operands = 0 : i64, tpu.core_type = #tpu.core_type<tc>, window_params = [{transform_indices = @transform_0, window_bounds = array<i64: 9, 104, 8>}, {transform_indices = @transform_1, window_bounds = array<i64: 104, 8>}]} {
    %c0 = arith.constant 0 : index
    %c0_0 = arith.constant 0 : index
    %c0_1 = arith.constant 0 : index
    %0 = vector.load %arg1[%c0, %c0_0, %c0_1] : memref<9x104x8xf32, #tpu.memory_space<vmem>>, vector<9x104x8xf32>
    %cst = arith.constant dense<0xFF800000> : vector<104x8xf32>
    %1 = vector.multi_reduction <maximumf>, %0, %cst [0] : vector<9x104x8xf32> to vector<104x8xf32>
    %c0_2 = arith.constant 0 : index
    %c0_3 = arith.constant 0 : index
    %2 = vector.load %arg2[%c0_2, %c0_3] : memref<104x8xf32, #tpu.memory_space<vmem>>, vector<104x8xf32>
    tpu.vector_store %arg2[%c0_2, %c0_3], %1 {strides = array<i32>} : memref<104x8xf32, #tpu.memory_space<vmem>>, vector<104x8xf32>,
    return
  }
  func.func @transform_0(%arg0: i32) -> (i32, i32, i32) {
    %c0_i32 = arith.constant 0 : i32
    %c0_i32_0 = arith.constant 0 : i32
    %c0_i32_1 = arith.constant 0 : i32
    return %c0_i32, %arg0, %c0_i32_0 : i32, i32, i32
  }
  func.func @transform_1(%arg0: i32) -> (i32, i32) {
    %c0_i32 = arith.constant 0 : i32
    %c0_i32_0 = arith.constant 0 : i32
    return %arg0, %c0_i32 : i32, i32
  }
}

</mosaic_0001>

<bundles_post_ra>
// kernel: reduction_block_b.14
= control target key start
LH: loop header
LB: loop body
LE: loop exit
PB: predicated region body
PF: predicated region fallthrough
CT: control target
= control target key end

     0   :  { %v144_v0 = vlaneseq  ;;  %vm934_vm0 = vcmask 1043456   ;;  %vm935_vm1 = vcmask 523268   ;;  %s2133_s1 = inlined_call_operand.vmem [shape: f32[1,192], index: 1, kind: input, shape index: {}]   ;;  %s2134_s2 = inlined_call_operand.vmem [shape: f32[1,192], index: 2, kind: input, shape index: {}]   ;;  %s2135_s0 = inlined_call_operand.vmem [shape: f32[512,192], index: 0, kind: input, shape index: {}]   ;;  %s2136_s3 = inlined_call_operand.vmem [shape: bf16[512,192], index: 3, kind: output, shape index: {}]  }
   0x1   :  { %v142_v2 = vld [vmem:[%s2133_s1] sm:$0x3]  ;;  %v15_v5 = vld [vmem:[%s2135_s0 + $0x8] sm:$0xff]  ;;  %v16_v8 = vld [vmem:[%s2135_s0 + $0x10] sm:$0xff] }
   0x2   :  { %v145_v1 = vshrl.u32 %v144_v0, 7  ;;  %v282_v3 = vld [vmem:[%s2134_s2] sm:$0x3]  ;;  %v17_v9 = vld [vmem:[%s2135_s0 + $0x18] sm:$0xff]  ;;  %v19_v15 = vld [vmem:[%s2135_s0 + $0x28] sm:$0xff] }
   0x3   :  { %v14_v4 = vld [vmem:[%s2135_s0] sm:$0xff]  ;;  %v20_v16 = vld [vmem:[%s2135_s0 + $0x30] sm:$0xff]  ;;  %v21_v17 = vld [vmem:[%s2135_s0 + $0x38] sm:$0xff] }
   0x4   :  { %v146_v6 = vsub.s32 0, %v145_v1  ;;  %v150_v7 = vsub.s32 1, %v145_v1  ;;  %v18_v10 = vld [vmem:[%s2135_s0 + $0x20] sm:$0xff]  ;;  %v23_v35 = vld [vmem:[%s2135_s0 + $0x48] sm:$0xff]  ;;  %v24_v40 = vld [vmem:[%s2135_s0 + $0x50] sm:$0xff] }
   0x5   :  { %v22_v34 = vld [vmem:[%s2135_s0 + $0x40] sm:$0xff]  ;;  %v25_v41 = vld [vmem:[%s2135_s0 + $0x58] sm:$0xff]  ;;  %vm1221_vm2 = vmor %vm935_vm1, %vm934_vm0 }
   0x6   :  { %v1174_v11 = vrot.slane %v142_v2, %v146_v6  ;;  %v1176_v12 = vrot.slane %v142_v2, %v150_v7  ;;  %v1178_v13 = vrot.slane %v282_v3, %v146_v6  ;;  %v1180_v14 = vrot.slane %v282_v3, %v150_v7  ;;  %v26_v47 = vld [vmem:[%s2135_s0 + $0x60] sm:$0xff]  ;;  %v27_v48 = vld [vmem:[%s2135_s0 + $0x68] sm:$0xff]  ;;  %v28_v53 = vld [vmem:[%s2135_s0 + $0x70] sm:$0xff] }
   0x7   :  { %v29_v54 = vld [vmem:[%s2135_s0 + $0x78] sm:$0xff]  ;;  %v30_v3 = vld [vmem:[%s2135_s0 + $0x80] sm:$0xff] }
   0x8   :  { %v154_v18 = vmul.f32 %v1174_v11, %v14_v4  ;;  %v155_v19 = vmul.f32 %v1176_v12, %v15_v5  ;;  %v156_v20 = vmul.f32 %v1174_v11, %v16_v8  ;;  %v157_v21 = vmul.f32 %v1176_v12, %v17_v9  ;;  %v31_v8 = vld [vmem:[%s2135_s0 + $0x88] sm:$0xff] }
   0x9   :  { %v158_v22 = vmul.f32 %v1174_v11, %v18_v10  ;;  %v159_v23 = vmul.f32 %v1176_v12, %v19_v15  ;;  %v160_v24 = vmul.f32 %v1174_v11, %v20_v16  ;;  %v161_v25 = vmul.f32 %v1176_v12, %v21_v17  ;;  %v32_v17 = vld [vmem:[%s2135_s0 + $0x90] sm:$0xff] }
   0xa   :  { %v294_v26 = vadd.f32 %v1178_v13, %v154_v18  ;;  %v295_v27 = vadd.f32 %v1180_v14, %v155_v19  ;;  %v296_v28 = vadd.f32 %v1178_v13, %v156_v20  ;;  %v297_v29 = vadd.f32 %v1180_v14, %v157_v21  ;;  %v33_v18 = vld [vmem:[%s2135_s0 + $0x98] sm:$0xff] }
   0xb   :  { %v298_v30 = vadd.f32 %v1178_v13, %v158_v22  ;;  %v299_v31 = vadd.f32 %v1180_v14, %v159_v23  ;;  %v300_v32 = vadd.f32 %v1178_v13, %v160_v24  ;;  %v301_v33 = vadd.f32 %v1180_v14, %v161_v25  ;;  %v34_v23 = vld [vmem:[%s2135_s0 + $0xa0] sm:$0xff]  ;;  %v35_v24 = vld [vmem:[%s2135_s0 + $0xa8] sm:$0xff] }
   0xc   :  { %v422_v36 = vmax.f32 %v294_v26, 0.0  ;;  %v423_v37 = vmax.f32 %v295_v27, 0.0  ;;  %v424_v38 = vmax.f32 %v296_v28, 0.0  ;;  %v425_v39 = vmax.f32 %v297_v29, 0.0  ;;  %v36_v29 = vld [vmem:[%s2135_s0 + $0xb0] sm:$0xff] }
   0xd   :  { %v426_v43 = vmax.f32 %v298_v30, 0.0  ;;  %v427_v44 = vmax.f32 %v299_v31, 0.0  ;;  %v428_v45 = vmax.f32 %v300_v32, 0.0  ;;  %v429_v46 = vmax.f32 %v301_v33, 0.0 }
   0xe   :  { %v1069_v49 = vpack.c.bf16 %v423_v37, %v422_v36  ;;  %v1070_v50 = vpack.c.bf16 %v425_v39, %v424_v38  ;;  %v162_v51 = vmul.f32 %v1174_v11, %v22_v34  ;;  %v163_v52 = vmul.f32 %v1176_v12, %v23_v35  ;;  %v37_v34 = vld [vmem:[%s2135_s0 + $0xb8] sm:$0xff]  ;;  %v38_v39 = vld [vmem:[%s2135_s0 + $0xc0] sm:$0xff] }
   0xf   :  { %v1071_v55 = vpack.c.bf16 %v427_v44, %v426_v43  ;;  %v1072_v56 = vpack.c.bf16 %v429_v46, %v428_v45  ;;  %v164_v57 = vmul.f32 %v1174_v11, %v24_v40  ;;  %v165_v58 = vmul.f32 %v1176_v12, %v25_v41 }
  0x10   :  { %937 = vst.msk [vmem:[%s2136_s3] sm:$0xff] %vm1221_vm2, %v1069_v49  ;;  %938 = vst.msk [vmem:[%s2136_s3 + $0x8] sm:$0xff] %vm1221_vm2, %v1070_v50  ;;  %v302_v59 = vadd.f32 %v1178_v13, %v162_v51  ;;  %v303_v60 = vadd.f32 %v1180_v14, %v163_v52  ;;  %v166_v61 = vmul.f32 %v1174_v11, %v26_v47  ;;  %v39_v49 = vld [vmem:[%s2135_s0 + $0xc8] sm:$0xff] }
  0x11   :  { %v167_v62 = vmul.f32 %v1176_v12, %v27_v48  ;;  %939 = vst.msk [vmem:[%s2136_s3 + $0x10] sm:$0xff] %vm1221_vm2, %v1071_v55  ;;  %940 = vst.msk [vmem:[%s2136_s3 + $0x18] sm:$0xff] %vm1221_vm2, %v1072_v56  ;;  %v304_v63 = vadd.f32 %v1178_v13, %v164_v57  ;;  %v305_v0 = vadd.f32 %v1180_v14, %v165_v58  ;;  %v41_v55 = vld [vmem:[%s2135_s0 + $0xd8] sm:$0xff] }
  0x12   :  { %v168_v1 = vmul.f32 %v1174_v11, %v28_v53  ;;  %v169_v2 = vmul.f32 %v1176_v12, %v29_v54  ;;  %v430_v4 = vmax.f32 %v302_v59, 0.0  ;;  %v431_v5 = vmax.f32 %v303_v60, 0.0  ;;  %v40_v54 = vld [vmem:[%s2135_s0 + $0xd0] sm:$0xff]  ;;  %v42_v60 = vld [vmem:[%s2135_s0 + $0xe0] sm:$0xff] }
  0x13   :  { %v306_v6 = vadd.f32 %v1178_v13, %v166_v61  ;;  %v307_v7 = vadd.f32 %v1180_v14, %v167_v62  ;;  %v432_v9 = vmax.f32 %v304_v63, 0.0  ;;  %v433_v10 = vmax.f32 %v305_v0, 0.0  ;;  %v43_v61 = vld [vmem:[%s2135_s0 + $0xe8] sm:$0xff] }
  0x14   :  { %v308_v15 = vadd.f32 %v1178_v13, %v168_v1  ;;  %v309_v16 = vadd.f32 %v1180_v14, %v169_v2  ;;  %v1073_v19 = vpack.c.bf16 %v431_v5, %v430_v4  ;;  %v170_v22 = vmul.f32 %v1174_v11, %v30_v3  ;;  %v44_v2 = vld [vmem:[%s2135_s0 + $0xf0] sm:$0xff] }
  0x15   :  { %v434_v20 = vmax.f32 %v306_v6, 0.0  ;;  %v435_v21 = vmax.f32 %v307_v7, 0.0  ;;  %v1074_v25 = vpack.c.bf16 %v433_v10, %v432_v9  ;;  %v171_v28 = vmul.f32 %v1176_v12, %v31_v8  ;;  %v45_v7 = vld [vmem:[%s2135_s0 + $0xf8] sm:$0xff] }
  0x16   :  { %v436_v26 = vmax.f32 %v308_v15, 0.0  ;;  %v437_v27 = vmax.f32 %v309_v16, 0.0  ;;  %941 = vst.msk [vmem:[%s2136_s3 + $0x20] sm:$0xff] %vm1221_vm2, %v1073_v19  ;;  %v310_v31 = vadd.f32 %v1178_v13, %v170_v22  ;;  %v172_v32 = vmul.f32 %v1174_v11, %v32_v17  ;;  %v46_v16 = vld [vmem:[%s2135_s0 + $0x100] sm:$0xff] }
  0x17   :  { %v1075_v30 = vpack.c.bf16 %v435_v21, %v434_v20  ;;  %v173_v33 = vmul.f32 %v1176_v12, %v33_v18  ;;  %942 = vst.msk [vmem:[%s2136_s3 + $0x28] sm:$0xff] %vm1221_vm2, %v1074_v25  ;;  %v311_v36 = vadd.f32 %v1180_v14, %v171_v28  ;;  %v174_v37 = vmul.f32 %v1174_v11, %v34_v23  ;;  %v47_v25 = vld [vmem:[%s2135_s0 + $0x108] sm:$0xff] }
  0x18   :  { %v1076_v35 = vpack.c.bf16 %v437_v27, %v436_v26  ;;  %v175_v38 = vmul.f32 %v1176_v12, %v35_v24  ;;  %v438_v40 = vmax.f32 %v310_v31, 0.0  ;;  %v312_v41 = vadd.f32 %v1178_v13, %v172_v32  ;;  %v49_v31 = vld [vmem:[%s2135_s0 + $0x118] sm:$0xff] }
  0x19   :  { %943 = vst.msk [vmem:[%s2136_s3 + $0x30] sm:$0xff] %vm1221_vm2, %v1075_v30  ;;  %v313_v43 = vadd.f32 %v1180_v14, %v173_v33  ;;  %v176_v44 = vmul.f32 %v1174_v11, %v36_v29  ;;  %v439_v45 = vmax.f32 %v311_v36, 0.0  ;;  %v314_v46 = vadd.f32 %v1178_v13, %v174_v37  ;;  %v48_v30 = vld [vmem:[%s2135_s0 + $0x110] sm:$0xff]  ;;  %v50_v36 = vld [vmem:[%s2135_s0 + $0x120] sm:$0xff]  ;;  %v51_v37 = vld [vmem:[%s2135_s0 + $0x128] sm:$0xff] }
  0x1a   :  { %944 = vst.msk [vmem:[%s2136_s3 + $0x38] sm:$0xff] %vm1221_vm2, %v1076_v35  ;;  %v315_v47 = vadd.f32 %v1180_v14, %v175_v38  ;;  %v177_v48 = vmul.f32 %v1176_v12, %v37_v34  ;;  %v440_v50 = vmax.f32 %v312_v41, 0.0  ;;  %v178_v53 = vmul.f32 %v1174_v11, %v38_v39 }
  0x1b   :  { %v441_v51 = vmax.f32 %v313_v43, 0.0  ;;  %v316_v52 = vadd.f32 %v1178_v13, %v176_v44  ;;  %v1077_v56 = vpack.c.bf16 %v439_v45, %v438_v40  ;;  %v442_v57 = vmax.f32 %v314_v46, 0.0  ;;  %v52_v43 = vld [vmem:[%s2135_s0 + $0x130] sm:$0xff] }
  0x1c   :  { %v443_v58 = vmax.f32 %v315_v47, 0.0  ;;  %v317_v59 = vadd.f32 %v1180_v14, %v177_v48  ;;  %v179_v0 = vmul.f32 %v1176_v12, %v39_v49  ;;  %v318_v1 = vadd.f32 %v1178_v13, %v178_v53  ;;  %v53_v48 = vld [vmem:[%s2135_s0 + $0x138] sm:$0xff]  ;;  %v54_v53 = vld [vmem:[%s2135_s0 + $0x140] sm:$0xff] }
  0x1d   :  { %v1078_v62 = vpack.c.bf16 %v441_v51, %v440_v50  ;;  %v444_v63 = vmax.f32 %v316_v52, 0.0  ;;  %945 = vst.msk [vmem:[%s2136_s3 + $0x40] sm:$0xff] %vm1221_vm2, %v1077_v56  ;;  %v180_v5 = vmul.f32 %v1174_v11, %v40_v54  ;;  %v181_v6 = vmul.f32 %v1176_v12, %v41_v55 }
  0x1e   :  { %v1079_v3 = vpack.c.bf16 %v443_v58, %v442_v57  ;;  %v445_v4 = vmax.f32 %v317_v59, 0.0  ;;  %v319_v8 = vadd.f32 %v1180_v14, %v179_v0  ;;  %v446_v9 = vmax.f32 %v318_v1, 0.0 }
  0x1f   :  { %946 = vst.msk [vmem:[%s2136_s3 + $0x48] sm:$0xff] %vm1221_vm2, %v1078_v62  ;;  %v182_v10 = vmul.f32 %v1174_v11, %v42_v60  ;;  %v183_v15 = vmul.f32 %v1176_v12, %v43_v61  ;;  %v320_v18 = vadd.f32 %v1178_v13, %v180_v5  ;;  %v321_v19 = vadd.f32 %v1180_v14, %v181_v6  ;;  %v55_v62 = vld [vmem:[%s2135_s0 + $0x148] sm:$0xff] }
  0x20   :  { %947 = vst.msk [vmem:[%s2136_s3 + $0x50] sm:$0xff] %vm1221_vm2, %v1079_v3  ;;  %v1080_v17 = vpack.c.bf16 %v445_v4, %v444_v63  ;;  %v184_v20 = vmul.f32 %v1174_v11, %v44_v2  ;;  %v447_v21 = vmax.f32 %v319_v8, 0.0  ;;  %v185_v24 = vmul.f32 %v1176_v12, %v45_v7  ;;  %v56_v3 = vld [vmem:[%s2135_s0 + $0x150] sm:$0xff]  ;;  %v57_v4 = vld [vmem:[%s2135_s0 + $0x158] sm:$0xff] }
  0x21   :  { %v322_v22 = vadd.f32 %v1178_v13, %v182_v10  ;;  %v323_v23 = vadd.f32 %v1180_v14, %v183_v15  ;;  %v448_v26 = vmax.f32 %v320_v18, 0.0  ;;  %v449_v27 = vmax.f32 %v321_v19, 0.0  ;;  %v59_v10 = vld [vmem:[%s2135_s0 + $0x168] sm:$0xff]  ;;  %v60_v19 = vld [vmem:[%s2135_s0 + $0x170] sm:$0xff] }
  0x22   :  { %948 = vst.msk [vmem:[%s2136_s3 + $0x58] sm:$0xff] %vm1221_vm2, %v1080_v17  ;;  %v324_v28 = vadd.f32 %v1178_v13, %v184_v20  ;;  %v186_v29 = vmul.f32 %v1174_v11, %v46_v16  ;;  %v1081_v32 = vpack.c.bf16 %v447_v21, %v446_v9  ;;  %v325_v35 = vadd.f32 %v1180_v14, %v185_v24  ;;  %v58_v9 = vld [vmem:[%s2135_s0 + $0x160] sm:$0xff]  ;;  %v61_v24 = vld [vmem:[%s2135_s0 + $0x178] sm:$0xff] }
  0x23   :  { %v450_v33 = vmax.f32 %v322_v22, 0.0  ;;  %v451_v34 = vmax.f32 %v323_v23, 0.0  ;;  %v1082_v38 = vpack.c.bf16 %v449_v27, %v448_v26  ;;  %v187_v40 = vmul.f32 %v1176_v12, %v47_v25 }
  0x24   :  { %v452_v39 = vmax.f32 %v324_v28, 0.0  ;;  %v326_v41 = vadd.f32 %v1178_v13, %v186_v29  ;;  %949 = vst.msk [vmem:[%s2136_s3 + $0x60] sm:$0xff] %vm1221_vm2, %v1081_v32  ;;  %v453_v45 = vmax.f32 %v325_v35, 0.0  ;;  %v188_v46 = vmul.f32 %v1174_v11, %v48_v30  ;;  %v62_v29 = vld [vmem:[%s2135_s0 + $0x180] sm:$0xff] }
  0x25   :  { %v1083_v44 = vpack.c.bf16 %v451_v34, %v450_v33  ;;  %v189_v47 = vmul.f32 %v1176_v12, %v49_v31  ;;  %950 = vst.msk [vmem:[%s2136_s3 + $0x68] sm:$0xff] %vm1221_vm2, %v1082_v38  ;;  %v327_v49 = vadd.f32 %v1180_v14, %v187_v40  ;;  %v190_v51 = vmul.f32 %v1174_v11, %v50_v36  ;;  %v63_v38 = vld [vmem:[%s2135_s0 + $0x188] sm:$0xff] }
  0x26   :  { %v454_v50 = vmax.f32 %v326_v41, 0.0  ;;  %v191_v52 = vmul.f32 %v1176_v12, %v51_v37  ;;  %v1084_v54 = vpack.c.bf16 %v453_v45, %v452_v39  ;;  %v328_v55 = vadd.f32 %v1178_v13, %v188_v46  ;;  %v65_v45 = vld [vmem:[%s2135_s0 + $0x198] sm:$0xff] }
  0x27   :  { %951 = vst.msk [vmem:[%s2136_s3 + $0x70] sm:$0xff] %vm1221_vm2, %v1083_v44  ;;  %v329_v56 = vadd.f32 %v1180_v14, %v189_v47  ;;  %v192_v57 = vmul.f32 %v1174_v11, %v52_v43  ;;  %v455_v58 = vmax.f32 %v327_v49, 0.0  ;;  %v330_v59 = vadd.f32 %v1178_v13, %v190_v51  ;;  %v64_v44 = vld [vmem:[%s2135_s0 + $0x190] sm:$0xff]  ;;  %v67_v51 = vld [vmem:[%s2135_s0 + $0x1a8] sm:$0xff] }
  0x28   :  { %v331_v60 = vadd.f32 %v1180_v14, %v191_v52  ;;  %v193_v61 = vmul.f32 %v1176_v12, %v53_v48  ;;  %952 = vst.msk [vmem:[%s2136_s3 + $0x78] sm:$0xff] %vm1221_vm2, %v1084_v54  ;;  %v456_v63 = vmax.f32 %v328_v55, 0.0  ;;  %v194_v2 = vmul.f32 %v1174_v11, %v54_v53 }
  0x29   :  { %v457_v0 = vmax.f32 %v329_v56, 0.0  ;;  %v332_v1 = vadd.f32 %v1178_v13, %v192_v57  ;;  %v1085_v5 = vpack.c.bf16 %v455_v58, %v454_v50  ;;  %v458_v6 = vmax.f32 %v330_v59, 0.0  ;;  %v66_v50 = vld [vmem:[%s2135_s0 + $0x1a0] sm:$0xff]  ;;  %v68_v56 = vld [vmem:[%s2135_s0 + $0x1b0] sm:$0xff] }
  0x2a   :  { %v459_v7 = vmax.f32 %v331_v60, 0.0  ;;  %v333_v8 = vadd.f32 %v1180_v14, %v193_v61  ;;  %v195_v17 = vmul.f32 %v1176_v12, %v55_v62  ;;  %v334_v18 = vadd.f32 %v1178_v13, %v194_v2  ;;  %v69_v61 = vld [vmem:[%s2135_s0 + $0x1b8] sm:$0xff]  ;;  %v70_v2 = vld [vmem:[%s2135_s0 + $0x1c0] sm:$0xff] }
  0x2b   :  { %v1086_v15 = vpack.c.bf16 %v457_v0, %v456_v63  ;;  %v460_v16 = vmax.f32 %v332_v1, 0.0  ;;  %953 = vst.msk [vmem:[%s2136_s3 + $0x80] sm:$0xff] %vm1221_vm2, %v1085_v5  ;;  %v196_v22 = vmul.f32 %v1174_v11, %v56_v3  ;;  %v197_v23 = vmul.f32 %v1176_v12, %v57_v4 }
  0x2c   :  { %v1087_v20 = vpack.c.bf16 %v459_v7, %v458_v6  ;;  %v461_v21 = vmax.f32 %v333_v8, 0.0  ;;  %v335_v25 = vadd.f32 %v1180_v14, %v195_v17  ;;  %v462_v26 = vmax.f32 %v334_v18, 0.0 }
  0x2d   :  { %954 = vst.msk [vmem:[%s2136_s3 + $0x88] sm:$0xff] %vm1221_vm2, %v1086_v15  ;;  %v198_v27 = vmul.f32 %v1174_v11, %v58_v9  ;;  %v199_v28 = vmul.f32 %v1176_v12, %v59_v10  ;;  %v336_v31 = vadd.f32 %v1178_v13, %v196_v22  ;;  %v337_v32 = vadd.f32 %v1180_v14, %v197_v23  ;;  %v71_v15 = vld [vmem:[%s2135_s0 + $0x1c8] sm:$0xff] }
  0x2e   :  { %955 = vst.msk [vmem:[%s2136_s3 + $0x90] sm:$0xff] %vm1221_vm2, %v1087_v20  ;;  %v1088_v30 = vpack.c.bf16 %v461_v21, %v460_v16  ;;  %v200_v33 = vmul.f32 %v1174_v11, %v60_v19  ;;  %v463_v34 = vmax.f32 %v335_v25, 0.0  ;;  %v201_v37 = vmul.f32 %v1176_v12, %v61_v24  ;;  %v72_v20 = vld [vmem:[%s2135_s0 + $0x1d0] sm:$0xff]  ;;  %v73_v21 = vld [vmem:[%s2135_s0 + $0x1d8] sm:$0xff] }
  0x2f   :  { %v338_v35 = vadd.f32 %v1178_v13, %v198_v27  ;;  %v339_v36 = vadd.f32 %v1180_v14, %v199_v28  ;;  %v464_v39 = vmax.f32 %v336_v31, 0.0  ;;  %v465_v40 = vmax.f32 %v337_v32, 0.0  ;;  %v75_v27 = vld [vmem:[%s2135_s0 + $0x1e8] sm:$0xff]  ;;  %v76_v32 = vld [vmem:[%s2135_s0 + $0x1f0] sm:$0xff] }
  0x30   :  { %956 = vst.msk [vmem:[%s2136_s3 + $0x98] sm:$0xff] %vm1221_vm2, %v1088_v30  ;;  %v340_v41 = vadd.f32 %v1178_v13, %v200_v33  ;;  %v202_v43 = vmul.f32 %v1174_v11, %v62_v29  ;;  %v1089_v46 = vpack.c.bf16 %v463_v34, %v462_v26  ;;  %v341_v49 = vadd.f32 %v1180_v14, %v201_v37  ;;  %v74_v26 = vld [vmem:[%s2135_s0 + $0x1e0] sm:$0xff]  ;;  %v77_v37 = vld [vmem:[%s2135_s0 + $0x1f8] sm:$0xff] }
  0x31   :  { %v466_v47 = vmax.f32 %v338_v35, 0.0  ;;  %v467_v48 = vmax.f32 %v339_v36, 0.0  ;;  %v1090_v52 = vpack.c.bf16 %v465_v40, %v464_v39  ;;  %v203_v54 = vmul.f32 %v1176_v12, %v63_v38 }
  0x32   :  { %v468_v53 = vmax.f32 %v340_v41, 0.0  ;;  %v342_v55 = vadd.f32 %v1178_v13, %v202_v43  ;;  %957 = vst.msk [vmem:[%s2136_s3 + $0xa0] sm:$0xff] %vm1221_vm2, %v1089_v46  ;;  %v469_v58 = vmax.f32 %v341_v49, 0.0  ;;  %v204_v59 = vmul.f32 %v1174_v11, %v64_v44  ;;  %v78_v43 = vld [vmem:[%s2135_s0 + $0x200] sm:$0xff] }
  0x33   :  { %v1091_v57 = vpack.c.bf16 %v467_v48, %v466_v47  ;;  %v205_v60 = vmul.f32 %v1176_v12, %v65_v45  ;;  %958 = vst.msk [vmem:[%s2136_s3 + $0xa8] sm:$0xff] %vm1221_vm2, %v1090_v52  ;;  %v343_v62 = vadd.f32 %v1180_v14, %v203_v54  ;;  %v206_v0 = vmul.f32 %v1174_v11, %v66_v50  ;;  %v79_v52 = vld [vmem:[%s2135_s0 + $0x208] sm:$0xff] }
  0x34   :  { %v470_v63 = vmax.f32 %v342_v55, 0.0  ;;  %v207_v1 = vmul.f32 %v1176_v12, %v67_v51  ;;  %v1092_v3 = vpack.c.bf16 %v469_v58, %v468_v53  ;;  %v344_v4 = vadd.f32 %v1178_v13, %v204_v59  ;;  %v81_v58 = vld [vmem:[%s2135_s0 + $0x218] sm:$0xff] }
  0x35   :  { %959 = vst.msk [vmem:[%s2136_s3 + $0xb0] sm:$0xff] %vm1221_vm2, %v1091_v57  ;;  %v345_v5 = vadd.f32 %v1180_v14, %v205_v60  ;;  %v208_v6 = vmul.f32 %v1174_v11, %v68_v56  ;;  %v471_v7 = vmax.f32 %v343_v62, 0.0  ;;  %v346_v8 = vadd.f32 %v1178_v13, %v206_v0  ;;  %v80_v57 = vld [vmem:[%s2135_s0 + $0x210] sm:$0xff]  ;;  %v83_v0 = vld [vmem:[%s2135_s0 + $0x228] sm:$0xff] }
  0x36   :  { %v347_v9 = vadd.f32 %v1180_v14, %v207_v1  ;;  %v209_v10 = vmul.f32 %v1176_v12, %v69_v61  ;;  %960 = vst.msk [vmem:[%s2136_s3 + $0xb8] sm:$0xff] %vm1221_vm2, %v1092_v3  ;;  %v472_v16 = vmax.f32 %v344_v4, 0.0  ;;  %v210_v19 = vmul.f32 %v1174_v11, %v70_v2 }
  0x37   :  { %v473_v17 = vmax.f32 %v345_v5, 0.0  ;;  %v348_v18 = vadd.f32 %v1178_v13, %v208_v6  ;;  %v1093_v22 = vpack.c.bf16 %v471_v7, %v470_v63  ;;  %v474_v23 = vmax.f32 %v346_v8, 0.0  ;;  %v82_v63 = vld [vmem:[%s2135_s0 + $0x220] sm:$0xff]  ;;  %v84_v5 = vld [vmem:[%s2135_s0 + $0x230] sm:$0xff] }
  0x38   :  { %v475_v24 = vmax.f32 %v347_v9, 0.0  ;;  %v349_v25 = vadd.f32 %v1180_v14, %v209_v10  ;;  %v211_v30 = vmul.f32 %v1176_v12, %v71_v15  ;;  %v350_v31 = vadd.f32 %v1178_v13, %v210_v19  ;;  %v85_v10 = vld [vmem:[%s2135_s0 + $0x238] sm:$0xff]  ;;  %v86_v19 = vld [vmem:[%s2135_s0 + $0x240] sm:$0xff] }
  0x39   :  { %v1094_v28 = vpack.c.bf16 %v473_v17, %v472_v16  ;;  %v476_v29 = vmax.f32 %v348_v18, 0.0  ;;  %961 = vst.msk [vmem:[%s2136_s3 + $0xc0] sm:$0xff] %vm1221_vm2, %v1093_v22  ;;  %v212_v35 = vmul.f32 %v1174_v11, %v72_v20  ;;  %v213_v36 = vmul.f32 %v1176_v12, %v73_v21 }
  0x3a   :  { %v1095_v33 = vpack.c.bf16 %v475_v24, %v474_v23  ;;  %v477_v34 = vmax.f32 %v349_v25, 0.0  ;;  %v351_v38 = vadd.f32 %v1180_v14, %v211_v30  ;;  %v478_v39 = vmax.f32 %v350_v31, 0.0 }
  0x3b   :  { %962 = vst.msk [vmem:[%s2136_s3 + $0xc8] sm:$0xff] %vm1221_vm2, %v1094_v28  ;;  %v214_v40 = vmul.f32 %v1174_v11, %v74_v26  ;;  %v215_v41 = vmul.f32 %v1176_v12, %v75_v27  ;;  %v352_v45 = vadd.f32 %v1178_v13, %v212_v35  ;;  %v353_v46 = vadd.f32 %v1180_v14, %v213_v36  ;;  %v87_v28 = vld [vmem:[%s2135_s0 + $0x248] sm:$0xff] }
  0x3c   :  { %963 = vst.msk [vmem:[%s2136_s3 + $0xd0] sm:$0xff] %vm1221_vm2, %v1095_v33  ;;  %v1096_v44 = vpack.c.bf16 %v477_v34, %v476_v29  ;;  %v216_v47 = vmul.f32 %v1174_v11, %v76_v32  ;;  %v479_v48 = vmax.f32 %v351_v38, 0.0  ;;  %v217_v51 = vmul.f32 %v1176_v12, %v77_v37  ;;  %v88_v33 = vld [vmem:[%s2135_s0 + $0x250] sm:$0xff]  ;;  %v89_v34 = vld [vmem:[%s2135_s0 + $0x258] sm:$0xff] }
  0x3d   :  { %v354_v49 = vadd.f32 %v1178_v13, %v214_v40  ;;  %v355_v50 = vadd.f32 %v1180_v14, %v215_v41  ;;  %v480_v53 = vmax.f32 %v352_v45, 0.0  ;;  %v481_v54 = vmax.f32 %v353_v46, 0.0  ;;  %v91_v40 = vld [vmem:[%s2135_s0 + $0x268] sm:$0xff]  ;;  %v92_v46 = vld [vmem:[%s2135_s0 + $0x270] sm:$0xff] }
  0x3e   :  { %964 = vst.msk [vmem:[%s2136_s3 + $0xd8] sm:$0xff] %vm1221_vm2, %v1096_v44  ;;  %v356_v55 = vadd.f32 %v1178_v13, %v216_v47  ;;  %v218_v56 = vmul.f32 %v1174_v11, %v78_v43  ;;  %v1097_v59 = vpack.c.bf16 %v479_v48, %v478_v39  ;;  %v357_v62 = vadd.f32 %v1180_v14, %v217_v51  ;;  %v90_v39 = vld [vmem:[%s2135_s0 + $0x260] sm:$0xff]  ;;  %v93_v51 = vld [vmem:[%s2135_s0 + $0x278] sm:$0xff] }
  0x3f   :  { %v482_v60 = vmax.f32 %v354_v49, 0.0  ;;  %v483_v61 = vmax.f32 %v355_v50, 0.0  ;;  %v1098_v1 = vpack.c.bf16 %v481_v54, %v480_v53  ;;  %v219_v3 = vmul.f32 %v1176_v12, %v79_v52 }
  0x40   :  { %v484_v2 = vmax.f32 %v356_v55, 0.0  ;;  %v358_v4 = vadd.f32 %v1178_v13, %v218_v56  ;;  %965 = vst.msk [vmem:[%s2136_s3 + $0xe0] sm:$0xff] %vm1221_vm2, %v1097_v59  ;;  %v485_v7 = vmax.f32 %v357_v62, 0.0  ;;  %v220_v8 = vmul.f32 %v1174_v11, %v80_v57  ;;  %v94_v56 = vld [vmem:[%s2135_s0 + $0x280] sm:$0xff] }
  0x41   :  { %v1099_v6 = vpack.c.bf16 %v483_v61, %v482_v60  ;;  %v221_v9 = vmul.f32 %v1176_v12, %v81_v58  ;;  %966 = vst.msk [vmem:[%s2136_s3 + $0xe8] sm:$0xff] %vm1221_vm2, %v1098_v1  ;;  %v359_v15 = vadd.f32 %v1180_v14, %v219_v3  ;;  %v222_v17 = vmul.f32 %v1174_v11, %v82_v63  ;;  %v95_v1 = vld [vmem:[%s2135_s0 + $0x288] sm:$0xff] }
  0x42   :  { %v486_v16 = vmax.f32 %v358_v4, 0.0  ;;  %v223_v18 = vmul.f32 %v1176_v12, %v83_v0  ;;  %v1100_v20 = vpack.c.bf16 %v485_v7, %v484_v2  ;;  %v360_v21 = vadd.f32 %v1178_v13, %v220_v8  ;;  %v97_v7 = vld [vmem:[%s2135_s0 + $0x298] sm:$0xff] }
  0x43   :  { %967 = vst.msk [vmem:[%s2136_s3 + $0xf0] sm:$0xff] %vm1221_vm2, %v1099_v6  ;;  %v361_v22 = vadd.f32 %v1180_v14, %v221_v9  ;;  %v224_v23 = vmul.f32 %v1174_v11, %v84_v5  ;;  %v487_v24 = vmax.f32 %v359_v15, 0.0  ;;  %v362_v25 = vadd.f32 %v1178_v13, %v222_v17  ;;  %v96_v6 = vld [vmem:[%s2135_s0 + $0x290] sm:$0xff]  ;;  %v99_v17 = vld [vmem:[%s2135_s0 + $0x2a8] sm:$0xff] }
  0x44   :  { %v363_v26 = vadd.f32 %v1180_v14, %v223_v18  ;;  %v225_v27 = vmul.f32 %v1176_v12, %v85_v10  ;;  %968 = vst.msk [vmem:[%s2136_s3 + $0xf8] sm:$0xff] %vm1221_vm2, %v1100_v20  ;;  %v488_v29 = vmax.f32 %v360_v21, 0.0  ;;  %v226_v32 = vmul.f32 %v1174_v11, %v86_v19 }
  0x45   :  { %v489_v30 = vmax.f32 %v361_v22, 0.0  ;;  %v364_v31 = vadd.f32 %v1178_v13, %v224_v23  ;;  %v1101_v35 = vpack.c.bf16 %v487_v24, %v486_v16  ;;  %v490_v36 = vmax.f32 %v362_v25, 0.0  ;;  %v98_v16 = vld [vmem:[%s2135_s0 + $0x2a0] sm:$0xff]  ;;  %v100_v22 = vld [vmem:[%s2135_s0 + $0x2b0] sm:$0xff] }
  0x46   :  { %v491_v37 = vmax.f32 %v363_v26, 0.0  ;;  %v365_v38 = vadd.f32 %v1180_v14, %v225_v27  ;;  %v227_v44 = vmul.f32 %v1176_v12, %v87_v28  ;;  %v366_v45 = vadd.f32 %v1178_v13, %v226_v32  ;;  %v101_v27 = vld [vmem:[%s2135_s0 + $0x2b8] sm:$0xff]  ;;  %v102_v32 = vld [vmem:[%s2135_s0 + $0x2c0] sm:$0xff] }
  0x47   :  { %v1102_v41 = vpack.c.bf16 %v489_v30, %v488_v29  ;;  %v492_v43 = vmax.f32 %v364_v31, 0.0  ;;  %969 = vst.msk [vmem:[%s2136_s3 + $0x100] sm:$0xff] %vm1221_vm2, %v1101_v35  ;;  %v228_v49 = vmul.f32 %v1174_v11, %v88_v33  ;;  %v229_v50 = vmul.f32 %v1176_v12, %v89_v34 }
  0x48   :  { %v1103_v47 = vpack.c.bf16 %v491_v37, %v490_v36  ;;  %v493_v48 = vmax.f32 %v365_v38, 0.0  ;;  %v367_v52 = vadd.f32 %v1180_v14, %v227_v44  ;;  %v494_v53 = vmax.f32 %v366_v45, 0.0 }
  0x49   :  { %970 = vst.msk [vmem:[%s2136_s3 + $0x108] sm:$0xff] %vm1221_vm2, %v1102_v41  ;;  %v230_v54 = vmul.f32 %v1174_v11, %v90_v39  ;;  %v231_v55 = vmul.f32 %v1176_v12, %v91_v40  ;;  %v368_v58 = vadd.f32 %v1178_v13, %v228_v49  ;;  %v369_v59 = vadd.f32 %v1180_v14, %v229_v50  ;;  %v103_v41 = vld [vmem:[%s2135_s0 + $0x2c8] sm:$0xff] }
  0x4a   :  { %971 = vst.msk [vmem:[%s2136_s3 + $0x110] sm:$0xff] %vm1221_vm2, %v1103_v47  ;;  %v1104_v57 = vpack.c.bf16 %v493_v48, %v492_v43  ;;  %v232_v60 = vmul.f32 %v1174_v11, %v92_v46  ;;  %v495_v61 = vmax.f32 %v367_v52, 0.0  ;;  %v233_v0 = vmul.f32 %v1176_v12, %v93_v51  ;;  %v104_v47 = vld [vmem:[%s2135_s0 + $0x2d0] sm:$0xff]  ;;  %v105_v48 = vld [vmem:[%s2135_s0 + $0x2d8] sm:$0xff] }
  0x4b   :  { %v370_v62 = vadd.f32 %v1178_v13, %v230_v54  ;;  %v371_v63 = vadd.f32 %v1180_v14, %v231_v55  ;;  %v496_v2 = vmax.f32 %v368_v58, 0.0  ;;  %v497_v3 = vmax.f32 %v369_v59, 0.0  ;;  %v107_v54 = vld [vmem:[%s2135_s0 + $0x2e8] sm:$0xff]  ;;  %v108_v59 = vld [vmem:[%s2135_s0 + $0x2f0] sm:$0xff] }
  0x4c   :  { %972 = vst.msk [vmem:[%s2136_s3 + $0x118] sm:$0xff] %vm1221_vm2, %v1104_v57  ;;  %v372_v4 = vadd.f32 %v1178_v13, %v232_v60  ;;  %v234_v5 = vmul.f32 %v1174_v11, %v94_v56  ;;  %v1105_v8 = vpack.c.bf16 %v495_v61, %v494_v53  ;;  %v373_v15 = vadd.f32 %v1180_v14, %v233_v0  ;;  %v106_v53 = vld [vmem:[%s2135_s0 + $0x2e0] sm:$0xff]  ;;  %v109_v0 = vld [vmem:[%s2135_s0 + $0x2f8] sm:$0xff] }
  0x4d   :  { %v498_v9 = vmax.f32 %v370_v62, 0.0  ;;  %v499_v10 = vmax.f32 %v371_v63, 0.0  ;;  %v1106_v18 = vpack.c.bf16 %v497_v3, %v496_v2  ;;  %v235_v20 = vmul.f32 %v1176_v12, %v95_v1 }
  0x4e   :  { %v500_v19 = vmax.f32 %v372_v4, 0.0  ;;  %v374_v21 = vadd.f32 %v1178_v13, %v234_v5  ;;  %973 = vst.msk [vmem:[%s2136_s3 + $0x120] sm:$0xff] %vm1221_vm2, %v1105_v8  ;;  %v501_v24 = vmax.f32 %v373_v15, 0.0  ;;  %v236_v25 = vmul.f32 %v1174_v11, %v96_v6  ;;  %v110_v5 = vld [vmem:[%s2135_s0 + $0x300] sm:$0xff] }
  0x4f   :  { %v1107_v23 = vpack.c.bf16 %v499_v10, %v498_v9  ;;  %v237_v26 = vmul.f32 %v1176_v12, %v97_v7  ;;  %974 = vst.msk [vmem:[%s2136_s3 + $0x128] sm:$0xff] %vm1221_vm2, %v1106_v18  ;;  %v375_v28 = vadd.f32 %v1180_v14, %v235_v20  ;;  %v238_v30 = vmul.f32 %v1174_v11, %v98_v16  ;;  %v111_v18 = vld [vmem:[%s2135_s0 + $0x308] sm:$0xff] }
  0x50   :  { %v502_v29 = vmax.f32 %v374_v21, 0.0  ;;  %v239_v31 = vmul.f32 %v1176_v12, %v99_v17  ;;  %v1108_v33 = vpack.c.bf16 %v501_v24, %v500_v19  ;;  %v376_v34 = vadd.f32 %v1178_v13, %v236_v25  ;;  %v113_v24 = vld [vmem:[%s2135_s0 + $0x318] sm:$0xff] }
  0x51   :  { %975 = vst.msk [vmem:[%s2136_s3 + $0x130] sm:$0xff] %vm1221_vm2, %v1107_v23  ;;  %v377_v35 = vadd.f32 %v1180_v14, %v237_v26  ;;  %v240_v36 = vmul.f32 %v1174_v11, %v100_v22  ;;  %v503_v37 = vmax.f32 %v375_v28, 0.0  ;;  %v378_v38 = vadd.f32 %v1178_v13, %v238_v30  ;;  %v112_v23 = vld [vmem:[%s2135_s0 + $0x310] sm:$0xff]  ;;  %v115_v30 = vld [vmem:[%s2135_s0 + $0x328] sm:$0xff] }
  0x52   :  { %v379_v39 = vadd.f32 %v1180_v14, %v239_v31  ;;  %v241_v40 = vmul.f32 %v1176_v12, %v101_v27  ;;  %976 = vst.msk [vmem:[%s2136_s3 + $0x138] sm:$0xff] %vm1221_vm2, %v1108_v33  ;;  %v504_v43 = vmax.f32 %v376_v34, 0.0  ;;  %v242_v46 = vmul.f32 %v1174_v11, %v102_v32 }
  0x53   :  { %v505_v44 = vmax.f32 %v377_v35, 0.0  ;;  %v380_v45 = vadd.f32 %v1178_v13, %v240_v36  ;;  %v1109_v49 = vpack.c.bf16 %v503_v37, %v502_v29  ;;  %v506_v50 = vmax.f32 %v378_v38, 0.0  ;;  %v114_v29 = vld [vmem:[%s2135_s0 + $0x320] sm:$0xff]  ;;  %v116_v35 = vld [vmem:[%s2135_s0 + $0x330] sm:$0xff] }
  0x54   :  { %v507_v51 = vmax.f32 %v379_v39, 0.0  ;;  %v381_v52 = vadd.f32 %v1180_v14, %v241_v40  ;;  %v243_v57 = vmul.f32 %v1176_v12, %v103_v41  ;;  %v382_v58 = vadd.f32 %v1178_v13, %v242_v46  ;;  %v117_v40 = vld [vmem:[%s2135_s0 + $0x338] sm:$0xff]  ;;  %v118_v46 = vld [vmem:[%s2135_s0 + $0x340] sm:$0xff] }
  0x55   :  { %v1110_v55 = vpack.c.bf16 %v505_v44, %v504_v43  ;;  %v508_v56 = vmax.f32 %v380_v45, 0.0  ;;  %977 = vst.msk [vmem:[%s2136_s3 + $0x140] sm:$0xff] %vm1221_vm2, %v1109_v49  ;;  %v244_v62 = vmul.f32 %v1174_v11, %v104_v47  ;;  %v245_v63 = vmul.f32 %v1176_v12, %v105_v48 }
  0x56   :  { %v1111_v60 = vpack.c.bf16 %v507_v51, %v506_v50  ;;  %v509_v61 = vmax.f32 %v381_v52, 0.0  ;;  %v383_v1 = vadd.f32 %v1180_v14, %v243_v57  ;;  %v510_v2 = vmax.f32 %v382_v58, 0.0 }
  0x57   :  { %978 = vst.msk [vmem:[%s2136_s3 + $0x148] sm:$0xff] %vm1221_vm2, %v1110_v55  ;;  %v246_v3 = vmul.f32 %v1174_v11, %v106_v53  ;;  %v247_v4 = vmul.f32 %v1176_v12, %v107_v54  ;;  %v384_v7 = vadd.f32 %v1178_v13, %v244_v62  ;;  %v385_v8 = vadd.f32 %v1180_v14, %v245_v63  ;;  %v119_v55 = vld [vmem:[%s2135_s0 + $0x348] sm:$0xff] }
  0x58   :  { %979 = vst.msk [vmem:[%s2136_s3 + $0x150] sm:$0xff] %vm1221_vm2, %v1111_v60  ;;  %v1112_v6 = vpack.c.bf16 %v509_v61, %v508_v56  ;;  %v248_v9 = vmul.f32 %v1174_v11, %v108_v59  ;;  %v511_v10 = vmax.f32 %v383_v1, 0.0  ;;  %v249_v17 = vmul.f32 %v1176_v12, %v109_v0  ;;  %v120_v60 = vld [vmem:[%s2135_s0 + $0x350] sm:$0xff]  ;;  %v121_v61 = vld [vmem:[%s2135_s0 + $0x358] sm:$0xff] }
  0x59   :  { %v386_v15 = vadd.f32 %v1178_v13, %v246_v3  ;;  %v387_v16 = vadd.f32 %v1180_v14, %v247_v4  ;;  %v512_v19 = vmax.f32 %v384_v7, 0.0  ;;  %v513_v20 = vmax.f32 %v385_v8, 0.0  ;;  %v123_v3 = vld [vmem:[%s2135_s0 + $0x368] sm:$0xff]  ;;  %v124_v8 = vld [vmem:[%s2135_s0 + $0x370] sm:$0xff] }
  0x5a   :  { %980 = vst.msk [vmem:[%s2136_s3 + $0x158] sm:$0xff] %vm1221_vm2, %v1112_v6  ;;  %v388_v21 = vadd.f32 %v1178_v13, %v248_v9  ;;  %v250_v22 = vmul.f32 %v1174_v11, %v110_v5  ;;  %v1113_v25 = vpack.c.bf16 %v511_v10, %v510_v2  ;;  %v389_v28 = vadd.f32 %v1180_v14, %v249_v17  ;;  %v122_v2 = vld [vmem:[%s2135_s0 + $0x360] sm:$0xff]  ;;  %v125_v17 = vld [vmem:[%s2135_s0 + $0x378] sm:$0xff] }
  0x5b   :  { %v514_v26 = vmax.f32 %v386_v15, 0.0  ;;  %v515_v27 = vmax.f32 %v387_v16, 0.0  ;;  %v1114_v31 = vpack.c.bf16 %v513_v20, %v512_v19  ;;  %v251_v33 = vmul.f32 %v1176_v12, %v111_v18 }
  0x5c   :  { %v516_v32 = vmax.f32 %v388_v21, 0.0  ;;  %v390_v34 = vadd.f32 %v1178_v13, %v250_v22  ;;  %981 = vst.msk [vmem:[%s2136_s3 + $0x160] sm:$0xff] %vm1221_vm2, %v1113_v25  ;;  %v517_v37 = vmax.f32 %v389_v28, 0.0  ;;  %v252_v38 = vmul.f32 %v1174_v11, %v112_v23  ;;  %v126_v22 = vld [vmem:[%s2135_s0 + $0x380] sm:$0xff] }
  0x5d   :  { %v1115_v36 = vpack.c.bf16 %v515_v27, %v514_v26  ;;  %v253_v39 = vmul.f32 %v1176_v12, %v113_v24  ;;  %982 = vst.msk [vmem:[%s2136_s3 + $0x168] sm:$0xff] %vm1221_vm2, %v1114_v31  ;;  %v391_v41 = vadd.f32 %v1180_v14, %v251_v33  ;;  %v254_v44 = vmul.f32 %v1174_v11, %v114_v29  ;;  %v127_v31 = vld [vmem:[%s2135_s0 + $0x388] sm:$0xff] }
  0x5e   :  { %v518_v43 = vmax.f32 %v390_v34, 0.0  ;;  %v255_v45 = vmul.f32 %v1176_v12, %v115_v30  ;;  %v1116_v47 = vpack.c.bf16 %v517_v37, %v516_v32  ;;  %v392_v48 = vadd.f32 %v1178_v13, %v252_v38  ;;  %v129_v37 = vld [vmem:[%s2135_s0 + $0x398] sm:$0xff] }
  0x5f   :  { %983 = vst.msk [vmem:[%s2136_s3 + $0x170] sm:$0xff] %vm1221_vm2, %v1115_v36  ;;  %v393_v49 = vadd.f32 %v1180_v14, %v253_v39  ;;  %v256_v50 = vmul.f32 %v1174_v11, %v116_v35  ;;  %v519_v51 = vmax.f32 %v391_v41, 0.0  ;;  %v394_v52 = vadd.f32 %v1178_v13, %v254_v44  ;;  %v128_v36 = vld [vmem:[%s2135_s0 + $0x390] sm:$0xff]  ;;  %v131_v44 = vld [vmem:[%s2135_s0 + $0x3a8] sm:$0xff] }
  0x60   :  { %v395_v53 = vadd.f32 %v1180_v14, %v255_v45  ;;  %v257_v54 = vmul.f32 %v1176_v12, %v117_v40  ;;  %984 = vst.msk [vmem:[%s2136_s3 + $0x178] sm:$0xff] %vm1221_vm2, %v1116_v47  ;;  %v520_v56 = vmax.f32 %v392_v48, 0.0  ;;  %v258_v59 = vmul.f32 %v1174_v11, %v118_v46 }
  0x61   :  { %v521_v57 = vmax.f32 %v393_v49, 0.0  ;;  %v396_v58 = vadd.f32 %v1178_v13, %v256_v50  ;;  %v1117_v62 = vpack.c.bf16 %v519_v51, %v518_v43  ;;  %v522_v63 = vmax.f32 %v394_v52, 0.0  ;;  %v130_v43 = vld [vmem:[%s2135_s0 + $0x3a0] sm:$0xff]  ;;  %v132_v49 = vld [vmem:[%s2135_s0 + $0x3b0] sm:$0xff] }
  0x62   :  { %v523_v0 = vmax.f32 %v395_v53, 0.0  ;;  %v397_v1 = vadd.f32 %v1180_v14, %v257_v54  ;;  %v259_v6 = vmul.f32 %v1176_v12, %v119_v55  ;;  %v398_v7 = vadd.f32 %v1178_v13, %v258_v59  ;;  %v133_v54 = vld [vmem:[%s2135_s0 + $0x3b8] sm:$0xff]  ;;  %v134_v59 = vld [vmem:[%s2135_s0 + $0x3c0] sm:$0xff] }
  0x63   :  { %v1118_v4 = vpack.c.bf16 %v521_v57, %v520_v56  ;;  %v524_v5 = vmax.f32 %v396_v58, 0.0  ;;  %985 = vst.msk [vmem:[%s2136_s3 + $0x180] sm:$0xff] %vm1221_vm2, %v1117_v62  ;;  %v260_v15 = vmul.f32 %v1174_v11, %v120_v60  ;;  %v261_v16 = vmul.f32 %v1176_v12, %v121_v61 }
  0x64   :  { %v1119_v9 = vpack.c.bf16 %v523_v0, %v522_v63  ;;  %v525_v10 = vmax.f32 %v397_v1, 0.0  ;;  %v399_v18 = vadd.f32 %v1180_v14, %v259_v6  ;;  %v526_v19 = vmax.f32 %v398_v7, 0.0 }
  0x65   :  { %986 = vst.msk [vmem:[%s2136_s3 + $0x188] sm:$0xff] %vm1221_vm2, %v1118_v4  ;;  %v262_v20 = vmul.f32 %v1174_v11, %v122_v2  ;;  %v263_v21 = vmul.f32 %v1176_v12, %v123_v3  ;;  %v400_v24 = vadd.f32 %v1178_v13, %v260_v15  ;;  %v401_v25 = vadd.f32 %v1180_v14, %v261_v16  ;;  %v135_v4 = vld [vmem:[%s2135_s0 + $0x3c8] sm:$0xff] }
  0x66   :  { %987 = vst.msk [vmem:[%s2136_s3 + $0x190] sm:$0xff] %vm1221_vm2, %v1119_v9  ;;  %v1120_v23 = vpack.c.bf16 %v525_v10, %v524_v5  ;;  %v264_v26 = vmul.f32 %v1174_v11, %v124_v8  ;;  %v527_v27 = vmax.f32 %v399_v18, 0.0  ;;  %v265_v30 = vmul.f32 %v1176_v12, %v125_v17  ;;  %v136_v9 = vld [vmem:[%s2135_s0 + $0x3d0] sm:$0xff]  ;;  %v137_v10 = vld [vmem:[%s2135_s0 + $0x3d8] sm:$0xff] }
  0x67   :  { %v402_v28 = vadd.f32 %v1178_v13, %v262_v20  ;;  %v403_v29 = vadd.f32 %v1180_v14, %v263_v21  ;;  %v528_v32 = vmax.f32 %v400_v24, 0.0  ;;  %v529_v33 = vmax.f32 %v401_v25, 0.0  ;;  %v139_v20 = vld [vmem:[%s2135_s0 + $0x3e8] sm:$0xff]  ;;  %v140_v25 = vld [vmem:[%s2135_s0 + $0x3f0] sm:$0xff] }
  0x68   :  { %988 = vst.msk [vmem:[%s2136_s3 + $0x198] sm:$0xff] %vm1221_vm2, %v1120_v23  ;;  %v404_v34 = vadd.f32 %v1178_v13, %v264_v26  ;;  %v266_v35 = vmul.f32 %v1174_v11, %v126_v22  ;;  %v1121_v38 = vpack.c.bf16 %v527_v27, %v526_v19  ;;  %v405_v41 = vadd.f32 %v1180_v14, %v265_v30  ;;  %v138_v19 = vld [vmem:[%s2135_s0 + $0x3e0] sm:$0xff]  ;;  %v141_v30 = vld [vmem:[%s2135_s0 + $0x3f8] sm:$0xff] }
  0x69   :  { %v530_v39 = vmax.f32 %v402_v28, 0.0  ;;  %v531_v40 = vmax.f32 %v403_v29, 0.0  ;;  %v1122_v45 = vpack.c.bf16 %v529_v33, %v528_v32  ;;  %v267_v47 = vmul.f32 %v1176_v12, %v127_v31 }
  0x6a   :  { %v532_v46 = vmax.f32 %v404_v34, 0.0  ;;  %v406_v48 = vadd.f32 %v1178_v13, %v266_v35  ;;  %989 = vst.msk [vmem:[%s2136_s3 + $0x1a0] sm:$0xff] %vm1221_vm2, %v1121_v38  ;;  %v533_v51 = vmax.f32 %v405_v41, 0.0  ;;  %v268_v52 = vmul.f32 %v1174_v11, %v128_v36 }
  0x6b   :  { %v1123_v50 = vpack.c.bf16 %v531_v40, %v530_v39  ;;  %v269_v53 = vmul.f32 %v1176_v12, %v129_v37  ;;  %990 = vst.msk [vmem:[%s2136_s3 + $0x1a8] sm:$0xff] %vm1221_vm2, %v1122_v45  ;;  %v407_v55 = vadd.f32 %v1180_v14, %v267_v47  ;;  %v270_v57 = vmul.f32 %v1174_v11, %v130_v43 }
  0x6c   :  { %v534_v56 = vmax.f32 %v406_v48, 0.0  ;;  %v271_v58 = vmul.f32 %v1176_v12, %v131_v44  ;;  %v1124_v60 = vpack.c.bf16 %v533_v51, %v532_v46  ;;  %v408_v61 = vadd.f32 %v1178_v13, %v268_v52 }
  0x6d   :  { %991 = vst.msk [vmem:[%s2136_s3 + $0x1b0] sm:$0xff] %vm1221_vm2, %v1123_v50  ;;  %v409_v62 = vadd.f32 %v1180_v14, %v269_v53  ;;  %v272_v63 = vmul.f32 %v1174_v11, %v132_v49  ;;  %v535_v0 = vmax.f32 %v407_v55, 0.0  ;;  %v410_v1 = vadd.f32 %v1178_v13, %v270_v57 }
  0x6e   :  { %v411_v2 = vadd.f32 %v1180_v14, %v271_v58  ;;  %v273_v3 = vmul.f32 %v1176_v12, %v133_v54  ;;  %992 = vst.msk [vmem:[%s2136_s3 + $0x1b8] sm:$0xff] %vm1221_vm2, %v1124_v60  ;;  %v536_v5 = vmax.f32 %v408_v61, 0.0  ;;  %v274_v8 = vmul.f32 %v1174_v11, %v134_v59 }
  0x6f   :  { %v537_v6 = vmax.f32 %v409_v62, 0.0  ;;  %v412_v7 = vadd.f32 %v1178_v13, %v272_v63  ;;  %v1125_v15 = vpack.c.bf16 %v535_v0, %v534_v56  ;;  %v538_v16 = vmax.f32 %v410_v1, 0.0 }
  0x70   :  { %v539_v17 = vmax.f32 %v411_v2, 0.0  ;;  %v413_v18 = vadd.f32 %v1180_v14, %v273_v3  ;;  %v275_v23 = vmul.f32 %v1176_v12, %v135_v4  ;;  %v414_v24 = vadd.f32 %v1178_v13, %v274_v8 }
  0x71   :  { %v1126_v21 = vpack.c.bf16 %v537_v6, %v536_v5  ;;  %v540_v22 = vmax.f32 %v412_v7, 0.0  ;;  %993 = vst.msk [vmem:[%s2136_s3 + $0x1c0] sm:$0xff] %vm1221_vm2, %v1125_v15  ;;  %v276_v28 = vmul.f32 %v1174_v11, %v136_v9  ;;  %v277_v29 = vmul.f32 %v1176_v12, %v137_v10 }
  0x72   :  { %v1127_v26 = vpack.c.bf16 %v539_v17, %v538_v16  ;;  %v541_v27 = vmax.f32 %v413_v18, 0.0  ;;  %v415_v31 = vadd.f32 %v1180_v14, %v275_v23  ;;  %v542_v32 = vmax.f32 %v414_v24, 0.0 }
  0x73   :  { %994 = vst.msk [vmem:[%s2136_s3 + $0x1c8] sm:$0xff] %vm1221_vm2, %v1126_v21  ;;  %v278_v33 = vmul.f32 %v1174_v11, %v138_v19  ;;  %v279_v34 = vmul.f32 %v1176_v12, %v139_v20  ;;  %v416_v36 = vadd.f32 %v1178_v13, %v276_v28  ;;  %v417_v37 = vadd.f32 %v1180_v14, %v277_v29 }
  0x74   :  { %995 = vst.msk [vmem:[%s2136_s3 + $0x1d0] sm:$0xff] %vm1221_vm2, %v1127_v26  ;;  %v1128_v35 = vpack.c.bf16 %v541_v27, %v540_v22  ;;  %v280_v38 = vmul.f32 %v1174_v11, %v140_v25  ;;  %v543_v39 = vmax.f32 %v415_v31, 0.0  ;;  %v281_v43 = vmul.f32 %v1176_v12, %v141_v30 }
  0x75   :  { %v418_v40 = vadd.f32 %v1178_v13, %v278_v33  ;;  %v419_v41 = vadd.f32 %v1180_v14, %v279_v34  ;;  %v544_v44 = vmax.f32 %v416_v36, 0.0  ;;  %v545_v45 = vmax.f32 %v417_v37, 0.0 }
  0x76   :  { %996 = vst.msk [vmem:[%s2136_s3 + $0x1d8] sm:$0xff] %vm1221_vm2, %v1128_v35  ;;  %v420_v46 = vadd.f32 %v1178_v13, %v280_v38  ;;  %v1129_v47 = vpack.c.bf16 %v543_v39, %v542_v32  ;;  %v421_v49 = vadd.f32 %v1180_v14, %v281_v43 }
  0x77   :  { %v546_v48 = vmax.f32 %v418_v40, 0.0  ;;  %v547_v11 = vmax.f32 %v419_v41, 0.0  ;;  %v1130_v50 = vpack.c.bf16 %v545_v45, %v544_v44 }
  0x78   :  { %v548_v51 = vmax.f32 %v420_v46, 0.0  ;;  %997 = vst.msk [vmem:[%s2136_s3 + $0x1e0] sm:$0xff] %vm1221_vm2, %v1129_v47  ;;  %v549_v52 = vmax.f32 %v421_v49, 0.0 }
  0x79   :  { %v1131_v12 = vpack.c.bf16 %v547_v11, %v546_v48  ;;  %998 = vst.msk [vmem:[%s2136_s3 + $0x1e8] sm:$0xff] %vm1221_vm2, %v1130_v50 }
  0x7a   :  { %v1132_v13 = vpack.c.bf16 %v549_v52, %v548_v51 }
  0x7b   :  { %999 = vst.msk [vmem:[%s2136_s3 + $0x1f0] sm:$0xff] %vm1221_vm2, %v1131_v12 }
  0x7c   :  { %1000 = vst.msk [vmem:[%s2136_s3 + $0x1f8] sm:$0xff] %vm1221_vm2, %v1132_v13 }

// kernel: reduction_block_b.13
= control target key start
LH: loop header
LB: loop body
LE: loop exit
PB: predicated region body
PF: predicated region fallthrough
CT: control target
= control target key end

     0   :  { %vm341_vm0 = vcmask 1043456   ;;  %v1493_v1 = vmov 0   ;;  %vm244_vm1 = vcmask 64512   ;;  %vm702_vm2 = vcmask 523264   ;;  %s2641_s1 = inlined_call_operand.vmem [shape: bf16[8,192], index: 1, kind: input, shape index: {}]   ;;  %s2642_s0 = inlined_call_operand.vmem [shape: bf16[512,8], index: 0, kind: input, shape index: {}]   ;;  %s2643_s2 = inlined_call_operand.vmem [shape: f32[512,192], index: 2, kind: output, shape index: {0}]   ;;  %s2644_s3 = inlined_call_operand.vmem [shape: f32[1,2,192], index: 3, kind: output, shape index: {1}]  }
   0x1   :  { %v78_v0 = vld [vmem:[%s2641_s1] sm:$0xff]  ;;  %380 = vmatprep.mubr.bf16.mxu0 %v1493_v1  ;;  %540 = vmatprep.mubr.bf16.mxu1 %v1493_v1  ;;  %v1462_v7 = vld [vmem:[%s2642_s0 + $0x8] sm:$0xff]   ;;  %v1463_v9 = vld [vmem:[%s2642_s0 + $0x10] sm:$0xff]   ;;  %vm1362_vm3 = vcmask 1040384   ;;  %vm1376_vm4 = vcmask 1041408   ;;  %vm1377_vm5 = vcmask 519170  }
   0x2   :  { %v1421_v2 = vcombine.high %v78_v0, %v78_v0  ;;  %v1420_v3 = vcombine.low %v78_v0, %v78_v0  ;;  %v1461_v5 = vld [vmem:[%s2642_s0] sm:$0xff]   ;;  %v1471_v8 = vld [vmem:[%s2642_s0 + $0x88] sm:$0xff]   ;;  %v1473_v10 = vld [vmem:[%s2642_s0 + $0x90] sm:$0xff]  }
   0x3   :  { %v1469_v6 = vld [vmem:[%s2642_s0 + $0x80] sm:$0xff]   ;;  %v1464_v11 = vld [vmem:[%s2642_s0 + $0x18] sm:$0xff]   ;;  %v1466_v15 = vld [vmem:[%s2642_s0 + $0x28] sm:$0xff]  }
   0x4   :  { %1422 = vmatprep.subr.msk.bf16.mxu0 %vm341_vm0, %v1421_v2  ;;  %v343_v4 = vsel %vm341_vm0, %v1420_v3, 0  ;;  %1455 = vmatprep.subr.msk.bf16.mxu1 %vm341_vm0, %v1421_v2  ;;  %v1475_v12 = vld [vmem:[%s2642_s0 + $0x98] sm:$0xff]   ;;  %v1465_v13 = vld [vmem:[%s2642_s0 + $0x20] sm:$0xff]   ;;  %v1479_v16 = vld [vmem:[%s2642_s0 + $0xa8] sm:$0xff]  }
   0x5   :  { %349 = vmatpush1.bf16.msra.mxu0 %v343_v4  ;;  %1456 = vmatpush1.bf16.msra.mxu1 %v343_v4  ;;  %v1477_v14 = vld [vmem:[%s2642_s0 + $0xa0] sm:$0xff]   ;;  %v1467_v17 = vld [vmem:[%s2642_s0 + $0x30] sm:$0xff]   ;;  %v1468_v19 = vld [vmem:[%s2642_s0 + $0x38] sm:$0xff]  }
   0x6   :  { %v1481_v18 = vld [vmem:[%s2642_s0 + $0xb0] sm:$0xff]   ;;  %v1483_v20 = vld [vmem:[%s2642_s0 + $0xb8] sm:$0xff]   ;;  %v1470_v21 = vld [vmem:[%s2642_s0 + $0x40] sm:$0xff]  }
   0x7   :  { %v1485_v22 = vld [vmem:[%s2642_s0 + $0xc0] sm:$0xff]   ;;  %v1472_v23 = vld [vmem:[%s2642_s0 + $0x48] sm:$0xff]   ;;  %v1474_v25 = vld [vmem:[%s2642_s0 + $0x50] sm:$0xff]  }
   0x8   :  { %1423 = vmatmul.mubr.msk.bf16.vlgmr.msra.gmra.mrb[0].mxu0 %vm244_vm1, %v1461_v5  ;;  %1439 = vmatmul.mubr.msk.bf16.vlgmr.msra.gmra.mrb[0].mxu1 %vm244_vm1, %v1469_v6  ;;  %v1486_v24 = vld [vmem:[%s2642_s0 + $0xc8] sm:$0xff]   ;;  %v1487_v26 = vld [vmem:[%s2642_s0 + $0xd0] sm:$0xff]   ;;  %v1476_v27 = vld [vmem:[%s2642_s0 + $0x58] sm:$0xff]  }
   0x9   :  { %390 = vmatprep.mubr.bf16.mxu0 %v1493_v1  ;;  %550 = vmatprep.mubr.bf16.mxu1 %v1493_v1  ;;  %v1488_v28 = vld [vmem:[%s2642_s0 + $0xd8] sm:$0xff]   ;;  %v1478_v29 = vld [vmem:[%s2642_s0 + $0x60] sm:$0xff]   ;;  %v1480_v31 = vld [vmem:[%s2642_s0 + $0x68] sm:$0xff]  }
   0xa   :  { %v1489_v30 = vld [vmem:[%s2642_s0 + $0xe0] sm:$0xff]   ;;  %v1490_v32 = vld [vmem:[%s2642_s0 + $0xe8] sm:$0xff]   ;;  %v1482_v33 = vld [vmem:[%s2642_s0 + $0x70] sm:$0xff]  }
   0xb   :  { %v1491_v34 = vld [vmem:[%s2642_s0 + $0xf0] sm:$0xff]   ;;  %v1484_v35 = vld [vmem:[%s2642_s0 + $0x78] sm:$0xff]   ;;  %vm1378_vm6 = vmor %vm1377_vm5, %vm1376_vm4 }
   0xc   :  { %v1492_v36 = vld [vmem:[%s2642_s0 + $0xf8] sm:$0xff]  }
  0x10   :  { %1424 = vmatmul.mubr.msk.bf16.gmra.mrb[4].mxu0 %vm244_vm1, %v1462_v7  ;;  %1440 = vmatmul.mubr.msk.bf16.gmra.mrb[4].mxu1 %vm244_vm1, %v1471_v8 }
  0x11   :  { %400 = vmatprep.mubr.bf16.mxu0 %v1493_v1  ;;  %560 = vmatprep.mubr.bf16.mxu1 %v1493_v1 }
  0x18   :  { %1425 = vmatmul.mubr.msk.bf16.gmra.mrb[8].mxu0 %vm244_vm1, %v1463_v9  ;;  %1441 = vmatmul.mubr.msk.bf16.gmra.mrb[8].mxu1 %vm244_vm1, %v1473_v10 }
  0x19   :  { %410 = vmatprep.mubr.bf16.mxu0 %v1493_v1  ;;  %570 = vmatprep.mubr.bf16.mxu1 %v1493_v1 }
  0x20   :  { %1426 = vmatmul.mubr.msk.bf16.gmra.mrb[12].mxu0 %vm244_vm1, %v1464_v11  ;;  %1442 = vmatmul.mubr.msk.bf16.gmra.mrb[12].mxu1 %vm244_vm1, %v1475_v12 }
  0x21   :  { %420 = vmatprep.mubr.bf16.mxu0 %v1493_v1  ;;  %580 = vmatprep.mubr.bf16.mxu1 %v1493_v1 }
  0x28   :  { %1427 = vmatmul.mubr.msk.bf16.gmra.mrb[16].mxu0 %vm244_vm1, %v1465_v13  ;;  %1443 = vmatmul.mubr.msk.bf16.gmra.mrb[16].mxu1 %vm244_vm1, %v1477_v14 }
  0x29   :  { %430 = vmatprep.mubr.bf16.mxu0 %v1493_v1  ;;  %590 = vmatprep.mubr.bf16.mxu1 %v1493_v1 }
  0x30   :  { %1428 = vmatmul.mubr.msk.bf16.gmra.mrb[20].mxu0 %vm244_vm1, %v1466_v15  ;;  %1444 = vmatmul.mubr.msk.bf16.gmra.mrb[20].mxu1 %vm244_vm1, %v1479_v16 }
  0x31   :  { %440 = vmatprep.mubr.bf16.mxu0 %v1493_v1  ;;  %600 = vmatprep.mubr.bf16.mxu1 %v1493_v1 }
  0x38   :  { %1429 = vmatmul.mubr.msk.bf16.gmra.mrb[24].mxu0 %vm244_vm1, %v1467_v17  ;;  %1445 = vmatmul.mubr.msk.bf16.gmra.mrb[24].mxu1 %vm244_vm1, %v1481_v18 }
  0x39   :  { %450 = vmatprep.mubr.bf16.mxu0 %v1493_v1  ;;  %610 = vmatprep.mubr.bf16.mxu1 %v1493_v1 }
  0x40   :  { %1430 = vmatmul.mubr.msk.bf16.gmra.mrb[28].mxu0 %vm244_vm1, %v1468_v19  ;;  %1446 = vmatmul.mubr.msk.bf16.gmra.mrb[28].mxu1 %vm244_vm1, %v1483_v20 }
  0x41   :  { %460 = vmatprep.mubr.bf16.mxu0 %v1493_v1  ;;  %620 = vmatprep.mubr.bf16.mxu1 %v1493_v1 }
  0x48   :  { %1431 = vmatmul.mubr.msk.bf16.gmra.mrb[32].mxu0 %vm244_vm1, %v1470_v21  ;;  %1447 = vmatmul.mubr.msk.bf16.gmra.mrb[32].mxu1 %vm244_vm1, %v1485_v22 }
  0x49   :  { %470 = vmatprep.mubr.bf16.mxu0 %v1493_v1  ;;  %630 = vmatprep.mubr.bf16.mxu1 %v1493_v1 }
  0x50   :  { %1432 = vmatmul.mubr.msk.bf16.gmra.mrb[36].mxu0 %vm244_vm1, %v1472_v23  ;;  %1448 = vmatmul.mubr.msk.bf16.gmra.mrb[36].mxu1 %vm244_vm1, %v1486_v24 }
  0x51   :  { %480 = vmatprep.mubr.bf16.mxu0 %v1493_v1  ;;  %640 = vmatprep.mubr.bf16.mxu1 %v1493_v1 }
  0x58   :  { %1433 = vmatmul.mubr.msk.bf16.gmra.mrb[40].mxu0 %vm244_vm1, %v1474_v25  ;;  %1449 = vmatmul.mubr.msk.bf16.gmra.mrb[40].mxu1 %vm244_vm1, %v1487_v26 }
  0x59   :  { %490 = vmatprep.mubr.bf16.mxu0 %v1493_v1  ;;  %650 = vmatprep.mubr.bf16.mxu1 %v1493_v1 }
  0x60   :  { %1434 = vmatmul.mubr.msk.bf16.gmra.mrb[44].mxu0 %vm244_vm1, %v1476_v27  ;;  %1450 = vmatmul.mubr.msk.bf16.gmra.mrb[44].mxu1 %vm244_vm1, %v1488_v28 }
  0x61   :  { %500 = vmatprep.mubr.bf16.mxu0 %v1493_v1  ;;  %660 = vmatprep.mubr.bf16.mxu1 %v1493_v1 }
  0x68   :  { %1435 = vmatmul.mubr.msk.bf16.gmra.mrb[48].mxu0 %vm244_vm1, %v1478_v29  ;;  %1451 = vmatmul.mubr.msk.bf16.gmra.mrb[48].mxu1 %vm244_vm1, %v1489_v30 }
  0x69   :  { %510 = vmatprep.mubr.bf16.mxu0 %v1493_v1  ;;  %670 = vmatprep.mubr.bf16.mxu1 %v1493_v1 }
  0x70   :  { %1436 = vmatmul.mubr.msk.bf16.gmra.mrb[52].mxu0 %vm244_vm1, %v1480_v31  ;;  %1452 = vmatmul.mubr.msk.bf16.gmra.mrb[52].mxu1 %vm244_vm1, %v1490_v32 }
  0x71   :  { %520 = vmatprep.mubr.bf16.mxu0 %v1493_v1  ;;  %680 = vmatprep.mubr.bf16.mxu1 %v1493_v1 }
  0x78   :  { %1437 = vmatmul.mubr.msk.bf16.gmra.mrb[56].mxu0 %vm244_vm1, %v1482_v33  ;;  %1453 = vmatmul.mubr.msk.bf16.gmra.mrb[56].mxu1 %vm244_vm1, %v1491_v34 }
  0x79   :  { %530 = vmatprep.mubr.bf16.mxu0 %v1493_v1  ;;  %690 = vmatprep.mubr.bf16.mxu1 %v1493_v1 }
  0x80   :  { %1438 = vmatmul.mubr.msk.bf16.gmra.mrb[60].mxu0 %vm244_vm1, %v1484_v35  ;;  %1454 = vmatmul.mubr.msk.bf16.gmra.mrb[60].mxu1 %vm244_vm1, %v1492_v36 }
  0xdb   :  { %v382_v37 = vpop.f32.mrb[0].mxu0  ;;  %v1694_v48 = vpop.f32.mrb[0].mxu1 }
  0xdc   :  { %701 = vst [vmem:[%s2643_s2] sm:$0xff] %v382_v37  ;;  %v384_v38 = vpop.f32.mrb[1].mxu0  ;;  %v1032_v41 = vmul.f32 %v382_v37, %v382_v37  ;;  %766 = vst [vmem:[%s2643_s2 + $0x200] sm:$0xff] %v1694_v48  ;;  %v1700_v51 = vpop.f32.mrb[1].mxu1 }
  0xdd   :  { %703 = vst.msk [vmem:[%s2643_s2 + $0x8] sm:$0xff] %vm702_vm2, %v384_v38  ;;  %v1033_v39 = vmul.f32 %v384_v38, %v384_v38  ;;  %v386_v40 = vpop.f32.mrb[2].mxu0  ;;  %v899_v45 = vsel %vm702_vm2, %v384_v38, 0.0  ;;  %767 = vst.msk [vmem:[%s2643_s2 + $0x208] sm:$0xff] %vm702_vm2, %v1700_v51  ;;  %v1709_v54 = vpop.f32.mrb[2].mxu1 }
  0xde   :  { %704 = vst [vmem:[%s2643_s2 + $0x10] sm:$0xff] %v386_v40  ;;  %v830_v42 = vadd.f32 %v386_v40, %v382_v37  ;;  %v1034_v43 = vmul.f32 %v386_v40, %v386_v40  ;;  %v388_v44 = vpop.f32.mrb[3].mxu0  ;;  %768 = vst [vmem:[%s2643_s2 + $0x210] sm:$0xff] %v1709_v54  ;;  %v1715_v56 = vpop.f32.mrb[3].mxu1 }
  0xdf   :  { %705 = vst.msk [vmem:[%s2643_s2 + $0x18] sm:$0xff] %vm702_vm2, %v388_v44  ;;  %v900_v46 = vsel %vm702_vm2, %v388_v44, 0.0  ;;  %v1035_v47 = vmul.f32 %v388_v44, %v388_v44  ;;  %v1229_v52 = vsel %vm702_vm2, %v1033_v39, 0.0  ;;  %769 = vst.msk [vmem:[%s2643_s2 + $0x218] sm:$0xff] %vm702_vm2, %v1715_v56 }
  0xe0   :  { %v1160_v49 = vadd.f32 %v1034_v43, %v1032_v41  ;;  %v901_v50 = vadd.f32 %v900_v46, %v899_v45 }
  0xe1   :  { %v1230_v53 = vsel %vm702_vm2, %v1035_v47, 0.0 }
  0xe2   :  { %v1231_v55 = vadd.f32 %v1230_v53, %v1229_v52 }
  0xe3   :  { %v392_v57 = vpop.f32.mrb[4].mxu0  ;;  %v1739_v8 = vpop.f32.mrb[4].mxu1 }
  0xe4   :  { %706 = vst [vmem:[%s2643_s2 + $0x20] sm:$0xff] %v392_v57  ;;  %v831_v58 = vadd.f32 %v830_v42, %v392_v57  ;;  %v1036_v59 = vmul.f32 %v392_v57, %v392_v57  ;;  %v394_v60 = vpop.f32.mrb[5].mxu0  ;;  %770 = vst [vmem:[%s2643_s2 + $0x220] sm:$0xff] %v1739_v8  ;;  %v1745_v12 = vpop.f32.mrb[5].mxu1 }
  0xe5   :  { %707 = vst.msk [vmem:[%s2643_s2 + $0x28] sm:$0xff] %vm702_vm2, %v394_v60  ;;  %v902_v61 = vsel %vm702_vm2, %v394_v60, 0.0  ;;  %v1037_v62 = vmul.f32 %v394_v60, %v394_v60  ;;  %v396_v63 = vpop.f32.mrb[6].mxu0  ;;  %771 = vst.msk [vmem:[%s2643_s2 + $0x228] sm:$0xff] %vm702_vm2, %v1745_v12  ;;  %v1753_v14 = vpop.f32.mrb[6].mxu1 }
  0xe6   :  { %v1161_v0 = vadd.f32 %v1160_v49, %v1036_v59  ;;  %v903_v1 = vadd.f32 %v902_v61, %v901_v50  ;;  %708 = vst [vmem:[%s2643_s2 + $0x30] sm:$0xff] %v396_v63  ;;  %v832_v2 = vadd.f32 %v831_v58, %v396_v63  ;;  %v1038_v3 = vmul.f32 %v396_v63, %v396_v63  ;;  %v398_v4 = vpop.f32.mrb[7].mxu0  ;;  %v1759_v16 = vpop.f32.mrb[7].mxu1 }
  0xe7   :  { %v1232_v5 = vsel %vm702_vm2, %v1037_v62, 0.0  ;;  %709 = vst.msk [vmem:[%s2643_s2 + $0x38] sm:$0xff] %vm702_vm2, %v398_v4  ;;  %v904_v6 = vsel %vm702_vm2, %v398_v4, 0.0  ;;  %v1039_v7 = vmul.f32 %v398_v4, %v398_v4  ;;  %772 = vst [vmem:[%s2643_s2 + $0x230] sm:$0xff] %v1753_v14 }
  0xe8   :  { %v1233_v9 = vadd.f32 %v1232_v5, %v1231_v55  ;;  %v1162_v10 = vadd.f32 %v1161_v0, %v1038_v3  ;;  %v905_v11 = vadd.f32 %v904_v6, %v903_v1  ;;  %773 = vst.msk [vmem:[%s2643_s2 + $0x238] sm:$0xff] %vm702_vm2, %v1759_v16 }
  0xe9   :  { %v1234_v13 = vsel %vm702_vm2, %v1039_v7, 0.0 }
  0xea   :  { %v1235_v15 = vadd.f32 %v1234_v13, %v1233_v9 }
  0xeb   :  { %v402_v17 = vpop.f32.mrb[8].mxu0  ;;  %v1783_v32 = vpop.f32.mrb[8].mxu1 }
  0xec   :  { %710 = vst [vmem:[%s2643_s2 + $0x40] sm:$0xff] %v402_v17  ;;  %v833_v18 = vadd.f32 %v832_v2, %v402_v17  ;;  %v1040_v19 = vmul.f32 %v402_v17, %v402_v17  ;;  %v404_v20 = vpop.f32.mrb[9].mxu0  ;;  %774 = vst [vmem:[%s2643_s2 + $0x240] sm:$0xff] %v1783_v32  ;;  %v1789_v36 = vpop.f32.mrb[9].mxu1 }
  0xed   :  { %711 = vst.msk [vmem:[%s2643_s2 + $0x48] sm:$0xff] %vm702_vm2, %v404_v20  ;;  %v906_v21 = vsel %vm702_vm2, %v404_v20, 0.0  ;;  %v1041_v22 = vmul.f32 %v404_v20, %v404_v20  ;;  %v406_v23 = vpop.f32.mrb[10].mxu0  ;;  %775 = vst.msk [vmem:[%s2643_s2 + $0x248] sm:$0xff] %vm702_vm2, %v1789_v36  ;;  %v1797_v38 = vpop.f32.mrb[10].mxu1 }
  0xee   :  { %v1163_v24 = vadd.f32 %v1162_v10, %v1040_v19  ;;  %v907_v25 = vadd.f32 %v906_v21, %v905_v11  ;;  %712 = vst [vmem:[%s2643_s2 + $0x50] sm:$0xff] %v406_v23  ;;  %v834_v26 = vadd.f32 %v833_v18, %v406_v23  ;;  %v1042_v27 = vmul.f32 %v406_v23, %v406_v23  ;;  %v408_v28 = vpop.f32.mrb[11].mxu0  ;;  %v1803_v40 = vpop.f32.mrb[11].mxu1 }
  0xef   :  { %v1236_v29 = vsel %vm702_vm2, %v1041_v22, 0.0  ;;  %713 = vst.msk [vmem:[%s2643_s2 + $0x58] sm:$0xff] %vm702_vm2, %v408_v28  ;;  %v908_v30 = vsel %vm702_vm2, %v408_v28, 0.0  ;;  %v1043_v31 = vmul.f32 %v408_v28, %v408_v28  ;;  %776 = vst [vmem:[%s2643_s2 + $0x250] sm:$0xff] %v1797_v38 }
  0xf0   :  { %v1237_v33 = vadd.f32 %v1236_v29, %v1235_v15  ;;  %v1164_v34 = vadd.f32 %v1163_v24, %v1042_v27  ;;  %v909_v35 = vadd.f32 %v908_v30, %v907_v25  ;;  %777 = vst.msk [vmem:[%s2643_s2 + $0x258] sm:$0xff] %vm702_vm2, %v1803_v40 }
  0xf1   :  { %v1238_v37 = vsel %vm702_vm2, %v1043_v31, 0.0 }
  0xf2   :  { %v1239_v39 = vadd.f32 %v1238_v37, %v1237_v33 }
  0xf3   :  { %v412_v41 = vpop.f32.mrb[12].mxu0  ;;  %v1827_v60 = vpop.f32.mrb[12].mxu1 }
  0xf4   :  { %714 = vst [vmem:[%s2643_s2 + $0x60] sm:$0xff] %v412_v41  ;;  %v835_v42 = vadd.f32 %v834_v26, %v412_v41  ;;  %v1044_v43 = vmul.f32 %v412_v41, %v412_v41  ;;  %v414_v44 = vpop.f32.mrb[13].mxu0  ;;  %778 = vst [vmem:[%s2643_s2 + $0x260] sm:$0xff] %v1827_v60  ;;  %v1833_v0 = vpop.f32.mrb[13].mxu1 }
  0xf5   :  { %715 = vst.msk [vmem:[%s2643_s2 + $0x68] sm:$0xff] %vm702_vm2, %v414_v44  ;;  %v910_v45 = vsel %vm702_vm2, %v414_v44, 0.0  ;;  %v1045_v46 = vmul.f32 %v414_v44, %v414_v44  ;;  %v416_v47 = vpop.f32.mrb[14].mxu0  ;;  %779 = vst.msk [vmem:[%s2643_s2 + $0x268] sm:$0xff] %vm702_vm2, %v1833_v0  ;;  %v1841_v2 = vpop.f32.mrb[14].mxu1 }
  0xf6   :  { %v1165_v49 = vadd.f32 %v1164_v34, %v1044_v43  ;;  %v911_v50 = vadd.f32 %v910_v45, %v909_v35  ;;  %716 = vst [vmem:[%s2643_s2 + $0x70] sm:$0xff] %v416_v47  ;;  %v836_v52 = vadd.f32 %v835_v42, %v416_v47  ;;  %v1046_v53 = vmul.f32 %v416_v47, %v416_v47  ;;  %v418_v55 = vpop.f32.mrb[15].mxu0  ;;  %v1847_v4 = vpop.f32.mrb[15].mxu1 }
  0xf7   :  { %v1240_v57 = vsel %vm702_vm2, %v1045_v46, 0.0  ;;  %717 = vst.msk [vmem:[%s2643_s2 + $0x78] sm:$0xff] %vm702_vm2, %v418_v55  ;;  %v912_v58 = vsel %vm702_vm2, %v418_v55, 0.0  ;;  %v1047_v59 = vmul.f32 %v418_v55, %v418_v55  ;;  %780 = vst [vmem:[%s2643_s2 + $0x270] sm:$0xff] %v1841_v2 }
  0xf8   :  { %v1241_v61 = vadd.f32 %v1240_v57, %v1239_v39  ;;  %v1166_v62 = vadd.f32 %v1165_v49, %v1046_v53  ;;  %v913_v63 = vadd.f32 %v912_v58, %v911_v50  ;;  %781 = vst.msk [vmem:[%s2643_s2 + $0x278] sm:$0xff] %vm702_vm2, %v1847_v4 }
  0xf9   :  { %v1242_v1 = vsel %vm702_vm2, %v1047_v59, 0.0 }
  0xfa   :  { %v1243_v3 = vadd.f32 %v1242_v1, %v1241_v61 }
  0xfb   :  { %v422_v5 = vpop.f32.mrb[16].mxu0  ;;  %v1871_v24 = vpop.f32.mrb[16].mxu1 }
  0xfc   :  { %718 = vst [vmem:[%s2643_s2 + $0x80] sm:$0xff] %v422_v5  ;;  %v837_v6 = vadd.f32 %v836_v52, %v422_v5  ;;  %v1048_v7 = vmul.f32 %v422_v5, %v422_v5  ;;  %v424_v9 = vpop.f32.mrb[17].mxu0  ;;  %782 = vst [vmem:[%s2643_s2 + $0x280] sm:$0xff] %v1871_v24  ;;  %v1877_v28 = vpop.f32.mrb[17].mxu1 }
  0xfd   :  { %719 = vst.msk [vmem:[%s2643_s2 + $0x88] sm:$0xff] %vm702_vm2, %v424_v9  ;;  %v914_v10 = vsel %vm702_vm2, %v424_v9, 0.0  ;;  %v1049_v11 = vmul.f32 %v424_v9, %v424_v9  ;;  %v426_v13 = vpop.f32.mrb[18].mxu0  ;;  %783 = vst.msk [vmem:[%s2643_s2 + $0x288] sm:$0xff] %vm702_vm2, %v1877_v28  ;;  %v1885_v30 = vpop.f32.mrb[18].mxu1 }
  0xfe   :  { %v1167_v15 = vadd.f32 %v1166_v62, %v1048_v7  ;;  %v915_v17 = vadd.f32 %v914_v10, %v913_v63  ;;  %720 = vst [vmem:[%s2643_s2 + $0x90] sm:$0xff] %v426_v13  ;;  %v838_v18 = vadd.f32 %v837_v6, %v426_v13  ;;  %v1050_v19 = vmul.f32 %v426_v13, %v426_v13  ;;  %v428_v20 = vpop.f32.mrb[19].mxu0  ;;  %v1891_v33 = vpop.f32.mrb[19].mxu1 }
  0xff   :  { %v1244_v21 = vsel %vm702_vm2, %v1049_v11, 0.0  ;;  %721 = vst.msk [vmem:[%s2643_s2 + $0x98] sm:$0xff] %vm702_vm2, %v428_v20  ;;  %v916_v22 = vsel %vm702_vm2, %v428_v20, 0.0  ;;  %v1051_v23 = vmul.f32 %v428_v20, %v428_v20  ;;  %784 = vst [vmem:[%s2643_s2 + $0x290] sm:$0xff] %v1885_v30 }
 0x100   :  { %v1245_v25 = vadd.f32 %v1244_v21, %v1243_v3  ;;  %v1168_v26 = vadd.f32 %v1167_v15, %v1050_v19  ;;  %v917_v27 = vadd.f32 %v916_v22, %v915_v17  ;;  %785 = vst.msk [vmem:[%s2643_s2 + $0x298] sm:$0xff] %vm702_vm2, %v1891_v33 }
 0x101   :  { %v1246_v29 = vsel %vm702_vm2, %v1051_v23, 0.0 }
 0x102   :  { %v1247_v31 = vadd.f32 %v1246_v29, %v1245_v25 }
 0x103   :  { %v432_v34 = vpop.f32.mrb[20].mxu0  ;;  %v1915_v55 = vpop.f32.mrb[20].mxu1 }
 0x104   :  { %722 = vst [vmem:[%s2643_s2 + $0xa0] sm:$0xff] %v432_v34  ;;  %v839_v35 = vadd.f32 %v838_v18, %v432_v34  ;;  %v1052_v37 = vmul.f32 %v432_v34, %v432_v34  ;;  %v434_v39 = vpop.f32.mrb[21].mxu0  ;;  %786 = vst [vmem:[%s2643_s2 + $0x2a0] sm:$0xff] %v1915_v55  ;;  %v1921_v61 = vpop.f32.mrb[21].mxu1 }
 0x105   :  { %723 = vst.msk [vmem:[%s2643_s2 + $0xa8] sm:$0xff] %vm702_vm2, %v434_v39  ;;  %v918_v41 = vsel %vm702_vm2, %v434_v39, 0.0  ;;  %v1053_v42 = vmul.f32 %v434_v39, %v434_v39  ;;  %v436_v43 = vpop.f32.mrb[22].mxu0  ;;  %787 = vst.msk [vmem:[%s2643_s2 + $0x2a8] sm:$0xff] %vm702_vm2, %v1921_v61  ;;  %v1929_v63 = vpop.f32.mrb[22].mxu1 }
 0x106   :  { %v1169_v44 = vadd.f32 %v1168_v26, %v1052_v37  ;;  %v919_v45 = vadd.f32 %v918_v41, %v917_v27  ;;  %724 = vst [vmem:[%s2643_s2 + $0xb0] sm:$0xff] %v436_v43  ;;  %v840_v46 = vadd.f32 %v839_v35, %v436_v43  ;;  %v1054_v47 = vmul.f32 %v436_v43, %v436_v43  ;;  %v438_v49 = vpop.f32.mrb[23].mxu0  ;;  %v1935_v3 = vpop.f32.mrb[23].mxu1 }
 0x107   :  { %v1248_v50 = vsel %vm702_vm2, %v1053_v42, 0.0  ;;  %725 = vst.msk [vmem:[%s2643_s2 + $0xb8] sm:$0xff] %vm702_vm2, %v438_v49  ;;  %v920_v52 = vsel %vm702_vm2, %v438_v49, 0.0  ;;  %v1055_v53 = vmul.f32 %v438_v49, %v438_v49  ;;  %788 = vst [vmem:[%s2643_s2 + $0x2b0] sm:$0xff] %v1929_v63 }
 0x108   :  { %v1249_v57 = vadd.f32 %v1248_v50, %v1247_v31  ;;  %v1170_v58 = vadd.f32 %v1169_v44, %v1054_v47  ;;  %v921_v59 = vadd.f32 %v920_v52, %v919_v45  ;;  %789 = vst.msk [vmem:[%s2643_s2 + $0x2b8] sm:$0xff] %vm702_vm2, %v1935_v3 }
 0x109   :  { %v1250_v62 = vsel %vm702_vm2, %v1055_v53, 0.0 }
 0x10a   :  { %v1251_v1 = vadd.f32 %v1250_v62, %v1249_v57 }
 0x10b   :  { %v442_v5 = vpop.f32.mrb[24].mxu0  ;;  %v1959_v25 = vpop.f32.mrb[24].mxu1 }
 0x10c   :  { %726 = vst [vmem:[%s2643_s2 + $0xc0] sm:$0xff] %v442_v5  ;;  %v841_v6 = vadd.f32 %v840_v46, %v442_v5  ;;  %v1056_v7 = vmul.f32 %v442_v5, %v442_v5  ;;  %v444_v9 = vpop.f32.mrb[25].mxu0  ;;  %790 = vst [vmem:[%s2643_s2 + $0x2c0] sm:$0xff] %v1959_v25  ;;  %v1965_v31 = vpop.f32.mrb[25].mxu1 }
 0x10d   :  { %727 = vst.msk [vmem:[%s2643_s2 + $0xc8] sm:$0xff] %vm702_vm2, %v444_v9  ;;  %v922_v10 = vsel %vm702_vm2, %v444_v9, 0.0  ;;  %v1057_v11 = vmul.f32 %v444_v9, %v444_v9  ;;  %v446_v13 = vpop.f32.mrb[26].mxu0  ;;  %791 = vst.msk [vmem:[%s2643_s2 + $0x2c8] sm:$0xff] %vm702_vm2, %v1965_v31  ;;  %v1973_v35 = vpop.f32.mrb[26].mxu1 }
 0x10e   :  { %v1171_v15 = vadd.f32 %v1170_v58, %v1056_v7  ;;  %v923_v17 = vadd.f32 %v922_v10, %v921_v59  ;;  %728 = vst [vmem:[%s2643_s2 + $0xd0] sm:$0xff] %v446_v13  ;;  %v842_v18 = vadd.f32 %v841_v6, %v446_v13  ;;  %v1058_v19 = vmul.f32 %v446_v13, %v446_v13  ;;  %v448_v20 = vpop.f32.mrb[27].mxu0  ;;  %v1979_v39 = vpop.f32.mrb[27].mxu1 }
 0x10f   :  { %v1252_v21 = vsel %vm702_vm2, %v1057_v11, 0.0  ;;  %729 = vst.msk [vmem:[%s2643_s2 + $0xd8] sm:$0xff] %vm702_vm2, %v448_v20  ;;  %v924_v22 = vsel %vm702_vm2, %v448_v20, 0.0  ;;  %v1059_v23 = vmul.f32 %v448_v20, %v448_v20  ;;  %792 = vst [vmem:[%s2643_s2 + $0x2d0] sm:$0xff] %v1973_v35 }
 0x110   :  { %v1253_v26 = vadd.f32 %v1252_v21, %v1251_v1  ;;  %v1172_v27 = vadd.f32 %v1171_v15, %v1058_v19  ;;  %v925_v29 = vadd.f32 %v924_v22, %v923_v17  ;;  %793 = vst.msk [vmem:[%s2643_s2 + $0x2d8] sm:$0xff] %vm702_vm2, %v1979_v39 }
 0x111   :  { %v1254_v34 = vsel %vm702_vm2, %v1059_v23, 0.0 }
 0x112   :  { %v1255_v37 = vadd.f32 %v1254_v34, %v1253_v26 }
 0x113   :  { %v452_v41 = vpop.f32.mrb[28].mxu0  ;;  %v2003_v1 = vpop.f32.mrb[28].mxu1 }
 0x114   :  { %730 = vst [vmem:[%s2643_s2 + $0xe0] sm:$0xff] %v452_v41  ;;  %v843_v42 = vadd.f32 %v842_v18, %v452_v41  ;;  %v1060_v43 = vmul.f32 %v452_v41, %v452_v41  ;;  %v454_v44 = vpop.f32.mrb[29].mxu0  ;;  %794 = vst [vmem:[%s2643_s2 + $0x2e0] sm:$0xff] %v2003_v1  ;;  %v2009_v9 = vpop.f32.mrb[29].mxu1 }
 0x115   :  { %731 = vst.msk [vmem:[%s2643_s2 + $0xe8] sm:$0xff] %vm702_vm2, %v454_v44  ;;  %v926_v45 = vsel %vm702_vm2, %v454_v44, 0.0  ;;  %v1061_v46 = vmul.f32 %v454_v44, %v454_v44  ;;  %v456_v47 = vpop.f32.mrb[30].mxu0  ;;  %795 = vst.msk [vmem:[%s2643_s2 + $0x2e8] sm:$0xff] %vm702_vm2, %v2009_v9  ;;  %v2017_v11 = vpop.f32.mrb[30].mxu1 }
 0x116   :  { %v1173_v49 = vadd.f32 %v1172_v27, %v1060_v43  ;;  %v927_v50 = vadd.f32 %v926_v45, %v925_v29  ;;  %732 = vst [vmem:[%s2643_s2 + $0xf0] sm:$0xff] %v456_v47  ;;  %v844_v52 = vadd.f32 %v843_v42, %v456_v47  ;;  %v1062_v53 = vmul.f32 %v456_v47, %v456_v47  ;;  %v458_v57 = vpop.f32.mrb[31].mxu0  ;;  %v2023_v15 = vpop.f32.mrb[31].mxu1 }
 0x117   :  { %v1256_v58 = vsel %vm702_vm2, %v1061_v46, 0.0  ;;  %733 = vst.msk [vmem:[%s2643_s2 + $0xf8] sm:$0xff] %vm702_vm2, %v458_v57  ;;  %v928_v59 = vsel %vm702_vm2, %v458_v57, 0.0  ;;  %v1063_v62 = vmul.f32 %v458_v57, %v458_v57  ;;  %796 = vst [vmem:[%s2643_s2 + $0x2f0] sm:$0xff] %v2017_v11 }
 0x118   :  { %v1257_v5 = vadd.f32 %v1256_v58, %v1255_v37  ;;  %v1174_v6 = vadd.f32 %v1173_v49, %v1062_v53  ;;  %v929_v7 = vadd.f32 %v928_v59, %v927_v50  ;;  %797 = vst.msk [vmem:[%s2643_s2 + $0x2f8] sm:$0xff] %vm702_vm2, %v2023_v15 }
 0x119   :  { %v1258_v10 = vsel %vm702_vm2, %v1063_v62, 0.0 }
 0x11a   :  { %v1259_v13 = vadd.f32 %v1258_v10, %v1257_v5 }
 0x11b   :  { %v462_v17 = vpop.f32.mrb[32].mxu0  ;;  %v2047_v44 = vpop.f32.mrb[32].mxu1 }
 0x11c   :  { %734 = vst [vmem:[%s2643_s2 + $0x100] sm:$0xff] %v462_v17  ;;  %v845_v18 = vadd.f32 %v844_v52, %v462_v17  ;;  %v1064_v19 = vmul.f32 %v462_v17, %v462_v17  ;;  %v464_v20 = vpop.f32.mrb[33].mxu0  ;;  %798 = vst [vmem:[%s2643_s2 + $0x300] sm:$0xff] %v2047_v44  ;;  %v2053_v49 = vpop.f32.mrb[33].mxu1 }
 0x11d   :  { %735 = vst.msk [vmem:[%s2643_s2 + $0x108] sm:$0xff] %vm702_vm2, %v464_v20  ;;  %v930_v21 = vsel %vm702_vm2, %v464_v20, 0.0  ;;  %v1065_v22 = vmul.f32 %v464_v20, %v464_v20  ;;  %v466_v23 = vpop.f32.mrb[34].mxu0  ;;  %799 = vst.msk [vmem:[%s2643_s2 + $0x308] sm:$0xff] %vm702_vm2, %v2053_v49  ;;  %v2061_v52 = vpop.f32.mrb[34].mxu1 }
 0x11e   :  { %v1175_v26 = vadd.f32 %v1174_v6, %v1064_v19  ;;  %v931_v27 = vadd.f32 %v930_v21, %v929_v7  ;;  %736 = vst [vmem:[%s2643_s2 + $0x110] sm:$0xff] %v466_v23  ;;  %v846_v29 = vadd.f32 %v845_v18, %v466_v23  ;;  %v1066_v34 = vmul.f32 %v466_v23, %v466_v23  ;;  %v468_v37 = vpop.f32.mrb[35].mxu0  ;;  %v2067_v57 = vpop.f32.mrb[35].mxu1 }
 0x11f   :  { %v1260_v41 = vsel %vm702_vm2, %v1065_v22, 0.0  ;;  %737 = vst.msk [vmem:[%s2643_s2 + $0x118] sm:$0xff] %vm702_vm2, %v468_v37  ;;  %v932_v42 = vsel %vm702_vm2, %v468_v37, 0.0  ;;  %v1067_v43 = vmul.f32 %v468_v37, %v468_v37  ;;  %800 = vst [vmem:[%s2643_s2 + $0x310] sm:$0xff] %v2061_v52 }
 0x120   :  { %v1261_v45 = vadd.f32 %v1260_v41, %v1259_v13  ;;  %v1176_v46 = vadd.f32 %v1175_v26, %v1066_v34  ;;  %v933_v47 = vadd.f32 %v932_v42, %v931_v27  ;;  %801 = vst.msk [vmem:[%s2643_s2 + $0x318] sm:$0xff] %vm702_vm2, %v2067_v57 }
 0x121   :  { %v1262_v50 = vsel %vm702_vm2, %v1067_v43, 0.0 }
 0x122   :  { %v1263_v53 = vadd.f32 %v1262_v50, %v1261_v45 }
 0x123   :  { %v472_v58 = vpop.f32.mrb[36].mxu0  ;;  %v2091_v26 = vpop.f32.mrb[36].mxu1 }
 0x124   :  { %738 = vst [vmem:[%s2643_s2 + $0x120] sm:$0xff] %v472_v58  ;;  %v847_v59 = vadd.f32 %v846_v29, %v472_v58  ;;  %v1068_v62 = vmul.f32 %v472_v58, %v472_v58  ;;  %v474_v5 = vpop.f32.mrb[37].mxu0  ;;  %802 = vst [vmem:[%s2643_s2 + $0x320] sm:$0xff] %v2091_v26  ;;  %v2097_v37 = vpop.f32.mrb[37].mxu1 }
 0x125   :  { %739 = vst.msk [vmem:[%s2643_s2 + $0x128] sm:$0xff] %vm702_vm2, %v474_v5  ;;  %v934_v6 = vsel %vm702_vm2, %v474_v5, 0.0  ;;  %v1069_v7 = vmul.f32 %v474_v5, %v474_v5  ;;  %v476_v10 = vpop.f32.mrb[38].mxu0  ;;  %803 = vst.msk [vmem:[%s2643_s2 + $0x328] sm:$0xff] %vm702_vm2, %v2097_v37  ;;  %v2105_v42 = vpop.f32.mrb[38].mxu1 }
 0x126   :  { %v1177_v13 = vadd.f32 %v1176_v46, %v1068_v62  ;;  %v935_v17 = vadd.f32 %v934_v6, %v933_v47  ;;  %740 = vst [vmem:[%s2643_s2 + $0x130] sm:$0xff] %v476_v10  ;;  %v848_v18 = vadd.f32 %v847_v59, %v476_v10  ;;  %v1070_v19 = vmul.f32 %v476_v10, %v476_v10  ;;  %v478_v20 = vpop.f32.mrb[39].mxu0  ;;  %v2111_v45 = vpop.f32.mrb[39].mxu1 }
 0x127   :  { %v1264_v21 = vsel %vm702_vm2, %v1069_v7, 0.0  ;;  %741 = vst.msk [vmem:[%s2643_s2 + $0x138] sm:$0xff] %vm702_vm2, %v478_v20  ;;  %v936_v22 = vsel %vm702_vm2, %v478_v20, 0.0  ;;  %v1071_v23 = vmul.f32 %v478_v20, %v478_v20  ;;  %804 = vst [vmem:[%s2643_s2 + $0x330] sm:$0xff] %v2105_v42 }
 0x128   :  { %v1265_v27 = vadd.f32 %v1264_v21, %v1263_v53  ;;  %v1178_v29 = vadd.f32 %v1177_v13, %v1070_v19  ;;  %v937_v34 = vadd.f32 %v936_v22, %v935_v17  ;;  %805 = vst.msk [vmem:[%s2643_s2 + $0x338] sm:$0xff] %vm702_vm2, %v2111_v45 }
 0x129   :  { %v1266_v41 = vsel %vm702_vm2, %v1071_v23, 0.0 }
 0x12a   :  { %v1267_v43 = vadd.f32 %v1266_v41, %v1265_v27 }
 0x12b   :  { %v482_v46 = vpop.f32.mrb[40].mxu0  ;;  %v2135_v20 = vpop.f32.mrb[40].mxu1 }
 0x12c   :  { %742 = vst [vmem:[%s2643_s2 + $0x140] sm:$0xff] %v482_v46  ;;  %v849_v47 = vadd.f32 %v848_v18, %v482_v46  ;;  %v1072_v50 = vmul.f32 %v482_v46, %v482_v46  ;;  %v484_v53 = vpop.f32.mrb[41].mxu0  ;;  %806 = vst [vmem:[%s2643_s2 + $0x340] sm:$0xff] %v2135_v20  ;;  %v2141_v27 = vpop.f32.mrb[41].mxu1 }
 0x12d   :  { %743 = vst.msk [vmem:[%s2643_s2 + $0x148] sm:$0xff] %vm702_vm2, %v484_v53  ;;  %v938_v58 = vsel %vm702_vm2, %v484_v53, 0.0  ;;  %v1073_v59 = vmul.f32 %v484_v53, %v484_v53  ;;  %v486_v62 = vpop.f32.mrb[42].mxu0  ;;  %807 = vst.msk [vmem:[%s2643_s2 + $0x348] sm:$0xff] %vm702_vm2, %v2141_v27 }
 0x12e   :  { %v1179_v5 = vadd.f32 %v1178_v29, %v1072_v50  ;;  %v939_v6 = vadd.f32 %v938_v58, %v937_v34  ;;  %744 = vst [vmem:[%s2643_s2 + $0x150] sm:$0xff] %v486_v62  ;;  %v850_v7 = vadd.f32 %v849_v47, %v486_v62  ;;  %v1074_v10 = vmul.f32 %v486_v62, %v486_v62  ;;  %v488_v13 = vpop.f32.mrb[43].mxu0  ;;  %v2149_v34 = vpop.f32.mrb[42].mxu1 }
 0x12f   :  { %v1268_v17 = vsel %vm702_vm2, %v1073_v59, 0.0  ;;  %745 = vst.msk [vmem:[%s2643_s2 + $0x158] sm:$0xff] %vm702_vm2, %v488_v13  ;;  %v940_v18 = vsel %vm702_vm2, %v488_v13, 0.0  ;;  %v1075_v19 = vmul.f32 %v488_v13, %v488_v13  ;;  %808 = vst [vmem:[%s2643_s2 + $0x350] sm:$0xff] %v2149_v34 }
 0x130   :  { %v1269_v21 = vadd.f32 %v1268_v17, %v1267_v43  ;;  %v1180_v22 = vadd.f32 %v1179_v5, %v1074_v10  ;;  %v941_v23 = vadd.f32 %v940_v18, %v939_v6  ;;  %v2155_v43 = vpop.f32.mrb[43].mxu1 }
 0x131   :  { %v1270_v29 = vsel %vm702_vm2, %v1075_v19, 0.0  ;;  %809 = vst.msk [vmem:[%s2643_s2 + $0x358] sm:$0xff] %vm702_vm2, %v2155_v43 }
 0x132   :  { %v1271_v41 = vadd.f32 %v1270_v29, %v1269_v21 }
 0x133   :  { %v492_v46 = vpop.f32.mrb[44].mxu0  ;;  %v2179_v21 = vpop.f32.mrb[44].mxu1 }
 0x134   :  { %746 = vst [vmem:[%s2643_s2 + $0x160] sm:$0xff] %v492_v46  ;;  %v851_v47 = vadd.f32 %v850_v7, %v492_v46  ;;  %v1076_v50 = vmul.f32 %v492_v46, %v492_v46  ;;  %v494_v53 = vpop.f32.mrb[45].mxu0  ;;  %2683 = vst [vmem:[#allocation2_spill] sm:$0xff] %v2179_v21  ;;  %v2185_v46 = vpop.f32.mrb[45].mxu1 }
 0x135   :  { %747 = vst.msk [vmem:[%s2643_s2 + $0x168] sm:$0xff] %vm702_vm2, %v494_v53  ;;  %v942_v58 = vsel %vm702_vm2, %v494_v53, 0.0  ;;  %v1077_v59 = vmul.f32 %v494_v53, %v494_v53  ;;  %v496_v62 = vpop.f32.mrb[46].mxu0  ;;  %810 = vst [vmem:[%s2643_s2 + $0x360] sm:$0xff] %v2179_v21 }
 0x136   :  { %v1181_v5 = vadd.f32 %v1180_v22, %v1076_v50  ;;  %v943_v6 = vadd.f32 %v942_v58, %v941_v23  ;;  %748 = vst [vmem:[%s2643_s2 + $0x170] sm:$0xff] %v496_v62  ;;  %v852_v10 = vadd.f32 %v851_v47, %v496_v62  ;;  %v1078_v13 = vmul.f32 %v496_v62, %v496_v62  ;;  %v498_v7 = vpop.f32.mrb[47].mxu0  ;;  %v2193_v50 = vpop.f32.mrb[46].mxu1 }
 0x137   :  { %v1272_v17 = vsel %vm702_vm2, %v1077_v59, 0.0  ;;  %749 = vst.msk [vmem:[%s2643_s2 + $0x178] sm:$0xff] %vm702_vm2, %v498_v7  ;;  %v944_v18 = vsel %vm702_vm2, %v498_v7, 0.0  ;;  %v1079_v19 = vmul.f32 %v498_v7, %v498_v7  ;;  %2684 = vst [vmem:[#allocation3_spill] sm:$0xff] %v2185_v46  ;;  %v2199_v53 = vpop.f32.mrb[47].mxu1 }
 0x138   :  { %v1273_v22 = vadd.f32 %v1272_v17, %v1271_v41  ;;  %v1182_v23 = vadd.f32 %v1181_v5, %v1078_v13  ;;  %v945_v29 = vadd.f32 %v944_v18, %v943_v6  ;;  %811 = vst.msk [vmem:[%s2643_s2 + $0x368] sm:$0xff] %vm702_vm2, %v2185_v46  ;;  %2685 = vst [vmem:[#allocation4_spill] sm:$0xff] %v2193_v50 }
 0x139   :  { %v1274_v47 = vsel %vm702_vm2, %v1079_v19, 0.0  ;;  %812 = vst [vmem:[%s2643_s2 + $0x370] sm:$0xff] %v2193_v50  ;;  %2686 = vst [vmem:[#allocation5_spill] sm:$0xff] %v2199_v53  ;;  %v1098_v46 = vmul.f32 %v1709_v54, %v1709_v54 }
 0x13a   :  { %v1275_v41 = vadd.f32 %v1274_v47, %v1273_v22  ;;  %813 = vst.msk [vmem:[%s2643_s2 + $0x378] sm:$0xff] %vm702_vm2, %v2199_v53 }
 0x13b   :  { %v502_v58 = vpop.f32.mrb[48].mxu0  ;;  %v2223_v50 = vpop.f32.mrb[48].mxu1 }
 0x13c   :  { %750 = vst [vmem:[%s2643_s2 + $0x180] sm:$0xff] %v502_v58  ;;  %v853_v59 = vadd.f32 %v852_v10, %v502_v58  ;;  %v1080_v62 = vmul.f32 %v502_v58, %v502_v58  ;;  %v504_v5 = vpop.f32.mrb[49].mxu0  ;;  %2687 = vst [vmem:[#allocation6_spill] sm:$0xff] %v2223_v50 }
 0x13d   :  { %751 = vst.msk [vmem:[%s2643_s2 + $0x188] sm:$0xff] %vm702_vm2, %v504_v5  ;;  %v946_v6 = vsel %vm702_vm2, %v504_v5, 0.0  ;;  %v1081_v13 = vmul.f32 %v504_v5, %v504_v5  ;;  %v506_v7 = vpop.f32.mrb[50].mxu0  ;;  %814 = vst [vmem:[%s2643_s2 + $0x380] sm:$0xff] %v2223_v50 }
 0x13e   :  { %v1183_v17 = vadd.f32 %v1182_v23, %v1080_v62  ;;  %v947_v18 = vadd.f32 %v946_v6, %v945_v29  ;;  %752 = vst [vmem:[%s2643_s2 + $0x190] sm:$0xff] %v506_v7  ;;  %v854_v19 = vadd.f32 %v853_v59, %v506_v7  ;;  %v1082_v22 = vmul.f32 %v506_v7, %v506_v7  ;;  %v508_v10 = vpop.f32.mrb[51].mxu0  ;;  %v2229_v59 = vpop.f32.mrb[49].mxu1 }
 0x13f   :  { %v1276_v47 = vsel %vm702_vm2, %v1081_v13, 0.0  ;;  %753 = vst.msk [vmem:[%s2643_s2 + $0x198] sm:$0xff] %vm702_vm2, %v508_v10  ;;  %v948_v58 = vsel %vm702_vm2, %v508_v10, 0.0  ;;  %v1083_v5 = vmul.f32 %v508_v10, %v508_v10  ;;  %2688 = vst [vmem:[#allocation7_spill] sm:$0xff] %v2229_v59  ;;  %v2237_v13 = vpop.f32.mrb[50].mxu1 }
 0x140   :  { %v1277_v23 = vadd.f32 %v1276_v47, %v1275_v41  ;;  %v1184_v29 = vadd.f32 %v1183_v17, %v1082_v22  ;;  %v949_v62 = vadd.f32 %v948_v58, %v947_v18  ;;  %815 = vst.msk [vmem:[%s2643_s2 + $0x388] sm:$0xff] %vm702_vm2, %v2229_v59  ;;  %2689 = vst [vmem:[#allocation8_spill] sm:$0xff] %v2237_v13  ;;  %v2243_v7 = vpop.f32.mrb[51].mxu1 }
 0x141   :  { %v1278_v6 = vsel %vm702_vm2, %v1083_v5, 0.0  ;;  %816 = vst [vmem:[%s2643_s2 + $0x390] sm:$0xff] %v2237_v13  ;;  %2690 = vst [vmem:[#allocation9_spill] sm:$0xff] %v2243_v7 }
 0x142   :  { %v1279_v41 = vadd.f32 %v1278_v6, %v1277_v23  ;;  %817 = vst.msk [vmem:[%s2643_s2 + $0x398] sm:$0xff] %vm702_vm2, %v2243_v7 }
 0x143   :  { %v512_v17 = vpop.f32.mrb[52].mxu0  ;;  %v2267_v59 = vpop.f32.mrb[52].mxu1 }
 0x144   :  { %754 = vst [vmem:[%s2643_s2 + $0x1a0] sm:$0xff] %v512_v17  ;;  %v855_v18 = vadd.f32 %v854_v19, %v512_v17  ;;  %v1084_v22 = vmul.f32 %v512_v17, %v512_v17  ;;  %v514_v10 = vpop.f32.mrb[53].mxu0  ;;  %2691 = vst [vmem:[#allocation10_spill] sm:$0xff] %v2267_v59 }
 0x145   :  { %755 = vst.msk [vmem:[%s2643_s2 + $0x1a8] sm:$0xff] %vm702_vm2, %v514_v10  ;;  %v950_v47 = vsel %vm702_vm2, %v514_v10, 0.0  ;;  %v1085_v58 = vmul.f32 %v514_v10, %v514_v10  ;;  %v516_v5 = vpop.f32.mrb[54].mxu0  ;;  %818 = vst [vmem:[%s2643_s2 + $0x3a0] sm:$0xff] %v2267_v59 }
 0x146   :  { %v1185_v23 = vadd.f32 %v1184_v29, %v1084_v22  ;;  %v951_v6 = vadd.f32 %v950_v47, %v949_v62  ;;  %756 = vst [vmem:[%s2643_s2 + $0x1b0] sm:$0xff] %v516_v5  ;;  %v856_v13 = vadd.f32 %v855_v18, %v516_v5  ;;  %v1086_v7 = vmul.f32 %v516_v5, %v516_v5  ;;  %v518_v19 = vpop.f32.mrb[55].mxu0  ;;  %v2273_v18 = vpop.f32.mrb[53].mxu1 }
 0x147   :  { %v1280_v17 = vsel %vm702_vm2, %v1085_v58, 0.0  ;;  %757 = vst.msk [vmem:[%s2643_s2 + $0x1b8] sm:$0xff] %vm702_vm2, %v518_v19  ;;  %v952_v50 = vsel %vm702_vm2, %v518_v19, 0.0  ;;  %v1087_v10 = vmul.f32 %v518_v19, %v518_v19  ;;  %2692 = vst [vmem:[#allocation11_spill] sm:$0xff] %v2273_v18  ;;  %v2281_v58 = vpop.f32.mrb[54].mxu1 }
 0x148   :  { %v1281_v29 = vadd.f32 %v1280_v17, %v1279_v41  ;;  %v1186_v62 = vadd.f32 %v1185_v23, %v1086_v7  ;;  %v953_v22 = vadd.f32 %v952_v50, %v951_v6  ;;  %819 = vst.msk [vmem:[%s2643_s2 + $0x3a8] sm:$0xff] %vm702_vm2, %v2273_v18  ;;  %2693 = vst [vmem:[#allocation12_spill] sm:$0xff] %v2281_v58  ;;  %v2287_v50 = vpop.f32.mrb[55].mxu1 }
 0x149   :  { %v1282_v47 = vsel %vm702_vm2, %v1087_v10, 0.0  ;;  %820 = vst [vmem:[%s2643_s2 + $0x3b0] sm:$0xff] %v2281_v58  ;;  %2694 = vst [vmem:[#allocation13_spill] sm:$0xff] %v2287_v50 }
 0x14a   :  { %v1283_v41 = vadd.f32 %v1282_v47, %v1281_v29  ;;  %821 = vst.msk [vmem:[%s2643_s2 + $0x3b8] sm:$0xff] %vm702_vm2, %v2287_v50 }
 0x14b   :  { %v522_v7 = vpop.f32.mrb[56].mxu0  ;;  %v2311_v18 = vpop.f32.mrb[56].mxu1 }
 0x14c   :  { %758 = vst [vmem:[%s2643_s2 + $0x1c0] sm:$0xff] %v522_v7  ;;  %v857_v5 = vadd.f32 %v856_v13, %v522_v7  ;;  %v1088_v23 = vmul.f32 %v522_v7, %v522_v7  ;;  %v524_v6 = vpop.f32.mrb[57].mxu0  ;;  %2695 = vst [vmem:[#allocation14_spill] sm:$0xff] %v2311_v18 }
 0x14d   :  { %759 = vst.msk [vmem:[%s2643_s2 + $0x1c8] sm:$0xff] %vm702_vm2, %v524_v6  ;;  %v954_v19 = vsel %vm702_vm2, %v524_v6, 0.0  ;;  %v1089_v17 = vmul.f32 %v524_v6, %v524_v6  ;;  %v526_v10 = vpop.f32.mrb[58].mxu0  ;;  %822 = vst [vmem:[%s2643_s2 + $0x3c0] sm:$0xff] %v2311_v18 }
 0x14e   :  { %v1187_v29 = vadd.f32 %v1186_v62, %v1088_v23  ;;  %v955_v47 = vadd.f32 %v954_v19, %v953_v22  ;;  %760 = vst [vmem:[%s2643_s2 + $0x1d0] sm:$0xff] %v526_v10  ;;  %v858_v58 = vadd.f32 %v857_v5, %v526_v10  ;;  %v1090_v50 = vmul.f32 %v526_v10, %v526_v10  ;;  %v528_v13 = vpop.f32.mrb[59].mxu0  ;;  %v2317_v5 = vpop.f32.mrb[57].mxu1 }
 0x14f   :  { %v1284_v7 = vsel %vm702_vm2, %v1089_v17, 0.0  ;;  %761 = vst.msk [vmem:[%s2643_s2 + $0x1d8] sm:$0xff] %vm702_vm2, %v528_v13  ;;  %v956_v59 = vsel %vm702_vm2, %v528_v13, 0.0  ;;  %v1091_v6 = vmul.f32 %v528_v13, %v528_v13  ;;  %2696 = vst [vmem:[#allocation15_spill] sm:$0xff] %v2317_v5  ;;  %v2325_v17 = vpop.f32.mrb[58].mxu1  ;;  %v1096_v10 = vmul.f32 %v1694_v48, %v1694_v48 }
 0x150   :  { %v1285_v62 = vadd.f32 %v1284_v7, %v1283_v41  ;;  %v1188_v22 = vadd.f32 %v1187_v29, %v1090_v50  ;;  %v957_v23 = vadd.f32 %v956_v59, %v955_v47  ;;  %823 = vst.msk [vmem:[%s2643_s2 + $0x3c8] sm:$0xff] %vm702_vm2, %v2317_v5  ;;  %2697 = vst [vmem:[#allocation16_spill] sm:$0xff] %v2325_v17  ;;  %v2331_v59 = vpop.f32.mrb[59].mxu1  ;;  %v962_v7 = vsel %vm702_vm2, %v1700_v51, 0.0 }
 0x151   :  { %v1286_v19 = vsel %vm702_vm2, %v1091_v6, 0.0  ;;  %824 = vst [vmem:[%s2643_s2 + $0x3d0] sm:$0xff] %v2325_v17  ;;  %2698 = vst [vmem:[#allocation17_spill] sm:$0xff] %v2331_v59  ;;  %v1097_v6 = vmul.f32 %v1700_v51, %v1700_v51  ;;  %v1099_v51 = vmul.f32 %v1715_v56, %v1715_v56 }
 0x152   :  { %v1287_v41 = vadd.f32 %v1286_v19, %v1285_v62  ;;  %825 = vst.msk [vmem:[%s2643_s2 + $0x3d8] sm:$0xff] %vm702_vm2, %v2331_v59 }
 0x153   :  { %v532_v50 = vpop.f32.mrb[60].mxu0  ;;  %v1292_v21 = vsel %vm702_vm2, %v1097_v6, 0.0 }
 0x154   :  { %762 = vst [vmem:[%s2643_s2 + $0x1e0] sm:$0xff] %v532_v50  ;;  %v859_v29 = vadd.f32 %v858_v58, %v532_v50  ;;  %v1092_v47 = vmul.f32 %v532_v50, %v532_v50  ;;  %v534_v13 = vpop.f32.mrb[61].mxu0 }
 0x155   :  { %763 = vst.msk [vmem:[%s2643_s2 + $0x1e8] sm:$0xff] %vm702_vm2, %v534_v13  ;;  %v958_v62 = vsel %vm702_vm2, %v534_v13, 0.0  ;;  %v1093_v19 = vmul.f32 %v534_v13, %v534_v13  ;;  %v536_v59 = vpop.f32.mrb[62].mxu0 }
 0x156   :  { %v1189_v17 = vadd.f32 %v1188_v22, %v1092_v47  ;;  %v959_v5 = vadd.f32 %v958_v62, %v957_v23  ;;  %764 = vst [vmem:[%s2643_s2 + $0x1f0] sm:$0xff] %v536_v59  ;;  %v860_v58 = vadd.f32 %v859_v29, %v536_v59  ;;  %v1094_v50 = vmul.f32 %v536_v59, %v536_v59  ;;  %v538_v18 = vpop.f32.mrb[63].mxu0  ;;  %v2363_v47 = vpop.f32.mrb[60].mxu1 }
 0x157   :  { %v1288_v53 = vsel %vm702_vm2, %v1093_v19, 0.0  ;;  %765 = vst.msk [vmem:[%s2643_s2 + $0x1f8] sm:$0xff] %vm702_vm2, %v538_v18  ;;  %v960_v22 = vsel %vm702_vm2, %v538_v18, 0.0  ;;  %v1095_v23 = vmul.f32 %v538_v18, %v538_v18  ;;  %826 = vst [vmem:[%s2643_s2 + $0x3e0] sm:$0xff] %v2363_v47  ;;  %v2370_v19 = vpop.f32.mrb[61].mxu1  ;;  %v1101_v18 = vmul.f32 %v1745_v12, %v1745_v12 }
 0x158   :  { %v1289_v13 = vadd.f32 %v1288_v53, %v1287_v41  ;;  %v861_v29 = vadd.f32 %v860_v58, %v1694_v48  ;;  %v1190_v59 = vadd.f32 %v1189_v17, %v1094_v50  ;;  %v961_v62 = vadd.f32 %v960_v22, %v959_v5  ;;  %2699 = vst [vmem:[#allocation18_spill] sm:$0xff] %v2370_v19  ;;  %v2383_v48 = vpop.f32.mrb[62].mxu1 }
 0x159   :  { %v1290_v53 = vsel %vm702_vm2, %v1095_v23, 0.0  ;;  %827 = vst.msk [vmem:[%s2643_s2 + $0x3e8] sm:$0xff] %vm702_vm2, %v2370_v19  ;;  %2700 = vst [vmem:[#allocation19_spill] sm:$0xff] %v2383_v48  ;;  %v2390_v58 = vpop.f32.mrb[63].mxu1  ;;  %v964_v50 = vsel %vm702_vm2, %v1715_v56, 0.0  ;;  %v1294_v22 = vsel %vm702_vm2, %v1099_v51, 0.0  ;;  %v1100_v23 = vmul.f32 %v1739_v8, %v1739_v8 }
 0x15a   :  { %v862_v5 = vadd.f32 %v861_v29, %v1709_v54  ;;  %v1191_v17 = vadd.f32 %v1190_v59, %v1096_v10  ;;  %v963_v41 = vadd.f32 %v962_v7, %v961_v62  ;;  %v1291_v6 = vadd.f32 %v1290_v53, %v1289_v13  ;;  %828 = vst [vmem:[%s2643_s2 + $0x3f0] sm:$0xff] %v2383_v48 }
 0x15b   :  { %2701 = vst [vmem:[#allocation20_spill] sm:$0xff] %v2390_v58  ;;  %v1103_v54 = vmul.f32 %v1759_v16, %v1759_v16  ;;  %829 = vst.msk [vmem:[%s2643_s2 + $0x3f8] sm:$0xff] %vm702_vm2, %v2390_v58  ;;  %v966_v56 = vsel %vm702_vm2, %v1745_v12, 0.0  ;;  %v1296_v51 = vsel %vm702_vm2, %v1101_v18, 0.0  ;;  %v1102_v59 = vmul.f32 %v1753_v14, %v1753_v14 }
 0x15c   :  { %v863_v10 = vadd.f32 %v862_v5, %v1739_v8  ;;  %v1192_v7 = vadd.f32 %v1191_v17, %v1098_v46  ;;  %v965_v13 = vadd.f32 %v964_v50, %v963_v41  ;;  %v1293_v29 = vadd.f32 %v1292_v21, %v1291_v6 }
 0x15d   :  { %v1105_v62 = vmul.f32 %v1789_v36, %v1789_v36  ;;  %v968_v8 = vsel %vm702_vm2, %v1759_v16, 0.0  ;;  %v1298_v21 = vsel %vm702_vm2, %v1103_v54, 0.0  ;;  %v1104_v12 = vmul.f32 %v1783_v32, %v1783_v32 }
 0x15e   :  { %v864_v53 = vadd.f32 %v863_v10, %v1753_v14  ;;  %v1193_v48 = vadd.f32 %v1192_v7, %v1100_v23  ;;  %v967_v58 = vadd.f32 %v966_v56, %v965_v13  ;;  %v1295_v19 = vadd.f32 %v1294_v22, %v1293_v29 }
 0x15f   :  { %v1107_v46 = vmul.f32 %v1803_v40, %v1803_v40  ;;  %v970_v14 = vsel %vm702_vm2, %v1789_v36, 0.0  ;;  %v1300_v6 = vsel %vm702_vm2, %v1105_v62, 0.0  ;;  %v1106_v16 = vmul.f32 %v1797_v38, %v1797_v38 }
 0x160   :  { %v865_v18 = vadd.f32 %v864_v53, %v1783_v32  ;;  %v1194_v5 = vadd.f32 %v1193_v48, %v1102_v59  ;;  %v969_v17 = vadd.f32 %v968_v8, %v967_v58  ;;  %v1297_v41 = vadd.f32 %v1296_v51, %v1295_v19 }
 0x161   :  { %v1109_v50 = vmul.f32 %v1833_v0, %v1833_v0  ;;  %v972_v32 = vsel %vm702_vm2, %v1803_v40, 0.0  ;;  %v1302_v19 = vsel %vm702_vm2, %v1107_v46, 0.0  ;;  %v1108_v36 = vmul.f32 %v1827_v60, %v1827_v60 }
 0x162   :  { %v866_v22 = vadd.f32 %v865_v18, %v1797_v38  ;;  %v1195_v23 = vadd.f32 %v1194_v5, %v1104_v12  ;;  %v971_v54 = vadd.f32 %v970_v14, %v969_v17  ;;  %v1299_v10 = vadd.f32 %v1298_v21, %v1297_v41 }
 0x163   :  { %v1111_v48 = vmul.f32 %v1847_v4, %v1847_v4  ;;  %v974_v38 = vsel %vm702_vm2, %v1833_v0, 0.0  ;;  %v1304_v56 = vsel %vm702_vm2, %v1109_v50, 0.0  ;;  %v1110_v40 = vmul.f32 %v1841_v2, %v1841_v2 }
 0x164   :  { %v867_v58 = vadd.f32 %v866_v22, %v1827_v60  ;;  %v1196_v7 = vadd.f32 %v1195_v23, %v1106_v16  ;;  %v973_v13 = vadd.f32 %v972_v32, %v971_v54  ;;  %v1301_v29 = vadd.f32 %v1300_v6, %v1299_v10 }
 0x165   :  { %v1113_v51 = vmul.f32 %v1877_v28, %v1877_v28  ;;  %v976_v60 = vsel %vm702_vm2, %v1847_v4, 0.0  ;;  %v1306_v21 = vsel %vm702_vm2, %v1111_v48, 0.0  ;;  %v1112_v0 = vmul.f32 %v1871_v24, %v1871_v24 }
 0x166   :  { %v868_v59 = vadd.f32 %v867_v58, %v1841_v2  ;;  %v1197_v62 = vadd.f32 %v1196_v7, %v1108_v36  ;;  %v975_v53 = vadd.f32 %v974_v38, %v973_v13  ;;  %v1303_v8 = vadd.f32 %v1302_v19, %v1301_v29 }
 0x167   :  { %v1115_v12 = vmul.f32 %v1891_v33, %v1891_v33  ;;  %v978_v2 = vsel %vm702_vm2, %v1877_v28, 0.0  ;;  %v1308_v41 = vsel %vm702_vm2, %v1113_v51, 0.0  ;;  %v1114_v4 = vmul.f32 %v1885_v30, %v1885_v30 }
 0x168   :  { %v1198_v46 = vadd.f32 %v1197_v62, %v1110_v40  ;;  %v977_v18 = vadd.f32 %v976_v60, %v975_v53  ;;  %v1305_v5 = vadd.f32 %v1304_v56, %v1303_v8  ;;  %v869_v17 = vadd.f32 %v868_v59, %v1871_v24 }
 0x169   :  { %v1117_v14 = vmul.f32 %v1921_v61, %v1921_v61  ;;  %v980_v23 = vsel %vm702_vm2, %v1891_v33, 0.0  ;;  %v1310_v24 = vsel %vm702_vm2, %v1115_v12, 0.0  ;;  %v1116_v28 = vmul.f32 %v1915_v55, %v1915_v55 }
 0x16a   :  { %v1307_v6 = vadd.f32 %v1306_v21, %v1305_v5  ;;  %v870_v16 = vadd.f32 %v869_v17, %v1885_v30  ;;  %v1199_v50 = vadd.f32 %v1198_v46, %v1112_v0  ;;  %v979_v22 = vadd.f32 %v978_v2, %v977_v18 }
 0x16b   :  { %v1119_v54 = vmul.f32 %v1935_v3, %v1935_v3  ;;  %v982_v30 = vsel %vm702_vm2, %v1921_v61, 0.0  ;;  %v1312_v48 = vsel %vm702_vm2, %v1117_v14, 0.0  ;;  %v1118_v33 = vmul.f32 %v1929_v63, %v1929_v63 }
 0x16c   :  { %v871_v10 = vadd.f32 %v870_v16, %v1915_v55  ;;  %v1200_v32 = vadd.f32 %v1199_v50, %v1114_v4  ;;  %v981_v19 = vadd.f32 %v980_v23, %v979_v22  ;;  %v1309_v36 = vadd.f32 %v1308_v41, %v1307_v6 }
 0x16d   :  { %v1121_v58 = vmul.f32 %v1965_v31, %v1965_v31  ;;  %v984_v55 = vsel %vm702_vm2, %v1935_v3, 0.0  ;;  %v1314_v56 = vsel %vm702_vm2, %v1119_v54, 0.0  ;;  %v1120_v61 = vmul.f32 %v1959_v25, %v1959_v25 }
 0x16e   :  { %v872_v7 = vadd.f32 %v871_v10, %v1929_v63  ;;  %v1201_v13 = vadd.f32 %v1200_v32, %v1116_v28  ;;  %v983_v29 = vadd.f32 %v982_v30, %v981_v19  ;;  %v1311_v38 = vadd.f32 %v1310_v24, %v1309_v36 }
 0x16f   :  { %v1123_v40 = vmul.f32 %v1979_v39, %v1979_v39  ;;  %v986_v63 = vsel %vm702_vm2, %v1965_v31, 0.0  ;;  %v1316_v8 = vsel %vm702_vm2, %v1121_v58, 0.0  ;;  %v1122_v3 = vmul.f32 %v1973_v35, %v1973_v35 }
 0x170   :  { %v873_v51 = vadd.f32 %v872_v7, %v1959_v25  ;;  %v1202_v59 = vadd.f32 %v1201_v13, %v1118_v33  ;;  %v985_v62 = vadd.f32 %v984_v55, %v983_v29  ;;  %v1313_v53 = vadd.f32 %v1312_v48, %v1311_v38 }
 0x171   :  { %v1125_v60 = vmul.f32 %v2009_v9, %v2009_v9  ;;  %v988_v25 = vsel %vm702_vm2, %v1979_v39, 0.0  ;;  %v1318_v18 = vsel %vm702_vm2, %v1123_v40, 0.0  ;;  %v1124_v31 = vmul.f32 %v2003_v1, %v2003_v1 }
 0x172   :  { %v874_v21 = vadd.f32 %v873_v51, %v1973_v35  ;;  %v1203_v0 = vadd.f32 %v1202_v59, %v1120_v61  ;;  %v987_v12 = vadd.f32 %v986_v63, %v985_v62  ;;  %v1315_v46 = vadd.f32 %v1314_v56, %v1313_v53 }
 0x173   :  { %v1127_v5 = vmul.f32 %v2023_v15, %v2023_v15  ;;  %v990_v35 = vsel %vm702_vm2, %v2009_v9, 0.0  ;;  %v1320_v14 = vsel %vm702_vm2, %v1125_v60, 0.0  ;;  %v1126_v39 = vmul.f32 %v2017_v11, %v2017_v11 }
 0x174   :  { %v875_v17 = vadd.f32 %v874_v21, %v2003_v1  ;;  %v1204_v2 = vadd.f32 %v1203_v0, %v1122_v3  ;;  %v989_v41 = vadd.f32 %v988_v25, %v987_v12  ;;  %v1317_v4 = vadd.f32 %v1316_v8, %v1315_v46  ;;  %v2702_v25 = vld [vmem:[#allocation3_spill] sm:$0xff] }
 0x175   :  { %v1129_v6 = vmul.f32 %v2053_v49, %v2053_v49  ;;  %v992_v1 = vsel %vm702_vm2, %v2023_v15, 0.0  ;;  %v1322_v24 = vsel %vm702_vm2, %v1127_v5, 0.0  ;;  %v1128_v9 = vmul.f32 %v2047_v44, %v2047_v44 }
 0x176   :  { %v876_v16 = vadd.f32 %v875_v17, %v2017_v11  ;;  %v1205_v50 = vadd.f32 %v1204_v2, %v1124_v31  ;;  %v991_v22 = vadd.f32 %v990_v35, %v989_v41  ;;  %v1319_v23 = vadd.f32 %v1318_v18, %v1317_v4  ;;  %v2703_v4 = vld [vmem:[#allocation2_spill] sm:$0xff]  ;;  %v2704_v35 = vld [vmem:[#allocation5_spill] sm:$0xff] }
 0x177   :  { %v1131_v28 = vmul.f32 %v2067_v57, %v2067_v57  ;;  %v994_v11 = vsel %vm702_vm2, %v2053_v49, 0.0  ;;  %v1324_v36 = vsel %vm702_vm2, %v1129_v6, 0.0  ;;  %v1130_v15 = vmul.f32 %v2061_v52, %v2061_v52 }
 0x178   :  { %v877_v54 = vadd.f32 %v876_v16, %v2047_v44  ;;  %v1206_v10 = vadd.f32 %v1205_v50, %v1126_v39  ;;  %v993_v32 = vadd.f32 %v992_v1, %v991_v22  ;;  %v1321_v19 = vadd.f32 %v1320_v14, %v1319_v23  ;;  %v2705_v23 = vld [vmem:[#allocation4_spill] sm:$0xff]  ;;  %v2706_v1 = vld [vmem:[#allocation7_spill] sm:$0xff] }
 0x179   :  { %v1133_v30 = vmul.f32 %v2097_v37, %v2097_v37  ;;  %v996_v44 = vsel %vm702_vm2, %v2067_v57, 0.0  ;;  %v1326_v13 = vsel %vm702_vm2, %v1131_v28, 0.0  ;;  %v1132_v49 = vmul.f32 %v2091_v26, %v2091_v26 }
 0x17a   :  { %v1207_v48 = vadd.f32 %v1206_v10, %v1128_v9  ;;  %v995_v33 = vadd.f32 %v994_v11, %v993_v32  ;;  %v1323_v58 = vadd.f32 %v1322_v24, %v1321_v19  ;;  %v878_v7 = vadd.f32 %v877_v54, %v2061_v52  ;;  %v2707_v11 = vld [vmem:[#allocation6_spill] sm:$0xff] }
 0x17b   :  { %v1135_v29 = vmul.f32 %v2111_v45, %v2111_v45  ;;  %v998_v40 = vsel %vm702_vm2, %v2097_v37, 0.0  ;;  %v1328_v52 = vsel %vm702_vm2, %v1133_v30, 0.0  ;;  %v1134_v57 = vmul.f32 %v2105_v42, %v2105_v42 }
 0x17c   :  { %v1325_v38 = vadd.f32 %v1324_v36, %v1323_v58  ;;  %v1208_v55 = vadd.f32 %v1207_v48, %v1130_v15  ;;  %v997_v56 = vadd.f32 %v996_v44, %v995_v33  ;;  %v879_v61 = vadd.f32 %v878_v7, %v2091_v26  ;;  %v2708_v15 = vld [vmem:[#allocation9_spill] sm:$0xff] }
 0x17d   :  { %v1137_v51 = vmul.f32 %v2141_v27, %v2141_v27  ;;  %v1000_v8 = vsel %vm702_vm2, %v2111_v45, 0.0  ;;  %v1330_v26 = vsel %vm702_vm2, %v1135_v29, 0.0  ;;  %v1136_v37 = vmul.f32 %v2135_v20, %v2135_v20 }
 0x17e   :  { %v1327_v59 = vadd.f32 %v1326_v13, %v1325_v38  ;;  %v1209_v62 = vadd.f32 %v1208_v55, %v1132_v49  ;;  %v999_v53 = vadd.f32 %v998_v40, %v997_v56  ;;  %v880_v63 = vadd.f32 %v879_v61, %v2105_v42  ;;  %v2709_v49 = vld [vmem:[#allocation8_spill] sm:$0xff]  ;;  %v2710_v38 = vld [vmem:[#allocation11_spill] sm:$0xff] }
 0x17f   :  { %v1139_v3 = vmul.f32 %v2155_v43, %v2155_v43  ;;  %v1002_v46 = vsel %vm702_vm2, %v2141_v27, 0.0  ;;  %v1332_v42 = vsel %vm702_vm2, %v1137_v51, 0.0  ;;  %v1138_v45 = vmul.f32 %v2149_v34, %v2149_v34 }
 0x180   :  { %v1329_v60 = vadd.f32 %v1328_v52, %v1327_v59  ;;  %v1210_v21 = vadd.f32 %v1209_v62, %v1134_v57  ;;  %v1001_v0 = vadd.f32 %v1000_v8, %v999_v53  ;;  %v881_v12 = vadd.f32 %v880_v63, %v2135_v20  ;;  %v2711_v59 = vld [vmem:[#allocation10_spill] sm:$0xff]  ;;  %v2712_v53 = vld [vmem:[#allocation13_spill] sm:$0xff] }
 0x181   :  { %v1141_v18 = vmul.f32 %v2702_v25, %v2702_v25  ;;  %v1004_v41 = vsel %vm702_vm2, %v2155_v43, 0.0  ;;  %v1334_v20 = vsel %vm702_vm2, %v1139_v3, 0.0  ;;  %v1140_v27 = vmul.f32 %v2703_v4, %v2703_v4 }
 0x182   :  { %v1331_v31 = vadd.f32 %v1330_v26, %v1329_v60  ;;  %v1211_v5 = vadd.f32 %v1210_v21, %v1136_v37  ;;  %v1003_v17 = vadd.f32 %v1002_v46, %v1001_v0  ;;  %v882_v2 = vadd.f32 %v881_v12, %v2149_v34  ;;  %v2713_v0 = vld [vmem:[#allocation12_spill] sm:$0xff] }
 0x183   :  { %v1143_v14 = vmul.f32 %v2704_v35, %v2704_v35  ;;  %v1006_v22 = vsel %vm702_vm2, %v2702_v25, 0.0  ;;  %v1336_v34 = vsel %vm702_vm2, %v1141_v18, 0.0  ;;  %v1142_v43 = vmul.f32 %v2705_v23, %v2705_v23 }
 0x184   :  { %v1333_v39 = vadd.f32 %v1332_v42, %v1331_v31  ;;  %v1212_v6 = vadd.f32 %v1211_v5, %v1138_v45  ;;  %v1005_v16 = vadd.f32 %v1004_v41, %v1003_v17  ;;  %v883_v50 = vadd.f32 %v882_v2, %v2703_v4  ;;  %v2714_v5 = vld [vmem:[#allocation14_spill] sm:$0xff]  ;;  %v2715_v2 = vld [vmem:[#allocation15_spill] sm:$0xff] }
 0x185   :  { %v1145_v24 = vmul.f32 %v2706_v1, %v2706_v1  ;;  %v1008_v32 = vsel %vm702_vm2, %v2704_v35, 0.0  ;;  %v1338_v19 = vsel %vm702_vm2, %v1143_v14, 0.0  ;;  %v1144_v36 = vmul.f32 %v2707_v11, %v2707_v11 }
 0x186   :  { %v1335_v9 = vadd.f32 %v1334_v20, %v1333_v39  ;;  %v1213_v28 = vadd.f32 %v1212_v6, %v1140_v27  ;;  %v1007_v54 = vadd.f32 %v1006_v22, %v1005_v16  ;;  %v884_v10 = vadd.f32 %v883_v50, %v2705_v23  ;;  %v2716_v39 = vld [vmem:[#allocation16_spill] sm:$0xff]  ;;  %v2717_v16 = vld [vmem:[#allocation17_spill] sm:$0xff] }
 0x187   :  { %v1147_v30 = vmul.f32 %v2708_v15, %v2708_v15  ;;  %v1010_v44 = vsel %vm702_vm2, %v2706_v1, 0.0  ;;  %v1340_v13 = vsel %vm702_vm2, %v1145_v24, 0.0  ;;  %v1146_v29 = vmul.f32 %v2709_v49, %v2709_v49 }
 0x188   :  { %v1337_v48 = vadd.f32 %v1336_v34, %v1335_v9  ;;  %v1214_v33 = vadd.f32 %v1213_v28, %v1142_v43  ;;  %v1009_v58 = vadd.f32 %v1008_v32, %v1007_v54  ;;  %v885_v7 = vadd.f32 %v884_v10, %v2707_v11  ;;  %v2718_v34 = vld [vmem:[#allocation18_spill] sm:$0xff] }
 0x189   :  { %v1149_v55 = vmul.f32 %v2710_v38, %v2710_v38  ;;  %v1012_v57 = vsel %vm702_vm2, %v2708_v15, 0.0  ;;  %v1342_v51 = vsel %vm702_vm2, %v1147_v30, 0.0  ;;  %v1148_v62 = vmul.f32 %v2711_v59, %v2711_v59 }
 0x18a   :  { %v1339_v56 = vadd.f32 %v1338_v19, %v1337_v48  ;;  %v1215_v61 = vadd.f32 %v1214_v33, %v1144_v36  ;;  %v1011_v40 = vadd.f32 %v1010_v44, %v1009_v58  ;;  %v886_v52 = vadd.f32 %v885_v7, %v2709_v49  ;;  %v2719_v48 = vld [vmem:[#allocation19_spill] sm:$0xff]  ;;  %v2720_v58 = vld [vmem:[#allocation20_spill] sm:$0xff] }
 0x18b   :  { %v1151_v63 = vmul.f32 %v2712_v53, %v2712_v53  ;;  %v1014_v60 = vsel %vm702_vm2, %v2710_v38, 0.0  ;;  %v1344_v21 = vsel %vm702_vm2, %v1149_v55, 0.0  ;;  %v1150_v12 = vmul.f32 %v2713_v0, %v2713_v0 }
 0x18c   :  { %v1341_v8 = vadd.f32 %v1340_v13, %v1339_v56  ;;  %v1216_v26 = vadd.f32 %v1215_v61, %v1146_v29  ;;  %v1013_v37 = vadd.f32 %v1012_v57, %v1011_v40  ;;  %v887_v3 = vadd.f32 %v886_v52, %v2711_v59 }
 0x18d   :  { %v1016_v46 = vsel %vm702_vm2, %v2712_v53, 0.0  ;;  %v1346_v31 = vsel %vm702_vm2, %v1151_v63, 0.0  ;;  %v1152_v17 = vmul.f32 %v2714_v5, %v2714_v5  ;;  %v1018_v41 = vsel %vm702_vm2, %v2715_v2, 0.0 }
 0x18e   :  { %v1343_v42 = vadd.f32 %v1342_v51, %v1341_v8  ;;  %v1217_v45 = vadd.f32 %v1216_v26, %v1148_v62  ;;  %v1015_v25 = vadd.f32 %v1014_v60, %v1013_v37  ;;  %v888_v18 = vadd.f32 %v887_v3, %v2713_v0 }
 0x18f   :  { %v1153_v20 = vmul.f32 %v2715_v2, %v2715_v2  ;;  %v1154_v6 = vmul.f32 %v2716_v39, %v2716_v39  ;;  %v1155_v50 = vmul.f32 %v2717_v16, %v2717_v16  ;;  %v1156_v22 = vmul.f32 %v2363_v47, %v2363_v47 }
 0x190   :  { %v1345_v4 = vadd.f32 %v1344_v21, %v1343_v42  ;;  %v1218_v27 = vadd.f32 %v1217_v45, %v1150_v12  ;;  %v1017_v35 = vadd.f32 %v1016_v46, %v1015_v25  ;;  %v889_v14 = vadd.f32 %v888_v18, %v2714_v5 }
 0x191   :  { %v1157_v23 = vmul.f32 %v2718_v34, %v2718_v34  ;;  %v1348_v28 = vsel %vm702_vm2, %v1153_v20, 0.0  ;;  %v1020_v54 = vsel %vm702_vm2, %v2717_v16, 0.0  ;;  %v1022_v10 = vsel %vm702_vm2, %v2718_v34, 0.0 }
 0x192   :  { %v1347_v43 = vadd.f32 %v1346_v31, %v1345_v4  ;;  %v1219_v1 = vadd.f32 %v1218_v27, %v1152_v17  ;;  %v1019_v24 = vadd.f32 %v1018_v41, %v1017_v35  ;;  %v890_v9 = vadd.f32 %v889_v14, %v2716_v39 }
 0x193   :  { %v1350_v15 = vsel %vm702_vm2, %v1155_v50, 0.0  ;;  %v1352_v30 = vsel %vm702_vm2, %v1157_v23, 0.0  ;;  %v1158_v33 = vmul.f32 %v2719_v48, %v2719_v48  ;;  %v1159_v7 = vmul.f32 %v2720_v58, %v2720_v58 }
 0x194   :  { %v1349_v32 = vadd.f32 %v1348_v28, %v1347_v43  ;;  %v1220_v19 = vadd.f32 %v1219_v1, %v1154_v6  ;;  %v1021_v11 = vadd.f32 %v1020_v54, %v1019_v24  ;;  %v891_v36 = vadd.f32 %v890_v9, %v2363_v47 }
 0x195   :  { %v1024_v38 = vsel %vm702_vm2, %v2720_v58, 0.0  ;;  %v1354_v40 = vsel %vm702_vm2, %v1159_v7, 0.0  ;;  %v1494_v21 = vmov 1983009808   ;;  %v1371_v12 = vlaneseq }
 0x196   :  { %v1351_v44 = vadd.f32 %v1350_v15, %v1349_v32  ;;  %v1221_v13 = vadd.f32 %v1220_v19, %v1156_v22  ;;  %v1023_v49 = vadd.f32 %v1022_v10, %v1021_v11  ;;  %v892_v29 = vadd.f32 %v891_v36, %v2719_v48 }
 0x197   :  { %v1369_v0 = vunpack.c.l.s4 %v1494_v21  ;;  %v1372_v2 = vshrl.u32 %v1371_v12, 7 }
 0x198   :  { %v1353_v55 = vadd.f32 %v1352_v30, %v1351_v44  ;;  %v893_v47 = vrot.slane %v892_v29, 4  ;;  %v1222_v56 = vadd.f32 %v1221_v13, %v1158_v33  ;;  %v1025_v61 = vadd.f32 %v1024_v38, %v1023_v49 }
 0x199   :  { %v1370_v17 = vunpack.c.0.s8 %v1369_v0 }
 0x19a   :  { %v894_v52 = vadd.f32 %v893_v47, %v892_v29  ;;  %v1223_v57 = vrot.slane %v1222_v56, 4  ;;  %v1026_v51 = vrot.slane %v1025_v61, 4  ;;  %v1355_v59 = vadd.f32 %v1354_v40, %v1353_v55 }
 0x19b   :  { %v1373_v39 = vsub.s32 %v1370_v17, %v1372_v2 }
 0x19c   :  { %v895_v62 = vrot.slane %v894_v52, 2  ;;  %v1224_v53 = vadd.f32 %v1223_v57, %v1222_v56  ;;  %v1027_v63 = vadd.f32 %v1026_v51, %v1025_v61  ;;  %v1356_v8 = vrot.slane %v1355_v59, 4 }
 0x19e   :  { %v896_v26 = vadd.f32 %v895_v62, %v894_v52  ;;  %v1225_v37 = vrot.slane %v1224_v53, 2  ;;  %v1028_v3 = vrot.slane %v1027_v63, 2  ;;  %v1357_v60 = vadd.f32 %v1356_v8, %v1355_v59 }
 0x1a0   :  { %v897_v46 = vrot.slane %v896_v26, 1  ;;  %v1226_v42 = vadd.f32 %v1225_v37, %v1224_v53  ;;  %v1029_v45 = vadd.f32 %v1028_v3, %v1027_v63  ;;  %v1358_v25 = vrot.slane %v1357_v60, 2 }
 0x1a2   :  { %v1227_v18 = vrot.slane %v1226_v42, 1  ;;  %v1030_v31 = vrot.slane %v1029_v45, 1  ;;  %v1359_v5 = vadd.f32 %v1358_v25, %v1357_v60  ;;  %v898_v41 = vadd.f32 %v897_v46, %v896_v26 }
 0x1a4   :  { %v1228_v20 = vadd.f32 %v1227_v18, %v1226_v42  ;;  %v1360_v4 = vrot.slane %v1359_v5, 1  ;;  %v1031_v35 = vadd.f32 %v1030_v31, %v1029_v45 }
 0x1a6   :  { %v1363_v27 = vsel %vm1362_vm3, %v898_v41, %v1228_v20  ;;  %v1361_v14 = vadd.f32 %v1360_v4, %v1359_v5 }
 0x1a8   :  { %v1364_v6 = vsel %vm1362_vm3, %v1031_v35, %v1361_v14 }
 0x1a9   :  { %v1367_v16 = vcombine.low %v1363_v27, %v1364_v6 }
 0x1ab   :  { %v1374_v50 = vrot.slane %v1367_v16, %v1373_v39 }
 0x1ad   :  { %1379 = vst.msk [vmem:[%s2644_s3] sm:$0xf] %vm1378_vm6, %v1374_v50 }

// kernel: reduction_block_b.15
= control target key start
LH: loop header
LB: loop body
LE: loop exit
PB: predicated region body
PF: predicated region fallthrough
CT: control target
= control target key end

     0   :  { %vm3166_vm0 = vcmask 523264   ;;  %vm6041_vm1 = vcmask 1040384   ;;  %vm6055_vm2 = vcmask 1041408   ;;  %vm6056_vm3 = vcmask 519170   ;;  %s10250_s1 = inlined_call_operand.vmem [shape: bf16[1344,192], index: 1, kind: input, shape index: {}]   ;;  %s10251_s0 = inlined_call_operand.vmem [shape: bf16[512,1344], index: 0, kind: input, shape index: {}]   ;;  %s10252_s2 = inlined_call_operand.vmem [shape: f32[512,192], index: 2, kind: output, shape index: {0}]   ;;  %s10253_s3 = inlined_call_operand.vmem [shape: f32[1,2,192], index: 3, kind: output, shape index: {1}]  }
   0x1   :  { %v7261_v0 = vld [vmem:[%s10250_s1 + $0x4] ss:$8 sps:$4 sm:$0xff]   ;;  %v7265_v2 = vld [vmem:[%s10250_s1] ss:$8 sps:$4 sm:$0xff]   ;;  %v7267_v4 = vld [vmem:[%s10250_s1 + $0x14] ss:$8 sps:$4 sm:$0xff]  }
   0x2   :  { %v7263_v1 = vld [vmem:[%s10250_s1 + $0x304] ss:$8 sps:$4 sm:$0xff]   ;;  %3263 = vmatprep.subr.bf16.mxu1 %v7261_v0  ;;  %v7266_v3 = vld [vmem:[%s10250_s1 + $0x300] ss:$8 sps:$4 sm:$0xff]   ;;  %v7269_v5 = vld [vmem:[%s10250_s1 + $0x314] ss:$8 sps:$4 sm:$0xff]  }
   0x3   :  { %4322 = vmatprep.subr.bf16.mxu0 %v7263_v1  ;;  %3264 = vmatpush1.bf16.msra.mxu1 %v7265_v2  ;;  %v7271_v6 = vld [vmem:[%s10250_s1 + $0x10] ss:$8 sps:$4 sm:$0xff]   ;;  %v7273_v8 = vld [vmem:[%s10250_s1 + $0x24] ss:$8 sps:$4 sm:$0xff]   ;;  %v7277_v10 = vld [vmem:[%s10250_s1 + $0x20] ss:$8 sps:$4 sm:$0xff]  }
   0x4   :  { %4323 = vmatpush1.bf16.msra.mxu0 %v7266_v3  ;;  %3265 = vmatprep.subr.bf16.mxu1 %v7267_v4  ;;  %v7272_v7 = vld [vmem:[%s10250_s1 + $0x310] ss:$8 sps:$4 sm:$0xff]   ;;  %v7275_v9 = vld [vmem:[%s10250_s1 + $0x324] ss:$8 sps:$4 sm:$0xff]   ;;  %v7278_v11 = vld [vmem:[%s10250_s1 + $0x320] ss:$8 sps:$4 sm:$0xff]  }
   0x5   :  { %4324 = vmatprep.subr.bf16.mxu0 %v7269_v5  ;;  %v7279_v12 = vld [vmem:[%s10250_s1 + $0x34] ss:$8 sps:$4 sm:$0xff]   ;;  %v7283_v14 = vld [vmem:[%s10250_s1 + $0x30] ss:$8 sps:$4 sm:$0xff]   ;;  %v7285_v16 = vld [vmem:[%s10250_s1 + $0x44] ss:$8 sps:$4 sm:$0xff]  }
   0x6   :  { %v7281_v13 = vld [vmem:[%s10250_s1 + $0x334] ss:$8 sps:$4 sm:$0xff]   ;;  %v7284_v15 = vld [vmem:[%s10250_s1 + $0x330] ss:$8 sps:$4 sm:$0xff]   ;;  %v7287_v17 = vld [vmem:[%s10250_s1 + $0x344] ss:$8 sps:$4 sm:$0xff]  }
   0x7   :  { %3266 = vmatpush1.bf16.msra.mxu1 %v7271_v6  ;;  %v7289_v18 = vld [vmem:[%s10250_s1 + $0x40] ss:$8 sps:$4 sm:$0xff]   ;;  %v7291_v20 = vld [vmem:[%s10250_s1 + $0x54] ss:$8 sps:$4 sm:$0xff]   ;;  %v7295_v22 = vld [vmem:[%s10250_s1 + $0x50] ss:$8 sps:$4 sm:$0xff]  }
   0x8   :  { %4325 = vmatpush1.bf16.msra.mxu0 %v7272_v7  ;;  %3267 = vmatprep.subr.bf16.mxu1 %v7273_v8  ;;  %v7290_v19 = vld [vmem:[%s10250_s1 + $0x340] ss:$8 sps:$4 sm:$0xff]   ;;  %v7293_v21 = vld [vmem:[%s10250_s1 + $0x354] ss:$8 sps:$4 sm:$0xff]   ;;  %v7296_v23 = vld [vmem:[%s10250_s1 + $0x350] ss:$8 sps:$4 sm:$0xff]  }
   0x9   :  { %4326 = vmatprep.subr.bf16.mxu0 %v7275_v9  ;;  %v7297_v24 = vld [vmem:[%s10250_s1 + $0x64] ss:$8 sps:$4 sm:$0xff]   ;;  %v7301_v26 = vld [vmem:[%s10250_s1 + $0x60] ss:$8 sps:$4 sm:$0xff]   ;;  %v7303_v28 = vld [vmem:[%s10250_s1 + $0x74] ss:$8 sps:$4 sm:$0xff]  }
   0xa   :  { %v7299_v25 = vld [vmem:[%s10250_s1 + $0x364] ss:$8 sps:$4 sm:$0xff]   ;;  %v7302_v27 = vld [vmem:[%s10250_s1 + $0x360] ss:$8 sps:$4 sm:$0xff]   ;;  %v7305_v29 = vld [vmem:[%s10250_s1 + $0x374] ss:$8 sps:$4 sm:$0xff]  }
   0xb   :  { %3268 = vmatpush1.bf16.msra.mxu1 %v7277_v10  ;;  %v7307_v30 = vld [vmem:[%s10250_s1 + $0x70] ss:$8 sps:$4 sm:$0xff]   ;;  %v7309_v32 = vld [vmem:[%s10250_s1 + $0x84] ss:$8 sps:$4 sm:$0xff]   ;;  %v7313_v34 = vld [vmem:[%s10250_s1 + $0x80] ss:$8 sps:$4 sm:$0xff]  }
   0xc   :  { %4327 = vmatpush1.bf16.msra.mxu0 %v7278_v11  ;;  %3269 = vmatprep.subr.bf16.mxu1 %v7279_v12  ;;  %v7308_v31 = vld [vmem:[%s10250_s1 + $0x370] ss:$8 sps:$4 sm:$0xff]   ;;  %v7311_v33 = vld [vmem:[%s10250_s1 + $0x384] ss:$8 sps:$4 sm:$0xff]   ;;  %v7314_v35 = vld [vmem:[%s10250_s1 + $0x380] ss:$8 sps:$4 sm:$0xff]  }
   0xd   :  { %4328 = vmatprep.subr.bf16.mxu0 %v7281_v13  ;;  %v7315_v36 = vld [vmem:[%s10250_s1 + $0x94] ss:$8 sps:$4 sm:$0xff]   ;;  %v7319_v38 = vld [vmem:[%s10250_s1 + $0x90] ss:$8 sps:$4 sm:$0xff]   ;;  %v7321_v40 = vld [vmem:[%s10250_s1 + $0xa4] ss:$8 sps:$4 sm:$0xff]  }
   0xe   :  { %v7317_v37 = vld [vmem:[%s10250_s1 + $0x394] ss:$8 sps:$4 sm:$0xff]   ;;  %v7320_v39 = vld [vmem:[%s10250_s1 + $0x390] ss:$8 sps:$4 sm:$0xff]   ;;  %v7323_v41 = vld [vmem:[%s10250_s1 + $0x3a4] ss:$8 sps:$4 sm:$0xff]  }
   0xf   :  { %3270 = vmatpush1.bf16.msra.mxu1 %v7283_v14  ;;  %v7325_v42 = vld [vmem:[%s10250_s1 + $0xa0] ss:$8 sps:$4 sm:$0xff]   ;;  %v7327_v44 = vld [vmem:[%s10250_s1 + $0xb4] ss:$8 sps:$4 sm:$0xff]   ;;  %v7331_v46 = vld [vmem:[%s10250_s1 + $0xb0] ss:$8 sps:$4 sm:$0xff]  }
  0x10   :  { %4329 = vmatpush1.bf16.msra.mxu0 %v7284_v15  ;;  %3271 = vmatprep.subr.bf16.mxu1 %v7285_v16  ;;  %v7326_v43 = vld [vmem:[%s10250_s1 + $0x3a0] ss:$8 sps:$4 sm:$0xff]   ;;  %v7329_v45 = vld [vmem:[%s10250_s1 + $0x3b4] ss:$8 sps:$4 sm:$0xff]   ;;  %v7332_v47 = vld [vmem:[%s10250_s1 + $0x3b0] ss:$8 sps:$4 sm:$0xff]  }
  0x11   :  { %4330 = vmatprep.subr.bf16.mxu0 %v7287_v17  ;;  %v7333_v48 = vld [vmem:[%s10250_s1 + $0xc4] ss:$8 sps:$4 sm:$0xff]   ;;  %v7362_v51 = vld [vmem:[%s10251_s0 + $0x1c] ss:$44 sps:$4 sm:$0xff]   ;;  %v7343_v56 = vld [vmem:[%s10250_s1 + $0xd0] ss:$8 sps:$4 sm:$0xff]  }
  0x12   :  { %v7359_v49 = vld [vmem:[%s10251_s0 + $0x4] ss:$44 sps:$4 sm:$0xff]   ;;  %v7337_v52 = vld [vmem:[%s10250_s1 + $0xc0] ss:$8 sps:$4 sm:$0xff]   ;;  %4354 = vmatprep.mubr.bf16.mxu0 %v7362_v51  ;;  %v7339_v54 = vld [vmem:[%s10250_s1 + $0xd4] ss:$8 sps:$4 sm:$0xff]  }
  0x13   :  { %3272 = vmatpush1.bf16.msra.mxu1 %v7289_v18  ;;  %v7335_v50 = vld [vmem:[%s10250_s1 + $0x3c4] ss:$8 sps:$4 sm:$0xff]   ;;  %3295 = vmatprep.mubr.bf16.mxu1 %v7359_v49  ;;  %v7338_v53 = vld [vmem:[%s10250_s1 + $0x3c0] ss:$8 sps:$4 sm:$0xff]   ;;  %v7341_v55 = vld [vmem:[%s10250_s1 + $0x3d4] ss:$8 sps:$4 sm:$0xff]  }
  0x14   :  { %4331 = vmatpush1.bf16.msra.mxu0 %v7290_v19  ;;  %3273 = vmatprep.subr.bf16.mxu1 %v7291_v20  ;;  %v7344_v57 = vld [vmem:[%s10250_s1 + $0x3d0] ss:$8 sps:$4 sm:$0xff]   ;;  %v7345_v58 = vld [vmem:[%s10250_s1 + $0xe4] ss:$8 sps:$4 sm:$0xff]   ;;  %v7349_v60 = vld [vmem:[%s10250_s1 + $0xe0] ss:$8 sps:$4 sm:$0xff]  }
  0x15   :  { %4332 = vmatprep.subr.bf16.mxu0 %v7293_v21  ;;  %v7347_v59 = vld [vmem:[%s10250_s1 + $0x3e4] ss:$8 sps:$4 sm:$0xff]   ;;  %v7350_v61 = vld [vmem:[%s10250_s1 + $0x3e0] ss:$8 sps:$4 sm:$0xff]   ;;  %v7351_v62 = vld [vmem:[%s10250_s1 + $0xf4] ss:$8 sps:$4 sm:$0xff]  }
  0x16   :  { %v7353_v63 = vld [vmem:[%s10250_s1 + $0x3f4] ss:$8 sps:$4 sm:$0xff]   ;;  %v7355_v0 = vld [vmem:[%s10250_s1 + $0xf0] ss:$8 sps:$4 sm:$0xff]   ;;  %v7365_v2 = vld [vmem:[%s10250_s1 + $0x104] ss:$8 sps:$4 sm:$0xff]  }
  0x17   :  { %3274 = vmatpush1.bf16.msra.mxu1 %v7295_v22  ;;  %v7356_v1 = vld [vmem:[%s10250_s1 + $0x3f0] ss:$8 sps:$4 sm:$0xff]   ;;  %v7368_v3 = vld [vmem:[%s10250_s1 + $0x404] ss:$8 sps:$4 sm:$0xff]   ;;  %v7363_v6 = vld [vmem:[%s10250_s1 + $0x100] ss:$8 sps:$4 sm:$0xff]  }
  0x18   :  { %4333 = vmatpush1.bf16.msra.mxu0 %v7296_v23  ;;  %3275 = vmatprep.subr.bf16.mxu1 %v7297_v24  ;;  %v7357_v4 = vld [vmem:[%s10251_s0] ss:$44 sps:$4 sm:$0xff]   ;;  %v7360_v5 = vld [vmem:[%s10251_s0 + $0x18] ss:$44 sps:$4 sm:$0xff]   ;;  %v7369_v8 = vld [vmem:[%s10251_s0 + $0x5c] ss:$44 sps:$4 sm:$0xff]  }
  0x19   :  { %4334 = vmatprep.subr.bf16.mxu0 %v7299_v25  ;;  %v7366_v7 = vld [vmem:[%s10250_s1 + $0x400] ss:$8 sps:$4 sm:$0xff]   ;;  %v7382_v10 = vld [vmem:[%s10250_s1 + $0x114] ss:$8 sps:$4 sm:$0xff]   ;;  %v7380_v12 = vld [vmem:[%s10250_s1 + $0x110] ss:$8 sps:$4 sm:$0xff]  }
  0x1a   :  { %v7371_v9 = vld [vmem:[%s10251_s0 + $0x74] ss:$44 sps:$4 sm:$0xff]   ;;  %v7384_v13 = vld [vmem:[%s10250_s1 + $0x410] ss:$8 sps:$4 sm:$0xff]   ;;  %v7400_v14 = vld [vmem:[%s10250_s1 + $0x124] ss:$8 sps:$4 sm:$0xff]  }
  0x1b   :  { %3276 = vmatpush1.bf16.msra.mxu1 %v7301_v26  ;;  %v7386_v11 = vld [vmem:[%s10250_s1 + $0x414] ss:$8 sps:$4 sm:$0xff]   ;;  %v7404_v15 = vld [vmem:[%s10250_s1 + $0x424] ss:$8 sps:$4 sm:$0xff]   ;;  %v7398_v20 = vld [vmem:[%s10250_s1 + $0x120] ss:$8 sps:$4 sm:$0xff]  }
  0x1c   :  { %4335 = vmatpush1.bf16.msra.mxu0 %v7302_v27  ;;  %3277 = vmatprep.subr.bf16.mxu1 %v7303_v28  ;;  %v7373_v16 = vld [vmem:[%s10251_s0 + $0x58] ss:$44 sps:$4 sm:$0xff]   ;;  %v7374_v17 = vld [vmem:[%s10251_s0 + $0x70] ss:$44 sps:$4 sm:$0xff]   ;;  %v7375_v18 = vld [vmem:[%s10251_s0 + $0xb4] ss:$44 sps:$4 sm:$0xff]  }
  0x1d   :  { %4336 = vmatprep.subr.bf16.mxu0 %v7305_v29  ;;  %v7377_v19 = vld [vmem:[%s10251_s0 + $0xcc] ss:$44 sps:$4 sm:$0xff]   ;;  %v7402_v21 = vld [vmem:[%s10250_s1 + $0x420] ss:$8 sps:$4 sm:$0xff]   ;;  %v7418_v22 = vld [vmem:[%s10250_s1 + $0x134] ss:$8 sps:$4 sm:$0xff]  }
  0x1e   :  { %v7422_v23 = vld [vmem:[%s10250_s1 + $0x434] ss:$8 sps:$4 sm:$0xff]   ;;  %v7416_v24 = vld [vmem:[%s10250_s1 + $0x130] ss:$8 sps:$4 sm:$0xff]   ;;  %v7436_v29 = vld [vmem:[%s10250_s1 + $0x144] ss:$8 sps:$4 sm:$0xff]  }
  0x1f   :  { %3278 = vmatpush1.bf16.msra.mxu1 %v7307_v30  ;;  %v7379_v25 = vld [vmem:[%s10251_s0 + $0xb0] ss:$44 sps:$4 sm:$0xff]   ;;  %v7383_v26 = vld [vmem:[%s10251_s0 + $0xc8] ss:$44 sps:$4 sm:$0xff]   ;;  %v7387_v28 = vld [vmem:[%s10251_s0 + $0x10c] ss:$44 sps:$4 sm:$0xff]  }
  0x20   :  { %4337 = vmatpush1.bf16.msra.mxu0 %v7308_v31  ;;  %3279 = vmatprep.subr.bf16.mxu1 %v7309_v32  ;;  %v7420_v27 = vld [vmem:[%s10250_s1 + $0x430] ss:$8 sps:$4 sm:$0xff]   ;;  %v7440_v31 = vld [vmem:[%s10250_s1 + $0x444] ss:$8 sps:$4 sm:$0xff]   ;;  %v7434_v32 = vld [vmem:[%s10250_s1 + $0x140] ss:$8 sps:$4 sm:$0xff]  }
  0x21   :  { %4338 = vmatprep.subr.bf16.mxu0 %v7311_v33  ;;  %v7389_v30 = vld [vmem:[%s10251_s0 + $0x124] ss:$44 sps:$4 sm:$0xff]   ;;  %v7438_v33 = vld [vmem:[%s10250_s1 + $0x440] ss:$8 sps:$4 sm:$0xff]   ;;  %vm6057_vm4 = vmor %vm6056_vm3, %vm6055_vm2 }
  0x22   :  { %v7407_v49 = vld [vmem:[%s10251_s0 + $0x1d4] ss:$44 sps:$4 sm:$0xff]   ;;  %v7410_v51 = vld [vmem:[%s10251_s0 + $0x1d0] ss:$44 sps:$4 sm:$0xff]  }
  0x23   :  { %3280 = vmatpush1.bf16.msra.mxu1 %v7313_v34  ;;  %v7391_v34 = vld [vmem:[%s10251_s0 + $0x108] ss:$44 sps:$4 sm:$0xff]  }
  0x24   :  { %4339 = vmatpush1.bf16.msra.mxu0 %v7314_v35  ;;  %3281 = vmatprep.subr.bf16.mxu1 %v7315_v36  ;;  %v7392_v35 = vld [vmem:[%s10251_s0 + $0x120] ss:$44 sps:$4 sm:$0xff]   ;;  %v7452_v36 = vld [vmem:[%s10250_s1 + $0x150] ss:$8 sps:$4 sm:$0xff]  }
  0x25   :  { %4340 = vmatprep.subr.bf16.mxu0 %v7317_v37  ;;  %v7393_v37 = vld [vmem:[%s10251_s0 + $0x164] ss:$44 sps:$4 sm:$0xff]  }
  0x27   :  { %3282 = vmatpush1.bf16.msra.mxu1 %v7319_v38  ;;  %v7454_v38 = vld [vmem:[%s10250_s1 + $0x154] ss:$8 sps:$4 sm:$0xff]  }
  0x28   :  { %4341 = vmatpush1.bf16.msra.mxu0 %v7320_v39  ;;  %3283 = vmatprep.subr.bf16.mxu1 %v7321_v40  ;;  %v7456_v39 = vld [vmem:[%s10250_s1 + $0x450] ss:$8 sps:$4 sm:$0xff]   ;;  %v7458_v40 = vld [vmem:[%s10250_s1 + $0x454] ss:$8 sps:$4 sm:$0xff]  }
  0x29   :  { %4342 = vmatprep.subr.bf16.mxu0 %v7323_v41  ;;  %v7395_v41 = vld [vmem:[%s10251_s0 + $0x17c] ss:$44 sps:$4 sm:$0xff]  }
  0x2b   :  { %3284 = vmatpush1.bf16.msra.mxu1 %v7325_v42  ;;  %v7397_v42 = vld [vmem:[%s10251_s0 + $0x160] ss:$44 sps:$4 sm:$0xff]  }
  0x2c   :  { %4343 = vmatpush1.bf16.msra.mxu0 %v7326_v43  ;;  %3285 = vmatprep.subr.bf16.mxu1 %v7327_v44  ;;  %v7401_v43 = vld [vmem:[%s10251_s0 + $0x178] ss:$44 sps:$4 sm:$0xff]   ;;  %v7470_v44 = vld [vmem:[%s10250_s1 + $0x160] ss:$8 sps:$4 sm:$0xff]  }
  0x2d   :  { %4344 = vmatprep.subr.bf16.mxu0 %v7329_v45  ;;  %v7405_v45 = vld [vmem:[%s10251_s0 + $0x1bc] ss:$44 sps:$4 sm:$0xff]  }
  0x2f   :  { %3286 = vmatpush1.bf16.msra.mxu1 %v7331_v46  ;;  %v7472_v46 = vld [vmem:[%s10250_s1 + $0x164] ss:$8 sps:$4 sm:$0xff]  }
  0x30   :  { %4345 = vmatpush1.bf16.msra.mxu0 %v7332_v47  ;;  %3287 = vmatprep.subr.bf16.mxu1 %v7333_v48  ;;  %v7474_v47 = vld [vmem:[%s10250_s1 + $0x460] ss:$8 sps:$4 sm:$0xff]   ;;  %v7476_v48 = vld [vmem:[%s10250_s1 + $0x464] ss:$8 sps:$4 sm:$0xff]  }
  0x31   :  { %4346 = vmatprep.subr.bf16.mxu0 %v7335_v50  ;;  %v7409_v50 = vld [vmem:[%s10251_s0 + $0x1b8] ss:$44 sps:$4 sm:$0xff]  }
  0x33   :  { %3288 = vmatpush1.bf16.msra.mxu1 %v7337_v52  ;;  %v7488_v52 = vld [vmem:[%s10250_s1 + $0x170] ss:$8 sps:$4 sm:$0xff]  }
  0x34   :  { %4347 = vmatpush1.bf16.msra.mxu0 %v7338_v53  ;;  %3289 = vmatprep.subr.bf16.mxu1 %v7339_v54  ;;  %v7411_v53 = vld [vmem:[%s10251_s0 + $0x214] ss:$44 sps:$4 sm:$0xff]  }
  0x35   :  { %4348 = vmatprep.subr.bf16.mxu0 %v7341_v55  ;;  %v7490_v54 = vld [vmem:[%s10250_s1 + $0x174] ss:$8 sps:$4 sm:$0xff]   ;;  %v7492_v55 = vld [vmem:[%s10250_s1 + $0x470] ss:$8 sps:$4 sm:$0xff]  }
  0x37   :  { %3290 = vmatpush1.bf16.msra.mxu1 %v7343_v56  ;;  %v7494_v56 = vld [vmem:[%s10250_s1 + $0x474] ss:$8 sps:$4 sm:$0xff]  }
  0x38   :  { %4349 = vmatpush1.bf16.msra.mxu0 %v7344_v57  ;;  %3291 = vmatprep.subr.bf16.mxu1 %v7345_v58  ;;  %v7413_v57 = vld [vmem:[%s10251_s0 + $0x22c] ss:$44 sps:$4 sm:$0xff]   ;;  %v7415_v58 = vld [vmem:[%s10251_s0 + $0x210] ss:$44 sps:$4 sm:$0xff]  }
  0x39   :  { %4350 = vmatprep.subr.bf16.mxu0 %v7347_v59  ;;  %v7419_v59 = vld [vmem:[%s10251_s0 + $0x228] ss:$44 sps:$4 sm:$0xff]  }
  0x3b   :  { %3292 = vmatpush1.bf16.msra.mxu1 %v7349_v60  ;;  %v7506_v60 = vld [vmem:[%s10250_s1 + $0x180] ss:$8 sps:$4 sm:$0xff]  }
  0x3c   :  { %4351 = vmatpush1.bf16.msra.mxu0 %v7350_v61  ;;  %3293 = vmatprep.subr.bf16.mxu1 %v7351_v62  ;;  %v7423_v61 = vld [vmem:[%s10251_s0 + $0x26c] ss:$44 sps:$4 sm:$0xff]  }
  0x3d   :  { %4352 = vmatprep.subr.bf16.mxu0 %v7353_v63  ;;  %v7508_v62 = vld [vmem:[%s10250_s1 + $0x184] ss:$8 sps:$4 sm:$0xff]   ;;  %v7510_v63 = vld [vmem:[%s10250_s1 + $0x480] ss:$8 sps:$4 sm:$0xff]  }
  0x3f   :  { %3294 = vmatpush1.bf16.msra.mxu1 %v7355_v0  ;;  %v7512_v0 = vld [vmem:[%s10250_s1 + $0x484] ss:$8 sps:$4 sm:$0xff]  }
  0x40   :  { %4353 = vmatpush1.bf16.msra.mxu0 %v7356_v1  ;;  %3616 = vmatprep.subr.bf16.mxu1 %v7365_v2  ;;  %v7425_v1 = vld [vmem:[%s10251_s0 + $0x284] ss:$44 sps:$4 sm:$0xff]   ;;  %v7427_v2 = vld [vmem:[%s10251_s0 + $0x268] ss:$44 sps:$4 sm:$0xff]  }
  0x41   :  { %4675 = vmatprep.subr.bf16.mxu0 %v7368_v3  ;;  %v7428_v3 = vld [vmem:[%s10251_s0 + $0x280] ss:$44 sps:$4 sm:$0xff]  }
  0x42   :  { %3296 = vmatmul.mubr.bf16.vlgmr.msra.gmra.mrb[0].mxu1 %v7357_v4  ;;  %v7524_v4 = vld [vmem:[%s10250_s1 + $0x190] ss:$8 sps:$4 sm:$0xff]  }
  0x43   :  { %4355 = vmatmul.mubr.bf16.vlgmr.msra.gmra.mrb[0].mxu0 %v7360_v5  ;;  %3617 = vmatpush1.bf16.msra.mxu1 %v7363_v6  ;;  %v7429_v5 = vld [vmem:[%s10251_s0 + $0x2c4] ss:$44 sps:$4 sm:$0xff]   ;;  %v7526_v6 = vld [vmem:[%s10250_s1 + $0x194] ss:$8 sps:$4 sm:$0xff]  }
  0x44   :  { %4676 = vmatpush1.bf16.msra.mxu0 %v7366_v7  ;;  %3305 = vmatprep.mubr.bf16.mxu1 %v7369_v8  ;;  %v7528_v7 = vld [vmem:[%s10250_s1 + $0x490] ss:$8 sps:$4 sm:$0xff]   ;;  %v7530_v8 = vld [vmem:[%s10250_s1 + $0x494] ss:$8 sps:$4 sm:$0xff]  }
  0x45   :  { %4364 = vmatprep.mubr.bf16.mxu0 %v7371_v9  ;;  %3618 = vmatprep.subr.bf16.mxu1 %v7382_v10  ;;  %v7431_v9 = vld [vmem:[%s10251_s0 + $0x2dc] ss:$44 sps:$4 sm:$0xff]   ;;  %v7433_v10 = vld [vmem:[%s10251_s0 + $0x2c0] ss:$44 sps:$4 sm:$0xff]  }
  0x46   :  { %4677 = vmatprep.subr.bf16.mxu0 %v7386_v11  ;;  %v7437_v11 = vld [vmem:[%s10251_s0 + $0x2d8] ss:$44 sps:$4 sm:$0xff]  }
  0x47   :  { %3619 = vmatpush1.bf16.msra.mxu1 %v7380_v12  ;;  %v7542_v12 = vld [vmem:[%s10250_s1 + $0x1a0] ss:$8 sps:$4 sm:$0xff]  }
  0x48   :  { %4678 = vmatpush1.bf16.msra.mxu0 %v7384_v13  ;;  %3620 = vmatprep.subr.bf16.mxu1 %v7400_v14  ;;  %v7441_v13 = vld [vmem:[%s10251_s0 + $0x31c] ss:$44 sps:$4 sm:$0xff]   ;;  %v7544_v14 = vld [vmem:[%s10250_s1 + $0x1a4] ss:$8 sps:$4 sm:$0xff]  }
  0x49   :  { %4679 = vmatprep.subr.bf16.mxu0 %v7404_v15  ;;  %v7546_v15 = vld [vmem:[%s10250_s1 + $0x4a0] ss:$8 sps:$4 sm:$0xff]  }
  0x4a   :  { %3306 = vmatmul.mubr.bf16.gmra.mrb[4].mxu1 %v7373_v16  ;;  %v7548_v16 = vld [vmem:[%s10250_s1 + $0x4a4] ss:$8 sps:$4 sm:$0xff]  }
  0x4b   :  { %4365 = vmatmul.mubr.bf16.gmra.mrb[4].mxu0 %v7374_v17  ;;  %3315 = vmatprep.mubr.bf16.mxu1 %v7375_v18  ;;  %v7443_v17 = vld [vmem:[%s10251_s0 + $0x334] ss:$44 sps:$4 sm:$0xff]   ;;  %v7445_v18 = vld [vmem:[%s10251_s0 + $0x318] ss:$44 sps:$4 sm:$0xff]  }
  0x4c   :  { %4374 = vmatprep.mubr.bf16.mxu0 %v7377_v19  ;;  %3621 = vmatpush1.bf16.msra.mxu1 %v7398_v20  ;;  %v7446_v19 = vld [vmem:[%s10251_s0 + $0x330] ss:$44 sps:$4 sm:$0xff]  }
  0x4d   :  { %4680 = vmatpush1.bf16.msra.mxu0 %v7402_v21  ;;  %3622 = vmatprep.subr.bf16.mxu1 %v7418_v22  ;;  %v7560_v20 = vld [vmem:[%s10250_s1 + $0x1b0] ss:$8 sps:$4 sm:$0xff]   ;;  %v7447_v21 = vld [vmem:[%s10251_s0 + $0x374] ss:$44 sps:$4 sm:$0xff]  }
  0x4e   :  { %4681 = vmatprep.subr.bf16.mxu0 %v7422_v23  ;;  %v7562_v22 = vld [vmem:[%s10250_s1 + $0x1b4] ss:$8 sps:$4 sm:$0xff]   ;;  %v7564_v23 = vld [vmem:[%s10250_s1 + $0x4b0] ss:$8 sps:$4 sm:$0xff]  }
  0x50   :  { %3623 = vmatpush1.bf16.msra.mxu1 %v7416_v24  ;;  %v7566_v24 = vld [vmem:[%s10250_s1 + $0x4b4] ss:$8 sps:$4 sm:$0xff]  }
  0x51   :  { %4682 = vmatpush1.bf16.msra.mxu0 %v7420_v27  ;;  %3624 = vmatprep.subr.bf16.mxu1 %v7436_v29  ;;  %v7455_v27 = vld [vmem:[%s10251_s0 + $0x388] ss:$44 sps:$4 sm:$0xff]   ;;  %v7459_v29 = vld [vmem:[%s10251_s0 + $0x3cc] ss:$44 sps:$4 sm:$0xff]  }
  0x52   :  { %4683 = vmatprep.subr.bf16.mxu0 %v7440_v31  ;;  %3316 = vmatmul.mubr.bf16.gmra.mrb[8].mxu1 %v7379_v25  ;;  %v7449_v25 = vld [vmem:[%s10251_s0 + $0x38c] ss:$44 sps:$4 sm:$0xff]   ;;  %v7582_v31 = vld [vmem:[%s10250_s1 + $0x4c0] ss:$8 sps:$4 sm:$0xff]  }
  0x53   :  { %4375 = vmatmul.mubr.bf16.gmra.mrb[8].mxu0 %v7383_v26  ;;  %3325 = vmatprep.mubr.bf16.mxu1 %v7387_v28  ;;  %v7451_v26 = vld [vmem:[%s10251_s0 + $0x370] ss:$44 sps:$4 sm:$0xff]   ;;  %v7578_v28 = vld [vmem:[%s10250_s1 + $0x1c0] ss:$8 sps:$4 sm:$0xff]  }
  0x54   :  { %4384 = vmatprep.mubr.bf16.mxu0 %v7389_v30  ;;  %3625 = vmatpush1.bf16.msra.mxu1 %v7434_v32  ;;  %v7580_v30 = vld [vmem:[%s10250_s1 + $0x1c4] ss:$8 sps:$4 sm:$0xff]  }
  0x55   :  { %4684 = vmatpush1.bf16.msra.mxu0 %v7438_v33  ;;  %3626 = vmatprep.subr.bf16.mxu1 %v7454_v38  ;;  %v7584_v32 = vld [vmem:[%s10250_s1 + $0x4c4] ss:$8 sps:$4 sm:$0xff]   ;;  %v7598_v38 = vld [vmem:[%s10250_s1 + $0x1d4] ss:$8 sps:$4 sm:$0xff]  }
  0x56   :  { %4685 = vmatprep.subr.bf16.mxu0 %v7458_v40  ;;  %v7461_v33 = vld [vmem:[%s10251_s0 + $0x3e4] ss:$44 sps:$4 sm:$0xff]   ;;  %v7602_v40 = vld [vmem:[%s10250_s1 + $0x4d4] ss:$8 sps:$4 sm:$0xff]  }
  0x58   :  { %3627 = vmatpush1.bf16.msra.mxu1 %v7452_v36  ;;  %v7596_v36 = vld [vmem:[%s10250_s1 + $0x1d0] ss:$8 sps:$4 sm:$0xff]  }
  0x59   :  { %4686 = vmatpush1.bf16.msra.mxu0 %v7456_v39  ;;  %3628 = vmatprep.subr.bf16.mxu1 %v7472_v46  ;;  %v7600_v39 = vld [vmem:[%s10250_s1 + $0x4d0] ss:$8 sps:$4 sm:$0xff]   ;;  %v7614_v46 = vld [vmem:[%s10250_s1 + $0x1e0] ss:$8 sps:$4 sm:$0xff]  }
  0x5a   :  { %3326 = vmatmul.mubr.bf16.gmra.mrb[12].mxu1 %v7391_v34  ;;  %4687 = vmatprep.subr.bf16.mxu0 %v7476_v48  ;;  %v7463_v34 = vld [vmem:[%s10251_s0 + $0x3c8] ss:$44 sps:$4 sm:$0xff]  }
  0x5b   :  { %4385 = vmatmul.mubr.bf16.gmra.mrb[12].mxu0 %v7392_v35  ;;  %3335 = vmatprep.mubr.bf16.mxu1 %v7393_v37  ;;  %v7464_v35 = vld [vmem:[%s10251_s0 + $0x3e0] ss:$44 sps:$4 sm:$0xff]   ;;  %v7465_v37 = vld [vmem:[%s10251_s0 + $0x424] ss:$44 sps:$4 sm:$0xff]  }
  0x5c   :  { %4394 = vmatprep.mubr.bf16.mxu0 %v7395_v41  ;;  %3629 = vmatpush1.bf16.msra.mxu1 %v7470_v44  ;;  %v7467_v41 = vld [vmem:[%s10251_s0 + $0x43c] ss:$44 sps:$4 sm:$0xff]  }
  0x5d   :  { %4688 = vmatpush1.bf16.msra.mxu0 %v7474_v47  ;;  %3630 = vmatprep.subr.bf16.mxu1 %v7490_v54  ;;  %v7477_v44 = vld [vmem:[%s10251_s0 + $0x47c] ss:$44 sps:$4 sm:$0xff]   ;;  %v7616_v47 = vld [vmem:[%s10250_s1 + $0x1e4] ss:$8 sps:$4 sm:$0xff]  }
  0x5e   :  { %4689 = vmatprep.subr.bf16.mxu0 %v7494_v56  ;;  %v7618_v48 = vld [vmem:[%s10250_s1 + $0x4e0] ss:$8 sps:$4 sm:$0xff]   ;;  %v7487_v54 = vld [vmem:[%s10251_s0 + $0x4d0] ss:$44 sps:$4 sm:$0xff]   ;;  %v7495_v56 = vld [vmem:[%s10251_s0 + $0x52c] ss:$44 sps:$4 sm:$0xff]  }
  0x60   :  { %3631 = vmatpush1.bf16.msra.mxu1 %v7488_v52  ;;  %v7483_v52 = vld [vmem:[%s10251_s0 + $0x4d4] ss:$44 sps:$4 sm:$0xff]  }
  0x61   :  { %4690 = vmatpush1.bf16.msra.mxu0 %v7492_v55  ;;  %3632 = vmatprep.subr.bf16.mxu1 %v7508_v62  ;;  %v7491_v55 = vld [vmem:[%s10251_s0 + $0x4e8] ss:$44 sps:$4 sm:$0xff]  }
  0x62   :  { %3336 = vmatmul.mubr.bf16.gmra.mrb[16].mxu1 %v7397_v42  ;;  %4691 = vmatprep.subr.bf16.mxu0 %v7512_v0  ;;  %v7469_v42 = vld [vmem:[%s10251_s0 + $0x420] ss:$44 sps:$4 sm:$0xff]   ;;  %v7499_v62 = vld [vmem:[%s10251_s0 + $0x528] ss:$44 sps:$4 sm:$0xff]   ;;  %v7501_v0 = vld [vmem:[%s10251_s0 + $0x584] ss:$44 sps:$4 sm:$0xff]  }
  0x63   :  { %4395 = vmatmul.mubr.bf16.gmra.mrb[16].mxu0 %v7401_v43  ;;  %3345 = vmatprep.mubr.bf16.mxu1 %v7405_v45  ;;  %v7473_v43 = vld [vmem:[%s10251_s0 + $0x438] ss:$44 sps:$4 sm:$0xff]   ;;  %v7479_v45 = vld [vmem:[%s10251_s0 + $0x494] ss:$44 sps:$4 sm:$0xff]  }
  0x64   :  { %4404 = vmatprep.mubr.bf16.mxu0 %v7407_v49  ;;  %3633 = vmatpush1.bf16.msra.mxu1 %v7506_v60  ;;  %v7620_v49 = vld [vmem:[%s10250_s1 + $0x4e4] ss:$8 sps:$4 sm:$0xff]   ;;  %v7636_v60 = vld [vmem:[%s10250_s1 + $0x4f0] ss:$8 sps:$4 sm:$0xff]  }
  0x65   :  { %4692 = vmatpush1.bf16.msra.mxu0 %v7510_v63  ;;  %3634 = vmatprep.subr.bf16.mxu1 %v7526_v6  ;;  %v7500_v63 = vld [vmem:[%s10251_s0 + $0x540] ss:$44 sps:$4 sm:$0xff]  }
  0x66   :  { %4693 = vmatprep.subr.bf16.mxu0 %v7530_v8  ;;  %v7653_v6 = vld [vmem:[%s10250_s1 + $0x204] ss:$8 sps:$4 sm:$0xff]  }
  0x67   :  { %v7517_v8 = vld [vmem:[%s10251_s0 + $0x5d8] ss:$44 sps:$4 sm:$0xff]  }
  0x68   :  { %3635 = vmatpush1.bf16.msra.mxu1 %v7524_v4  ;;  %v7513_v4 = vld [vmem:[%s10251_s0 + $0x5dc] ss:$44 sps:$4 sm:$0xff]  }
  0x69   :  { %4694 = vmatpush1.bf16.msra.mxu0 %v7528_v7  ;;  %3636 = vmatprep.subr.bf16.mxu1 %v7544_v14  ;;  %v7656_v7 = vld [vmem:[%s10250_s1 + $0x504] ss:$8 sps:$4 sm:$0xff]  }
  0x6a   :  { %3346 = vmatmul.mubr.bf16.gmra.mrb[20].mxu1 %v7409_v50  ;;  %4695 = vmatprep.subr.bf16.mxu0 %v7548_v16  ;;  %v7481_v50 = vld [vmem:[%s10251_s0 + $0x478] ss:$44 sps:$4 sm:$0xff]   ;;  %v7535_v16 = vld [vmem:[%s10251_s0 + $0x688] ss:$44 sps:$4 sm:$0xff]  }
  0x6b   :  { %4405 = vmatmul.mubr.bf16.gmra.mrb[20].mxu0 %v7410_v51  ;;  %3355 = vmatprep.mubr.bf16.mxu1 %v7411_v53  ;;  %v7482_v51 = vld [vmem:[%s10251_s0 + $0x490] ss:$44 sps:$4 sm:$0xff]   ;;  %v7485_v53 = vld [vmem:[%s10251_s0 + $0x4ec] ss:$44 sps:$4 sm:$0xff]  }
  0x6c   :  { %4414 = vmatprep.mubr.bf16.mxu0 %v7413_v57  ;;  %3637 = vmatpush1.bf16.msra.mxu1 %v7542_v12  ;;  %v7497_v57 = vld [vmem:[%s10251_s0 + $0x544] ss:$44 sps:$4 sm:$0xff]   ;;  %v7531_v14 = vld [vmem:[%s10251_s0 + $0x68c] ss:$44 sps:$4 sm:$0xff]  }
  0x6d   :  { %4696 = vmatpush1.bf16.msra.mxu0 %v7546_v15  ;;  %3638 = vmatprep.subr.bf16.mxu1 %v7562_v22  ;;  %v7523_v12 = vld [vmem:[%s10251_s0 + $0x630] ss:$44 sps:$4 sm:$0xff]  }
  0x6e   :  { %4697 = vmatprep.subr.bf16.mxu0 %v7566_v24  ;;  %v7533_v15 = vld [vmem:[%s10251_s0 + $0x6a4] ss:$44 sps:$4 sm:$0xff]   ;;  %v7549_v22 = vld [vmem:[%s10251_s0 + $0x73c] ss:$44 sps:$4 sm:$0xff]  }
  0x6f   :  { %v7553_v24 = vld [vmem:[%s10251_s0 + $0x738] ss:$44 sps:$4 sm:$0xff]  }
  0x70   :  { %3639 = vmatpush1.bf16.msra.mxu1 %v7560_v20  ;;  %v7541_v20 = vld [vmem:[%s10251_s0 + $0x6e0] ss:$44 sps:$4 sm:$0xff]  }
  0x71   :  { %4698 = vmatpush1.bf16.msra.mxu0 %v7564_v23  ;;  %3640 = vmatprep.subr.bf16.mxu1 %v7580_v30  ;;  %v7551_v23 = vld [vmem:[%s10251_s0 + $0x754] ss:$44 sps:$4 sm:$0xff]   ;;  %v7567_v30 = vld [vmem:[%s10251_s0 + $0x7ec] ss:$44 sps:$4 sm:$0xff]  }
  0x72   :  { %3356 = vmatmul.mubr.bf16.gmra.mrb[24].mxu1 %v7415_v58  ;;  %4699 = vmatprep.subr.bf16.mxu0 %v7584_v32  ;;  %v7632_v58 = vld [vmem:[%s10250_s1 + $0x1f0] ss:$8 sps:$4 sm:$0xff]   ;;  %v7571_v32 = vld [vmem:[%s10251_s0 + $0x7e8] ss:$44 sps:$4 sm:$0xff]  }
  0x73   :  { %4415 = vmatmul.mubr.bf16.gmra.mrb[24].mxu0 %v7419_v59  ;;  %3365 = vmatprep.mubr.bf16.mxu1 %v7423_v61  ;;  %v7634_v59 = vld [vmem:[%s10250_s1 + $0x1f4] ss:$8 sps:$4 sm:$0xff]  }
  0x74   :  { %4424 = vmatprep.mubr.bf16.mxu0 %v7425_v1  ;;  %3641 = vmatpush1.bf16.msra.mxu1 %v7578_v28  ;;  %v7638_v61 = vld [vmem:[%s10250_s1 + $0x4f4] ss:$8 sps:$4 sm:$0xff]  }
  0x75   :  { %4700 = vmatpush1.bf16.msra.mxu0 %v7582_v31  ;;  %3642 = vmatprep.subr.bf16.mxu1 %v7598_v38  ;;  %v7503_v1 = vld [vmem:[%s10251_s0 + $0x59c] ss:$44 sps:$4 sm:$0xff]   ;;  %v7569_v31 = vld [vmem:[%s10251_s0 + $0x804] ss:$44 sps:$4 sm:$0xff]  }
  0x76   :  { %4701 = vmatprep.subr.bf16.mxu0 %v7602_v40  ;;  %v7559_v28 = vld [vmem:[%s10251_s0 + $0x790] ss:$44 sps:$4 sm:$0xff]   ;;  %v7589_v40 = vld [vmem:[%s10251_s0 + $0x898] ss:$44 sps:$4 sm:$0xff]  }
  0x77   :  { %v7585_v38 = vld [vmem:[%s10251_s0 + $0x89c] ss:$44 sps:$4 sm:$0xff]  }
  0x78   :  { %3643 = vmatpush1.bf16.msra.mxu1 %v7596_v36  ;;  %v7577_v36 = vld [vmem:[%s10251_s0 + $0x840] ss:$44 sps:$4 sm:$0xff]  }
  0x79   :  { %4702 = vmatpush1.bf16.msra.mxu0 %v7600_v39  ;;  %3644 = vmatprep.subr.bf16.mxu1 %v7616_v47  ;;  %v7587_v39 = vld [vmem:[%s10251_s0 + $0x8b4] ss:$44 sps:$4 sm:$0xff]   ;;  %v7605_v47 = vld [vmem:[%s10251_s0 + $0x964] ss:$44 sps:$4 sm:$0xff]  }
  0x7a   :  { %3366 = vmatmul.mubr.bf16.gmra.mrb[28].mxu1 %v7427_v2  ;;  %4703 = vmatprep.subr.bf16.mxu0 %v7620_v49  ;;  %v7505_v2 = vld [vmem:[%s10251_s0 + $0x580] ss:$44 sps:$4 sm:$0xff]  }
  0x7b   :  { %4425 = vmatmul.mubr.bf16.gmra.mrb[28].mxu0 %v7428_v3  ;;  %3375 = vmatprep.mubr.bf16.mxu1 %v7429_v5  ;;  %v7509_v3 = vld [vmem:[%s10251_s0 + $0x598] ss:$44 sps:$4 sm:$0xff]   ;;  %v7515_v5 = vld [vmem:[%s10251_s0 + $0x5f4] ss:$44 sps:$4 sm:$0xff]  }
  0x7c   :  { %4434 = vmatprep.mubr.bf16.mxu0 %v7431_v9  ;;  %3645 = vmatpush1.bf16.msra.mxu1 %v7614_v46  ;;  %v7518_v9 = vld [vmem:[%s10251_s0 + $0x5f0] ss:$44 sps:$4 sm:$0xff]   ;;  %v7603_v46 = vld [vmem:[%s10251_s0 + $0x94c] ss:$44 sps:$4 sm:$0xff]  }
  0x7d   :  { %4704 = vmatpush1.bf16.msra.mxu0 %v7618_v48  ;;  %3646 = vmatprep.subr.bf16.mxu1 %v7634_v59  ;;  %v7607_v48 = vld [vmem:[%s10251_s0 + $0x948] ss:$44 sps:$4 sm:$0xff]   ;;  %v7608_v49 = vld [vmem:[%s10251_s0 + $0x960] ss:$44 sps:$4 sm:$0xff]  }
  0x7e   :  { %4705 = vmatprep.subr.bf16.mxu0 %v7638_v61  ;;  %v7629_v59 = vld [vmem:[%s10251_s0 + $0xa6c] ss:$44 sps:$4 sm:$0xff]   ;;  %v7635_v61 = vld [vmem:[%s10251_s0 + $0xa68] ss:$44 sps:$4 sm:$0xff]  }
  0x80   :  { %3647 = vmatpush1.bf16.msra.mxu1 %v7632_v58  ;;  %v7627_v58 = vld [vmem:[%s10251_s0 + $0xa54] ss:$44 sps:$4 sm:$0xff]  }
  0x81   :  { %4706 = vmatpush1.bf16.msra.mxu0 %v7636_v60  ;;  %3969 = vmatprep.subr.bf16.mxu1 %v7653_v6  ;;  %v7631_v60 = vld [vmem:[%s10251_s0 + $0xa50] ss:$44 sps:$4 sm:$0xff]   ;;  %v7651_v6 = vld [vmem:[%s10250_s1 + $0x200] ss:$8 sps:$4 sm:$0xff]  }
  0x82   :  { %3376 = vmatmul.mubr.bf16.gmra.mrb[32].mxu1 %v7433_v10  ;;  %v7519_v10 = vld [vmem:[%s10251_s0 + $0x634] ss:$44 sps:$4 sm:$0xff]   ;;  %5028 = vmatprep.subr.bf16.mxu0 %v7656_v7 }
  0x83   :  { %4435 = vmatmul.mubr.bf16.gmra.mrb[32].mxu0 %v7437_v11  ;;  %3385 = vmatprep.mubr.bf16.mxu1 %v7441_v13  ;;  %v7521_v11 = vld [vmem:[%s10251_s0 + $0x64c] ss:$44 sps:$4 sm:$0xff]   ;;  %v7527_v13 = vld [vmem:[%s10251_s0 + $0x648] ss:$44 sps:$4 sm:$0xff]  }
  0x84   :  { %4444 = vmatprep.mubr.bf16.mxu0 %v7443_v17  ;;  %v7536_v17 = vld [vmem:[%s10251_s0 + $0x6a0] ss:$44 sps:$4 sm:$0xff]  }
  0x85   :  { %v7654_v7 = vld [vmem:[%s10250_s1 + $0x500] ss:$8 sps:$4 sm:$0xff]  }
  0x8a   :  { %3386 = vmatmul.mubr.bf16.gmra.mrb[36].mxu1 %v7445_v18  ;;  %v7537_v18 = vld [vmem:[%s10251_s0 + $0x6e4] ss:$44 sps:$4 sm:$0xff]  }
  0x8b   :  { %4445 = vmatmul.mubr.bf16.gmra.mrb[36].mxu0 %v7446_v19  ;;  %3395 = vmatprep.mubr.bf16.mxu1 %v7447_v21  ;;  %v7539_v19 = vld [vmem:[%s10251_s0 + $0x6fc] ss:$44 sps:$4 sm:$0xff]   ;;  %v7545_v21 = vld [vmem:[%s10251_s0 + $0x6f8] ss:$44 sps:$4 sm:$0xff]  }
  0x8c   :  { %4454 = vmatprep.mubr.bf16.mxu0 %v7449_v25  ;;  %v7554_v25 = vld [vmem:[%s10251_s0 + $0x750] ss:$44 sps:$4 sm:$0xff]  }
  0x92   :  { %3396 = vmatmul.mubr.bf16.gmra.mrb[40].mxu1 %v7451_v26  ;;  %v7555_v26 = vld [vmem:[%s10251_s0 + $0x794] ss:$44 sps:$4 sm:$0xff]  }
  0x93   :  { %4455 = vmatmul.mubr.bf16.gmra.mrb[40].mxu0 %v7455_v27  ;;  %3405 = vmatprep.mubr.bf16.mxu1 %v7459_v29  ;;  %v7557_v27 = vld [vmem:[%s10251_s0 + $0x7ac] ss:$44 sps:$4 sm:$0xff]   ;;  %v7563_v29 = vld [vmem:[%s10251_s0 + $0x7a8] ss:$44 sps:$4 sm:$0xff]  }
  0x94   :  { %4464 = vmatprep.mubr.bf16.mxu0 %v7461_v33  ;;  %v7572_v33 = vld [vmem:[%s10251_s0 + $0x800] ss:$44 sps:$4 sm:$0xff]  }
  0x9a   :  { %3406 = vmatmul.mubr.bf16.gmra.mrb[44].mxu1 %v7463_v34  ;;  %v7573_v34 = vld [vmem:[%s10251_s0 + $0x844] ss:$44 sps:$4 sm:$0xff]  }
  0x9b   :  { %4465 = vmatmul.mubr.bf16.gmra.mrb[44].mxu0 %v7464_v35  ;;  %3415 = vmatprep.mubr.bf16.mxu1 %v7465_v37  ;;  %v7575_v35 = vld [vmem:[%s10251_s0 + $0x85c] ss:$44 sps:$4 sm:$0xff]   ;;  %v7581_v37 = vld [vmem:[%s10251_s0 + $0x858] ss:$44 sps:$4 sm:$0xff]  }
  0x9c   :  { %4474 = vmatprep.mubr.bf16.mxu0 %v7467_v41  ;;  %v7590_v41 = vld [vmem:[%s10251_s0 + $0x8b0] ss:$44 sps:$4 sm:$0xff]  }
  0xa2   :  { %3416 = vmatmul.mubr.bf16.gmra.mrb[48].mxu1 %v7469_v42  ;;  %v7591_v42 = vld [vmem:[%s10251_s0 + $0x8f4] ss:$44 sps:$4 sm:$0xff]  }
  0xa3   :  { %4475 = vmatmul.mubr.bf16.gmra.mrb[48].mxu0 %v7473_v43  ;;  %3425 = vmatprep.mubr.bf16.mxu1 %v7477_v44  ;;  %v7593_v43 = vld [vmem:[%s10251_s0 + $0x90c] ss:$44 sps:$4 sm:$0xff]   ;;  %v7595_v44 = vld [vmem:[%s10251_s0 + $0x8f0] ss:$44 sps:$4 sm:$0xff]  }
  0xa4   :  { %4484 = vmatprep.mubr.bf16.mxu0 %v7479_v45  ;;  %v7599_v45 = vld [vmem:[%s10251_s0 + $0x908] ss:$44 sps:$4 sm:$0xff]  }
  0xaa   :  { %3426 = vmatmul.mubr.bf16.gmra.mrb[52].mxu1 %v7481_v50  ;;  %v7609_v50 = vld [vmem:[%s10251_s0 + $0x9a4] ss:$44 sps:$4 sm:$0xff]  }
  0xab   :  { %4485 = vmatmul.mubr.bf16.gmra.mrb[52].mxu0 %v7482_v51  ;;  %3435 = vmatprep.mubr.bf16.mxu1 %v7483_v52  ;;  %v7611_v51 = vld [vmem:[%s10251_s0 + $0x9bc] ss:$44 sps:$4 sm:$0xff]   ;;  %v7613_v52 = vld [vmem:[%s10251_s0 + $0x9a0] ss:$44 sps:$4 sm:$0xff]  }
  0xac   :  { %4494 = vmatprep.mubr.bf16.mxu0 %v7485_v53  ;;  %v7617_v53 = vld [vmem:[%s10251_s0 + $0x9b8] ss:$44 sps:$4 sm:$0xff]  }
  0xb2   :  { %3436 = vmatmul.mubr.bf16.gmra.mrb[56].mxu1 %v7487_v54  ;;  %v7621_v54 = vld [vmem:[%s10251_s0 + $0x9fc] ss:$44 sps:$4 sm:$0xff]  }
  0xb3   :  { %4495 = vmatmul.mubr.bf16.gmra.mrb[56].mxu0 %v7491_v55  ;;  %3445 = vmatprep.mubr.bf16.mxu1 %v7495_v56  ;;  %v7623_v55 = vld [vmem:[%s10251_s0 + $0xa14] ss:$44 sps:$4 sm:$0xff]   ;;  %v7625_v56 = vld [vmem:[%s10251_s0 + $0x9f8] ss:$44 sps:$4 sm:$0xff]  }
  0xb4   :  { %4504 = vmatprep.mubr.bf16.mxu0 %v7497_v57  ;;  %v7626_v57 = vld [vmem:[%s10251_s0 + $0xa10] ss:$44 sps:$4 sm:$0xff]  }
  0xba   :  { %3446 = vmatmul.mubr.bf16.gmra.mrb[60].mxu1 %v7499_v62  ;;  %v7639_v62 = vld [vmem:[%s10251_s0 + $0xaac] ss:$44 sps:$4 sm:$0xff]  }
  0xbb   :  { %4505 = vmatmul.mubr.bf16.gmra.mrb[60].mxu0 %v7500_v63  ;;  %3455 = vmatprep.mubr.bf16.mxu1 %v7501_v0  ;;  %v7641_v63 = vld [vmem:[%s10251_s0 + $0xac4] ss:$44 sps:$4 sm:$0xff]   ;;  %v7643_v0 = vld [vmem:[%s10251_s0 + $0xaa8] ss:$44 sps:$4 sm:$0xff]  }
  0xbc   :  { %4514 = vmatprep.mubr.bf16.mxu0 %v7503_v1  ;;  %v7644_v1 = vld [vmem:[%s10251_s0 + $0xac0] ss:$44 sps:$4 sm:$0xff]  }
  0xc2   :  { %3456 = vmatmul.mubr.bf16.gmra.mrb[64].mxu1 %v7505_v2  ;;  %v7647_v2 = vld [vmem:[%s10251_s0 + $0xc] ss:$44 sps:$4 sm:$0xff]  }
  0xc3   :  { %4515 = vmatmul.mubr.bf16.gmra.mrb[64].mxu0 %v7509_v3  ;;  %3465 = vmatprep.mubr.bf16.mxu1 %v7513_v4  ;;  %v7650_v3 = vld [vmem:[%s10251_s0 + $0x24] ss:$44 sps:$4 sm:$0xff]   ;;  %v7645_v4 = vld [vmem:[%s10251_s0 + $0x8] ss:$44 sps:$4 sm:$0xff]  }
  0xc4   :  { %4524 = vmatprep.mubr.bf16.mxu0 %v7515_v5  ;;  %v7648_v5 = vld [vmem:[%s10251_s0 + $0x20] ss:$44 sps:$4 sm:$0xff]  }
  0xca   :  { %3466 = vmatmul.mubr.bf16.gmra.mrb[68].mxu1 %v7517_v8  ;;  %v7657_v8 = vld [vmem:[%s10251_s0 + $0x64] ss:$44 sps:$4 sm:$0xff]  }
  0xcb   :  { %4525 = vmatmul.mubr.bf16.gmra.mrb[68].mxu0 %v7518_v9  ;;  %3475 = vmatprep.mubr.bf16.mxu1 %v7519_v10  ;;  %v7659_v9 = vld [vmem:[%s10251_s0 + $0x7c] ss:$44 sps:$4 sm:$0xff]  }
  0xcc   :  { %4534 = vmatprep.mubr.bf16.mxu0 %v7521_v11  ;;  %v7670_v10 = vld [vmem:[%s10250_s1 + $0x214] ss:$8 sps:$4 sm:$0xff]  }
  0xcd   :  { %v7719_v11 = vld [vmem:[%s10250_s1 + $0x514] ss:$8 sps:$4 sm:$0xff]  }
  0xd2   :  { %3476 = vmatmul.mubr.bf16.gmra.mrb[72].mxu1 %v7523_v12  ;;  %v7668_v12 = vld [vmem:[%s10250_s1 + $0x210] ss:$8 sps:$4 sm:$0xff]  }
  0xd3   :  { %4535 = vmatmul.mubr.bf16.gmra.mrb[72].mxu0 %v7527_v13  ;;  %3485 = vmatprep.mubr.bf16.mxu1 %v7531_v14  ;;  %v7717_v13 = vld [vmem:[%s10250_s1 + $0x510] ss:$8 sps:$4 sm:$0xff]   ;;  %v7685_v14 = vld [vmem:[%s10250_s1 + $0x224] ss:$8 sps:$4 sm:$0xff]  }
  0xd4   :  { %4544 = vmatprep.mubr.bf16.mxu0 %v7533_v15  ;;  %v7782_v15 = vld [vmem:[%s10250_s1 + $0x524] ss:$8 sps:$4 sm:$0xff]  }
  0xda   :  { %3486 = vmatmul.mubr.bf16.gmra.mrb[76].mxu1 %v7535_v16  ;;  %v7661_v16 = vld [vmem:[%s10251_s0 + $0x60] ss:$44 sps:$4 sm:$0xff]  }
  0xdb   :  { %4545 = vmatmul.mubr.bf16.gmra.mrb[76].mxu0 %v7536_v17  ;;  %3495 = vmatprep.mubr.bf16.mxu1 %v7537_v18  ;;  %v7662_v17 = vld [vmem:[%s10251_s0 + $0x78] ss:$44 sps:$4 sm:$0xff]   ;;  %v7663_v18 = vld [vmem:[%s10251_s0 + $0xbc] ss:$44 sps:$4 sm:$0xff]  }
  0xdc   :  { %4554 = vmatprep.mubr.bf16.mxu0 %v7539_v19  ;;  %v7665_v19 = vld [vmem:[%s10251_s0 + $0xd4] ss:$44 sps:$4 sm:$0xff]  }
  0xe2   :  { %3496 = vmatmul.mubr.bf16.gmra.mrb[80].mxu1 %v7541_v20  ;;  %v7683_v20 = vld [vmem:[%s10250_s1 + $0x220] ss:$8 sps:$4 sm:$0xff]  }
  0xe3   :  { %4555 = vmatmul.mubr.bf16.gmra.mrb[80].mxu0 %v7545_v21  ;;  %3505 = vmatprep.mubr.bf16.mxu1 %v7549_v22  ;;  %v7780_v21 = vld [vmem:[%s10250_s1 + $0x520] ss:$8 sps:$4 sm:$0xff]   ;;  %v7700_v22 = vld [vmem:[%s10250_s1 + $0x234] ss:$8 sps:$4 sm:$0xff]  }
  0xe4   :  { %4564 = vmatprep.mubr.bf16.mxu0 %v7551_v23  ;;  %v7698_v23 = vld [vmem:[%s10250_s1 + $0x230] ss:$8 sps:$4 sm:$0xff]  }
  0xea   :  { %3506 = vmatmul.mubr.bf16.gmra.mrb[84].mxu1 %v7553_v24  ;;  %v7715_v24 = vld [vmem:[%s10250_s1 + $0x244] ss:$8 sps:$4 sm:$0xff]  }
  0xeb   :  { %4565 = vmatmul.mubr.bf16.gmra.mrb[84].mxu0 %v7554_v25  ;;  %3515 = vmatprep.mubr.bf16.mxu1 %v7555_v26  ;;  %v7667_v25 = vld [vmem:[%s10251_s0 + $0xb8] ss:$44 sps:$4 sm:$0xff]   ;;  %v7671_v26 = vld [vmem:[%s10251_s0 + $0xd0] ss:$44 sps:$4 sm:$0xff]  }
  0xec   :  { %4574 = vmatprep.mubr.bf16.mxu0 %v7557_v27  ;;  %v7672_v27 = vld [vmem:[%s10251_s0 + $0x114] ss:$44 sps:$4 sm:$0xff]  }
  0xf2   :  { %3516 = vmatmul.mubr.bf16.gmra.mrb[88].mxu1 %v7559_v28  ;;  %v7674_v28 = vld [vmem:[%s10251_s0 + $0x12c] ss:$44 sps:$4 sm:$0xff]  }
  0xf3   :  { %4575 = vmatmul.mubr.bf16.gmra.mrb[88].mxu0 %v7563_v29  ;;  %3525 = vmatprep.mubr.bf16.mxu1 %v7567_v30  ;;  %v7713_v29 = vld [vmem:[%s10250_s1 + $0x240] ss:$8 sps:$4 sm:$0xff]   ;;  %v7733_v30 = vld [vmem:[%s10250_s1 + $0x254] ss:$8 sps:$4 sm:$0xff]  }
  0xf4   :  { %4584 = vmatprep.mubr.bf16.mxu0 %v7569_v31  ;;  %v7731_v31 = vld [vmem:[%s10250_s1 + $0x250] ss:$8 sps:$4 sm:$0xff]  }
  0xfa   :  { %3526 = vmatmul.mubr.bf16.gmra.mrb[92].mxu1 %v7571_v32  ;;  %v7748_v32 = vld [vmem:[%s10250_s1 + $0x264] ss:$8 sps:$4 sm:$0xff]  }
  0xfb   :  { %4585 = vmatmul.mubr.bf16.gmra.mrb[92].mxu0 %v7572_v33  ;;  %3535 = vmatprep.mubr.bf16.mxu1 %v7573_v34  ;;  %v7676_v33 = vld [vmem:[%s10251_s0 + $0x110] ss:$44 sps:$4 sm:$0xff]   ;;  %v7677_v34 = vld [vmem:[%s10251_s0 + $0x128] ss:$44 sps:$4 sm:$0xff]  }
  0xfc   :  { %4594 = vmatprep.mubr.bf16.mxu0 %v7575_v35  ;;  %v7678_v35 = vld [vmem:[%s10251_s0 + $0x16c] ss:$44 sps:$4 sm:$0xff]  }
 0x102   :  { %3536 = vmatmul.mubr.bf16.gmra.mrb[96].mxu1 %v7577_v36  ;;  %v7680_v36 = vld [vmem:[%s10251_s0 + $0x184] ss:$44 sps:$4 sm:$0xff]  }
 0x103   :  { %4595 = vmatmul.mubr.bf16.gmra.mrb[96].mxu0 %v7581_v37  ;;  %3545 = vmatprep.mubr.bf16.mxu1 %v7585_v38  ;;  %v7746_v37 = vld [vmem:[%s10250_s1 + $0x260] ss:$8 sps:$4 sm:$0xff]   ;;  %v7763_v38 = vld [vmem:[%s10250_s1 + $0x274] ss:$8 sps:$4 sm:$0xff]  }
 0x104   :  { %4604 = vmatprep.mubr.bf16.mxu0 %v7587_v39  ;;  %v7761_v39 = vld [vmem:[%s10250_s1 + $0x270] ss:$8 sps:$4 sm:$0xff]  }
 0x10a   :  { %3546 = vmatmul.mubr.bf16.gmra.mrb[100].mxu1 %v7589_v40  ;;  %v7778_v40 = vld [vmem:[%s10250_s1 + $0x284] ss:$8 sps:$4 sm:$0xff]  }
 0x10b   :  { %4605 = vmatmul.mubr.bf16.gmra.mrb[100].mxu0 %v7590_v41  ;;  %3555 = vmatprep.mubr.bf16.mxu1 %v7591_v42  ;;  %v7682_v41 = vld [vmem:[%s10251_s0 + $0x168] ss:$44 sps:$4 sm:$0xff]   ;;  %v7686_v42 = vld [vmem:[%s10251_s0 + $0x180] ss:$44 sps:$4 sm:$0xff]  }
 0x10c   :  { %4614 = vmatprep.mubr.bf16.mxu0 %v7593_v43  ;;  %v7687_v43 = vld [vmem:[%s10251_s0 + $0x1c4] ss:$44 sps:$4 sm:$0xff]  }
 0x112   :  { %3556 = vmatmul.mubr.bf16.gmra.mrb[104].mxu1 %v7595_v44  ;;  %v7689_v44 = vld [vmem:[%s10251_s0 + $0x1dc] ss:$44 sps:$4 sm:$0xff]  }
 0x113   :  { %4615 = vmatmul.mubr.bf16.gmra.mrb[104].mxu0 %v7599_v45  ;;  %3565 = vmatprep.mubr.bf16.mxu1 %v7603_v46  ;;  %v7776_v45 = vld [vmem:[%s10250_s1 + $0x280] ss:$8 sps:$4 sm:$0xff]   ;;  %v7796_v46 = vld [vmem:[%s10250_s1 + $0x294] ss:$8 sps:$4 sm:$0xff]  }
 0x114   :  { %4624 = vmatprep.mubr.bf16.mxu0 %v7605_v47  ;;  %v7794_v47 = vld [vmem:[%s10250_s1 + $0x290] ss:$8 sps:$4 sm:$0xff]  }
 0x11a   :  { %3566 = vmatmul.mubr.bf16.gmra.mrb[108].mxu1 %v7607_v48  ;;  %v7811_v48 = vld [vmem:[%s10250_s1 + $0x2a4] ss:$8 sps:$4 sm:$0xff]  }
 0x11b   :  { %4625 = vmatmul.mubr.bf16.gmra.mrb[108].mxu0 %v7608_v49  ;;  %3575 = vmatprep.mubr.bf16.mxu1 %v7609_v50  ;;  %v7691_v49 = vld [vmem:[%s10251_s0 + $0x1c0] ss:$44 sps:$4 sm:$0xff]   ;;  %v7692_v50 = vld [vmem:[%s10251_s0 + $0x1d8] ss:$44 sps:$4 sm:$0xff]  }
 0x11c   :  { %4634 = vmatprep.mubr.bf16.mxu0 %v7611_v51  ;;  %v7693_v51 = vld [vmem:[%s10251_s0 + $0x21c] ss:$44 sps:$4 sm:$0xff]  }
 0x122   :  { %3576 = vmatmul.mubr.bf16.gmra.mrb[112].mxu1 %v7613_v52  ;;  %v7695_v52 = vld [vmem:[%s10251_s0 + $0x234] ss:$44 sps:$4 sm:$0xff]  }
 0x123   :  { %4635 = vmatmul.mubr.bf16.gmra.mrb[112].mxu0 %v7617_v53  ;;  %3585 = vmatprep.mubr.bf16.mxu1 %v7621_v54  ;;  %v7809_v53 = vld [vmem:[%s10250_s1 + $0x2a0] ss:$8 sps:$4 sm:$0xff]   ;;  %v7697_v54 = vld [vmem:[%s10251_s0 + $0x218] ss:$44 sps:$4 sm:$0xff]  }
 0x124   :  { %4644 = vmatprep.mubr.bf16.mxu0 %v7623_v55  ;;  %v7701_v55 = vld [vmem:[%s10251_s0 + $0x230] ss:$44 sps:$4 sm:$0xff]  }
 0x12a   :  { %3586 = vmatmul.mubr.bf16.gmra.mrb[116].mxu1 %v7625_v56  ;;  %v7702_v56 = vld [vmem:[%s10251_s0 + $0x274] ss:$44 sps:$4 sm:$0xff]  }
 0x12b   :  { %4645 = vmatmul.mubr.bf16.gmra.mrb[116].mxu0 %v7626_v57  ;;  %3595 = vmatprep.mubr.bf16.mxu1 %v7627_v58  ;;  %v7704_v57 = vld [vmem:[%s10251_s0 + $0x28c] ss:$44 sps:$4 sm:$0xff]  }
 0x12c   :  { %4654 = vmatprep.mubr.bf16.mxu0 %v7629_v59  ;;  %v7824_v58 = vld [vmem:[%s10250_s1 + $0x2b0] ss:$8 sps:$4 sm:$0xff]   ;;  %v7826_v59 = vld [vmem:[%s10250_s1 + $0x2b4] ss:$8 sps:$4 sm:$0xff]  }
 0x132   :  { %3596 = vmatmul.mubr.bf16.gmra.mrb[120].mxu1 %v7631_v60  ;;  %v7706_v60 = vld [vmem:[%s10251_s0 + $0x270] ss:$44 sps:$4 sm:$0xff]  }
 0x133   :  { %4655 = vmatmul.mubr.bf16.gmra.mrb[120].mxu0 %v7635_v61  ;;  %3605 = vmatprep.mubr.bf16.mxu1 %v7639_v62  ;;  %v7707_v61 = vld [vmem:[%s10251_s0 + $0x288] ss:$44 sps:$4 sm:$0xff]   ;;  %v7708_v62 = vld [vmem:[%s10251_s0 + $0x2cc] ss:$44 sps:$4 sm:$0xff]  }
 0x134   :  { %4664 = vmatprep.mubr.bf16.mxu0 %v7641_v63  ;;  %v7710_v63 = vld [vmem:[%s10251_s0 + $0x2e4] ss:$44 sps:$4 sm:$0xff]  }
 0x13a   :  { %3606 = vmatmul.mubr.bf16.gmra.mrb[124].mxu1 %v7643_v0  ;;  %v7712_v0 = vld [vmem:[%s10251_s0 + $0x2c8] ss:$44 sps:$4 sm:$0xff]  }
 0x13b   :  { %4665 = vmatmul.mubr.bf16.gmra.mrb[124].mxu0 %v7644_v1  ;;  %3648 = vmatprep.mubr.bf16.mxu1 %v7647_v2  ;;  %v7716_v1 = vld [vmem:[%s10251_s0 + $0x2e0] ss:$44 sps:$4 sm:$0xff]   ;;  %v7720_v2 = vld [vmem:[%s10251_s0 + $0x324] ss:$44 sps:$4 sm:$0xff]  }
 0x13c   :  { %4707 = vmatprep.mubr.bf16.mxu0 %v7650_v3  ;;  %v7722_v3 = vld [vmem:[%s10251_s0 + $0x33c] ss:$44 sps:$4 sm:$0xff]  }
 0x142   :  { %3649 = vmatmul.mubr.bf16.vlgmr.msra.gmra.mrb[0].mxu1 %v7645_v4  ;;  %v7839_v4 = vld [vmem:[%s10250_s1 + $0x2c0] ss:$8 sps:$4 sm:$0xff]  }
 0x143   :  { %4708 = vmatmul.mubr.bf16.vlgmr.msra.gmra.mrb[0].mxu0 %v7648_v5  ;;  %3970 = vmatpush1.bf16.msra.mxu1 %v7651_v6  ;;  %v7841_v5 = vld [vmem:[%s10250_s1 + $0x2c4] ss:$8 sps:$4 sm:$0xff]   ;;  %v7843_v6 = vld [vmem:[%s10250_s1 + $0x530] ss:$8 sps:$4 sm:$0xff]  }
 0x144   :  { %5029 = vmatpush1.bf16.msra.mxu0 %v7654_v7  ;;  %3658 = vmatprep.mubr.bf16.mxu1 %v7657_v8  ;;  %v7845_v7 = vld [vmem:[%s10250_s1 + $0x534] ss:$8 sps:$4 sm:$0xff]   ;;  %v7724_v8 = vld [vmem:[%s10251_s0 + $0x320] ss:$44 sps:$4 sm:$0xff]  }
 0x145   :  { %4717 = vmatprep.mubr.bf16.mxu0 %v7659_v9  ;;  %3971 = vmatprep.subr.bf16.mxu1 %v7670_v10  ;;  %v7725_v9 = vld [vmem:[%s10251_s0 + $0x338] ss:$44 sps:$4 sm:$0xff]   ;;  %v7726_v10 = vld [vmem:[%s10251_s0 + $0x37c] ss:$44 sps:$4 sm:$0xff]  }
 0x146   :  { %5030 = vmatprep.subr.bf16.mxu0 %v7719_v11  ;;  %v7728_v11 = vld [vmem:[%s10251_s0 + $0x394] ss:$44 sps:$4 sm:$0xff]  }
 0x147   :  { %3972 = vmatpush1.bf16.msra.mxu1 %v7668_v12  ;;  %v7730_v12 = vld [vmem:[%s10251_s0 + $0x378] ss:$44 sps:$4 sm:$0xff]  }
 0x148   :  { %5031 = vmatpush1.bf16.msra.mxu0 %v7717_v13  ;;  %3973 = vmatprep.subr.bf16.mxu1 %v7685_v14  ;;  %v7734_v13 = vld [vmem:[%s10251_s0 + $0x390] ss:$44 sps:$4 sm:$0xff]   ;;  %v7735_v14 = vld [vmem:[%s10251_s0 + $0x3d4] ss:$44 sps:$4 sm:$0xff]  }
 0x149   :  { %5032 = vmatprep.subr.bf16.mxu0 %v7782_v15  ;;  %v7737_v15 = vld [vmem:[%s10251_s0 + $0x3ec] ss:$44 sps:$4 sm:$0xff]  }
 0x14a   :  { %3659 = vmatmul.mubr.bf16.gmra.mrb[4].mxu1 %v7661_v16  ;;  %v7857_v16 = vld [vmem:[%s10250_s1 + $0x2d0] ss:$8 sps:$4 sm:$0xff]  }
 0x14b   :  { %4718 = vmatmul.mubr.bf16.gmra.mrb[4].mxu0 %v7662_v17  ;;  %3668 = vmatprep.mubr.bf16.mxu1 %v7663_v18  ;;  %v7859_v17 = vld [vmem:[%s10250_s1 + $0x2d4] ss:$8 sps:$4 sm:$0xff]  }
 0x14c   :  { %4727 = vmatprep.mubr.bf16.mxu0 %v7665_v19  ;;  %3974 = vmatpush1.bf16.msra.mxu1 %v7683_v20  ;;  %v7739_v18 = vld [vmem:[%s10251_s0 + $0x3d0] ss:$44 sps:$4 sm:$0xff]   ;;  %v7740_v19 = vld [vmem:[%s10251_s0 + $0x3e8] ss:$44 sps:$4 sm:$0xff]   ;;  %v7741_v20 = vld [vmem:[%s10251_s0 + $0x42c] ss:$44 sps:$4 sm:$0xff]  }
 0x14d   :  { %5033 = vmatpush1.bf16.msra.mxu0 %v7780_v21  ;;  %3975 = vmatprep.subr.bf16.mxu1 %v7700_v22  ;;  %v7743_v21 = vld [vmem:[%s10251_s0 + $0x444] ss:$44 sps:$4 sm:$0xff]   ;;  %v7745_v22 = vld [vmem:[%s10251_s0 + $0x428] ss:$44 sps:$4 sm:$0xff]  }
 0x14e   :  { %5034 = vmatprep.subr.bf16.mxu0 %v7845_v7  ;;  %v7833_v7 = vld [vmem:[%s10251_s0 + $0x808] ss:$44 sps:$4 sm:$0xff]  }
 0x150   :  { %3976 = vmatpush1.bf16.msra.mxu1 %v7698_v23  ;;  %v7749_v23 = vld [vmem:[%s10251_s0 + $0x440] ss:$44 sps:$4 sm:$0xff]  }
 0x151   :  { %3977 = vmatprep.subr.bf16.mxu1 %v7715_v24  ;;  %5035 = vmatpush1.bf16.msra.mxu0 %v7843_v6  ;;  %v7750_v24 = vld [vmem:[%s10251_s0 + $0x484] ss:$44 sps:$4 sm:$0xff]  }
 0x152   :  { %3669 = vmatmul.mubr.bf16.gmra.mrb[8].mxu1 %v7667_v25  ;;  %v7752_v25 = vld [vmem:[%s10251_s0 + $0x49c] ss:$44 sps:$4 sm:$0xff]  }
 0x153   :  { %4728 = vmatmul.mubr.bf16.gmra.mrb[8].mxu0 %v7671_v26  ;;  %3678 = vmatprep.mubr.bf16.mxu1 %v7672_v27  ;;  %v7872_v26 = vld [vmem:[%s10250_s1 + $0x2e0] ss:$8 sps:$4 sm:$0xff]   ;;  %v7874_v27 = vld [vmem:[%s10250_s1 + $0x2e4] ss:$8 sps:$4 sm:$0xff]   ;;  %v7832_v6 = vld [vmem:[%s10251_s0 + $0x7f0] ss:$44 sps:$4 sm:$0xff]  }
 0x154   :  { %4737 = vmatprep.mubr.bf16.mxu0 %v7674_v28  ;;  %3978 = vmatpush1.bf16.msra.mxu1 %v7713_v29  ;;  %v7754_v28 = vld [vmem:[%s10251_s0 + $0x480] ss:$44 sps:$4 sm:$0xff]   ;;  %v7755_v29 = vld [vmem:[%s10251_s0 + $0x498] ss:$44 sps:$4 sm:$0xff]  }
 0x155   :  { %3979 = vmatprep.subr.bf16.mxu1 %v7733_v30  ;;  %v7756_v30 = vld [vmem:[%s10251_s0 + $0x4dc] ss:$44 sps:$4 sm:$0xff]  }
 0x158   :  { %3980 = vmatpush1.bf16.msra.mxu1 %v7731_v31  ;;  %v7758_v31 = vld [vmem:[%s10251_s0 + $0x4f4] ss:$44 sps:$4 sm:$0xff]  }
 0x159   :  { %3981 = vmatprep.subr.bf16.mxu1 %v7748_v32  ;;  %v7760_v32 = vld [vmem:[%s10251_s0 + $0x4d8] ss:$44 sps:$4 sm:$0xff]  }
 0x15a   :  { %3679 = vmatmul.mubr.bf16.gmra.mrb[12].mxu1 %v7676_v33  ;;  %v7764_v33 = vld [vmem:[%s10251_s0 + $0x4f0] ss:$44 sps:$4 sm:$0xff]  }
 0x15b   :  { %4738 = vmatmul.mubr.bf16.gmra.mrb[12].mxu0 %v7677_v34  ;;  %3688 = vmatprep.mubr.bf16.mxu1 %v7678_v35  ;;  %v7765_v34 = vld [vmem:[%s10251_s0 + $0x534] ss:$44 sps:$4 sm:$0xff]   ;;  %v7767_v35 = vld [vmem:[%s10251_s0 + $0x54c] ss:$44 sps:$4 sm:$0xff]  }
 0x15c   :  { %4747 = vmatprep.mubr.bf16.mxu0 %v7680_v36  ;;  %3982 = vmatpush1.bf16.msra.mxu1 %v7746_v37  ;;  %v7887_v36 = vld [vmem:[%s10250_s1 + $0x2f0] ss:$8 sps:$4 sm:$0xff]   ;;  %v7889_v37 = vld [vmem:[%s10250_s1 + $0x2f4] ss:$8 sps:$4 sm:$0xff]  }
 0x15d   :  { %3983 = vmatprep.subr.bf16.mxu1 %v7763_v38  ;;  %v7769_v38 = vld [vmem:[%s10251_s0 + $0x530] ss:$44 sps:$4 sm:$0xff]  }
 0x160   :  { %3984 = vmatpush1.bf16.msra.mxu1 %v7761_v39  ;;  %v7770_v39 = vld [vmem:[%s10251_s0 + $0x548] ss:$44 sps:$4 sm:$0xff]  }
 0x161   :  { %3985 = vmatprep.subr.bf16.mxu1 %v7778_v40  ;;  %v7771_v40 = vld [vmem:[%s10251_s0 + $0x58c] ss:$44 sps:$4 sm:$0xff]  }
 0x162   :  { %3689 = vmatmul.mubr.bf16.gmra.mrb[16].mxu1 %v7682_v41  ;;  %v7773_v41 = vld [vmem:[%s10251_s0 + $0x5a4] ss:$44 sps:$4 sm:$0xff]  }
 0x163   :  { %4748 = vmatmul.mubr.bf16.gmra.mrb[16].mxu0 %v7686_v42  ;;  %3698 = vmatprep.mubr.bf16.mxu1 %v7687_v43  ;;  %v7775_v42 = vld [vmem:[%s10251_s0 + $0x588] ss:$44 sps:$4 sm:$0xff]   ;;  %v7779_v43 = vld [vmem:[%s10251_s0 + $0x5a0] ss:$44 sps:$4 sm:$0xff]  }
 0x164   :  { %4757 = vmatprep.mubr.bf16.mxu0 %v7689_v44  ;;  %3986 = vmatpush1.bf16.msra.mxu1 %v7776_v45  ;;  %v7783_v44 = vld [vmem:[%s10251_s0 + $0x5e4] ss:$44 sps:$4 sm:$0xff]   ;;  %v7785_v45 = vld [vmem:[%s10251_s0 + $0x5fc] ss:$44 sps:$4 sm:$0xff]  }
 0x165   :  { %3987 = vmatprep.subr.bf16.mxu1 %v7796_v46  ;;  %v7787_v46 = vld [vmem:[%s10251_s0 + $0x5e0] ss:$44 sps:$4 sm:$0xff]  }
 0x168   :  { %3988 = vmatpush1.bf16.msra.mxu1 %v7794_v47  ;;  %v7788_v47 = vld [vmem:[%s10251_s0 + $0x5f8] ss:$44 sps:$4 sm:$0xff]  }
 0x169   :  { %3989 = vmatprep.subr.bf16.mxu1 %v7811_v48  ;;  %v7789_v48 = vld [vmem:[%s10251_s0 + $0x63c] ss:$44 sps:$4 sm:$0xff]  }
 0x16a   :  { %3699 = vmatmul.mubr.bf16.gmra.mrb[20].mxu1 %v7691_v49  ;;  %v7791_v49 = vld [vmem:[%s10251_s0 + $0x654] ss:$44 sps:$4 sm:$0xff]  }
 0x16b   :  { %4758 = vmatmul.mubr.bf16.gmra.mrb[20].mxu0 %v7692_v50  ;;  %3708 = vmatprep.mubr.bf16.mxu1 %v7693_v51  ;;  %v7793_v50 = vld [vmem:[%s10251_s0 + $0x638] ss:$44 sps:$4 sm:$0xff]   ;;  %v7797_v51 = vld [vmem:[%s10251_s0 + $0x650] ss:$44 sps:$4 sm:$0xff]  }
 0x16c   :  { %4767 = vmatprep.mubr.bf16.mxu0 %v7695_v52  ;;  %3990 = vmatpush1.bf16.msra.mxu1 %v7809_v53  ;;  %v7798_v52 = vld [vmem:[%s10251_s0 + $0x694] ss:$44 sps:$4 sm:$0xff]   ;;  %v7800_v53 = vld [vmem:[%s10251_s0 + $0x6ac] ss:$44 sps:$4 sm:$0xff]  }
 0x16d   :  { %3991 = vmatprep.subr.bf16.mxu1 %v7826_v59  ;;  %v7812_v59 = vld [vmem:[%s10251_s0 + $0x700] ss:$44 sps:$4 sm:$0xff]  }
 0x170   :  { %3992 = vmatpush1.bf16.msra.mxu1 %v7824_v58  ;;  %v7808_v58 = vld [vmem:[%s10251_s0 + $0x6e8] ss:$44 sps:$4 sm:$0xff]  }
 0x171   :  { %3993 = vmatprep.subr.bf16.mxu1 %v7841_v5  ;;  %v7830_v5 = vld [vmem:[%s10251_s0 + $0x80c] ss:$44 sps:$4 sm:$0xff]  }
 0x172   :  { %3709 = vmatmul.mubr.bf16.gmra.mrb[24].mxu1 %v7697_v54  ;;  %v7802_v54 = vld [vmem:[%s10251_s0 + $0x690] ss:$44 sps:$4 sm:$0xff]  }
 0x173   :  { %4768 = vmatmul.mubr.bf16.gmra.mrb[24].mxu0 %v7701_v55  ;;  %3718 = vmatprep.mubr.bf16.mxu1 %v7702_v56  ;;  %v7803_v55 = vld [vmem:[%s10251_s0 + $0x6a8] ss:$44 sps:$4 sm:$0xff]   ;;  %v7804_v56 = vld [vmem:[%s10251_s0 + $0x6ec] ss:$44 sps:$4 sm:$0xff]  }
 0x174   :  { %4777 = vmatprep.mubr.bf16.mxu0 %v7704_v57  ;;  %3994 = vmatpush1.bf16.msra.mxu1 %v7839_v4  ;;  %v7806_v57 = vld [vmem:[%s10251_s0 + $0x704] ss:$44 sps:$4 sm:$0xff]   ;;  %v7828_v4 = vld [vmem:[%s10251_s0 + $0x7f4] ss:$44 sps:$4 sm:$0xff]  }
 0x175   :  { %3995 = vmatprep.subr.bf16.mxu1 %v7859_v17  ;;  %v7854_v17 = vld [vmem:[%s10251_s0 + $0x914] ss:$44 sps:$4 sm:$0xff]  }
 0x178   :  { %3996 = vmatpush1.bf16.msra.mxu1 %v7857_v16  ;;  %v7852_v16 = vld [vmem:[%s10251_s0 + $0x8fc] ss:$44 sps:$4 sm:$0xff]  }
 0x179   :  { %3997 = vmatprep.subr.bf16.mxu1 %v7874_v27  ;;  %v7875_v27 = vld [vmem:[%s10251_s0 + $0x9c0] ss:$44 sps:$4 sm:$0xff]  }
 0x17a   :  { %3719 = vmatmul.mubr.bf16.gmra.mrb[28].mxu1 %v7706_v60  ;;  %v7813_v60 = vld [vmem:[%s10251_s0 + $0x744] ss:$44 sps:$4 sm:$0xff]  }
 0x17b   :  { %4778 = vmatmul.mubr.bf16.gmra.mrb[28].mxu0 %v7707_v61  ;;  %3728 = vmatprep.mubr.bf16.mxu1 %v7708_v62  ;;  %v7815_v61 = vld [vmem:[%s10251_s0 + $0x75c] ss:$44 sps:$4 sm:$0xff]   ;;  %v7817_v62 = vld [vmem:[%s10251_s0 + $0x740] ss:$44 sps:$4 sm:$0xff]  }
 0x17c   :  { %4787 = vmatprep.mubr.bf16.mxu0 %v7710_v63  ;;  %3998 = vmatpush1.bf16.msra.mxu1 %v7872_v26  ;;  %v7818_v63 = vld [vmem:[%s10251_s0 + $0x758] ss:$44 sps:$4 sm:$0xff]   ;;  %v7871_v26 = vld [vmem:[%s10251_s0 + $0x9a8] ss:$44 sps:$4 sm:$0xff]  }
 0x17d   :  { %3999 = vmatprep.subr.bf16.mxu1 %v7889_v37  ;;  %v7893_v37 = vld [vmem:[%s10251_s0 + $0xacc] ss:$44 sps:$4 sm:$0xff]  }
 0x180   :  { %4000 = vmatpush1.bf16.msra.mxu1 %v7887_v36  ;;  %v7891_v36 = vld [vmem:[%s10251_s0 + $0xab4] ss:$44 sps:$4 sm:$0xff]  }
 0x182   :  { %3729 = vmatmul.mubr.bf16.gmra.mrb[32].mxu1 %v7712_v0  ;;  %v7819_v0 = vld [vmem:[%s10251_s0 + $0x79c] ss:$44 sps:$4 sm:$0xff]  }
 0x183   :  { %4788 = vmatmul.mubr.bf16.gmra.mrb[32].mxu0 %v7716_v1  ;;  %3738 = vmatprep.mubr.bf16.mxu1 %v7720_v2  ;;  %v7821_v1 = vld [vmem:[%s10251_s0 + $0x7b4] ss:$44 sps:$4 sm:$0xff]   ;;  %v7823_v2 = vld [vmem:[%s10251_s0 + $0x798] ss:$44 sps:$4 sm:$0xff]  }
 0x184   :  { %4797 = vmatprep.mubr.bf16.mxu0 %v7722_v3  ;;  %v7827_v3 = vld [vmem:[%s10251_s0 + $0x7b0] ss:$44 sps:$4 sm:$0xff]  }
 0x18a   :  { %3739 = vmatmul.mubr.bf16.gmra.mrb[36].mxu1 %v7724_v8  ;;  %v7834_v8 = vld [vmem:[%s10251_s0 + $0x84c] ss:$44 sps:$4 sm:$0xff]  }
 0x18b   :  { %4798 = vmatmul.mubr.bf16.gmra.mrb[36].mxu0 %v7725_v9  ;;  %3748 = vmatprep.mubr.bf16.mxu1 %v7726_v10  ;;  %v7836_v9 = vld [vmem:[%s10251_s0 + $0x864] ss:$44 sps:$4 sm:$0xff]   ;;  %v7838_v10 = vld [vmem:[%s10251_s0 + $0x848] ss:$44 sps:$4 sm:$0xff]  }
 0x18c   :  { %4807 = vmatprep.mubr.bf16.mxu0 %v7728_v11  ;;  %v7842_v11 = vld [vmem:[%s10251_s0 + $0x860] ss:$44 sps:$4 sm:$0xff]  }
 0x192   :  { %3749 = vmatmul.mubr.bf16.gmra.mrb[40].mxu1 %v7730_v12  ;;  %v7846_v12 = vld [vmem:[%s10251_s0 + $0x8a4] ss:$44 sps:$4 sm:$0xff]  }
 0x193   :  { %4808 = vmatmul.mubr.bf16.gmra.mrb[40].mxu0 %v7734_v13  ;;  %3758 = vmatprep.mubr.bf16.mxu1 %v7735_v14  ;;  %v7848_v13 = vld [vmem:[%s10251_s0 + $0x8bc] ss:$44 sps:$4 sm:$0xff]   ;;  %v7850_v14 = vld [vmem:[%s10251_s0 + $0x8a0] ss:$44 sps:$4 sm:$0xff]  }
 0x194   :  { %4817 = vmatprep.mubr.bf16.mxu0 %v7737_v15  ;;  %v7851_v15 = vld [vmem:[%s10251_s0 + $0x8b8] ss:$44 sps:$4 sm:$0xff]  }
 0x19a   :  { %3759 = vmatmul.mubr.bf16.gmra.mrb[44].mxu1 %v7739_v18  ;;  %v7856_v18 = vld [vmem:[%s10251_s0 + $0x8f8] ss:$44 sps:$4 sm:$0xff]  }
 0x19b   :  { %4818 = vmatmul.mubr.bf16.gmra.mrb[44].mxu0 %v7740_v19  ;;  %3768 = vmatprep.mubr.bf16.mxu1 %v7741_v20  ;;  %v7860_v19 = vld [vmem:[%s10251_s0 + $0x910] ss:$44 sps:$4 sm:$0xff]   ;;  %v7861_v20 = vld [vmem:[%s10251_s0 + $0x954] ss:$44 sps:$4 sm:$0xff]  }
 0x19c   :  { %4827 = vmatprep.mubr.bf16.mxu0 %v7743_v21  ;;  %v7863_v21 = vld [vmem:[%s10251_s0 + $0x96c] ss:$44 sps:$4 sm:$0xff]  }
 0x1a2   :  { %3769 = vmatmul.mubr.bf16.gmra.mrb[48].mxu1 %v7745_v22  ;;  %v7865_v22 = vld [vmem:[%s10251_s0 + $0x950] ss:$44 sps:$4 sm:$0xff]  }
 0x1a3   :  { %4828 = vmatmul.mubr.bf16.gmra.mrb[48].mxu0 %v7749_v23  ;;  %3778 = vmatprep.mubr.bf16.mxu1 %v7750_v24  ;;  %v7866_v23 = vld [vmem:[%s10251_s0 + $0x968] ss:$44 sps:$4 sm:$0xff]   ;;  %v7867_v24 = vld [vmem:[%s10251_s0 + $0x9ac] ss:$44 sps:$4 sm:$0xff]  }
 0x1a4   :  { %4837 = vmatprep.mubr.bf16.mxu0 %v7752_v25  ;;  %v7869_v25 = vld [vmem:[%s10251_s0 + $0x9c4] ss:$44 sps:$4 sm:$0xff]  }
 0x1aa   :  { %3779 = vmatmul.mubr.bf16.gmra.mrb[52].mxu1 %v7754_v28  ;;  %v7876_v28 = vld [vmem:[%s10251_s0 + $0xa04] ss:$44 sps:$4 sm:$0xff]  }
 0x1ab   :  { %4838 = vmatmul.mubr.bf16.gmra.mrb[52].mxu0 %v7755_v29  ;;  %3788 = vmatprep.mubr.bf16.mxu1 %v7756_v30  ;;  %v7878_v29 = vld [vmem:[%s10251_s0 + $0xa1c] ss:$44 sps:$4 sm:$0xff]   ;;  %v7880_v30 = vld [vmem:[%s10251_s0 + $0xa00] ss:$44 sps:$4 sm:$0xff]  }
 0x1ac   :  { %4847 = vmatprep.mubr.bf16.mxu0 %v7758_v31  ;;  %v7881_v31 = vld [vmem:[%s10251_s0 + $0xa18] ss:$44 sps:$4 sm:$0xff]  }
 0x1b2   :  { %3789 = vmatmul.mubr.bf16.gmra.mrb[56].mxu1 %v7760_v32  ;;  %v7882_v32 = vld [vmem:[%s10251_s0 + $0xa5c] ss:$44 sps:$4 sm:$0xff]  }
 0x1b3   :  { %4848 = vmatmul.mubr.bf16.gmra.mrb[56].mxu0 %v7764_v33  ;;  %3798 = vmatprep.mubr.bf16.mxu1 %v7765_v34  ;;  %v7884_v33 = vld [vmem:[%s10251_s0 + $0xa74] ss:$44 sps:$4 sm:$0xff]   ;;  %v7886_v34 = vld [vmem:[%s10251_s0 + $0xa58] ss:$44 sps:$4 sm:$0xff]  }
 0x1b4   :  { %4857 = vmatprep.mubr.bf16.mxu0 %v7767_v35  ;;  %v7890_v35 = vld [vmem:[%s10251_s0 + $0xa70] ss:$44 sps:$4 sm:$0xff]  }
 0x1ba   :  { %3799 = vmatmul.mubr.bf16.gmra.mrb[60].mxu1 %v7769_v38  ;;  %v7895_v38 = vld [vmem:[%s10251_s0 + $0xab0] ss:$44 sps:$4 sm:$0xff]  }
 0x1bb   :  { %4858 = vmatmul.mubr.bf16.gmra.mrb[60].mxu0 %v7770_v39  ;;  %3808 = vmatprep.mubr.bf16.mxu1 %v7771_v40  ;;  %v7896_v39 = vld [vmem:[%s10251_s0 + $0xac8] ss:$44 sps:$4 sm:$0xff]  }
 0x1bc   :  { %4867 = vmatprep.mubr.bf16.mxu0 %v7773_v41  ;;  %v7899_v40 = vld [vmem:[%s10251_s0 + $0x14] ss:$44 sps:$4 sm:$0xff]   ;;  %v8025_v41 = vmov 0  }
 0x1c2   :  { %3809 = vmatmul.mubr.bf16.gmra.mrb[64].mxu1 %v7775_v42  ;;  %v7897_v42 = vld [vmem:[%s10251_s0 + $0x10] ss:$44 sps:$4 sm:$0xff]  }
 0x1c3   :  { %4868 = vmatmul.mubr.bf16.gmra.mrb[64].mxu0 %v7779_v43  ;;  %3818 = vmatprep.mubr.bf16.mxu1 %v7783_v44  ;;  %v7900_v43 = vld [vmem:[%s10251_s0 + $0x28] ss:$44 sps:$4 sm:$0xff]   ;;  %v7901_v44 = vld [vmem:[%s10251_s0 + $0x6c] ss:$44 sps:$4 sm:$0xff]  }
 0x1c4   :  { %4877 = vmatprep.mubr.bf16.mxu0 %v7785_v45  ;;  %v7903_v45 = vld [vmem:[%s10251_s0 + $0x68] ss:$44 sps:$4 sm:$0xff]  }
 0x1ca   :  { %3819 = vmatmul.mubr.bf16.gmra.mrb[68].mxu1 %v7787_v46  ;;  %v7904_v46 = vld [vmem:[%s10251_s0 + $0x80] ss:$44 sps:$4 sm:$0xff]  }
 0x1cb   :  { %4878 = vmatmul.mubr.bf16.gmra.mrb[68].mxu0 %v7788_v47  ;;  %3828 = vmatprep.mubr.bf16.mxu1 %v7789_v48  ;;  %v7905_v47 = vld [vmem:[%s10251_s0 + $0xc4] ss:$44 sps:$4 sm:$0xff]   ;;  %v7907_v48 = vld [vmem:[%s10251_s0 + $0xc0] ss:$44 sps:$4 sm:$0xff]  }
 0x1cc   :  { %4887 = vmatprep.mubr.bf16.mxu0 %v7791_v49  ;;  %v7908_v49 = vld [vmem:[%s10251_s0 + $0xd8] ss:$44 sps:$4 sm:$0xff]  }
 0x1d2   :  { %3829 = vmatmul.mubr.bf16.gmra.mrb[72].mxu1 %v7793_v50  ;;  %v7909_v50 = vld [vmem:[%s10251_s0 + $0x11c] ss:$44 sps:$4 sm:$0xff]  }
 0x1d3   :  { %4888 = vmatmul.mubr.bf16.gmra.mrb[72].mxu0 %v7797_v51  ;;  %3838 = vmatprep.mubr.bf16.mxu1 %v7798_v52  ;;  %v7911_v51 = vld [vmem:[%s10251_s0 + $0x118] ss:$44 sps:$4 sm:$0xff]   ;;  %v7912_v52 = vld [vmem:[%s10251_s0 + $0x130] ss:$44 sps:$4 sm:$0xff]  }
 0x1d4   :  { %4897 = vmatprep.mubr.bf16.mxu0 %v7800_v53  ;;  %v7913_v53 = vld [vmem:[%s10251_s0 + $0x174] ss:$44 sps:$4 sm:$0xff]  }
 0x1da   :  { %3839 = vmatmul.mubr.bf16.gmra.mrb[76].mxu1 %v7802_v54  ;;  %v7915_v54 = vld [vmem:[%s10251_s0 + $0x170] ss:$44 sps:$4 sm:$0xff]  }
 0x1db   :  { %4898 = vmatmul.mubr.bf16.gmra.mrb[76].mxu0 %v7803_v55  ;;  %3848 = vmatprep.mubr.bf16.mxu1 %v7804_v56  ;;  %v7916_v55 = vld [vmem:[%s10251_s0 + $0x188] ss:$44 sps:$4 sm:$0xff]   ;;  %v7917_v56 = vld [vmem:[%s10251_s0 + $0x1cc] ss:$44 sps:$4 sm:$0xff]  }
 0x1dc   :  { %4907 = vmatprep.mubr.bf16.mxu0 %v7806_v57  ;;  %v7919_v57 = vld [vmem:[%s10251_s0 + $0x1c8] ss:$44 sps:$4 sm:$0xff]  }
 0x1e2   :  { %3849 = vmatmul.mubr.bf16.gmra.mrb[80].mxu1 %v7808_v58  ;;  %v7920_v58 = vld [vmem:[%s10251_s0 + $0x1e0] ss:$44 sps:$4 sm:$0xff]  }
 0x1e3   :  { %4908 = vmatmul.mubr.bf16.gmra.mrb[80].mxu0 %v7812_v59  ;;  %3858 = vmatprep.mubr.bf16.mxu1 %v7813_v60  ;;  %v7921_v59 = vld [vmem:[%s10251_s0 + $0x224] ss:$44 sps:$4 sm:$0xff]   ;;  %v7923_v60 = vld [vmem:[%s10251_s0 + $0x220] ss:$44 sps:$4 sm:$0xff]  }
 0x1e4   :  { %4917 = vmatprep.mubr.bf16.mxu0 %v7815_v61  ;;  %v7924_v61 = vld [vmem:[%s10251_s0 + $0x238] ss:$44 sps:$4 sm:$0xff]  }
 0x1ea   :  { %3859 = vmatmul.mubr.bf16.gmra.mrb[84].mxu1 %v7817_v62  ;;  %v7925_v62 = vld [vmem:[%s10251_s0 + $0x27c] ss:$44 sps:$4 sm:$0xff]  }
 0x1eb   :  { %4918 = vmatmul.mubr.bf16.gmra.mrb[84].mxu0 %v7818_v63  ;;  %3868 = vmatprep.mubr.bf16.mxu1 %v7819_v0  ;;  %v7927_v63 = vld [vmem:[%s10251_s0 + $0x278] ss:$44 sps:$4 sm:$0xff]   ;;  %v7928_v0 = vld [vmem:[%s10251_s0 + $0x290] ss:$44 sps:$4 sm:$0xff]  }
 0x1ec   :  { %4927 = vmatprep.mubr.bf16.mxu0 %v7821_v1  ;;  %v7929_v1 = vld [vmem:[%s10251_s0 + $0x2d4] ss:$44 sps:$4 sm:$0xff]  }
 0x1f2   :  { %3869 = vmatmul.mubr.bf16.gmra.mrb[88].mxu1 %v7823_v2  ;;  %v7931_v2 = vld [vmem:[%s10251_s0 + $0x2d0] ss:$44 sps:$4 sm:$0xff]  }
 0x1f3   :  { %4928 = vmatmul.mubr.bf16.gmra.mrb[88].mxu0 %v7827_v3  ;;  %3878 = vmatprep.mubr.bf16.mxu1 %v7828_v4  ;;  %v7932_v3 = vld [vmem:[%s10251_s0 + $0x2e8] ss:$44 sps:$4 sm:$0xff]   ;;  %v7933_v4 = vld [vmem:[%s10251_s0 + $0x32c] ss:$44 sps:$4 sm:$0xff]  }
 0x1f4   :  { %4937 = vmatprep.mubr.bf16.mxu0 %v7830_v5  ;;  %v7935_v5 = vld [vmem:[%s10251_s0 + $0x328] ss:$44 sps:$4 sm:$0xff]  }
 0x1fa   :  { %3879 = vmatmul.mubr.bf16.gmra.mrb[92].mxu1 %v7832_v6  ;;  %v7936_v6 = vld [vmem:[%s10251_s0 + $0x340] ss:$44 sps:$4 sm:$0xff]  }
 0x1fb   :  { %4938 = vmatmul.mubr.bf16.gmra.mrb[92].mxu0 %v7833_v7  ;;  %3888 = vmatprep.mubr.bf16.mxu1 %v7834_v8  ;;  %v7937_v7 = vld [vmem:[%s10251_s0 + $0x384] ss:$44 sps:$4 sm:$0xff]   ;;  %v7939_v8 = vld [vmem:[%s10251_s0 + $0x380] ss:$44 sps:$4 sm:$0xff]  }
 0x1fc   :  { %4947 = vmatprep.mubr.bf16.mxu0 %v7836_v9  ;;  %v7940_v9 = vld [vmem:[%s10251_s0 + $0x398] ss:$44 sps:$4 sm:$0xff]  }
 0x202   :  { %3889 = vmatmul.mubr.bf16.gmra.mrb[96].mxu1 %v7838_v10  ;;  %v7941_v10 = vld [vmem:[%s10251_s0 + $0x3dc] ss:$44 sps:$4 sm:$0xff]  }
 0x203   :  { %4948 = vmatmul.mubr.bf16.gmra.mrb[96].mxu0 %v7842_v11  ;;  %3898 = vmatprep.mubr.bf16.mxu1 %v7846_v12  ;;  %v7943_v11 = vld [vmem:[%s10251_s0 + $0x3d8] ss:$44 sps:$4 sm:$0xff]   ;;  %v7944_v12 = vld [vmem:[%s10251_s0 + $0x3f0] ss:$44 sps:$4 sm:$0xff]  }
 0x204   :  { %4957 = vmatprep.mubr.bf16.mxu0 %v7848_v13  ;;  %v7945_v13 = vld [vmem:[%s10251_s0 + $0x434] ss:$44 sps:$4 sm:$0xff]  }
 0x20a   :  { %3899 = vmatmul.mubr.bf16.gmra.mrb[100].mxu1 %v7850_v14  ;;  %v7947_v14 = vld [vmem:[%s10251_s0 + $0x430] ss:$44 sps:$4 sm:$0xff]  }
 0x20b   :  { %4958 = vmatmul.mubr.bf16.gmra.mrb[100].mxu0 %v7851_v15  ;;  %3908 = vmatprep.mubr.bf16.mxu1 %v7852_v16  ;;  %v7948_v15 = vld [vmem:[%s10251_s0 + $0x448] ss:$44 sps:$4 sm:$0xff]   ;;  %v7949_v16 = vld [vmem:[%s10251_s0 + $0x48c] ss:$44 sps:$4 sm:$0xff]  }
 0x20c   :  { %4967 = vmatprep.mubr.bf16.mxu0 %v7854_v17  ;;  %v7951_v17 = vld [vmem:[%s10251_s0 + $0x488] ss:$44 sps:$4 sm:$0xff]  }
 0x212   :  { %3909 = vmatmul.mubr.bf16.gmra.mrb[104].mxu1 %v7856_v18  ;;  %v7952_v18 = vld [vmem:[%s10251_s0 + $0x4a0] ss:$44 sps:$4 sm:$0xff]  }
 0x213   :  { %4968 = vmatmul.mubr.bf16.gmra.mrb[104].mxu0 %v7860_v19  ;;  %3918 = vmatprep.mubr.bf16.mxu1 %v7861_v20  ;;  %v7953_v19 = vld [vmem:[%s10251_s0 + $0x4e4] ss:$44 sps:$4 sm:$0xff]   ;;  %v7955_v20 = vld [vmem:[%s10251_s0 + $0x4e0] ss:$44 sps:$4 sm:$0xff]  }
 0x214   :  { %4977 = vmatprep.mubr.bf16.mxu0 %v7863_v21  ;;  %v7956_v21 = vld [vmem:[%s10251_s0 + $0x4f8] ss:$44 sps:$4 sm:$0xff]  }
 0x21a   :  { %3919 = vmatmul.mubr.bf16.gmra.mrb[108].mxu1 %v7865_v22  ;;  %v7957_v22 = vld [vmem:[%s10251_s0 + $0x53c] ss:$44 sps:$4 sm:$0xff]  }
 0x21b   :  { %4978 = vmatmul.mubr.bf16.gmra.mrb[108].mxu0 %v7866_v23  ;;  %3928 = vmatprep.mubr.bf16.mxu1 %v7867_v24  ;;  %v7959_v23 = vld [vmem:[%s10251_s0 + $0x538] ss:$44 sps:$4 sm:$0xff]   ;;  %v7960_v24 = vld [vmem:[%s10251_s0 + $0x550] ss:$44 sps:$4 sm:$0xff]  }
 0x21c   :  { %4987 = vmatprep.mubr.bf16.mxu0 %v7869_v25  ;;  %v7961_v25 = vld [vmem:[%s10251_s0 + $0x594] ss:$44 sps:$4 sm:$0xff]  }
 0x222   :  { %3929 = vmatmul.mubr.bf16.gmra.mrb[112].mxu1 %v7871_v26  ;;  %v7963_v26 = vld [vmem:[%s10251_s0 + $0x590] ss:$44 sps:$4 sm:$0xff]  }
 0x223   :  { %4988 = vmatmul.mubr.bf16.gmra.mrb[112].mxu0 %v7875_v27  ;;  %3938 = vmatprep.mubr.bf16.mxu1 %v7876_v28  ;;  %v7964_v27 = vld [vmem:[%s10251_s0 + $0x5a8] ss:$44 sps:$4 sm:$0xff]   ;;  %v7965_v28 = vld [vmem:[%s10251_s0 + $0x5ec] ss:$44 sps:$4 sm:$0xff]  }
 0x224   :  { %4997 = vmatprep.mubr.bf16.mxu0 %v7878_v29  ;;  %v7967_v29 = vld [vmem:[%s10251_s0 + $0x5e8] ss:$44 sps:$4 sm:$0xff]  }
 0x22a   :  { %3939 = vmatmul.mubr.bf16.gmra.mrb[116].mxu1 %v7880_v30  ;;  %v7968_v30 = vld [vmem:[%s10251_s0 + $0x600] ss:$44 sps:$4 sm:$0xff]  }
 0x22b   :  { %4998 = vmatmul.mubr.bf16.gmra.mrb[116].mxu0 %v7881_v31  ;;  %3948 = vmatprep.mubr.bf16.mxu1 %v7882_v32  ;;  %v7969_v31 = vld [vmem:[%s10251_s0 + $0x644] ss:$44 sps:$4 sm:$0xff]   ;;  %v7971_v32 = vld [vmem:[%s10251_s0 + $0x640] ss:$44 sps:$4 sm:$0xff]  }
 0x22c   :  { %5007 = vmatprep.mubr.bf16.mxu0 %v7884_v33  ;;  %v7972_v33 = vld [vmem:[%s10251_s0 + $0x658] ss:$44 sps:$4 sm:$0xff]  }
 0x232   :  { %3949 = vmatmul.mubr.bf16.gmra.mrb[120].mxu1 %v7886_v34  ;;  %v7973_v34 = vld [vmem:[%s10251_s0 + $0x69c] ss:$44 sps:$4 sm:$0xff]  }
 0x233   :  { %5008 = vmatmul.mubr.bf16.gmra.mrb[120].mxu0 %v7890_v35  ;;  %3958 = vmatprep.mubr.bf16.mxu1 %v7891_v36  ;;  %v7975_v35 = vld [vmem:[%s10251_s0 + $0x698] ss:$44 sps:$4 sm:$0xff]   ;;  %v7976_v36 = vld [vmem:[%s10251_s0 + $0x6b0] ss:$44 sps:$4 sm:$0xff]  }
 0x234   :  { %5017 = vmatprep.mubr.bf16.mxu0 %v7893_v37  ;;  %v7977_v37 = vld [vmem:[%s10251_s0 + $0x6f4] ss:$44 sps:$4 sm:$0xff]  }
 0x23a   :  { %3959 = vmatmul.mubr.bf16.gmra.mrb[124].mxu1 %v7895_v38  ;;  %v7979_v38 = vld [vmem:[%s10251_s0 + $0x6f0] ss:$44 sps:$4 sm:$0xff]  }
 0x23b   :  { %5018 = vmatmul.mubr.bf16.gmra.mrb[124].mxu0 %v7896_v39  ;;  %4001 = vmatprep.mubr.bf16.mxu1 %v7899_v40  ;;  %v7980_v39 = vld [vmem:[%s10251_s0 + $0x708] ss:$44 sps:$4 sm:$0xff]   ;;  %v7981_v40 = vld [vmem:[%s10251_s0 + $0x74c] ss:$44 sps:$4 sm:$0xff]  }
 0x23c   :  { %5060 = vmatprep.mubr.bf16.mxu0 %v8025_v41 }
 0x242   :  { %4002 = vmatmul.mubr.bf16.vlgmr.msra.gmra.mrb[0].mxu1 %v7897_v42  ;;  %v7983_v42 = vld [vmem:[%s10251_s0 + $0x748] ss:$44 sps:$4 sm:$0xff]  }
 0x243   :  { %6587 = vmatmul.mubr.msk.bf16.vlgmr.msra.gmra.mrb[0].mxu0 %vm3166_vm0, %v7900_v43  ;;  %4011 = vmatprep.mubr.bf16.mxu1 %v7901_v44  ;;  %v7984_v43 = vld [vmem:[%s10251_s0 + $0x760] ss:$44 sps:$4 sm:$0xff]   ;;  %v7985_v44 = vld [vmem:[%s10251_s0 + $0x7a4] ss:$44 sps:$4 sm:$0xff]  }
 0x244   :  { %5070 = vmatprep.mubr.bf16.mxu0 %v8025_v41 }
 0x24a   :  { %4012 = vmatmul.mubr.bf16.gmra.mrb[4].mxu1 %v7903_v45  ;;  %v7987_v45 = vld [vmem:[%s10251_s0 + $0x7a0] ss:$44 sps:$4 sm:$0xff]  }
 0x24b   :  { %6588 = vmatmul.mubr.msk.bf16.gmra.mrb[4].mxu0 %vm3166_vm0, %v7904_v46  ;;  %4021 = vmatprep.mubr.bf16.mxu1 %v7905_v47  ;;  %v7988_v46 = vld [vmem:[%s10251_s0 + $0x7b8] ss:$44 sps:$4 sm:$0xff]   ;;  %v7989_v47 = vld [vmem:[%s10251_s0 + $0x7fc] ss:$44 sps:$4 sm:$0xff]  }
 0x24c   :  { %5080 = vmatprep.mubr.bf16.mxu0 %v8025_v41 }
 0x252   :  { %4022 = vmatmul.mubr.bf16.gmra.mrb[8].mxu1 %v7907_v48  ;;  %v7991_v48 = vld [vmem:[%s10251_s0 + $0x7f8] ss:$44 sps:$4 sm:$0xff]  }
 0x253   :  { %6589 = vmatmul.mubr.msk.bf16.gmra.mrb[8].mxu0 %vm3166_vm0, %v7908_v49  ;;  %4031 = vmatprep.mubr.bf16.mxu1 %v7909_v50  ;;  %v7992_v49 = vld [vmem:[%s10251_s0 + $0x810] ss:$44 sps:$4 sm:$0xff]   ;;  %v7993_v50 = vld [vmem:[%s10251_s0 + $0x854] ss:$44 sps:$4 sm:$0xff]  }
 0x254   :  { %5090 = vmatprep.mubr.bf16.mxu0 %v8025_v41 }
 0x25a   :  { %4032 = vmatmul.mubr.bf16.gmra.mrb[12].mxu1 %v7911_v51  ;;  %v7995_v51 = vld [vmem:[%s10251_s0 + $0x850] ss:$44 sps:$4 sm:$0xff]  }
 0x25b   :  { %6590 = vmatmul.mubr.msk.bf16.gmra.mrb[12].mxu0 %vm3166_vm0, %v7912_v52  ;;  %4041 = vmatprep.mubr.bf16.mxu1 %v7913_v53  ;;  %v7996_v52 = vld [vmem:[%s10251_s0 + $0x868] ss:$44 sps:$4 sm:$0xff]   ;;  %v7997_v53 = vld [vmem:[%s10251_s0 + $0x8ac] ss:$44 sps:$4 sm:$0xff]  }
 0x25c   :  { %5100 = vmatprep.mubr.bf16.mxu0 %v8025_v41 }
 0x262   :  { %4042 = vmatmul.mubr.bf16.gmra.mrb[16].mxu1 %v7915_v54  ;;  %v7999_v54 = vld [vmem:[%s10251_s0 + $0x8a8] ss:$44 sps:$4 sm:$0xff]  }
 0x263   :  { %6591 = vmatmul.mubr.msk.bf16.gmra.mrb[16].mxu0 %vm3166_vm0, %v7916_v55  ;;  %4051 = vmatprep.mubr.bf16.mxu1 %v7917_v56  ;;  %v8000_v55 = vld [vmem:[%s10251_s0 + $0x8c0] ss:$44 sps:$4 sm:$0xff]   ;;  %v8001_v56 = vld [vmem:[%s10251_s0 + $0x904] ss:$44 sps:$4 sm:$0xff]  }
 0x264   :  { %5110 = vmatprep.mubr.bf16.mxu0 %v8025_v41 }
 0x26a   :  { %4052 = vmatmul.mubr.bf16.gmra.mrb[20].mxu1 %v7919_v57  ;;  %v8003_v57 = vld [vmem:[%s10251_s0 + $0x900] ss:$44 sps:$4 sm:$0xff]  }
 0x26b   :  { %6592 = vmatmul.mubr.msk.bf16.gmra.mrb[20].mxu0 %vm3166_vm0, %v7920_v58  ;;  %4061 = vmatprep.mubr.bf16.mxu1 %v7921_v59  ;;  %v8004_v58 = vld [vmem:[%s10251_s0 + $0x918] ss:$44 sps:$4 sm:$0xff]   ;;  %v8005_v59 = vld [vmem:[%s10251_s0 + $0x95c] ss:$44 sps:$4 sm:$0xff]  }
 0x26c   :  { %5120 = vmatprep.mubr.bf16.mxu0 %v8025_v41 }
 0x272   :  { %4062 = vmatmul.mubr.bf16.gmra.mrb[24].mxu1 %v7923_v60 }
 0x273   :  { %6593 = vmatmul.mubr.msk.bf16.gmra.mrb[24].mxu0 %vm3166_vm0, %v7924_v61  ;;  %4071 = vmatprep.mubr.bf16.mxu1 %v7925_v62 }
 0x274   :  { %5130 = vmatprep.mubr.bf16.mxu0 %v8025_v41 }
 0x27a   :  { %4072 = vmatmul.mubr.bf16.gmra.mrb[28].mxu1 %v7927_v63 }
 0x27b   :  { %6594 = vmatmul.mubr.msk.bf16.gmra.mrb[28].mxu0 %vm3166_vm0, %v7928_v0  ;;  %4081 = vmatprep.mubr.bf16.mxu1 %v7929_v1  ;;  %v8007_v1 = vld [vmem:[%s10251_s0 + $0x958] ss:$44 sps:$4 sm:$0xff]  }
 0x27c   :  { %5140 = vmatprep.mubr.bf16.mxu0 %v8025_v41 }
 0x282   :  { %4082 = vmatmul.mubr.bf16.gmra.mrb[32].mxu1 %v7931_v2  ;;  %v8008_v2 = vld [vmem:[%s10251_s0 + $0x970] ss:$44 sps:$4 sm:$0xff]  }
 0x283   :  { %6595 = vmatmul.mubr.msk.bf16.gmra.mrb[32].mxu0 %vm3166_vm0, %v7932_v3  ;;  %4091 = vmatprep.mubr.bf16.mxu1 %v7933_v4 }
 0x284   :  { %5150 = vmatprep.mubr.bf16.mxu0 %v8025_v41 }
 0x28a   :  { %4092 = vmatmul.mubr.bf16.gmra.mrb[36].mxu1 %v7935_v5 }
 0x28b   :  { %6596 = vmatmul.mubr.msk.bf16.gmra.mrb[36].mxu0 %vm3166_vm0, %v7936_v6  ;;  %4101 = vmatprep.mubr.bf16.mxu1 %v7937_v7  ;;  %v8009_v6 = vld [vmem:[%s10251_s0 + $0x9b4] ss:$44 sps:$4 sm:$0xff]  }
 0x28c   :  { %5160 = vmatprep.mubr.bf16.mxu0 %v8025_v41 }
 0x292   :  { %4102 = vmatmul.mubr.bf16.gmra.mrb[40].mxu1 %v7939_v8 }
 0x293   :  { %6597 = vmatmul.mubr.msk.bf16.gmra.mrb[40].mxu0 %vm3166_vm0, %v7940_v9  ;;  %4111 = vmatprep.mubr.bf16.mxu1 %v7941_v10 }
 0x294   :  { %5170 = vmatprep.mubr.bf16.mxu0 %v8025_v41 }
 0x29a   :  { %4112 = vmatmul.mubr.bf16.gmra.mrb[44].mxu1 %v7943_v11 }
 0x29b   :  { %6598 = vmatmul.mubr.msk.bf16.gmra.mrb[44].mxu0 %vm3166_vm0, %v7944_v12  ;;  %4121 = vmatprep.mubr.bf16.mxu1 %v7945_v13 }
 0x29c   :  { %5180 = vmatprep.mubr.bf16.mxu0 %v8025_v41 }
 0x2a2   :  { %4122 = vmatmul.mubr.bf16.gmra.mrb[48].mxu1 %v7947_v14 }
 0x2a3   :  { %6599 = vmatmul.mubr.msk.bf16.gmra.mrb[48].mxu0 %vm3166_vm0, %v7948_v15  ;;  %4131 = vmatprep.mubr.bf16.mxu1 %v7949_v16 }
 0x2a4   :  { %5190 = vmatprep.mubr.bf16.mxu0 %v8025_v41 }
 0x2aa   :  { %4132 = vmatmul.mubr.bf16.gmra.mrb[52].mxu1 %v7951_v17 }
 0x2ab   :  { %6600 = vmatmul.mubr.msk.bf16.gmra.mrb[52].mxu0 %vm3166_vm0, %v7952_v18  ;;  %4141 = vmatprep.mubr.bf16.mxu1 %v7953_v19 }
 0x2ac   :  { %5200 = vmatprep.mubr.bf16.mxu0 %v8025_v41 }
 0x2b2   :  { %4142 = vmatmul.mubr.bf16.gmra.mrb[56].mxu1 %v7955_v20 }
 0x2b3   :  { %6601 = vmatmul.mubr.msk.bf16.gmra.mrb[56].mxu0 %vm3166_vm0, %v7956_v21  ;;  %4151 = vmatprep.mubr.bf16.mxu1 %v7957_v22 }
 0x2b4   :  { %5210 = vmatprep.mubr.bf16.mxu0 %v8025_v41 }
 0x2ba   :  { %4152 = vmatmul.mubr.bf16.gmra.mrb[60].mxu1 %v7959_v23 }
 0x2bb   :  { %6602 = vmatmul.mubr.msk.bf16.gmra.mrb[60].mxu0 %vm3166_vm0, %v7960_v24  ;;  %4161 = vmatprep.mubr.bf16.mxu1 %v7961_v25 }
 0x2bc   :  { %5220 = vmatprep.mubr.bf16.mxu0 %v8025_v41 }
 0x2c2   :  { %4162 = vmatmul.mubr.bf16.gmra.mrb[64].mxu1 %v7963_v26 }
 0x2c3   :  { %6603 = vmatmul.mubr.msk.bf16.gmra.mrb[64].mxu0 %vm3166_vm0, %v7964_v27  ;;  %4171 = vmatprep.mubr.bf16.mxu1 %v7965_v28  ;;  %v8011_v28 = vld [vmem:[%s10251_s0 + $0x9b0] ss:$44 sps:$4 sm:$0xff]  }
 0x2c4   :  { %5230 = vmatprep.mubr.bf16.mxu0 %v8025_v41 }
 0x2ca   :  { %4172 = vmatmul.mubr.bf16.gmra.mrb[68].mxu1 %v7967_v29 }
 0x2cb   :  { %6604 = vmatmul.mubr.msk.bf16.gmra.mrb[68].mxu0 %vm3166_vm0, %v7968_v30  ;;  %4181 = vmatprep.mubr.bf16.mxu1 %v7969_v31 }
 0x2cc   :  { %5240 = vmatprep.mubr.bf16.mxu0 %v8025_v41 }
 0x2d2   :  { %4182 = vmatmul.mubr.bf16.gmra.mrb[72].mxu1 %v7971_v32  ;;  %v8012_v32 = vld [vmem:[%s10251_s0 + $0x9c8] ss:$44 sps:$4 sm:$0xff]  }
 0x2d3   :  { %6605 = vmatmul.mubr.msk.bf16.gmra.mrb[72].mxu0 %vm3166_vm0, %v7972_v33  ;;  %4191 = vmatprep.mubr.bf16.mxu1 %v7973_v34  ;;  %v8013_v33 = vld [vmem:[%s10251_s0 + $0xa0c] ss:$44 sps:$4 sm:$0xff]  }
 0x2d4   :  { %5250 = vmatprep.mubr.bf16.mxu0 %v8025_v41 }
 0x2da   :  { %4192 = vmatmul.mubr.bf16.gmra.mrb[76].mxu1 %v7975_v35 }
 0x2db   :  { %6606 = vmatmul.mubr.msk.bf16.gmra.mrb[76].mxu0 %vm3166_vm0, %v7976_v36  ;;  %4201 = vmatprep.mubr.bf16.mxu1 %v7977_v37 }
 0x2dc   :  { %5260 = vmatprep.mubr.bf16.mxu0 %v8025_v41 }
 0x2e2   :  { %4202 = vmatmul.mubr.bf16.gmra.mrb[80].mxu1 %v7979_v38 }
 0x2e3   :  { %6607 = vmatmul.mubr.msk.bf16.gmra.mrb[80].mxu0 %vm3166_vm0, %v7980_v39  ;;  %4211 = vmatprep.mubr.bf16.mxu1 %v7981_v40 }
 0x2e4   :  { %5270 = vmatprep.mubr.bf16.mxu0 %v8025_v41 }
 0x2ea   :  { %4212 = vmatmul.mubr.bf16.gmra.mrb[84].mxu1 %v7983_v42 }
 0x2eb   :  { %6608 = vmatmul.mubr.msk.bf16.gmra.mrb[84].mxu0 %vm3166_vm0, %v7984_v43  ;;  %4221 = vmatprep.mubr.bf16.mxu1 %v7985_v44 }
 0x2ec   :  { %5280 = vmatprep.mubr.bf16.mxu0 %v8025_v41 }
 0x2f2   :  { %4222 = vmatmul.mubr.bf16.gmra.mrb[88].mxu1 %v7987_v45 }
 0x2f3   :  { %6609 = vmatmul.mubr.msk.bf16.gmra.mrb[88].mxu0 %vm3166_vm0, %v7988_v46  ;;  %4231 = vmatprep.mubr.bf16.mxu1 %v7989_v47 }
 0x2f4   :  { %5290 = vmatprep.mubr.bf16.mxu0 %v8025_v41 }
 0x2fa   :  { %4232 = vmatmul.mubr.bf16.gmra.mrb[92].mxu1 %v7991_v48 }
 0x2fb   :  { %6610 = vmatmul.mubr.msk.bf16.gmra.mrb[92].mxu0 %vm3166_vm0, %v7992_v49  ;;  %4241 = vmatprep.mubr.bf16.mxu1 %v7993_v50 }
 0x2fc   :  { %5300 = vmatprep.mubr.bf16.mxu0 %v8025_v41 }
 0x302   :  { %4242 = vmatmul.mubr.bf16.gmra.mrb[96].mxu1 %v7995_v51 }
 0x303   :  { %6611 = vmatmul.mubr.msk.bf16.gmra.mrb[96].mxu0 %vm3166_vm0, %v7996_v52  ;;  %4251 = vmatprep.mubr.bf16.mxu1 %v7997_v53 }
 0x304   :  { %5310 = vmatprep.mubr.bf16.mxu0 %v8025_v41 }
 0x30a   :  { %4252 = vmatmul.mubr.bf16.gmra.mrb[100].mxu1 %v7999_v54 }
 0x30b   :  { %6612 = vmatmul.mubr.msk.bf16.gmra.mrb[100].mxu0 %vm3166_vm0, %v8000_v55  ;;  %4261 = vmatprep.mubr.bf16.mxu1 %v8001_v56 }
 0x30c   :  { %5320 = vmatprep.mubr.bf16.mxu0 %v8025_v41 }
 0x312   :  { %4262 = vmatmul.mubr.bf16.gmra.mrb[104].mxu1 %v8003_v57 }
 0x313   :  { %6613 = vmatmul.mubr.msk.bf16.gmra.mrb[104].mxu0 %vm3166_vm0, %v8004_v58  ;;  %4271 = vmatprep.mubr.bf16.mxu1 %v8005_v59 }
 0x314   :  { %5330 = vmatprep.mubr.bf16.mxu0 %v8025_v41 }
 0x315   :  { %v4003_v60 = vpop.f32.mrb[0].mxu1 }
 0x316   :  { %v5062_v61 = vpop.f32.mrb[0].mxu0  ;;  %v4005_v63 = vpop.f32.mrb[1].mxu1 }
 0x317   :  { %v6619_v62 = vadd.f32 %v5062_v61, %v4003_v60  ;;  %v5064_v0 = vpop.f32.mrb[1].mxu0  ;;  %v4007_v4 = vpop.f32.mrb[2].mxu1  ;;  %v8015_v60 = vld [vmem:[%s10251_s0 + $0xa08] ss:$44 sps:$4 sm:$0xff]  }
 0x318   :  { %v6620_v3 = vadd.f32 %v5064_v0, %v4005_v63  ;;  %v5066_v5 = vpop.f32.mrb[2].mxu0  ;;  %v4009_v8 = vpop.f32.mrb[3].mxu1  ;;  %v8016_v0 = vld [vmem:[%s10251_s0 + $0xa20] ss:$44 sps:$4 sm:$0xff]  }
 0x319   :  { %5381 = vst [vmem:[%s10252_s2] sm:$0xff] %v6619_v62  ;;  %v6621_v7 = vadd.f32 %v5066_v5, %v4007_v4  ;;  %v5068_v9 = vpop.f32.mrb[3].mxu0  ;;  %v5711_v12 = vmul.f32 %v6619_v62, %v6619_v62 }
 0x31a   :  { %5382 = vst.msk [vmem:[%s10252_s2 + $0x8] sm:$0xff] %vm3166_vm0, %v6620_v3  ;;  %v5712_v10 = vmul.f32 %v6620_v3, %v6620_v3  ;;  %v6622_v11 = vadd.f32 %v5068_v9, %v4009_v8  ;;  %4272 = vmatmul.mubr.bf16.gmra.mrb[108].mxu1 %v8007_v1  ;;  %v5578_v15 = vsel %vm3166_vm0, %v6620_v3, 0.0  ;;  %v8017_v1 = vld [vmem:[%s10251_s0 + $0xa64] ss:$44 sps:$4 sm:$0xff]  }
 0x31b   :  { %5383 = vst [vmem:[%s10252_s2 + $0x10] sm:$0xff] %v6621_v7  ;;  %v5509_v13 = vadd.f32 %v6621_v7, %v6619_v62  ;;  %v5713_v14 = vmul.f32 %v6621_v7, %v6621_v7  ;;  %6614 = vmatmul.mubr.msk.bf16.gmra.mrb[108].mxu0 %vm3166_vm0, %v8008_v2  ;;  %4281 = vmatprep.mubr.bf16.mxu1 %v8009_v6 }
 0x31c   :  { %5384 = vst.msk [vmem:[%s10252_s2 + $0x18] sm:$0xff] %vm3166_vm0, %v6622_v11  ;;  %v5579_v16 = vsel %vm3166_vm0, %v6622_v11, 0.0  ;;  %v5714_v17 = vmul.f32 %v6622_v11, %v6622_v11  ;;  %5340 = vmatprep.mubr.bf16.mxu0 %v8025_v41  ;;  %v5908_v20 = vsel %vm3166_vm0, %v5712_v10, 0.0 }
 0x31d   :  { %v5839_v18 = vadd.f32 %v5713_v14, %v5711_v12  ;;  %v5580_v19 = vadd.f32 %v5579_v16, %v5578_v15  ;;  %v4013_v22 = vpop.f32.mrb[4].mxu1 }
 0x31e   :  { %v5909_v21 = vsel %vm3166_vm0, %v5714_v17, 0.0  ;;  %v5072_v23 = vpop.f32.mrb[4].mxu0  ;;  %v4015_v26 = vpop.f32.mrb[5].mxu1 }
 0x31f   :  { %v5910_v24 = vadd.f32 %v5909_v21, %v5908_v20  ;;  %v6623_v25 = vadd.f32 %v5072_v23, %v4013_v22  ;;  %v5074_v27 = vpop.f32.mrb[5].mxu0  ;;  %v4017_v30 = vpop.f32.mrb[6].mxu1 }
 0x320   :  { %v6624_v29 = vadd.f32 %v5074_v27, %v4015_v26  ;;  %v5076_v31 = vpop.f32.mrb[6].mxu0  ;;  %v4019_v37 = vpop.f32.mrb[7].mxu1  ;;  %v8019_v27 = vld [vmem:[%s10251_s0 + $0xa60] ss:$44 sps:$4 sm:$0xff]  }
 0x321   :  { %5385 = vst [vmem:[%s10252_s2 + $0x20] sm:$0xff] %v6623_v25  ;;  %v5510_v34 = vadd.f32 %v6623_v25, %v5509_v13  ;;  %v5715_v35 = vmul.f32 %v6623_v25, %v6623_v25  ;;  %v6625_v36 = vadd.f32 %v5076_v31, %v4017_v30  ;;  %v5078_v38 = vpop.f32.mrb[7].mxu0  ;;  %v8020_v31 = vld [vmem:[%s10251_s0 + $0xa78] ss:$44 sps:$4 sm:$0xff]  }
 0x322   :  { %5386 = vst.msk [vmem:[%s10252_s2 + $0x28] sm:$0xff] %vm3166_vm0, %v6624_v29  ;;  %v5581_v39 = vsel %vm3166_vm0, %v6624_v29, 0.0  ;;  %v5716_v40 = vmul.f32 %v6624_v29, %v6624_v29  ;;  %v6626_v42 = vadd.f32 %v5078_v38, %v4019_v37  ;;  %4282 = vmatmul.mubr.bf16.gmra.mrb[112].mxu1 %v8011_v28 }
 0x323   :  { %v5840_v43 = vadd.f32 %v5839_v18, %v5715_v35  ;;  %v5582_v44 = vadd.f32 %v5581_v39, %v5580_v19  ;;  %5387 = vst [vmem:[%s10252_s2 + $0x30] sm:$0xff] %v6625_v36  ;;  %v5511_v45 = vadd.f32 %v6625_v36, %v5510_v34  ;;  %v5717_v46 = vmul.f32 %v6625_v36, %v6625_v36 }
 0x324   :  { %v5911_v47 = vsel %vm3166_vm0, %v5716_v40, 0.0  ;;  %5388 = vst.msk [vmem:[%s10252_s2 + $0x38] sm:$0xff] %vm3166_vm0, %v6626_v42  ;;  %v5583_v48 = vsel %vm3166_vm0, %v6626_v42, 0.0  ;;  %v5718_v49 = vmul.f32 %v6626_v42, %v6626_v42  ;;  %6615 = vmatmul.mubr.msk.bf16.gmra.mrb[112].mxu0 %vm3166_vm0, %v8012_v32  ;;  %4291 = vmatprep.mubr.bf16.mxu1 %v8013_v33  ;;  %v8021_v32 = vld [vmem:[%s10251_s0 + $0xabc] ss:$44 sps:$4 sm:$0xff]  }
 0x325   :  { %v5912_v50 = vadd.f32 %v5911_v47, %v5910_v24  ;;  %v5841_v51 = vadd.f32 %v5840_v43, %v5717_v46  ;;  %v5584_v52 = vadd.f32 %v5583_v48, %v5582_v44  ;;  %5350 = vmatprep.mubr.bf16.mxu0 %v8025_v41  ;;  %v4023_v54 = vpop.f32.mrb[8].mxu1 }
 0x326   :  { %v5913_v53 = vsel %vm3166_vm0, %v5718_v49, 0.0  ;;  %v5082_v55 = vpop.f32.mrb[8].mxu0  ;;  %v4025_v58 = vpop.f32.mrb[9].mxu1 }
 0x327   :  { %v5914_v56 = vadd.f32 %v5913_v53, %v5912_v50  ;;  %v6627_v57 = vadd.f32 %v5082_v55, %v4023_v54  ;;  %v5084_v59 = vpop.f32.mrb[9].mxu0  ;;  %v4027_v62 = vpop.f32.mrb[10].mxu1 }
 0x328   :  { %v6628_v61 = vadd.f32 %v5084_v59, %v4025_v58  ;;  %v5086_v63 = vpop.f32.mrb[10].mxu0  ;;  %v4029_v5 = vpop.f32.mrb[11].mxu1  ;;  %v8023_v59 = vld [vmem:[%s10251_s0 + $0xab8] ss:$44 sps:$4 sm:$0xff]  }
 0x329   :  { %5389 = vst [vmem:[%s10252_s2 + $0x40] sm:$0xff] %v6627_v57  ;;  %v5512_v2 = vadd.f32 %v6627_v57, %v5511_v45  ;;  %v5719_v3 = vmul.f32 %v6627_v57, %v6627_v57  ;;  %v6629_v4 = vadd.f32 %v5086_v63, %v4027_v62  ;;  %v5088_v6 = vpop.f32.mrb[11].mxu0  ;;  %v8024_v63 = vld [vmem:[%s10251_s0 + $0xad0] ss:$44 sps:$4 sm:$0xff]  }
 0x32a   :  { %5390 = vst.msk [vmem:[%s10252_s2 + $0x48] sm:$0xff] %vm3166_vm0, %v6628_v61  ;;  %v5585_v7 = vsel %vm3166_vm0, %v6628_v61, 0.0  ;;  %v5720_v8 = vmul.f32 %v6628_v61, %v6628_v61  ;;  %v6630_v9 = vadd.f32 %v5088_v6, %v4029_v5  ;;  %4292 = vmatmul.mubr.bf16.gmra.mrb[116].mxu1 %v8015_v60 }
 0x32b   :  { %v5842_v10 = vadd.f32 %v5841_v51, %v5719_v3  ;;  %v5586_v11 = vadd.f32 %v5585_v7, %v5584_v52  ;;  %5391 = vst [vmem:[%s10252_s2 + $0x50] sm:$0xff] %v6629_v4  ;;  %v5513_v12 = vadd.f32 %v6629_v4, %v5512_v2  ;;  %v5721_v13 = vmul.f32 %v6629_v4, %v6629_v4 }
 0x32c   :  { %v5915_v14 = vsel %vm3166_vm0, %v5720_v8, 0.0  ;;  %5392 = vst.msk [vmem:[%s10252_s2 + $0x58] sm:$0xff] %vm3166_vm0, %v6630_v9  ;;  %v5587_v15 = vsel %vm3166_vm0, %v6630_v9, 0.0  ;;  %v5722_v16 = vmul.f32 %v6630_v9, %v6630_v9  ;;  %6616 = vmatmul.mubr.msk.bf16.gmra.mrb[116].mxu0 %vm3166_vm0, %v8016_v0  ;;  %4301 = vmatprep.mubr.bf16.mxu1 %v8017_v1 }
 0x32d   :  { %v5916_v17 = vadd.f32 %v5915_v14, %v5914_v56  ;;  %v5843_v18 = vadd.f32 %v5842_v10, %v5721_v13  ;;  %v5588_v19 = vadd.f32 %v5587_v15, %v5586_v11  ;;  %5360 = vmatprep.mubr.bf16.mxu0 %v8025_v41  ;;  %v4033_v21 = vpop.f32.mrb[12].mxu1 }
 0x32e   :  { %v5917_v20 = vsel %vm3166_vm0, %v5722_v16, 0.0  ;;  %v5092_v22 = vpop.f32.mrb[12].mxu0  ;;  %v4035_v25 = vpop.f32.mrb[13].mxu1 }
 0x32f   :  { %v5918_v23 = vadd.f32 %v5917_v20, %v5916_v17  ;;  %v6631_v24 = vadd.f32 %v5092_v22, %v4033_v21  ;;  %v5094_v26 = vpop.f32.mrb[13].mxu0  ;;  %v4037_v29 = vpop.f32.mrb[14].mxu1 }
 0x330   :  { %v6632_v28 = vadd.f32 %v5094_v26, %v4035_v25  ;;  %v5096_v30 = vpop.f32.mrb[14].mxu0  ;;  %v4039_v36 = vpop.f32.mrb[15].mxu1 }
 0x331   :  { %5393 = vst [vmem:[%s10252_s2 + $0x60] sm:$0xff] %v6631_v24  ;;  %v5514_v33 = vadd.f32 %v6631_v24, %v5513_v12  ;;  %v5723_v34 = vmul.f32 %v6631_v24, %v6631_v24  ;;  %v6633_v35 = vadd.f32 %v5096_v30, %v4037_v29  ;;  %v5098_v37 = vpop.f32.mrb[15].mxu0 }
 0x332   :  { %5394 = vst.msk [vmem:[%s10252_s2 + $0x68] sm:$0xff] %vm3166_vm0, %v6632_v28  ;;  %v5589_v38 = vsel %vm3166_vm0, %v6632_v28, 0.0  ;;  %v5724_v39 = vmul.f32 %v6632_v28, %v6632_v28  ;;  %v6634_v40 = vadd.f32 %v5098_v37, %v4039_v36  ;;  %4302 = vmatmul.mubr.bf16.gmra.mrb[120].mxu1 %v8019_v27 }
 0x333   :  { %v5844_v42 = vadd.f32 %v5843_v18, %v5723_v34  ;;  %v5590_v43 = vadd.f32 %v5589_v38, %v5588_v19  ;;  %5395 = vst [vmem:[%s10252_s2 + $0x70] sm:$0xff] %v6633_v35  ;;  %v5515_v44 = vadd.f32 %v6633_v35, %v5514_v33  ;;  %v5725_v45 = vmul.f32 %v6633_v35, %v6633_v35 }
 0x334   :  { %v5919_v46 = vsel %vm3166_vm0, %v5724_v39, 0.0  ;;  %5396 = vst.msk [vmem:[%s10252_s2 + $0x78] sm:$0xff] %vm3166_vm0, %v6634_v40  ;;  %v5591_v47 = vsel %vm3166_vm0, %v6634_v40, 0.0  ;;  %v5726_v48 = vmul.f32 %v6634_v40, %v6634_v40  ;;  %6617 = vmatmul.mubr.msk.bf16.gmra.mrb[120].mxu0 %vm3166_vm0, %v8020_v31  ;;  %4311 = vmatprep.mubr.bf16.mxu1 %v8021_v32 }
 0x335   :  { %v5920_v49 = vadd.f32 %v5919_v46, %v5918_v23  ;;  %v5845_v50 = vadd.f32 %v5844_v42, %v5725_v45  ;;  %v5592_v51 = vadd.f32 %v5591_v47, %v5590_v43  ;;  %5370 = vmatprep.mubr.bf16.mxu0 %v8025_v41  ;;  %v4043_v53 = vpop.f32.mrb[16].mxu1 }
 0x336   :  { %v5921_v52 = vsel %vm3166_vm0, %v5726_v48, 0.0  ;;  %v5102_v54 = vpop.f32.mrb[16].mxu0  ;;  %v4045_v57 = vpop.f32.mrb[17].mxu1 }
 0x337   :  { %v5922_v55 = vadd.f32 %v5921_v52, %v5920_v49  ;;  %v6635_v56 = vadd.f32 %v5102_v54, %v4043_v53  ;;  %v5104_v58 = vpop.f32.mrb[17].mxu0  ;;  %v4047_v61 = vpop.f32.mrb[18].mxu1 }
 0x338   :  { %v6636_v60 = vadd.f32 %v5104_v58, %v4045_v57  ;;  %v5106_v62 = vpop.f32.mrb[18].mxu0  ;;  %v4049_v2 = vpop.f32.mrb[19].mxu1 }
 0x339   :  { %5397 = vst [vmem:[%s10252_s2 + $0x80] sm:$0xff] %v6635_v56  ;;  %v5516_v41 = vadd.f32 %v6635_v56, %v5515_v44  ;;  %v5727_v0 = vmul.f32 %v6635_v56, %v6635_v56  ;;  %v6637_v1 = vadd.f32 %v5106_v62, %v4047_v61  ;;  %v5108_v3 = vpop.f32.mrb[19].mxu0 }
 0x33a   :  { %5398 = vst.msk [vmem:[%s10252_s2 + $0x88] sm:$0xff] %vm3166_vm0, %v6636_v60  ;;  %v5593_v4 = vsel %vm3166_vm0, %v6636_v60, 0.0  ;;  %v5728_v5 = vmul.f32 %v6636_v60, %v6636_v60  ;;  %v6638_v6 = vadd.f32 %v5108_v3, %v4049_v2  ;;  %4312 = vmatmul.mubr.bf16.gmra.mrb[124].mxu1 %v8023_v59 }
 0x33b   :  { %v5846_v7 = vadd.f32 %v5845_v50, %v5727_v0  ;;  %v5594_v8 = vadd.f32 %v5593_v4, %v5592_v51  ;;  %5399 = vst [vmem:[%s10252_s2 + $0x90] sm:$0xff] %v6637_v1  ;;  %v5517_v9 = vadd.f32 %v6637_v1, %v5516_v41  ;;  %v5729_v10 = vmul.f32 %v6637_v1, %v6637_v1 }
 0x33c   :  { %v5923_v11 = vsel %vm3166_vm0, %v5728_v5, 0.0  ;;  %5400 = vst.msk [vmem:[%s10252_s2 + $0x98] sm:$0xff] %vm3166_vm0, %v6638_v6  ;;  %v5595_v12 = vsel %vm3166_vm0, %v6638_v6, 0.0  ;;  %v5730_v13 = vmul.f32 %v6638_v6, %v6638_v6  ;;  %6618 = vmatmul.mubr.msk.bf16.gmra.mrb[124].mxu0 %vm3166_vm0, %v8024_v63 }
 0x33d   :  { %v5924_v14 = vadd.f32 %v5923_v11, %v5922_v55  ;;  %v5847_v15 = vadd.f32 %v5846_v7, %v5729_v10  ;;  %v5596_v16 = vadd.f32 %v5595_v12, %v5594_v8  ;;  %v4053_v18 = vpop.f32.mrb[20].mxu1 }
 0x33e   :  { %v5925_v17 = vsel %vm3166_vm0, %v5730_v13, 0.0  ;;  %v5112_v19 = vpop.f32.mrb[20].mxu0  ;;  %v4055_v22 = vpop.f32.mrb[21].mxu1 }
 0x33f   :  { %v5926_v20 = vadd.f32 %v5925_v17, %v5924_v14  ;;  %v6639_v21 = vadd.f32 %v5112_v19, %v4053_v18  ;;  %v5114_v23 = vpop.f32.mrb[21].mxu0  ;;  %v4057_v25 = vpop.f32.mrb[22].mxu1 }
 0x340   :  { %v6640_v24 = vadd.f32 %v5114_v23, %v4055_v22  ;;  %v5116_v26 = vpop.f32.mrb[22].mxu0  ;;  %v4059_v30 = vpop.f32.mrb[23].mxu1 }
 0x341   :  { %5401 = vst [vmem:[%s10252_s2 + $0xa0] sm:$0xff] %v6639_v21  ;;  %v5518_v27 = vadd.f32 %v6639_v21, %v5517_v9  ;;  %v5731_v28 = vmul.f32 %v6639_v21, %v6639_v21  ;;  %v6641_v29 = vadd.f32 %v5116_v26, %v4057_v25  ;;  %v5118_v31 = vpop.f32.mrb[23].mxu0 }
 0x342   :  { %5402 = vst.msk [vmem:[%s10252_s2 + $0xa8] sm:$0xff] %vm3166_vm0, %v6640_v24  ;;  %v5597_v32 = vsel %vm3166_vm0, %v6640_v24, 0.0  ;;  %v5732_v33 = vmul.f32 %v6640_v24, %v6640_v24  ;;  %v6642_v34 = vadd.f32 %v5118_v31, %v4059_v30 }
 0x343   :  { %v5848_v35 = vadd.f32 %v5847_v15, %v5731_v28  ;;  %v5598_v36 = vadd.f32 %v5597_v32, %v5596_v16  ;;  %5403 = vst [vmem:[%s10252_s2 + $0xb0] sm:$0xff] %v6641_v29  ;;  %v5519_v37 = vadd.f32 %v6641_v29, %v5518_v27  ;;  %v5733_v38 = vmul.f32 %v6641_v29, %v6641_v29 }
 0x344   :  { %v5927_v39 = vsel %vm3166_vm0, %v5732_v33, 0.0  ;;  %5404 = vst.msk [vmem:[%s10252_s2 + $0xb8] sm:$0xff] %vm3166_vm0, %v6642_v34  ;;  %v5599_v40 = vsel %vm3166_vm0, %v6642_v34, 0.0  ;;  %v5734_v42 = vmul.f32 %v6642_v34, %v6642_v34 }
 0x345   :  { %v5928_v43 = vadd.f32 %v5927_v39, %v5926_v20  ;;  %v5849_v44 = vadd.f32 %v5848_v35, %v5733_v38  ;;  %v5600_v45 = vadd.f32 %v5599_v40, %v5598_v36  ;;  %v4063_v47 = vpop.f32.mrb[24].mxu1 }
 0x346   :  { %v5929_v46 = vsel %vm3166_vm0, %v5734_v42, 0.0  ;;  %v5122_v48 = vpop.f32.mrb[24].mxu0  ;;  %v4065_v51 = vpop.f32.mrb[25].mxu1 }
 0x347   :  { %v5930_v49 = vadd.f32 %v5929_v46, %v5928_v43  ;;  %v6643_v50 = vadd.f32 %v5122_v48, %v4063_v47  ;;  %v5124_v52 = vpop.f32.mrb[25].mxu0  ;;  %v4067_v54 = vpop.f32.mrb[26].mxu1 }
 0x348   :  { %v6644_v53 = vadd.f32 %v5124_v52, %v4065_v51  ;;  %v5126_v55 = vpop.f32.mrb[26].mxu0  ;;  %v4069_v59 = vpop.f32.mrb[27].mxu1 }
 0x349   :  { %5405 = vst [vmem:[%s10252_s2 + $0xc0] sm:$0xff] %v6643_v50  ;;  %v5520_v56 = vadd.f32 %v6643_v50, %v5519_v37  ;;  %v5735_v57 = vmul.f32 %v6643_v50, %v6643_v50  ;;  %v6645_v58 = vadd.f32 %v5126_v55, %v4067_v54  ;;  %v5128_v60 = vpop.f32.mrb[27].mxu0 }
 0x34a   :  { %5406 = vst.msk [vmem:[%s10252_s2 + $0xc8] sm:$0xff] %vm3166_vm0, %v6644_v53  ;;  %v5601_v61 = vsel %vm3166_vm0, %v6644_v53, 0.0  ;;  %v5736_v62 = vmul.f32 %v6644_v53, %v6644_v53  ;;  %v6646_v63 = vadd.f32 %v5128_v60, %v4069_v59 }
 0x34b   :  { %v5850_v41 = vadd.f32 %v5849_v44, %v5735_v57  ;;  %v5602_v0 = vadd.f32 %v5601_v61, %v5600_v45  ;;  %5407 = vst [vmem:[%s10252_s2 + $0xd0] sm:$0xff] %v6645_v58  ;;  %v5521_v1 = vadd.f32 %v6645_v58, %v5520_v56  ;;  %v5737_v2 = vmul.f32 %v6645_v58, %v6645_v58 }
 0x34c   :  { %v5931_v3 = vsel %vm3166_vm0, %v5736_v62, 0.0  ;;  %5408 = vst.msk [vmem:[%s10252_s2 + $0xd8] sm:$0xff] %vm3166_vm0, %v6646_v63  ;;  %v5603_v4 = vsel %vm3166_vm0, %v6646_v63, 0.0  ;;  %v5738_v5 = vmul.f32 %v6646_v63, %v6646_v63 }
 0x34d   :  { %v5932_v6 = vadd.f32 %v5931_v3, %v5930_v49  ;;  %v5851_v7 = vadd.f32 %v5850_v41, %v5737_v2  ;;  %v5604_v8 = vadd.f32 %v5603_v4, %v5602_v0  ;;  %v4073_v10 = vpop.f32.mrb[28].mxu1 }
 0x34e   :  { %v5933_v9 = vsel %vm3166_vm0, %v5738_v5, 0.0  ;;  %v5132_v11 = vpop.f32.mrb[28].mxu0  ;;  %v4075_v14 = vpop.f32.mrb[29].mxu1 }
 0x34f   :  { %v5934_v12 = vadd.f32 %v5933_v9, %v5932_v6  ;;  %v6647_v13 = vadd.f32 %v5132_v11, %v4073_v10  ;;  %v5134_v15 = vpop.f32.mrb[29].mxu0  ;;  %v4077_v17 = vpop.f32.mrb[30].mxu1 }
 0x350   :  { %v6648_v16 = vadd.f32 %v5134_v15, %v4075_v14  ;;  %v5136_v18 = vpop.f32.mrb[30].mxu0  ;;  %v4079_v22 = vpop.f32.mrb[31].mxu1 }
 0x351   :  { %5409 = vst [vmem:[%s10252_s2 + $0xe0] sm:$0xff] %v6647_v13  ;;  %v5522_v19 = vadd.f32 %v6647_v13, %v5521_v1  ;;  %v5739_v20 = vmul.f32 %v6647_v13, %v6647_v13  ;;  %v6649_v21 = vadd.f32 %v5136_v18, %v4077_v17  ;;  %v5138_v23 = vpop.f32.mrb[31].mxu0 }
 0x352   :  { %5410 = vst.msk [vmem:[%s10252_s2 + $0xe8] sm:$0xff] %vm3166_vm0, %v6648_v16  ;;  %v5605_v24 = vsel %vm3166_vm0, %v6648_v16, 0.0  ;;  %v5740_v25 = vmul.f32 %v6648_v16, %v6648_v16  ;;  %v6650_v26 = vadd.f32 %v5138_v23, %v4079_v22 }
 0x353   :  { %v5852_v27 = vadd.f32 %v5851_v7, %v5739_v20  ;;  %v5606_v28 = vadd.f32 %v5605_v24, %v5604_v8  ;;  %5411 = vst [vmem:[%s10252_s2 + $0xf0] sm:$0xff] %v6649_v21  ;;  %v5523_v29 = vadd.f32 %v6649_v21, %v5522_v19  ;;  %v5741_v30 = vmul.f32 %v6649_v21, %v6649_v21 }
 0x354   :  { %v5935_v31 = vsel %vm3166_vm0, %v5740_v25, 0.0  ;;  %5412 = vst.msk [vmem:[%s10252_s2 + $0xf8] sm:$0xff] %vm3166_vm0, %v6650_v26  ;;  %v5607_v32 = vsel %vm3166_vm0, %v6650_v26, 0.0  ;;  %v5742_v33 = vmul.f32 %v6650_v26, %v6650_v26 }
 0x355   :  { %v5936_v34 = vadd.f32 %v5935_v31, %v5934_v12  ;;  %v5853_v35 = vadd.f32 %v5852_v27, %v5741_v30  ;;  %v5608_v36 = vadd.f32 %v5607_v32, %v5606_v28  ;;  %v4083_v38 = vpop.f32.mrb[32].mxu1 }
 0x356   :  { %v5937_v37 = vsel %vm3166_vm0, %v5742_v33, 0.0  ;;  %v5142_v39 = vpop.f32.mrb[32].mxu0  ;;  %v4085_v43 = vpop.f32.mrb[33].mxu1 }
 0x357   :  { %v5938_v40 = vadd.f32 %v5937_v37, %v5936_v34  ;;  %v6651_v42 = vadd.f32 %v5142_v39, %v4083_v38  ;;  %v5144_v44 = vpop.f32.mrb[33].mxu0  ;;  %v4087_v46 = vpop.f32.mrb[34].mxu1 }
 0x358   :  { %v6652_v45 = vadd.f32 %v5144_v44, %v4085_v43  ;;  %v5146_v47 = vpop.f32.mrb[34].mxu0  ;;  %v4089_v51 = vpop.f32.mrb[35].mxu1 }
 0x359   :  { %5413 = vst [vmem:[%s10252_s2 + $0x100] sm:$0xff] %v6651_v42  ;;  %v5524_v48 = vadd.f32 %v6651_v42, %v5523_v29  ;;  %v5743_v49 = vmul.f32 %v6651_v42, %v6651_v42  ;;  %v6653_v50 = vadd.f32 %v5146_v47, %v4087_v46  ;;  %v5148_v52 = vpop.f32.mrb[35].mxu0 }
 0x35a   :  { %5414 = vst.msk [vmem:[%s10252_s2 + $0x108] sm:$0xff] %vm3166_vm0, %v6652_v45  ;;  %v5609_v53 = vsel %vm3166_vm0, %v6652_v45, 0.0  ;;  %v5744_v54 = vmul.f32 %v6652_v45, %v6652_v45  ;;  %v6654_v55 = vadd.f32 %v5148_v52, %v4089_v51 }
 0x35b   :  { %v5854_v56 = vadd.f32 %v5853_v35, %v5743_v49  ;;  %v5610_v57 = vadd.f32 %v5609_v53, %v5608_v36  ;;  %5415 = vst [vmem:[%s10252_s2 + $0x110] sm:$0xff] %v6653_v50  ;;  %v5525_v58 = vadd.f32 %v6653_v50, %v5524_v48  ;;  %v5745_v59 = vmul.f32 %v6653_v50, %v6653_v50 }
 0x35c   :  { %v5939_v60 = vsel %vm3166_vm0, %v5744_v54, 0.0  ;;  %5416 = vst.msk [vmem:[%s10252_s2 + $0x118] sm:$0xff] %vm3166_vm0, %v6654_v55  ;;  %v5611_v61 = vsel %vm3166_vm0, %v6654_v55, 0.0  ;;  %v5746_v62 = vmul.f32 %v6654_v55, %v6654_v55 }
 0x35d   :  { %v5940_v63 = vadd.f32 %v5939_v60, %v5938_v40  ;;  %v5855_v41 = vadd.f32 %v5854_v56, %v5745_v59  ;;  %v5612_v0 = vadd.f32 %v5611_v61, %v5610_v57  ;;  %v4093_v2 = vpop.f32.mrb[36].mxu1 }
 0x35e   :  { %v5941_v1 = vsel %vm3166_vm0, %v5746_v62, 0.0  ;;  %v5152_v3 = vpop.f32.mrb[36].mxu0  ;;  %v4095_v6 = vpop.f32.mrb[37].mxu1 }
 0x35f   :  { %v5942_v4 = vadd.f32 %v5941_v1, %v5940_v63  ;;  %v6655_v5 = vadd.f32 %v5152_v3, %v4093_v2  ;;  %v5154_v7 = vpop.f32.mrb[37].mxu0  ;;  %v4097_v9 = vpop.f32.mrb[38].mxu1 }
 0x360   :  { %v6656_v8 = vadd.f32 %v5154_v7, %v4095_v6  ;;  %v5156_v10 = vpop.f32.mrb[38].mxu0  ;;  %v4099_v14 = vpop.f32.mrb[39].mxu1 }
 0x361   :  { %5417 = vst [vmem:[%s10252_s2 + $0x120] sm:$0xff] %v6655_v5  ;;  %v5526_v11 = vadd.f32 %v6655_v5, %v5525_v58  ;;  %v5747_v12 = vmul.f32 %v6655_v5, %v6655_v5  ;;  %v6657_v13 = vadd.f32 %v5156_v10, %v4097_v9  ;;  %v5158_v15 = vpop.f32.mrb[39].mxu0 }
 0x362   :  { %5418 = vst.msk [vmem:[%s10252_s2 + $0x128] sm:$0xff] %vm3166_vm0, %v6656_v8  ;;  %v5613_v16 = vsel %vm3166_vm0, %v6656_v8, 0.0  ;;  %v5748_v17 = vmul.f32 %v6656_v8, %v6656_v8  ;;  %v6658_v18 = vadd.f32 %v5158_v15, %v4099_v14 }
 0x363   :  { %v5856_v19 = vadd.f32 %v5855_v41, %v5747_v12  ;;  %v5614_v20 = vadd.f32 %v5613_v16, %v5612_v0  ;;  %5419 = vst [vmem:[%s10252_s2 + $0x130] sm:$0xff] %v6657_v13  ;;  %v5527_v21 = vadd.f32 %v6657_v13, %v5526_v11  ;;  %v5749_v22 = vmul.f32 %v6657_v13, %v6657_v13 }
 0x364   :  { %v5943_v23 = vsel %vm3166_vm0, %v5748_v17, 0.0  ;;  %5420 = vst.msk [vmem:[%s10252_s2 + $0x138] sm:$0xff] %vm3166_vm0, %v6658_v18  ;;  %v5615_v24 = vsel %vm3166_vm0, %v6658_v18, 0.0  ;;  %v5750_v25 = vmul.f32 %v6658_v18, %v6658_v18 }
 0x365   :  { %v5944_v26 = vadd.f32 %v5943_v23, %v5942_v4  ;;  %v5857_v27 = vadd.f32 %v5856_v19, %v5749_v22  ;;  %v5616_v28 = vadd.f32 %v5615_v24, %v5614_v20  ;;  %v4103_v30 = vpop.f32.mrb[40].mxu1 }
 0x366   :  { %v5945_v29 = vsel %vm3166_vm0, %v5750_v25, 0.0  ;;  %v5162_v31 = vpop.f32.mrb[40].mxu0  ;;  %v4105_v34 = vpop.f32.mrb[41].mxu1 }
 0x367   :  { %v5946_v32 = vadd.f32 %v5945_v29, %v5944_v26  ;;  %v6659_v33 = vadd.f32 %v5162_v31, %v4103_v30  ;;  %v5164_v35 = vpop.f32.mrb[41].mxu0  ;;  %v4107_v37 = vpop.f32.mrb[42].mxu1 }
 0x368   :  { %v6660_v36 = vadd.f32 %v5164_v35, %v4105_v34  ;;  %v5166_v38 = vpop.f32.mrb[42].mxu0  ;;  %v4109_v43 = vpop.f32.mrb[43].mxu1 }
 0x369   :  { %5421 = vst [vmem:[%s10252_s2 + $0x140] sm:$0xff] %v6659_v33  ;;  %v5528_v39 = vadd.f32 %v6659_v33, %v5527_v21  ;;  %v5751_v40 = vmul.f32 %v6659_v33, %v6659_v33  ;;  %v6661_v42 = vadd.f32 %v5166_v38, %v4107_v37  ;;  %v5168_v44 = vpop.f32.mrb[43].mxu0 }
 0x36a   :  { %5422 = vst.msk [vmem:[%s10252_s2 + $0x148] sm:$0xff] %vm3166_vm0, %v6660_v36  ;;  %v5617_v45 = vsel %vm3166_vm0, %v6660_v36, 0.0  ;;  %v5752_v46 = vmul.f32 %v6660_v36, %v6660_v36  ;;  %v6662_v47 = vadd.f32 %v5168_v44, %v4109_v43 }
 0x36b   :  { %v5858_v48 = vadd.f32 %v5857_v27, %v5751_v40  ;;  %v5618_v49 = vadd.f32 %v5617_v45, %v5616_v28  ;;  %5423 = vst [vmem:[%s10252_s2 + $0x150] sm:$0xff] %v6661_v42  ;;  %v5529_v50 = vadd.f32 %v6661_v42, %v5528_v39  ;;  %v5753_v51 = vmul.f32 %v6661_v42, %v6661_v42 }
 0x36c   :  { %v5947_v52 = vsel %vm3166_vm0, %v5752_v46, 0.0  ;;  %5424 = vst.msk [vmem:[%s10252_s2 + $0x158] sm:$0xff] %vm3166_vm0, %v6662_v47  ;;  %v5619_v53 = vsel %vm3166_vm0, %v6662_v47, 0.0  ;;  %v5754_v54 = vmul.f32 %v6662_v47, %v6662_v47 }
 0x36d   :  { %v5948_v55 = vadd.f32 %v5947_v52, %v5946_v32  ;;  %v5859_v56 = vadd.f32 %v5858_v48, %v5753_v51  ;;  %v5620_v57 = vadd.f32 %v5619_v53, %v5618_v49  ;;  %v4113_v59 = vpop.f32.mrb[44].mxu1 }
 0x36e   :  { %v5949_v58 = vsel %vm3166_vm0, %v5754_v54, 0.0  ;;  %v5172_v60 = vpop.f32.mrb[44].mxu0  ;;  %v4115_v63 = vpop.f32.mrb[45].mxu1 }
 0x36f   :  { %v5950_v61 = vadd.f32 %v5949_v58, %v5948_v55  ;;  %v6663_v62 = vadd.f32 %v5172_v60, %v4113_v59  ;;  %v5174_v41 = vpop.f32.mrb[45].mxu0  ;;  %v4117_v1 = vpop.f32.mrb[46].mxu1 }
 0x370   :  { %v6664_v0 = vadd.f32 %v5174_v41, %v4115_v63  ;;  %v5176_v2 = vpop.f32.mrb[46].mxu0  ;;  %v4119_v6 = vpop.f32.mrb[47].mxu1 }
 0x371   :  { %5425 = vst [vmem:[%s10252_s2 + $0x160] sm:$0xff] %v6663_v62  ;;  %v5530_v3 = vadd.f32 %v6663_v62, %v5529_v50  ;;  %v5755_v4 = vmul.f32 %v6663_v62, %v6663_v62  ;;  %v6665_v5 = vadd.f32 %v5176_v2, %v4117_v1  ;;  %v5178_v7 = vpop.f32.mrb[47].mxu0 }
 0x372   :  { %5426 = vst.msk [vmem:[%s10252_s2 + $0x168] sm:$0xff] %vm3166_vm0, %v6664_v0  ;;  %v5621_v8 = vsel %vm3166_vm0, %v6664_v0, 0.0  ;;  %v5756_v9 = vmul.f32 %v6664_v0, %v6664_v0  ;;  %v6666_v10 = vadd.f32 %v5178_v7, %v4119_v6 }
 0x373   :  { %v5860_v11 = vadd.f32 %v5859_v56, %v5755_v4  ;;  %v5622_v12 = vadd.f32 %v5621_v8, %v5620_v57  ;;  %5427 = vst [vmem:[%s10252_s2 + $0x170] sm:$0xff] %v6665_v5  ;;  %v5531_v13 = vadd.f32 %v6665_v5, %v5530_v3  ;;  %v5757_v14 = vmul.f32 %v6665_v5, %v6665_v5 }
 0x374   :  { %v5951_v15 = vsel %vm3166_vm0, %v5756_v9, 0.0  ;;  %5428 = vst.msk [vmem:[%s10252_s2 + $0x178] sm:$0xff] %vm3166_vm0, %v6666_v10  ;;  %v5623_v16 = vsel %vm3166_vm0, %v6666_v10, 0.0  ;;  %v5758_v17 = vmul.f32 %v6666_v10, %v6666_v10 }
 0x375   :  { %v5952_v18 = vadd.f32 %v5951_v15, %v5950_v61  ;;  %v5861_v19 = vadd.f32 %v5860_v11, %v5757_v14  ;;  %v5624_v20 = vadd.f32 %v5623_v16, %v5622_v12  ;;  %v4123_v22 = vpop.f32.mrb[48].mxu1 }
 0x376   :  { %v5953_v21 = vsel %vm3166_vm0, %v5758_v17, 0.0  ;;  %v5182_v23 = vpop.f32.mrb[48].mxu0  ;;  %v4125_v26 = vpop.f32.mrb[49].mxu1 }
 0x377   :  { %v5954_v24 = vadd.f32 %v5953_v21, %v5952_v18  ;;  %v6667_v25 = vadd.f32 %v5182_v23, %v4123_v22  ;;  %v5184_v27 = vpop.f32.mrb[49].mxu0  ;;  %v4127_v29 = vpop.f32.mrb[50].mxu1 }
 0x378   :  { %v6668_v28 = vadd.f32 %v5184_v27, %v4125_v26  ;;  %v5186_v30 = vpop.f32.mrb[50].mxu0  ;;  %v4129_v34 = vpop.f32.mrb[51].mxu1 }
 0x379   :  { %5429 = vst [vmem:[%s10252_s2 + $0x180] sm:$0xff] %v6667_v25  ;;  %v5532_v31 = vadd.f32 %v6667_v25, %v5531_v13  ;;  %v5759_v32 = vmul.f32 %v6667_v25, %v6667_v25  ;;  %v6669_v33 = vadd.f32 %v5186_v30, %v4127_v29  ;;  %v5188_v35 = vpop.f32.mrb[51].mxu0 }
 0x37a   :  { %5430 = vst.msk [vmem:[%s10252_s2 + $0x188] sm:$0xff] %vm3166_vm0, %v6668_v28  ;;  %v5625_v36 = vsel %vm3166_vm0, %v6668_v28, 0.0  ;;  %v5760_v37 = vmul.f32 %v6668_v28, %v6668_v28  ;;  %v6670_v38 = vadd.f32 %v5188_v35, %v4129_v34 }
 0x37b   :  { %v5862_v39 = vadd.f32 %v5861_v19, %v5759_v32  ;;  %v5626_v40 = vadd.f32 %v5625_v36, %v5624_v20  ;;  %5431 = vst [vmem:[%s10252_s2 + $0x190] sm:$0xff] %v6669_v33  ;;  %v5533_v42 = vadd.f32 %v6669_v33, %v5532_v31  ;;  %v5761_v43 = vmul.f32 %v6669_v33, %v6669_v33 }
 0x37c   :  { %v5955_v44 = vsel %vm3166_vm0, %v5760_v37, 0.0  ;;  %5432 = vst.msk [vmem:[%s10252_s2 + $0x198] sm:$0xff] %vm3166_vm0, %v6670_v38  ;;  %v5627_v45 = vsel %vm3166_vm0, %v6670_v38, 0.0  ;;  %v5762_v46 = vmul.f32 %v6670_v38, %v6670_v38 }
 0x37d   :  { %v5956_v47 = vadd.f32 %v5955_v44, %v5954_v24  ;;  %v5863_v48 = vadd.f32 %v5862_v39, %v5761_v43  ;;  %v5628_v49 = vadd.f32 %v5627_v45, %v5626_v40  ;;  %v4133_v51 = vpop.f32.mrb[52].mxu1 }
 0x37e   :  { %v5957_v50 = vsel %vm3166_vm0, %v5762_v46, 0.0  ;;  %v5192_v52 = vpop.f32.mrb[52].mxu0  ;;  %v4135_v55 = vpop.f32.mrb[53].mxu1 }
 0x37f   :  { %v5958_v53 = vadd.f32 %v5957_v50, %v5956_v47  ;;  %v6671_v54 = vadd.f32 %v5192_v52, %v4133_v51  ;;  %v5194_v56 = vpop.f32.mrb[53].mxu0  ;;  %v4137_v58 = vpop.f32.mrb[54].mxu1 }
 0x380   :  { %v6672_v57 = vadd.f32 %v5194_v56, %v4135_v55  ;;  %v5196_v59 = vpop.f32.mrb[54].mxu0  ;;  %v4139_v63 = vpop.f32.mrb[55].mxu1 }
 0x381   :  { %5433 = vst [vmem:[%s10252_s2 + $0x1a0] sm:$0xff] %v6671_v54  ;;  %v5534_v60 = vadd.f32 %v6671_v54, %v5533_v42  ;;  %v5763_v61 = vmul.f32 %v6671_v54, %v6671_v54  ;;  %v6673_v62 = vadd.f32 %v5196_v59, %v4137_v58  ;;  %v5198_v41 = vpop.f32.mrb[55].mxu0 }
 0x382   :  { %5434 = vst.msk [vmem:[%s10252_s2 + $0x1a8] sm:$0xff] %vm3166_vm0, %v6672_v57  ;;  %v5629_v0 = vsel %vm3166_vm0, %v6672_v57, 0.0  ;;  %v5764_v1 = vmul.f32 %v6672_v57, %v6672_v57  ;;  %v6674_v2 = vadd.f32 %v5198_v41, %v4139_v63 }
 0x383   :  { %v5864_v3 = vadd.f32 %v5863_v48, %v5763_v61  ;;  %v5630_v4 = vadd.f32 %v5629_v0, %v5628_v49  ;;  %5435 = vst [vmem:[%s10252_s2 + $0x1b0] sm:$0xff] %v6673_v62  ;;  %v5535_v5 = vadd.f32 %v6673_v62, %v5534_v60  ;;  %v5765_v6 = vmul.f32 %v6673_v62, %v6673_v62 }
 0x384   :  { %v5959_v7 = vsel %vm3166_vm0, %v5764_v1, 0.0  ;;  %5436 = vst.msk [vmem:[%s10252_s2 + $0x1b8] sm:$0xff] %vm3166_vm0, %v6674_v2  ;;  %v5631_v8 = vsel %vm3166_vm0, %v6674_v2, 0.0  ;;  %v5766_v9 = vmul.f32 %v6674_v2, %v6674_v2 }
 0x385   :  { %v5960_v10 = vadd.f32 %v5959_v7, %v5958_v53  ;;  %v5865_v11 = vadd.f32 %v5864_v3, %v5765_v6  ;;  %v5632_v12 = vadd.f32 %v5631_v8, %v5630_v4  ;;  %v4143_v14 = vpop.f32.mrb[56].mxu1 }
 0x386   :  { %v5961_v13 = vsel %vm3166_vm0, %v5766_v9, 0.0  ;;  %v5202_v15 = vpop.f32.mrb[56].mxu0  ;;  %v4145_v18 = vpop.f32.mrb[57].mxu1 }
 0x387   :  { %v5962_v16 = vadd.f32 %v5961_v13, %v5960_v10  ;;  %v6675_v17 = vadd.f32 %v5202_v15, %v4143_v14  ;;  %v5204_v19 = vpop.f32.mrb[57].mxu0  ;;  %v4147_v21 = vpop.f32.mrb[58].mxu1 }
 0x388   :  { %v6676_v20 = vadd.f32 %v5204_v19, %v4145_v18  ;;  %v5206_v22 = vpop.f32.mrb[58].mxu0  ;;  %v4149_v26 = vpop.f32.mrb[59].mxu1 }
 0x389   :  { %5437 = vst [vmem:[%s10252_s2 + $0x1c0] sm:$0xff] %v6675_v17  ;;  %v5536_v23 = vadd.f32 %v6675_v17, %v5535_v5  ;;  %v5767_v24 = vmul.f32 %v6675_v17, %v6675_v17  ;;  %v6677_v25 = vadd.f32 %v5206_v22, %v4147_v21  ;;  %v5208_v27 = vpop.f32.mrb[59].mxu0 }
 0x38a   :  { %5438 = vst.msk [vmem:[%s10252_s2 + $0x1c8] sm:$0xff] %vm3166_vm0, %v6676_v20  ;;  %v5633_v28 = vsel %vm3166_vm0, %v6676_v20, 0.0  ;;  %v5768_v29 = vmul.f32 %v6676_v20, %v6676_v20  ;;  %v6678_v30 = vadd.f32 %v5208_v27, %v4149_v26 }
 0x38b   :  { %v5866_v31 = vadd.f32 %v5865_v11, %v5767_v24  ;;  %v5634_v32 = vadd.f32 %v5633_v28, %v5632_v12  ;;  %5439 = vst [vmem:[%s10252_s2 + $0x1d0] sm:$0xff] %v6677_v25  ;;  %v5537_v33 = vadd.f32 %v6677_v25, %v5536_v23  ;;  %v5769_v34 = vmul.f32 %v6677_v25, %v6677_v25 }
 0x38c   :  { %v5963_v35 = vsel %vm3166_vm0, %v5768_v29, 0.0  ;;  %5440 = vst.msk [vmem:[%s10252_s2 + $0x1d8] sm:$0xff] %vm3166_vm0, %v6678_v30  ;;  %v5635_v36 = vsel %vm3166_vm0, %v6678_v30, 0.0  ;;  %v5770_v37 = vmul.f32 %v6678_v30, %v6678_v30 }
 0x38d   :  { %v5964_v38 = vadd.f32 %v5963_v35, %v5962_v16  ;;  %v5867_v39 = vadd.f32 %v5866_v31, %v5769_v34  ;;  %v5636_v40 = vadd.f32 %v5635_v36, %v5634_v32  ;;  %v4153_v43 = vpop.f32.mrb[60].mxu1 }
 0x38e   :  { %v5965_v42 = vsel %vm3166_vm0, %v5770_v37, 0.0  ;;  %v5212_v44 = vpop.f32.mrb[60].mxu0  ;;  %v4155_v47 = vpop.f32.mrb[61].mxu1 }
 0x38f   :  { %v5966_v45 = vadd.f32 %v5965_v42, %v5964_v38  ;;  %v6679_v46 = vadd.f32 %v5212_v44, %v4153_v43  ;;  %v5214_v48 = vpop.f32.mrb[61].mxu0  ;;  %v4157_v50 = vpop.f32.mrb[62].mxu1 }
 0x390   :  { %v6680_v49 = vadd.f32 %v5214_v48, %v4155_v47  ;;  %v5216_v51 = vpop.f32.mrb[62].mxu0  ;;  %v4159_v55 = vpop.f32.mrb[63].mxu1 }
 0x391   :  { %5441 = vst [vmem:[%s10252_s2 + $0x1e0] sm:$0xff] %v6679_v46  ;;  %v5538_v52 = vadd.f32 %v6679_v46, %v5537_v33  ;;  %v5771_v53 = vmul.f32 %v6679_v46, %v6679_v46  ;;  %v6681_v54 = vadd.f32 %v5216_v51, %v4157_v50  ;;  %v5218_v56 = vpop.f32.mrb[63].mxu0 }
 0x392   :  { %5442 = vst.msk [vmem:[%s10252_s2 + $0x1e8] sm:$0xff] %vm3166_vm0, %v6680_v49  ;;  %v5637_v57 = vsel %vm3166_vm0, %v6680_v49, 0.0  ;;  %v5772_v58 = vmul.f32 %v6680_v49, %v6680_v49  ;;  %v6682_v59 = vadd.f32 %v5218_v56, %v4159_v55 }
 0x393   :  { %v5868_v60 = vadd.f32 %v5867_v39, %v5771_v53  ;;  %v5638_v61 = vadd.f32 %v5637_v57, %v5636_v40  ;;  %5443 = vst [vmem:[%s10252_s2 + $0x1f0] sm:$0xff] %v6681_v54  ;;  %v5539_v62 = vadd.f32 %v6681_v54, %v5538_v52  ;;  %v5773_v63 = vmul.f32 %v6681_v54, %v6681_v54 }
 0x394   :  { %v5967_v41 = vsel %vm3166_vm0, %v5772_v58, 0.0  ;;  %5444 = vst.msk [vmem:[%s10252_s2 + $0x1f8] sm:$0xff] %vm3166_vm0, %v6682_v59  ;;  %v5639_v0 = vsel %vm3166_vm0, %v6682_v59, 0.0  ;;  %v5774_v1 = vmul.f32 %v6682_v59, %v6682_v59 }
 0x395   :  { %v5968_v2 = vadd.f32 %v5967_v41, %v5966_v45  ;;  %v5869_v3 = vadd.f32 %v5868_v60, %v5773_v63  ;;  %v5640_v4 = vadd.f32 %v5639_v0, %v5638_v61  ;;  %v4163_v6 = vpop.f32.mrb[64].mxu1 }
 0x396   :  { %v5969_v5 = vsel %vm3166_vm0, %v5774_v1, 0.0  ;;  %v5222_v7 = vpop.f32.mrb[64].mxu0  ;;  %v4165_v10 = vpop.f32.mrb[65].mxu1 }
 0x397   :  { %v5970_v8 = vadd.f32 %v5969_v5, %v5968_v2  ;;  %v6683_v9 = vadd.f32 %v5222_v7, %v4163_v6  ;;  %v5224_v11 = vpop.f32.mrb[65].mxu0  ;;  %v4167_v13 = vpop.f32.mrb[66].mxu1 }
 0x398   :  { %v6684_v12 = vadd.f32 %v5224_v11, %v4165_v10  ;;  %v5226_v14 = vpop.f32.mrb[66].mxu0  ;;  %v4169_v18 = vpop.f32.mrb[67].mxu1 }
 0x399   :  { %5445 = vst [vmem:[%s10252_s2 + $0x200] sm:$0xff] %v6683_v9  ;;  %v5540_v15 = vadd.f32 %v6683_v9, %v5539_v62  ;;  %v5775_v16 = vmul.f32 %v6683_v9, %v6683_v9  ;;  %v6685_v17 = vadd.f32 %v5226_v14, %v4167_v13  ;;  %v5228_v19 = vpop.f32.mrb[67].mxu0 }
 0x39a   :  { %5446 = vst.msk [vmem:[%s10252_s2 + $0x208] sm:$0xff] %vm3166_vm0, %v6684_v12  ;;  %v5641_v20 = vsel %vm3166_vm0, %v6684_v12, 0.0  ;;  %v5776_v21 = vmul.f32 %v6684_v12, %v6684_v12  ;;  %v6686_v22 = vadd.f32 %v5228_v19, %v4169_v18 }
 0x39b   :  { %v5870_v23 = vadd.f32 %v5869_v3, %v5775_v16  ;;  %v5642_v24 = vadd.f32 %v5641_v20, %v5640_v4  ;;  %5447 = vst [vmem:[%s10252_s2 + $0x210] sm:$0xff] %v6685_v17  ;;  %v5541_v25 = vadd.f32 %v6685_v17, %v5540_v15  ;;  %v5777_v26 = vmul.f32 %v6685_v17, %v6685_v17 }
 0x39c   :  { %v5971_v27 = vsel %vm3166_vm0, %v5776_v21, 0.0  ;;  %5448 = vst.msk [vmem:[%s10252_s2 + $0x218] sm:$0xff] %vm3166_vm0, %v6686_v22  ;;  %v5643_v28 = vsel %vm3166_vm0, %v6686_v22, 0.0  ;;  %v5778_v29 = vmul.f32 %v6686_v22, %v6686_v22 }
 0x39d   :  { %v5972_v30 = vadd.f32 %v5971_v27, %v5970_v8  ;;  %v5871_v31 = vadd.f32 %v5870_v23, %v5777_v26  ;;  %v5644_v32 = vadd.f32 %v5643_v28, %v5642_v24  ;;  %v4173_v34 = vpop.f32.mrb[68].mxu1 }
 0x39e   :  { %v5973_v33 = vsel %vm3166_vm0, %v5778_v29, 0.0  ;;  %v5232_v35 = vpop.f32.mrb[68].mxu0  ;;  %v4175_v38 = vpop.f32.mrb[69].mxu1 }
 0x39f   :  { %v5974_v36 = vadd.f32 %v5973_v33, %v5972_v30  ;;  %v6687_v37 = vadd.f32 %v5232_v35, %v4173_v34  ;;  %v5234_v39 = vpop.f32.mrb[69].mxu0  ;;  %v4177_v42 = vpop.f32.mrb[70].mxu1 }
 0x3a0   :  { %v6688_v40 = vadd.f32 %v5234_v39, %v4175_v38  ;;  %v5236_v43 = vpop.f32.mrb[70].mxu0  ;;  %v4179_v47 = vpop.f32.mrb[71].mxu1 }
 0x3a1   :  { %5449 = vst [vmem:[%s10252_s2 + $0x220] sm:$0xff] %v6687_v37  ;;  %v5542_v44 = vadd.f32 %v6687_v37, %v5541_v25  ;;  %v5779_v45 = vmul.f32 %v6687_v37, %v6687_v37  ;;  %v6689_v46 = vadd.f32 %v5236_v43, %v4177_v42  ;;  %v5238_v48 = vpop.f32.mrb[71].mxu0 }
 0x3a2   :  { %5450 = vst.msk [vmem:[%s10252_s2 + $0x228] sm:$0xff] %vm3166_vm0, %v6688_v40  ;;  %v5645_v49 = vsel %vm3166_vm0, %v6688_v40, 0.0  ;;  %v5780_v50 = vmul.f32 %v6688_v40, %v6688_v40  ;;  %v6690_v51 = vadd.f32 %v5238_v48, %v4179_v47 }
 0x3a3   :  { %v5872_v52 = vadd.f32 %v5871_v31, %v5779_v45  ;;  %v5646_v53 = vadd.f32 %v5645_v49, %v5644_v32  ;;  %5451 = vst [vmem:[%s10252_s2 + $0x230] sm:$0xff] %v6689_v46  ;;  %v5543_v54 = vadd.f32 %v6689_v46, %v5542_v44  ;;  %v5781_v55 = vmul.f32 %v6689_v46, %v6689_v46 }
 0x3a4   :  { %v5975_v56 = vsel %vm3166_vm0, %v5780_v50, 0.0  ;;  %5452 = vst.msk [vmem:[%s10252_s2 + $0x238] sm:$0xff] %vm3166_vm0, %v6690_v51  ;;  %v5647_v57 = vsel %vm3166_vm0, %v6690_v51, 0.0  ;;  %v5782_v58 = vmul.f32 %v6690_v51, %v6690_v51 }
 0x3a5   :  { %v5976_v59 = vadd.f32 %v5975_v56, %v5974_v36  ;;  %v5873_v60 = vadd.f32 %v5872_v52, %v5781_v55  ;;  %v5648_v61 = vadd.f32 %v5647_v57, %v5646_v53  ;;  %v4183_v63 = vpop.f32.mrb[72].mxu1 }
 0x3a6   :  { %v5977_v62 = vsel %vm3166_vm0, %v5782_v58, 0.0  ;;  %v5242_v41 = vpop.f32.mrb[72].mxu0  ;;  %v4185_v2 = vpop.f32.mrb[73].mxu1 }
 0x3a7   :  { %v5978_v0 = vadd.f32 %v5977_v62, %v5976_v59  ;;  %v6691_v1 = vadd.f32 %v5242_v41, %v4183_v63  ;;  %v5244_v3 = vpop.f32.mrb[73].mxu0  ;;  %v4187_v5 = vpop.f32.mrb[74].mxu1 }
 0x3a8   :  { %v6692_v4 = vadd.f32 %v5244_v3, %v4185_v2  ;;  %v5246_v6 = vpop.f32.mrb[74].mxu0  ;;  %v4189_v10 = vpop.f32.mrb[75].mxu1 }
 0x3a9   :  { %5453 = vst [vmem:[%s10252_s2 + $0x240] sm:$0xff] %v6691_v1  ;;  %v5544_v7 = vadd.f32 %v6691_v1, %v5543_v54  ;;  %v5783_v8 = vmul.f32 %v6691_v1, %v6691_v1  ;;  %v6693_v9 = vadd.f32 %v5246_v6, %v4187_v5  ;;  %v5248_v11 = vpop.f32.mrb[75].mxu0 }
 0x3aa   :  { %5454 = vst.msk [vmem:[%s10252_s2 + $0x248] sm:$0xff] %vm3166_vm0, %v6692_v4  ;;  %v5649_v12 = vsel %vm3166_vm0, %v6692_v4, 0.0  ;;  %v5784_v13 = vmul.f32 %v6692_v4, %v6692_v4  ;;  %v6694_v14 = vadd.f32 %v5248_v11, %v4189_v10 }
 0x3ab   :  { %v5874_v15 = vadd.f32 %v5873_v60, %v5783_v8  ;;  %v5650_v16 = vadd.f32 %v5649_v12, %v5648_v61  ;;  %5455 = vst [vmem:[%s10252_s2 + $0x250] sm:$0xff] %v6693_v9  ;;  %v5545_v17 = vadd.f32 %v6693_v9, %v5544_v7  ;;  %v5785_v18 = vmul.f32 %v6693_v9, %v6693_v9 }
 0x3ac   :  { %v5979_v19 = vsel %vm3166_vm0, %v5784_v13, 0.0  ;;  %5456 = vst.msk [vmem:[%s10252_s2 + $0x258] sm:$0xff] %vm3166_vm0, %v6694_v14  ;;  %v5651_v20 = vsel %vm3166_vm0, %v6694_v14, 0.0  ;;  %v5786_v21 = vmul.f32 %v6694_v14, %v6694_v14 }
 0x3ad   :  { %v5980_v22 = vadd.f32 %v5979_v19, %v5978_v0  ;;  %v5875_v23 = vadd.f32 %v5874_v15, %v5785_v18  ;;  %v5652_v24 = vadd.f32 %v5651_v20, %v5650_v16  ;;  %v4193_v26 = vpop.f32.mrb[76].mxu1 }
 0x3ae   :  { %v5981_v25 = vsel %vm3166_vm0, %v5786_v21, 0.0  ;;  %v5252_v27 = vpop.f32.mrb[76].mxu0  ;;  %v4195_v30 = vpop.f32.mrb[77].mxu1 }
 0x3af   :  { %v5982_v28 = vadd.f32 %v5981_v25, %v5980_v22  ;;  %v6695_v29 = vadd.f32 %v5252_v27, %v4193_v26  ;;  %v5254_v31 = vpop.f32.mrb[77].mxu0  ;;  %v4197_v33 = vpop.f32.mrb[78].mxu1 }
 0x3b0   :  { %v6696_v32 = vadd.f32 %v5254_v31, %v4195_v30  ;;  %v5256_v34 = vpop.f32.mrb[78].mxu0  ;;  %v4199_v38 = vpop.f32.mrb[79].mxu1 }
 0x3b1   :  { %5457 = vst [vmem:[%s10252_s2 + $0x260] sm:$0xff] %v6695_v29  ;;  %v5546_v35 = vadd.f32 %v6695_v29, %v5545_v17  ;;  %v5787_v36 = vmul.f32 %v6695_v29, %v6695_v29  ;;  %v6697_v37 = vadd.f32 %v5256_v34, %v4197_v33  ;;  %v5258_v39 = vpop.f32.mrb[79].mxu0 }
 0x3b2   :  { %5458 = vst.msk [vmem:[%s10252_s2 + $0x268] sm:$0xff] %vm3166_vm0, %v6696_v32  ;;  %v5653_v40 = vsel %vm3166_vm0, %v6696_v32, 0.0  ;;  %v5788_v42 = vmul.f32 %v6696_v32, %v6696_v32  ;;  %v6698_v43 = vadd.f32 %v5258_v39, %v4199_v38 }
 0x3b3   :  { %v5876_v44 = vadd.f32 %v5875_v23, %v5787_v36  ;;  %v5654_v45 = vadd.f32 %v5653_v40, %v5652_v24  ;;  %5459 = vst [vmem:[%s10252_s2 + $0x270] sm:$0xff] %v6697_v37  ;;  %v5547_v46 = vadd.f32 %v6697_v37, %v5546_v35  ;;  %v5789_v47 = vmul.f32 %v6697_v37, %v6697_v37 }
 0x3b4   :  { %v5983_v48 = vsel %vm3166_vm0, %v5788_v42, 0.0  ;;  %5460 = vst.msk [vmem:[%s10252_s2 + $0x278] sm:$0xff] %vm3166_vm0, %v6698_v43  ;;  %v5655_v49 = vsel %vm3166_vm0, %v6698_v43, 0.0  ;;  %v5790_v50 = vmul.f32 %v6698_v43, %v6698_v43 }
 0x3b5   :  { %v5984_v51 = vadd.f32 %v5983_v48, %v5982_v28  ;;  %v5877_v52 = vadd.f32 %v5876_v44, %v5789_v47  ;;  %v5656_v53 = vadd.f32 %v5655_v49, %v5654_v45  ;;  %v4203_v55 = vpop.f32.mrb[80].mxu1 }
 0x3b6   :  { %v5985_v54 = vsel %vm3166_vm0, %v5790_v50, 0.0  ;;  %v5262_v56 = vpop.f32.mrb[80].mxu0  ;;  %v4205_v59 = vpop.f32.mrb[81].mxu1 }
 0x3b7   :  { %v5986_v57 = vadd.f32 %v5985_v54, %v5984_v51  ;;  %v6699_v58 = vadd.f32 %v5262_v56, %v4203_v55  ;;  %v5264_v60 = vpop.f32.mrb[81].mxu0  ;;  %v4207_v62 = vpop.f32.mrb[82].mxu1 }
 0x3b8   :  { %v6700_v61 = vadd.f32 %v5264_v60, %v4205_v59  ;;  %v5266_v63 = vpop.f32.mrb[82].mxu0  ;;  %v4209_v2 = vpop.f32.mrb[83].mxu1 }
 0x3b9   :  { %5461 = vst [vmem:[%s10252_s2 + $0x280] sm:$0xff] %v6699_v58  ;;  %v5548_v41 = vadd.f32 %v6699_v58, %v5547_v46  ;;  %v5791_v0 = vmul.f32 %v6699_v58, %v6699_v58  ;;  %v6701_v1 = vadd.f32 %v5266_v63, %v4207_v62  ;;  %v5268_v3 = vpop.f32.mrb[83].mxu0 }
 0x3ba   :  { %5462 = vst.msk [vmem:[%s10252_s2 + $0x288] sm:$0xff] %vm3166_vm0, %v6700_v61  ;;  %v5657_v4 = vsel %vm3166_vm0, %v6700_v61, 0.0  ;;  %v5792_v5 = vmul.f32 %v6700_v61, %v6700_v61  ;;  %v6702_v6 = vadd.f32 %v5268_v3, %v4209_v2 }
 0x3bb   :  { %v5878_v7 = vadd.f32 %v5877_v52, %v5791_v0  ;;  %v5658_v8 = vadd.f32 %v5657_v4, %v5656_v53  ;;  %5463 = vst [vmem:[%s10252_s2 + $0x290] sm:$0xff] %v6701_v1  ;;  %v5549_v9 = vadd.f32 %v6701_v1, %v5548_v41  ;;  %v5793_v10 = vmul.f32 %v6701_v1, %v6701_v1 }
 0x3bc   :  { %v5987_v11 = vsel %vm3166_vm0, %v5792_v5, 0.0  ;;  %5464 = vst.msk [vmem:[%s10252_s2 + $0x298] sm:$0xff] %vm3166_vm0, %v6702_v6  ;;  %v5659_v12 = vsel %vm3166_vm0, %v6702_v6, 0.0  ;;  %v5794_v13 = vmul.f32 %v6702_v6, %v6702_v6 }
 0x3bd   :  { %v5988_v14 = vadd.f32 %v5987_v11, %v5986_v57  ;;  %v5879_v15 = vadd.f32 %v5878_v7, %v5793_v10  ;;  %v5660_v16 = vadd.f32 %v5659_v12, %v5658_v8  ;;  %v4213_v18 = vpop.f32.mrb[84].mxu1 }
 0x3be   :  { %v5989_v17 = vsel %vm3166_vm0, %v5794_v13, 0.0  ;;  %v5272_v19 = vpop.f32.mrb[84].mxu0  ;;  %v4215_v22 = vpop.f32.mrb[85].mxu1 }
 0x3bf   :  { %v5990_v20 = vadd.f32 %v5989_v17, %v5988_v14  ;;  %v6703_v21 = vadd.f32 %v5272_v19, %v4213_v18  ;;  %v5274_v23 = vpop.f32.mrb[85].mxu0  ;;  %v4217_v25 = vpop.f32.mrb[86].mxu1 }
 0x3c0   :  { %v6704_v24 = vadd.f32 %v5274_v23, %v4215_v22  ;;  %v5276_v26 = vpop.f32.mrb[86].mxu0  ;;  %v4219_v30 = vpop.f32.mrb[87].mxu1 }
 0x3c1   :  { %5465 = vst [vmem:[%s10252_s2 + $0x2a0] sm:$0xff] %v6703_v21  ;;  %v5550_v27 = vadd.f32 %v6703_v21, %v5549_v9  ;;  %v5795_v28 = vmul.f32 %v6703_v21, %v6703_v21  ;;  %v6705_v29 = vadd.f32 %v5276_v26, %v4217_v25  ;;  %v5278_v31 = vpop.f32.mrb[87].mxu0 }
 0x3c2   :  { %5466 = vst.msk [vmem:[%s10252_s2 + $0x2a8] sm:$0xff] %vm3166_vm0, %v6704_v24  ;;  %v5661_v32 = vsel %vm3166_vm0, %v6704_v24, 0.0  ;;  %v5796_v33 = vmul.f32 %v6704_v24, %v6704_v24  ;;  %v6706_v34 = vadd.f32 %v5278_v31, %v4219_v30 }
 0x3c3   :  { %v5880_v35 = vadd.f32 %v5879_v15, %v5795_v28  ;;  %v5662_v36 = vadd.f32 %v5661_v32, %v5660_v16  ;;  %5467 = vst [vmem:[%s10252_s2 + $0x2b0] sm:$0xff] %v6705_v29  ;;  %v5551_v37 = vadd.f32 %v6705_v29, %v5550_v27  ;;  %v5797_v38 = vmul.f32 %v6705_v29, %v6705_v29 }
 0x3c4   :  { %v5991_v39 = vsel %vm3166_vm0, %v5796_v33, 0.0  ;;  %5468 = vst.msk [vmem:[%s10252_s2 + $0x2b8] sm:$0xff] %vm3166_vm0, %v6706_v34  ;;  %v5663_v40 = vsel %vm3166_vm0, %v6706_v34, 0.0  ;;  %v5798_v42 = vmul.f32 %v6706_v34, %v6706_v34 }
 0x3c5   :  { %v5992_v43 = vadd.f32 %v5991_v39, %v5990_v20  ;;  %v5881_v44 = vadd.f32 %v5880_v35, %v5797_v38  ;;  %v5664_v45 = vadd.f32 %v5663_v40, %v5662_v36  ;;  %v4223_v47 = vpop.f32.mrb[88].mxu1 }
 0x3c6   :  { %v5993_v46 = vsel %vm3166_vm0, %v5798_v42, 0.0  ;;  %v5282_v48 = vpop.f32.mrb[88].mxu0  ;;  %v4225_v51 = vpop.f32.mrb[89].mxu1 }
 0x3c7   :  { %v5994_v49 = vadd.f32 %v5993_v46, %v5992_v43  ;;  %v6707_v50 = vadd.f32 %v5282_v48, %v4223_v47  ;;  %v5284_v52 = vpop.f32.mrb[89].mxu0  ;;  %v4227_v54 = vpop.f32.mrb[90].mxu1 }
 0x3c8   :  { %v6708_v53 = vadd.f32 %v5284_v52, %v4225_v51  ;;  %v5286_v55 = vpop.f32.mrb[90].mxu0  ;;  %v4229_v59 = vpop.f32.mrb[91].mxu1 }
 0x3c9   :  { %5469 = vst [vmem:[%s10252_s2 + $0x2c0] sm:$0xff] %v6707_v50  ;;  %v5552_v56 = vadd.f32 %v6707_v50, %v5551_v37  ;;  %v5799_v57 = vmul.f32 %v6707_v50, %v6707_v50  ;;  %v6709_v58 = vadd.f32 %v5286_v55, %v4227_v54  ;;  %v5288_v60 = vpop.f32.mrb[91].mxu0 }
 0x3ca   :  { %5470 = vst.msk [vmem:[%s10252_s2 + $0x2c8] sm:$0xff] %vm3166_vm0, %v6708_v53  ;;  %v5665_v61 = vsel %vm3166_vm0, %v6708_v53, 0.0  ;;  %v5800_v62 = vmul.f32 %v6708_v53, %v6708_v53  ;;  %v6710_v63 = vadd.f32 %v5288_v60, %v4229_v59 }
 0x3cb   :  { %v5882_v41 = vadd.f32 %v5881_v44, %v5799_v57  ;;  %v5666_v0 = vadd.f32 %v5665_v61, %v5664_v45  ;;  %5471 = vst [vmem:[%s10252_s2 + $0x2d0] sm:$0xff] %v6709_v58  ;;  %v5553_v1 = vadd.f32 %v6709_v58, %v5552_v56  ;;  %v5801_v2 = vmul.f32 %v6709_v58, %v6709_v58 }
 0x3cc   :  { %v5995_v3 = vsel %vm3166_vm0, %v5800_v62, 0.0  ;;  %5472 = vst.msk [vmem:[%s10252_s2 + $0x2d8] sm:$0xff] %vm3166_vm0, %v6710_v63  ;;  %v5667_v4 = vsel %vm3166_vm0, %v6710_v63, 0.0  ;;  %v5802_v5 = vmul.f32 %v6710_v63, %v6710_v63 }
 0x3cd   :  { %v5996_v6 = vadd.f32 %v5995_v3, %v5994_v49  ;;  %v5883_v7 = vadd.f32 %v5882_v41, %v5801_v2  ;;  %v5668_v8 = vadd.f32 %v5667_v4, %v5666_v0  ;;  %v4233_v10 = vpop.f32.mrb[92].mxu1 }
 0x3ce   :  { %v5997_v9 = vsel %vm3166_vm0, %v5802_v5, 0.0  ;;  %v5292_v11 = vpop.f32.mrb[92].mxu0  ;;  %v4235_v14 = vpop.f32.mrb[93].mxu1 }
 0x3cf   :  { %v5998_v12 = vadd.f32 %v5997_v9, %v5996_v6  ;;  %v6711_v13 = vadd.f32 %v5292_v11, %v4233_v10  ;;  %v5294_v15 = vpop.f32.mrb[93].mxu0  ;;  %v4237_v17 = vpop.f32.mrb[94].mxu1 }
 0x3d0   :  { %v6712_v16 = vadd.f32 %v5294_v15, %v4235_v14  ;;  %v5296_v18 = vpop.f32.mrb[94].mxu0  ;;  %v4239_v22 = vpop.f32.mrb[95].mxu1 }
 0x3d1   :  { %5473 = vst [vmem:[%s10252_s2 + $0x2e0] sm:$0xff] %v6711_v13  ;;  %v5554_v19 = vadd.f32 %v6711_v13, %v5553_v1  ;;  %v5803_v20 = vmul.f32 %v6711_v13, %v6711_v13  ;;  %v6713_v21 = vadd.f32 %v5296_v18, %v4237_v17  ;;  %v5298_v23 = vpop.f32.mrb[95].mxu0 }
 0x3d2   :  { %5474 = vst.msk [vmem:[%s10252_s2 + $0x2e8] sm:$0xff] %vm3166_vm0, %v6712_v16  ;;  %v5669_v24 = vsel %vm3166_vm0, %v6712_v16, 0.0  ;;  %v5804_v25 = vmul.f32 %v6712_v16, %v6712_v16  ;;  %v6714_v26 = vadd.f32 %v5298_v23, %v4239_v22 }
 0x3d3   :  { %v5884_v27 = vadd.f32 %v5883_v7, %v5803_v20  ;;  %v5670_v28 = vadd.f32 %v5669_v24, %v5668_v8  ;;  %5475 = vst [vmem:[%s10252_s2 + $0x2f0] sm:$0xff] %v6713_v21  ;;  %v5555_v29 = vadd.f32 %v6713_v21, %v5554_v19  ;;  %v5805_v30 = vmul.f32 %v6713_v21, %v6713_v21 }
 0x3d4   :  { %v5999_v31 = vsel %vm3166_vm0, %v5804_v25, 0.0  ;;  %5476 = vst.msk [vmem:[%s10252_s2 + $0x2f8] sm:$0xff] %vm3166_vm0, %v6714_v26  ;;  %v5671_v32 = vsel %vm3166_vm0, %v6714_v26, 0.0  ;;  %v5806_v33 = vmul.f32 %v6714_v26, %v6714_v26 }
 0x3d5   :  { %v6000_v34 = vadd.f32 %v5999_v31, %v5998_v12  ;;  %v5885_v35 = vadd.f32 %v5884_v27, %v5805_v30  ;;  %v5672_v36 = vadd.f32 %v5671_v32, %v5670_v28  ;;  %v4243_v38 = vpop.f32.mrb[96].mxu1 }
 0x3d6   :  { %v6001_v37 = vsel %vm3166_vm0, %v5806_v33, 0.0  ;;  %v5302_v39 = vpop.f32.mrb[96].mxu0  ;;  %v4245_v43 = vpop.f32.mrb[97].mxu1 }
 0x3d7   :  { %v6002_v40 = vadd.f32 %v6001_v37, %v6000_v34  ;;  %v6715_v42 = vadd.f32 %v5302_v39, %v4243_v38  ;;  %v5304_v44 = vpop.f32.mrb[97].mxu0  ;;  %v4247_v46 = vpop.f32.mrb[98].mxu1 }
 0x3d8   :  { %v6716_v45 = vadd.f32 %v5304_v44, %v4245_v43  ;;  %v5306_v47 = vpop.f32.mrb[98].mxu0  ;;  %v4249_v51 = vpop.f32.mrb[99].mxu1 }
 0x3d9   :  { %5477 = vst [vmem:[%s10252_s2 + $0x300] sm:$0xff] %v6715_v42  ;;  %v5556_v48 = vadd.f32 %v6715_v42, %v5555_v29  ;;  %v5807_v49 = vmul.f32 %v6715_v42, %v6715_v42  ;;  %v6717_v50 = vadd.f32 %v5306_v47, %v4247_v46  ;;  %v5308_v52 = vpop.f32.mrb[99].mxu0 }
 0x3da   :  { %5478 = vst.msk [vmem:[%s10252_s2 + $0x308] sm:$0xff] %vm3166_vm0, %v6716_v45  ;;  %v5673_v53 = vsel %vm3166_vm0, %v6716_v45, 0.0  ;;  %v5808_v54 = vmul.f32 %v6716_v45, %v6716_v45  ;;  %v6718_v55 = vadd.f32 %v5308_v52, %v4249_v51 }
 0x3db   :  { %v5886_v56 = vadd.f32 %v5885_v35, %v5807_v49  ;;  %v5674_v57 = vadd.f32 %v5673_v53, %v5672_v36  ;;  %5479 = vst [vmem:[%s10252_s2 + $0x310] sm:$0xff] %v6717_v50  ;;  %v5557_v58 = vadd.f32 %v6717_v50, %v5556_v48  ;;  %v5809_v59 = vmul.f32 %v6717_v50, %v6717_v50 }
 0x3dc   :  { %v6003_v60 = vsel %vm3166_vm0, %v5808_v54, 0.0  ;;  %5480 = vst.msk [vmem:[%s10252_s2 + $0x318] sm:$0xff] %vm3166_vm0, %v6718_v55  ;;  %v5675_v61 = vsel %vm3166_vm0, %v6718_v55, 0.0  ;;  %v5810_v62 = vmul.f32 %v6718_v55, %v6718_v55 }
 0x3dd   :  { %v6004_v63 = vadd.f32 %v6003_v60, %v6002_v40  ;;  %v5887_v41 = vadd.f32 %v5886_v56, %v5809_v59  ;;  %v5676_v0 = vadd.f32 %v5675_v61, %v5674_v57  ;;  %v4253_v2 = vpop.f32.mrb[100].mxu1 }
 0x3de   :  { %v6005_v1 = vsel %vm3166_vm0, %v5810_v62, 0.0  ;;  %v5312_v3 = vpop.f32.mrb[100].mxu0  ;;  %v4255_v6 = vpop.f32.mrb[101].mxu1 }
 0x3df   :  { %v6006_v4 = vadd.f32 %v6005_v1, %v6004_v63  ;;  %v6719_v5 = vadd.f32 %v5312_v3, %v4253_v2  ;;  %v5314_v7 = vpop.f32.mrb[101].mxu0  ;;  %v4257_v9 = vpop.f32.mrb[102].mxu1 }
 0x3e0   :  { %v6720_v8 = vadd.f32 %v5314_v7, %v4255_v6  ;;  %v5316_v10 = vpop.f32.mrb[102].mxu0  ;;  %v4259_v14 = vpop.f32.mrb[103].mxu1 }
 0x3e1   :  { %5481 = vst [vmem:[%s10252_s2 + $0x320] sm:$0xff] %v6719_v5  ;;  %v5558_v11 = vadd.f32 %v6719_v5, %v5557_v58  ;;  %v5811_v12 = vmul.f32 %v6719_v5, %v6719_v5  ;;  %v6721_v13 = vadd.f32 %v5316_v10, %v4257_v9  ;;  %v5318_v15 = vpop.f32.mrb[103].mxu0 }
 0x3e2   :  { %5482 = vst.msk [vmem:[%s10252_s2 + $0x328] sm:$0xff] %vm3166_vm0, %v6720_v8  ;;  %v5677_v16 = vsel %vm3166_vm0, %v6720_v8, 0.0  ;;  %v5812_v17 = vmul.f32 %v6720_v8, %v6720_v8  ;;  %v6722_v18 = vadd.f32 %v5318_v15, %v4259_v14 }
 0x3e3   :  { %v5888_v19 = vadd.f32 %v5887_v41, %v5811_v12  ;;  %v5678_v20 = vadd.f32 %v5677_v16, %v5676_v0  ;;  %5483 = vst [vmem:[%s10252_s2 + $0x330] sm:$0xff] %v6721_v13  ;;  %v5559_v21 = vadd.f32 %v6721_v13, %v5558_v11  ;;  %v5813_v22 = vmul.f32 %v6721_v13, %v6721_v13 }
 0x3e4   :  { %v6007_v23 = vsel %vm3166_vm0, %v5812_v17, 0.0  ;;  %5484 = vst.msk [vmem:[%s10252_s2 + $0x338] sm:$0xff] %vm3166_vm0, %v6722_v18  ;;  %v5679_v24 = vsel %vm3166_vm0, %v6722_v18, 0.0  ;;  %v5814_v25 = vmul.f32 %v6722_v18, %v6722_v18 }
 0x3e5   :  { %v6008_v26 = vadd.f32 %v6007_v23, %v6006_v4  ;;  %v5889_v27 = vadd.f32 %v5888_v19, %v5813_v22  ;;  %v5680_v28 = vadd.f32 %v5679_v24, %v5678_v20  ;;  %v4263_v30 = vpop.f32.mrb[104].mxu1 }
 0x3e6   :  { %v6009_v29 = vsel %vm3166_vm0, %v5814_v25, 0.0  ;;  %v5322_v31 = vpop.f32.mrb[104].mxu0  ;;  %v4265_v34 = vpop.f32.mrb[105].mxu1 }
 0x3e7   :  { %v6010_v32 = vadd.f32 %v6009_v29, %v6008_v26  ;;  %v6723_v33 = vadd.f32 %v5322_v31, %v4263_v30  ;;  %v5324_v35 = vpop.f32.mrb[105].mxu0  ;;  %v4267_v37 = vpop.f32.mrb[106].mxu1 }
 0x3e8   :  { %v6724_v36 = vadd.f32 %v5324_v35, %v4265_v34  ;;  %v5326_v38 = vpop.f32.mrb[106].mxu0  ;;  %v4269_v43 = vpop.f32.mrb[107].mxu1 }
 0x3e9   :  { %5485 = vst [vmem:[%s10252_s2 + $0x340] sm:$0xff] %v6723_v33  ;;  %v5560_v39 = vadd.f32 %v6723_v33, %v5559_v21  ;;  %v5815_v40 = vmul.f32 %v6723_v33, %v6723_v33  ;;  %v6725_v42 = vadd.f32 %v5326_v38, %v4267_v37  ;;  %v5328_v44 = vpop.f32.mrb[107].mxu0 }
 0x3ea   :  { %5486 = vst.msk [vmem:[%s10252_s2 + $0x348] sm:$0xff] %vm3166_vm0, %v6724_v36  ;;  %v5681_v45 = vsel %vm3166_vm0, %v6724_v36, 0.0  ;;  %v5816_v46 = vmul.f32 %v6724_v36, %v6724_v36  ;;  %v6726_v47 = vadd.f32 %v5328_v44, %v4269_v43 }
 0x3eb   :  { %v5890_v48 = vadd.f32 %v5889_v27, %v5815_v40  ;;  %v5682_v49 = vadd.f32 %v5681_v45, %v5680_v28  ;;  %5487 = vst [vmem:[%s10252_s2 + $0x350] sm:$0xff] %v6725_v42  ;;  %v5561_v50 = vadd.f32 %v6725_v42, %v5560_v39  ;;  %v5817_v51 = vmul.f32 %v6725_v42, %v6725_v42 }
 0x3ec   :  { %v6011_v52 = vsel %vm3166_vm0, %v5816_v46, 0.0  ;;  %5488 = vst.msk [vmem:[%s10252_s2 + $0x358] sm:$0xff] %vm3166_vm0, %v6726_v47  ;;  %v5683_v53 = vsel %vm3166_vm0, %v6726_v47, 0.0  ;;  %v5818_v54 = vmul.f32 %v6726_v47, %v6726_v47 }
 0x3ed   :  { %v6012_v55 = vadd.f32 %v6011_v52, %v6010_v32  ;;  %v5891_v56 = vadd.f32 %v5890_v48, %v5817_v51  ;;  %v5684_v57 = vadd.f32 %v5683_v53, %v5682_v49  ;;  %v4273_v59 = vpop.f32.mrb[108].mxu1 }
 0x3ee   :  { %v6013_v58 = vsel %vm3166_vm0, %v5818_v54, 0.0  ;;  %v5332_v60 = vpop.f32.mrb[108].mxu0  ;;  %v4275_v63 = vpop.f32.mrb[109].mxu1 }
 0x3ef   :  { %v6014_v61 = vadd.f32 %v6013_v58, %v6012_v55  ;;  %v6727_v62 = vadd.f32 %v5332_v60, %v4273_v59  ;;  %v5334_v41 = vpop.f32.mrb[109].mxu0  ;;  %v4277_v1 = vpop.f32.mrb[110].mxu1 }
 0x3f0   :  { %v6728_v0 = vadd.f32 %v5334_v41, %v4275_v63  ;;  %v5336_v2 = vpop.f32.mrb[110].mxu0  ;;  %v4279_v6 = vpop.f32.mrb[111].mxu1 }
 0x3f1   :  { %5489 = vst [vmem:[%s10252_s2 + $0x360] sm:$0xff] %v6727_v62  ;;  %v5562_v3 = vadd.f32 %v6727_v62, %v5561_v50  ;;  %v5819_v4 = vmul.f32 %v6727_v62, %v6727_v62  ;;  %v6729_v5 = vadd.f32 %v5336_v2, %v4277_v1  ;;  %v5338_v7 = vpop.f32.mrb[111].mxu0 }
 0x3f2   :  { %5490 = vst.msk [vmem:[%s10252_s2 + $0x368] sm:$0xff] %vm3166_vm0, %v6728_v0  ;;  %v5685_v8 = vsel %vm3166_vm0, %v6728_v0, 0.0  ;;  %v5820_v9 = vmul.f32 %v6728_v0, %v6728_v0  ;;  %v6730_v10 = vadd.f32 %v5338_v7, %v4279_v6 }
 0x3f3   :  { %v5892_v11 = vadd.f32 %v5891_v56, %v5819_v4  ;;  %v5686_v12 = vadd.f32 %v5685_v8, %v5684_v57  ;;  %5491 = vst [vmem:[%s10252_s2 + $0x370] sm:$0xff] %v6729_v5  ;;  %v5563_v13 = vadd.f32 %v6729_v5, %v5562_v3  ;;  %v5821_v14 = vmul.f32 %v6729_v5, %v6729_v5 }
 0x3f4   :  { %v6015_v15 = vsel %vm3166_vm0, %v5820_v9, 0.0  ;;  %5492 = vst.msk [vmem:[%s10252_s2 + $0x378] sm:$0xff] %vm3166_vm0, %v6730_v10  ;;  %v5687_v16 = vsel %vm3166_vm0, %v6730_v10, 0.0  ;;  %v5822_v17 = vmul.f32 %v6730_v10, %v6730_v10 }
 0x3f5   :  { %v6016_v18 = vadd.f32 %v6015_v15, %v6014_v61  ;;  %v5893_v19 = vadd.f32 %v5892_v11, %v5821_v14  ;;  %v5688_v20 = vadd.f32 %v5687_v16, %v5686_v12  ;;  %v4283_v22 = vpop.f32.mrb[112].mxu1 }
 0x3f6   :  { %v6017_v21 = vsel %vm3166_vm0, %v5822_v17, 0.0  ;;  %v4285_v25 = vpop.f32.mrb[113].mxu1 }
 0x3f7   :  { %v6018_v23 = vadd.f32 %v6017_v21, %v6016_v18  ;;  %v5342_v24 = vpop.f32.mrb[112].mxu0  ;;  %v4287_v28 = vpop.f32.mrb[114].mxu1 }
 0x3f8   :  { %v6731_v26 = vadd.f32 %v5342_v24, %v4283_v22  ;;  %v5344_v27 = vpop.f32.mrb[113].mxu0  ;;  %v4289_v31 = vpop.f32.mrb[115].mxu1 }
 0x3f9   :  { %v6732_v29 = vadd.f32 %v5344_v27, %v4285_v25  ;;  %v5346_v30 = vpop.f32.mrb[114].mxu0 }
 0x3fa   :  { %5493 = vst [vmem:[%s10252_s2 + $0x380] sm:$0xff] %v6731_v26  ;;  %v5564_v32 = vadd.f32 %v6731_v26, %v5563_v13  ;;  %v5823_v33 = vmul.f32 %v6731_v26, %v6731_v26  ;;  %v6733_v34 = vadd.f32 %v5346_v30, %v4287_v28  ;;  %v5348_v35 = vpop.f32.mrb[115].mxu0 }
 0x3fb   :  { %5494 = vst.msk [vmem:[%s10252_s2 + $0x388] sm:$0xff] %vm3166_vm0, %v6732_v29  ;;  %v5689_v36 = vsel %vm3166_vm0, %v6732_v29, 0.0  ;;  %v5824_v37 = vmul.f32 %v6732_v29, %v6732_v29  ;;  %v6734_v38 = vadd.f32 %v5348_v35, %v4289_v31 }
 0x3fc   :  { %v5894_v39 = vadd.f32 %v5893_v19, %v5823_v33  ;;  %v5690_v40 = vadd.f32 %v5689_v36, %v5688_v20  ;;  %5495 = vst [vmem:[%s10252_s2 + $0x390] sm:$0xff] %v6733_v34  ;;  %v5565_v42 = vadd.f32 %v6733_v34, %v5564_v32  ;;  %v5825_v43 = vmul.f32 %v6733_v34, %v6733_v34 }
 0x3fd   :  { %v6019_v44 = vsel %vm3166_vm0, %v5824_v37, 0.0  ;;  %5496 = vst.msk [vmem:[%s10252_s2 + $0x398] sm:$0xff] %vm3166_vm0, %v6734_v38  ;;  %v5691_v45 = vsel %vm3166_vm0, %v6734_v38, 0.0  ;;  %v5826_v46 = vmul.f32 %v6734_v38, %v6734_v38  ;;  %v4293_v50 = vpop.f32.mrb[116].mxu1 }
 0x3fe   :  { %v6020_v47 = vadd.f32 %v6019_v44, %v6018_v23  ;;  %v5895_v48 = vadd.f32 %v5894_v39, %v5825_v43  ;;  %v5692_v49 = vadd.f32 %v5691_v45, %v5690_v40  ;;  %v4295_v53 = vpop.f32.mrb[117].mxu1 }
 0x3ff   :  { %v6021_v51 = vsel %vm3166_vm0, %v5826_v46, 0.0  ;;  %v5352_v52 = vpop.f32.mrb[116].mxu0  ;;  %v4297_v57 = vpop.f32.mrb[118].mxu1 }
 0x400   :  { %v6022_v54 = vadd.f32 %v6021_v51, %v6020_v47  ;;  %v6735_v55 = vadd.f32 %v5352_v52, %v4293_v50  ;;  %v5354_v56 = vpop.f32.mrb[117].mxu0  ;;  %v4299_v60 = vpop.f32.mrb[119].mxu1 }
 0x401   :  { %v6736_v58 = vadd.f32 %v5354_v56, %v4295_v53  ;;  %v5356_v59 = vpop.f32.mrb[118].mxu0 }
 0x402   :  { %5497 = vst [vmem:[%s10252_s2 + $0x3a0] sm:$0xff] %v6735_v55  ;;  %v5566_v61 = vadd.f32 %v6735_v55, %v5565_v42  ;;  %v5827_v62 = vmul.f32 %v6735_v55, %v6735_v55  ;;  %v6737_v63 = vadd.f32 %v5356_v59, %v4297_v57  ;;  %v5358_v41 = vpop.f32.mrb[119].mxu0 }
 0x403   :  { %5498 = vst.msk [vmem:[%s10252_s2 + $0x3a8] sm:$0xff] %vm3166_vm0, %v6736_v58  ;;  %v5693_v0 = vsel %vm3166_vm0, %v6736_v58, 0.0  ;;  %v5828_v1 = vmul.f32 %v6736_v58, %v6736_v58  ;;  %v6738_v2 = vadd.f32 %v5358_v41, %v4299_v60 }
 0x404   :  { %v5896_v3 = vadd.f32 %v5895_v48, %v5827_v62  ;;  %v5694_v4 = vadd.f32 %v5693_v0, %v5692_v49  ;;  %5499 = vst [vmem:[%s10252_s2 + $0x3b0] sm:$0xff] %v6737_v63  ;;  %v5567_v5 = vadd.f32 %v6737_v63, %v5566_v61  ;;  %v5829_v6 = vmul.f32 %v6737_v63, %v6737_v63 }
 0x405   :  { %v6023_v7 = vsel %vm3166_vm0, %v5828_v1, 0.0  ;;  %5500 = vst.msk [vmem:[%s10252_s2 + $0x3b8] sm:$0xff] %vm3166_vm0, %v6738_v2  ;;  %v5695_v8 = vsel %vm3166_vm0, %v6738_v2, 0.0  ;;  %v5830_v9 = vmul.f32 %v6738_v2, %v6738_v2  ;;  %v4303_v13 = vpop.f32.mrb[120].mxu1 }
 0x406   :  { %v6024_v10 = vadd.f32 %v6023_v7, %v6022_v54  ;;  %v5897_v11 = vadd.f32 %v5896_v3, %v5829_v6  ;;  %v5696_v12 = vadd.f32 %v5695_v8, %v5694_v4  ;;  %v4305_v16 = vpop.f32.mrb[121].mxu1 }
 0x407   :  { %v6025_v14 = vsel %vm3166_vm0, %v5830_v9, 0.0  ;;  %v5362_v15 = vpop.f32.mrb[120].mxu0  ;;  %v4307_v20 = vpop.f32.mrb[122].mxu1 }
 0x408   :  { %v6026_v17 = vadd.f32 %v6025_v14, %v6024_v10  ;;  %v6739_v18 = vadd.f32 %v5362_v15, %v4303_v13  ;;  %v5364_v19 = vpop.f32.mrb[121].mxu0  ;;  %v4309_v23 = vpop.f32.mrb[123].mxu1 }
 0x409   :  { %v6740_v21 = vadd.f32 %v5364_v19, %v4305_v16  ;;  %v5366_v22 = vpop.f32.mrb[122].mxu0  ;;  %v8026_v19 = vmov 1983009808  }
 0x40a   :  { %5501 = vst [vmem:[%s10252_s2 + $0x3c0] sm:$0xff] %v6739_v18  ;;  %v5568_v24 = vadd.f32 %v6739_v18, %v5567_v5  ;;  %v5831_v25 = vmul.f32 %v6739_v18, %v6739_v18  ;;  %v6741_v26 = vadd.f32 %v5366_v22, %v4307_v20  ;;  %v5368_v27 = vpop.f32.mrb[123].mxu0  ;;  %v6048_v20 = vunpack.c.l.s4 %v8026_v19 }
 0x40b   :  { %5502 = vst.msk [vmem:[%s10252_s2 + $0x3c8] sm:$0xff] %vm3166_vm0, %v6740_v21  ;;  %v5697_v28 = vsel %vm3166_vm0, %v6740_v21, 0.0  ;;  %v5832_v29 = vmul.f32 %v6740_v21, %v6740_v21  ;;  %v6742_v30 = vadd.f32 %v5368_v27, %v4309_v23  ;;  %v6050_v21 = vlaneseq }
 0x40c   :  { %v5898_v31 = vadd.f32 %v5897_v11, %v5831_v25  ;;  %v5698_v32 = vadd.f32 %v5697_v28, %v5696_v12  ;;  %5503 = vst [vmem:[%s10252_s2 + $0x3d0] sm:$0xff] %v6741_v26  ;;  %v5569_v33 = vadd.f32 %v6741_v26, %v5568_v24  ;;  %v5833_v34 = vmul.f32 %v6741_v26, %v6741_v26 }
 0x40d   :  { %v6027_v35 = vsel %vm3166_vm0, %v5832_v29, 0.0  ;;  %5504 = vst.msk [vmem:[%s10252_s2 + $0x3d8] sm:$0xff] %vm3166_vm0, %v6742_v30  ;;  %v5699_v36 = vsel %vm3166_vm0, %v6742_v30, 0.0  ;;  %v5834_v37 = vmul.f32 %v6742_v30, %v6742_v30  ;;  %v4313_v42 = vpop.f32.mrb[124].mxu1  ;;  %v6049_v29 = vunpack.c.0.s8 %v6048_v20 }
 0x40e   :  { %v6028_v38 = vadd.f32 %v6027_v35, %v6026_v17  ;;  %v5899_v39 = vadd.f32 %v5898_v31, %v5833_v34  ;;  %v5700_v40 = vadd.f32 %v5699_v36, %v5698_v32  ;;  %v4315_v45 = vpop.f32.mrb[125].mxu1  ;;  %v6051_v30 = vshrl.u32 %v6050_v21, 7 }
 0x40f   :  { %v6029_v43 = vsel %vm3166_vm0, %v5834_v37, 0.0  ;;  %v5372_v44 = vpop.f32.mrb[124].mxu0  ;;  %v4317_v49 = vpop.f32.mrb[126].mxu1 }
 0x410   :  { %v6030_v46 = vadd.f32 %v6029_v43, %v6028_v38  ;;  %v6743_v47 = vadd.f32 %v5372_v44, %v4313_v42  ;;  %v5374_v48 = vpop.f32.mrb[125].mxu0  ;;  %v4319_v52 = vpop.f32.mrb[127].mxu1  ;;  %v6052_v37 = vsub.s32 %v6049_v29, %v6051_v30 }
 0x411   :  { %v6744_v50 = vadd.f32 %v5374_v48, %v4315_v45  ;;  %v5376_v51 = vpop.f32.mrb[126].mxu0 }
 0x412   :  { %5505 = vst [vmem:[%s10252_s2 + $0x3e0] sm:$0xff] %v6743_v47  ;;  %v5570_v53 = vadd.f32 %v6743_v47, %v5569_v33  ;;  %v5835_v54 = vmul.f32 %v6743_v47, %v6743_v47  ;;  %v6745_v55 = vadd.f32 %v5376_v51, %v4317_v49  ;;  %v5378_v56 = vpop.f32.mrb[127].mxu0 }
 0x413   :  { %5506 = vst.msk [vmem:[%s10252_s2 + $0x3e8] sm:$0xff] %vm3166_vm0, %v6744_v50  ;;  %v5701_v57 = vsel %vm3166_vm0, %v6744_v50, 0.0  ;;  %v5836_v58 = vmul.f32 %v6744_v50, %v6744_v50  ;;  %v6746_v59 = vadd.f32 %v5378_v56, %v4319_v52 }
 0x414   :  { %v5900_v60 = vadd.f32 %v5899_v39, %v5835_v54  ;;  %v5702_v61 = vadd.f32 %v5701_v57, %v5700_v40  ;;  %5507 = vst [vmem:[%s10252_s2 + $0x3f0] sm:$0xff] %v6745_v55  ;;  %v5571_v62 = vadd.f32 %v6745_v55, %v5570_v53  ;;  %v5837_v63 = vmul.f32 %v6745_v55, %v6745_v55 }
 0x415   :  { %v6031_v41 = vsel %vm3166_vm0, %v5836_v58, 0.0  ;;  %5508 = vst.msk [vmem:[%s10252_s2 + $0x3f8] sm:$0xff] %vm3166_vm0, %v6746_v59  ;;  %v5703_v0 = vsel %vm3166_vm0, %v6746_v59, 0.0  ;;  %v5838_v1 = vmul.f32 %v6746_v59, %v6746_v59 }
 0x416   :  { %v6032_v2 = vadd.f32 %v6031_v41, %v6030_v46  ;;  %v5572_v3 = vrot.slane %v5571_v62, 4  ;;  %v5901_v4 = vadd.f32 %v5900_v60, %v5837_v63  ;;  %v5704_v5 = vadd.f32 %v5703_v0, %v5702_v61 }
 0x417   :  { %v6033_v6 = vsel %vm3166_vm0, %v5838_v1, 0.0 }
 0x418   :  { %v5573_v7 = vadd.f32 %v5572_v3, %v5571_v62  ;;  %v5902_v8 = vrot.slane %v5901_v4, 4  ;;  %v5705_v9 = vrot.slane %v5704_v5, 4  ;;  %v6034_v10 = vadd.f32 %v6033_v6, %v6032_v2 }
 0x41a   :  { %v5574_v11 = vrot.slane %v5573_v7, 2  ;;  %v5903_v12 = vadd.f32 %v5902_v8, %v5901_v4  ;;  %v5706_v13 = vadd.f32 %v5705_v9, %v5704_v5  ;;  %v6035_v14 = vrot.slane %v6034_v10, 4 }
 0x41c   :  { %v5575_v15 = vadd.f32 %v5574_v11, %v5573_v7  ;;  %v5904_v16 = vrot.slane %v5903_v12, 2  ;;  %v5707_v17 = vrot.slane %v5706_v13, 2  ;;  %v6036_v18 = vadd.f32 %v6035_v14, %v6034_v10 }
 0x41e   :  { %v5576_v22 = vrot.slane %v5575_v15, 1  ;;  %v5905_v23 = vadd.f32 %v5904_v16, %v5903_v12  ;;  %v5708_v24 = vadd.f32 %v5707_v17, %v5706_v13  ;;  %v6037_v25 = vrot.slane %v6036_v18, 2 }
 0x420   :  { %v5906_v26 = vrot.slane %v5905_v23, 1  ;;  %v5709_v27 = vrot.slane %v5708_v24, 1  ;;  %v6038_v28 = vadd.f32 %v6037_v25, %v6036_v18  ;;  %v5577_v31 = vadd.f32 %v5576_v22, %v5575_v15 }
 0x422   :  { %v5907_v32 = vadd.f32 %v5906_v26, %v5905_v23  ;;  %v6039_v33 = vrot.slane %v6038_v28, 1  ;;  %v5710_v35 = vadd.f32 %v5709_v27, %v5708_v24 }
 0x424   :  { %v6042_v34 = vsel %vm6041_vm1, %v5577_v31, %v5907_v32  ;;  %v6040_v36 = vadd.f32 %v6039_v33, %v6038_v28 }
 0x426   :  { %v6043_v38 = vsel %vm6041_vm1, %v5710_v35, %v6040_v36 }
 0x427   :  { %v6046_v39 = vcombine.low %v6042_v34, %v6043_v38 }
 0x429   :  { %v6053_v40 = vrot.slane %v6046_v39, %v6052_v37 }
 0x42b   :  { %6058 = vst.msk [vmem:[%s10253_s3] sm:$0xf] %vm6057_vm4, %v6053_v40 }

// kernel: reduction_block_b.20
= control target key start
LH: loop header
LB: loop body
LE: loop exit
PB: predicated region body
PF: predicated region fallthrough
CT: control target
= control target key end

     0   :  { %v42_v0 = vlaneseq  ;;  %vm143_vm0 = vcmask 523264   ;;  %s428_s1 = inlined_call_operand.vmem [shape: f32[1,192], index: 1, kind: input, shape index: {}]   ;;  %s429_s2 = inlined_call_operand.vmem [shape: f32[1,192], index: 2, kind: input, shape index: {}]   ;;  %s430_s0 = inlined_call_operand.vmem [shape: f32[104,192], index: 0, kind: input, shape index: {}]   ;;  %s431_s3 = inlined_call_operand.vmem [shape: f32[104,192], index: 3, kind: output, shape index: {}]  }
   0x1   :  { %v40_v2 = vld [vmem:[%s428_s1] sm:$0x3]  ;;  %v15_v7 = vld [vmem:[%s430_s0 + $0x8] sm:$0xff]  ;;  %v16_v8 = vld [vmem:[%s430_s0 + $0x10] sm:$0xff] }
   0x2   :  { %v43_v1 = vshrl.u32 %v42_v0, 7  ;;  %v78_v3 = vld [vmem:[%s429_s2] sm:$0x3]  ;;  %v17_v9 = vld [vmem:[%s430_s0 + $0x18] sm:$0xff]  ;;  %v19_v15 = vld [vmem:[%s430_s0 + $0x28] sm:$0xff] }
   0x3   :  { %v14_v4 = vld [vmem:[%s430_s0] sm:$0xff]  ;;  %v20_v16 = vld [vmem:[%s430_s0 + $0x30] sm:$0xff]  ;;  %v21_v17 = vld [vmem:[%s430_s0 + $0x38] sm:$0xff] }
   0x4   :  { %v44_v5 = vsub.s32 0, %v43_v1  ;;  %v48_v6 = vsub.s32 1, %v43_v1  ;;  %v18_v10 = vld [vmem:[%s430_s0 + $0x20] sm:$0xff]  ;;  %v23_v31 = vld [vmem:[%s430_s0 + $0x48] sm:$0xff]  ;;  %v24_v32 = vld [vmem:[%s430_s0 + $0x50] sm:$0xff] }
   0x5   :  { %v22_v30 = vld [vmem:[%s430_s0 + $0x40] sm:$0xff]  ;;  %v25_v37 = vld [vmem:[%s430_s0 + $0x58] sm:$0xff]  ;;  %v27_v39 = vld [vmem:[%s430_s0 + $0x68] sm:$0xff] }
   0x6   :  { %v214_v11 = vrot.slane %v40_v2, %v44_v5  ;;  %v216_v12 = vrot.slane %v40_v2, %v48_v6  ;;  %v218_v13 = vrot.slane %v78_v3, %v44_v5  ;;  %v220_v14 = vrot.slane %v78_v3, %v48_v6  ;;  %v26_v38 = vld [vmem:[%s430_s0 + $0x60] sm:$0xff]  ;;  %v28_v44 = vld [vmem:[%s430_s0 + $0x70] sm:$0xff]  ;;  %v29_v45 = vld [vmem:[%s430_s0 + $0x78] sm:$0xff] }
   0x7   :  { %v30_v62 = vld [vmem:[%s430_s0 + $0x80] sm:$0xff]  ;;  %v31_v63 = vld [vmem:[%s430_s0 + $0x88] sm:$0xff]  ;;  %v32_v0 = vld [vmem:[%s430_s0 + $0x90] sm:$0xff] }
   0x8   :  { %v52_v18 = vmul.f32 %v214_v11, %v14_v4  ;;  %v53_v19 = vmul.f32 %v216_v12, %v15_v7  ;;  %v54_v20 = vmul.f32 %v214_v11, %v16_v8  ;;  %v55_v21 = vmul.f32 %v216_v12, %v17_v9  ;;  %v33_v5 = vld [vmem:[%s430_s0 + $0x98] sm:$0xff]  ;;  %v34_v6 = vld [vmem:[%s430_s0 + $0xa0] sm:$0xff]  ;;  %v35_v7 = vld [vmem:[%s430_s0 + $0xa8] sm:$0xff] }
   0x9   :  { %v56_v22 = vmul.f32 %v214_v11, %v18_v10  ;;  %v57_v23 = vmul.f32 %v216_v12, %v19_v15  ;;  %v58_v24 = vmul.f32 %v214_v11, %v20_v16  ;;  %v59_v25 = vmul.f32 %v216_v12, %v21_v17  ;;  %v36_v16 = vld [vmem:[%s430_s0 + $0xb0] sm:$0xff]  ;;  %v37_v17 = vld [vmem:[%s430_s0 + $0xb8] sm:$0xff] }
   0xa   :  { %v90_v26 = vadd.f32 %v218_v13, %v52_v18  ;;  %v91_v27 = vadd.f32 %v220_v14, %v53_v19  ;;  %v92_v28 = vadd.f32 %v218_v13, %v54_v20  ;;  %v93_v29 = vadd.f32 %v220_v14, %v55_v21 }
   0xb   :  { %v94_v33 = vadd.f32 %v218_v13, %v56_v22  ;;  %v95_v34 = vadd.f32 %v220_v14, %v57_v23  ;;  %v96_v35 = vadd.f32 %v218_v13, %v58_v24  ;;  %v97_v36 = vadd.f32 %v220_v14, %v59_v25 }
   0xc   :  { %v116_v40 = vmax.f32 %v90_v26, 0.0  ;;  %v117_v41 = vmax.f32 %v91_v27, 0.0  ;;  %v118_v42 = vmax.f32 %v92_v28, 0.0  ;;  %v119_v43 = vmax.f32 %v93_v29, 0.0 }
   0xd   :  { %v120_v46 = vmax.f32 %v94_v33, 0.0  ;;  %v121_v47 = vmax.f32 %v95_v34, 0.0  ;;  %v122_v48 = vmax.f32 %v96_v35, 0.0  ;;  %v123_v49 = vmax.f32 %v97_v36, 0.0 }
   0xe   :  { %142 = vst [vmem:[%s431_s3] sm:$0xff] %v116_v40  ;;  %144 = vst.msk [vmem:[%s431_s3 + $0x8] sm:$0xff] %vm143_vm0, %v117_v41  ;;  %v60_v50 = vmul.f32 %v214_v11, %v22_v30  ;;  %v61_v51 = vmul.f32 %v216_v12, %v23_v31  ;;  %v62_v52 = vmul.f32 %v214_v11, %v24_v32 }
   0xf   :  { %145 = vst [vmem:[%s431_s3 + $0x10] sm:$0xff] %v118_v42  ;;  %146 = vst.msk [vmem:[%s431_s3 + $0x18] sm:$0xff] %vm143_vm0, %v119_v43  ;;  %v63_v53 = vmul.f32 %v216_v12, %v25_v37  ;;  %v64_v54 = vmul.f32 %v214_v11, %v26_v38  ;;  %v65_v55 = vmul.f32 %v216_v12, %v27_v39  ;;  %v38_v38 = vld [vmem:[%s430_s0 + $0xc0] sm:$0xff]  ;;  %v39_v39 = vld [vmem:[%s430_s0 + $0xc8] sm:$0xff] }
  0x10   :  { %147 = vst [vmem:[%s431_s3 + $0x20] sm:$0xff] %v120_v46  ;;  %148 = vst.msk [vmem:[%s431_s3 + $0x28] sm:$0xff] %vm143_vm0, %v121_v47  ;;  %v66_v56 = vmul.f32 %v214_v11, %v28_v44  ;;  %v67_v57 = vmul.f32 %v216_v12, %v29_v45  ;;  %v98_v58 = vadd.f32 %v218_v13, %v60_v50 }
  0x11   :  { %149 = vst [vmem:[%s431_s3 + $0x30] sm:$0xff] %v122_v48  ;;  %150 = vst.msk [vmem:[%s431_s3 + $0x38] sm:$0xff] %vm143_vm0, %v123_v49  ;;  %v99_v59 = vadd.f32 %v220_v14, %v61_v51  ;;  %v100_v60 = vadd.f32 %v218_v13, %v62_v52  ;;  %v101_v61 = vadd.f32 %v220_v14, %v63_v53 }
  0x12   :  { %v102_v1 = vadd.f32 %v218_v13, %v64_v54  ;;  %v103_v2 = vadd.f32 %v220_v14, %v65_v55  ;;  %v104_v3 = vadd.f32 %v218_v13, %v66_v56  ;;  %v105_v4 = vadd.f32 %v220_v14, %v67_v57 }
  0x13   :  { %v124_v8 = vmax.f32 %v98_v58, 0.0  ;;  %v125_v9 = vmax.f32 %v99_v59, 0.0  ;;  %v126_v10 = vmax.f32 %v100_v60, 0.0  ;;  %v127_v15 = vmax.f32 %v101_v61, 0.0 }
  0x14   :  { %v128_v18 = vmax.f32 %v102_v1, 0.0  ;;  %v129_v19 = vmax.f32 %v103_v2, 0.0  ;;  %v130_v20 = vmax.f32 %v104_v3, 0.0  ;;  %v131_v21 = vmax.f32 %v105_v4, 0.0 }
  0x15   :  { %151 = vst [vmem:[%s431_s3 + $0x40] sm:$0xff] %v124_v8  ;;  %152 = vst.msk [vmem:[%s431_s3 + $0x48] sm:$0xff] %vm143_vm0, %v125_v9  ;;  %v68_v22 = vmul.f32 %v214_v11, %v30_v62  ;;  %v69_v23 = vmul.f32 %v216_v12, %v31_v63  ;;  %v70_v24 = vmul.f32 %v214_v11, %v32_v0 }
  0x16   :  { %153 = vst [vmem:[%s431_s3 + $0x50] sm:$0xff] %v126_v10  ;;  %154 = vst.msk [vmem:[%s431_s3 + $0x58] sm:$0xff] %vm143_vm0, %v127_v15  ;;  %v71_v25 = vmul.f32 %v216_v12, %v33_v5  ;;  %v72_v26 = vmul.f32 %v214_v11, %v34_v6  ;;  %v73_v27 = vmul.f32 %v216_v12, %v35_v7 }
  0x17   :  { %155 = vst [vmem:[%s431_s3 + $0x60] sm:$0xff] %v128_v18  ;;  %156 = vst.msk [vmem:[%s431_s3 + $0x68] sm:$0xff] %vm143_vm0, %v129_v19  ;;  %v74_v28 = vmul.f32 %v214_v11, %v36_v16  ;;  %v75_v29 = vmul.f32 %v216_v12, %v37_v17  ;;  %v106_v30 = vadd.f32 %v218_v13, %v68_v22 }
  0x18   :  { %157 = vst [vmem:[%s431_s3 + $0x70] sm:$0xff] %v130_v20  ;;  %158 = vst.msk [vmem:[%s431_s3 + $0x78] sm:$0xff] %vm143_vm0, %v131_v21  ;;  %v107_v31 = vadd.f32 %v220_v14, %v69_v23  ;;  %v108_v32 = vadd.f32 %v218_v13, %v70_v24  ;;  %v109_v33 = vadd.f32 %v220_v14, %v71_v25 }
  0x19   :  { %v110_v34 = vadd.f32 %v218_v13, %v72_v26  ;;  %v111_v35 = vadd.f32 %v220_v14, %v73_v27  ;;  %v112_v36 = vadd.f32 %v218_v13, %v74_v28  ;;  %v113_v37 = vadd.f32 %v220_v14, %v75_v29 }
  0x1a   :  { %v132_v40 = vmax.f32 %v106_v30, 0.0  ;;  %v133_v41 = vmax.f32 %v107_v31, 0.0  ;;  %v134_v42 = vmax.f32 %v108_v32, 0.0  ;;  %v135_v43 = vmax.f32 %v109_v33, 0.0 }
  0x1b   :  { %v136_v44 = vmax.f32 %v110_v34, 0.0  ;;  %v137_v45 = vmax.f32 %v111_v35, 0.0  ;;  %v138_v46 = vmax.f32 %v112_v36, 0.0  ;;  %v139_v47 = vmax.f32 %v113_v37, 0.0 }
  0x1c   :  { %159 = vst [vmem:[%s431_s3 + $0x80] sm:$0xff] %v132_v40  ;;  %160 = vst.msk [vmem:[%s431_s3 + $0x88] sm:$0xff] %vm143_vm0, %v133_v41  ;;  %v76_v48 = vmul.f32 %v214_v11, %v38_v38  ;;  %v77_v49 = vmul.f32 %v216_v12, %v39_v39 }
  0x1d   :  { %161 = vst [vmem:[%s431_s3 + $0x90] sm:$0xff] %v134_v42  ;;  %162 = vst.msk [vmem:[%s431_s3 + $0x98] sm:$0xff] %vm143_vm0, %v135_v43 }
  0x1e   :  { %163 = vst [vmem:[%s431_s3 + $0xa0] sm:$0xff] %v136_v44  ;;  %164 = vst.msk [vmem:[%s431_s3 + $0xa8] sm:$0xff] %vm143_vm0, %v137_v45  ;;  %v114_v11 = vadd.f32 %v218_v13, %v76_v48  ;;  %v115_v12 = vadd.f32 %v220_v14, %v77_v49 }
  0x1f   :  { %165 = vst [vmem:[%s431_s3 + $0xb0] sm:$0xff] %v138_v46  ;;  %166 = vst.msk [vmem:[%s431_s3 + $0xb8] sm:$0xff] %vm143_vm0, %v139_v47 }
  0x20   :  { %v140_v50 = vmax.f32 %v114_v11, 0.0  ;;  %v141_v51 = vmax.f32 %v115_v12, 0.0 }
  0x22   :  { %167 = vst [vmem:[%s431_s3 + $0xc0] sm:$0xff] %v140_v50  ;;  %168 = vst.msk [vmem:[%s431_s3 + $0xc8] sm:$0xff] %vm143_vm0, %v141_v51 }

// kernel: reduction_block_b.19
= control target key start
LH: loop header
LB: loop body
LE: loop exit
PB: predicated region body
PF: predicated region fallthrough
CT: control target
= control target key end

     0   :  { %vm1863_vm0 = vcmask 523264   ;;  %vm2742_vm1 = vcmask 1040384   ;;  %vm2756_vm2 = vcmask 1041408   ;;  %vm2757_vm3 = vcmask 519170   ;;  %s4922_s1 = inlined_call_operand.vmem [shape: bf16[1728,192], index: 1, kind: input, shape index: {}]   ;;  %s4923_s0 = inlined_call_operand.vmem [shape: bf16[104,1728], index: 0, kind: input, shape index: {}]   ;;  %s4924_s2 = inlined_call_operand.vmem [shape: f32[104,192], index: 2, kind: output, shape index: {0}]   ;;  %s4925_s3 = inlined_call_operand.vmem [shape: f32[1,2,192], index: 3, kind: output, shape index: {1}]  }
   0x1   :  { %v3278_v0 = vld [vmem:[%s4922_s1 + $0x4] ss:$8 sps:$4 sm:$0xff]   ;;  %v3282_v2 = vld [vmem:[%s4922_s1] ss:$8 sps:$4 sm:$0xff]   ;;  %v3284_v4 = vld [vmem:[%s4922_s1 + $0x14] ss:$8 sps:$4 sm:$0xff]  }
   0x2   :  { %v3280_v1 = vld [vmem:[%s4922_s1 + $0x304] ss:$8 sps:$4 sm:$0xff]   ;;  %1885 = vmatprep.subr.bf16.mxu1 %v3278_v0  ;;  %v3283_v3 = vld [vmem:[%s4922_s1 + $0x300] ss:$8 sps:$4 sm:$0xff]   ;;  %v3286_v5 = vld [vmem:[%s4922_s1 + $0x314] ss:$8 sps:$4 sm:$0xff]  }
   0x3   :  { %2188 = vmatprep.subr.bf16.mxu0 %v3280_v1  ;;  %1886 = vmatpush1.bf16.msra.mxu1 %v3282_v2  ;;  %v3288_v6 = vld [vmem:[%s4922_s1 + $0x10] ss:$8 sps:$4 sm:$0xff]   ;;  %v3290_v8 = vld [vmem:[%s4922_s1 + $0x24] ss:$8 sps:$4 sm:$0xff]   ;;  %v3294_v10 = vld [vmem:[%s4922_s1 + $0x20] ss:$8 sps:$4 sm:$0xff]  }
   0x4   :  { %2189 = vmatpush1.bf16.msra.mxu0 %v3283_v3  ;;  %1887 = vmatprep.subr.bf16.mxu1 %v3284_v4  ;;  %v3289_v7 = vld [vmem:[%s4922_s1 + $0x310] ss:$8 sps:$4 sm:$0xff]   ;;  %v3292_v9 = vld [vmem:[%s4922_s1 + $0x324] ss:$8 sps:$4 sm:$0xff]   ;;  %v3295_v11 = vld [vmem:[%s4922_s1 + $0x320] ss:$8 sps:$4 sm:$0xff]  }
   0x5   :  { %2190 = vmatprep.subr.bf16.mxu0 %v3286_v5  ;;  %v3296_v12 = vld [vmem:[%s4922_s1 + $0x34] ss:$8 sps:$4 sm:$0xff]   ;;  %v3300_v14 = vld [vmem:[%s4922_s1 + $0x30] ss:$8 sps:$4 sm:$0xff]   ;;  %v3302_v16 = vld [vmem:[%s4922_s1 + $0x44] ss:$8 sps:$4 sm:$0xff]  }
   0x6   :  { %v3298_v13 = vld [vmem:[%s4922_s1 + $0x334] ss:$8 sps:$4 sm:$0xff]   ;;  %v3301_v15 = vld [vmem:[%s4922_s1 + $0x330] ss:$8 sps:$4 sm:$0xff]   ;;  %v3304_v17 = vld [vmem:[%s4922_s1 + $0x344] ss:$8 sps:$4 sm:$0xff]  }
   0x7   :  { %1888 = vmatpush1.bf16.msra.mxu1 %v3288_v6  ;;  %v3306_v18 = vld [vmem:[%s4922_s1 + $0x40] ss:$8 sps:$4 sm:$0xff]   ;;  %v3308_v20 = vld [vmem:[%s4922_s1 + $0x54] ss:$8 sps:$4 sm:$0xff]   ;;  %v3312_v22 = vld [vmem:[%s4922_s1 + $0x50] ss:$8 sps:$4 sm:$0xff]  }
   0x8   :  { %2191 = vmatpush1.bf16.msra.mxu0 %v3289_v7  ;;  %1889 = vmatprep.subr.bf16.mxu1 %v3290_v8  ;;  %v3307_v19 = vld [vmem:[%s4922_s1 + $0x340] ss:$8 sps:$4 sm:$0xff]   ;;  %v3310_v21 = vld [vmem:[%s4922_s1 + $0x354] ss:$8 sps:$4 sm:$0xff]   ;;  %v3313_v23 = vld [vmem:[%s4922_s1 + $0x350] ss:$8 sps:$4 sm:$0xff]  }
   0x9   :  { %2192 = vmatprep.subr.bf16.mxu0 %v3292_v9  ;;  %v3314_v24 = vld [vmem:[%s4922_s1 + $0x64] ss:$8 sps:$4 sm:$0xff]   ;;  %v3318_v26 = vld [vmem:[%s4922_s1 + $0x60] ss:$8 sps:$4 sm:$0xff]   ;;  %v3320_v28 = vld [vmem:[%s4922_s1 + $0x74] ss:$8 sps:$4 sm:$0xff]  }
   0xa   :  { %v3316_v25 = vld [vmem:[%s4922_s1 + $0x364] ss:$8 sps:$4 sm:$0xff]   ;;  %v3319_v27 = vld [vmem:[%s4922_s1 + $0x360] ss:$8 sps:$4 sm:$0xff]   ;;  %v3322_v29 = vld [vmem:[%s4922_s1 + $0x374] ss:$8 sps:$4 sm:$0xff]  }
   0xb   :  { %1890 = vmatpush1.bf16.msra.mxu1 %v3294_v10  ;;  %v3324_v30 = vld [vmem:[%s4922_s1 + $0x70] ss:$8 sps:$4 sm:$0xff]   ;;  %v3326_v32 = vld [vmem:[%s4922_s1 + $0x84] ss:$8 sps:$4 sm:$0xff]   ;;  %v3330_v34 = vld [vmem:[%s4922_s1 + $0x80] ss:$8 sps:$4 sm:$0xff]  }
   0xc   :  { %2193 = vmatpush1.bf16.msra.mxu0 %v3295_v11  ;;  %1891 = vmatprep.subr.bf16.mxu1 %v3296_v12  ;;  %v3325_v31 = vld [vmem:[%s4922_s1 + $0x370] ss:$8 sps:$4 sm:$0xff]   ;;  %v3328_v33 = vld [vmem:[%s4922_s1 + $0x384] ss:$8 sps:$4 sm:$0xff]   ;;  %v3331_v35 = vld [vmem:[%s4922_s1 + $0x380] ss:$8 sps:$4 sm:$0xff]  }
   0xd   :  { %2194 = vmatprep.subr.bf16.mxu0 %v3298_v13  ;;  %v3332_v36 = vld [vmem:[%s4922_s1 + $0x94] ss:$8 sps:$4 sm:$0xff]   ;;  %v3336_v38 = vld [vmem:[%s4922_s1 + $0x90] ss:$8 sps:$4 sm:$0xff]   ;;  %v3338_v40 = vld [vmem:[%s4922_s1 + $0xa4] ss:$8 sps:$4 sm:$0xff]  }
   0xe   :  { %v3334_v37 = vld [vmem:[%s4922_s1 + $0x394] ss:$8 sps:$4 sm:$0xff]   ;;  %v3337_v39 = vld [vmem:[%s4922_s1 + $0x390] ss:$8 sps:$4 sm:$0xff]   ;;  %v3340_v41 = vld [vmem:[%s4922_s1 + $0x3a4] ss:$8 sps:$4 sm:$0xff]  }
   0xf   :  { %1892 = vmatpush1.bf16.msra.mxu1 %v3300_v14  ;;  %v3342_v42 = vld [vmem:[%s4922_s1 + $0xa0] ss:$8 sps:$4 sm:$0xff]   ;;  %v3344_v44 = vld [vmem:[%s4922_s1 + $0xb4] ss:$8 sps:$4 sm:$0xff]   ;;  %v3348_v46 = vld [vmem:[%s4922_s1 + $0xb0] ss:$8 sps:$4 sm:$0xff]  }
  0x10   :  { %2195 = vmatpush1.bf16.msra.mxu0 %v3301_v15  ;;  %1893 = vmatprep.subr.bf16.mxu1 %v3302_v16  ;;  %v3343_v43 = vld [vmem:[%s4922_s1 + $0x3a0] ss:$8 sps:$4 sm:$0xff]   ;;  %v3346_v45 = vld [vmem:[%s4922_s1 + $0x3b4] ss:$8 sps:$4 sm:$0xff]   ;;  %v3349_v47 = vld [vmem:[%s4922_s1 + $0x3b0] ss:$8 sps:$4 sm:$0xff]  }
  0x11   :  { %2196 = vmatprep.subr.bf16.mxu0 %v3304_v17  ;;  %v3376_v48 = vld [vmem:[%s4923_s0 + $0x4] ss:$56 sps:$4 sm:$0xff]   ;;  %v3354_v52 = vld [vmem:[%s4922_s1 + $0xc0] ss:$8 sps:$4 sm:$0xff]   ;;  %v3360_v56 = vld [vmem:[%s4922_s1 + $0xd0] ss:$8 sps:$4 sm:$0xff]  }
  0x12   :  { %v3350_v49 = vld [vmem:[%s4922_s1 + $0xc4] ss:$8 sps:$4 sm:$0xff]   ;;  %1917 = vmatprep.mubr.bf16.mxu1 %v3376_v48  ;;  %v3382_v51 = vld [vmem:[%s4923_s0 + $0x1c] ss:$56 sps:$4 sm:$0xff]   ;;  %v3355_v53 = vld [vmem:[%s4922_s1 + $0x3c0] ss:$8 sps:$4 sm:$0xff]  }
  0x13   :  { %1894 = vmatpush1.bf16.msra.mxu1 %v3306_v18  ;;  %v3352_v50 = vld [vmem:[%s4922_s1 + $0x3c4] ss:$8 sps:$4 sm:$0xff]   ;;  %v3356_v54 = vld [vmem:[%s4922_s1 + $0xd4] ss:$8 sps:$4 sm:$0xff]   ;;  %2220 = vmatprep.mubr.bf16.mxu0 %v3382_v51  ;;  %v3361_v57 = vld [vmem:[%s4922_s1 + $0x3d0] ss:$8 sps:$4 sm:$0xff]  }
  0x14   :  { %2197 = vmatpush1.bf16.msra.mxu0 %v3307_v19  ;;  %1895 = vmatprep.subr.bf16.mxu1 %v3308_v20  ;;  %v3358_v55 = vld [vmem:[%s4922_s1 + $0x3d4] ss:$8 sps:$4 sm:$0xff]   ;;  %v3362_v58 = vld [vmem:[%s4922_s1 + $0xe4] ss:$8 sps:$4 sm:$0xff]   ;;  %v3366_v60 = vld [vmem:[%s4922_s1 + $0xe0] ss:$8 sps:$4 sm:$0xff]  }
  0x15   :  { %2198 = vmatprep.subr.bf16.mxu0 %v3310_v21  ;;  %v3364_v59 = vld [vmem:[%s4922_s1 + $0x3e4] ss:$8 sps:$4 sm:$0xff]   ;;  %v3367_v61 = vld [vmem:[%s4922_s1 + $0x3e0] ss:$8 sps:$4 sm:$0xff]   ;;  %v3368_v62 = vld [vmem:[%s4922_s1 + $0xf4] ss:$8 sps:$4 sm:$0xff]  }
  0x16   :  { %v3370_v63 = vld [vmem:[%s4922_s1 + $0x3f4] ss:$8 sps:$4 sm:$0xff]   ;;  %v3372_v0 = vld [vmem:[%s4922_s1 + $0xf0] ss:$8 sps:$4 sm:$0xff]   ;;  %v3379_v2 = vld [vmem:[%s4922_s1 + $0x104] ss:$8 sps:$4 sm:$0xff]  }
  0x17   :  { %1896 = vmatpush1.bf16.msra.mxu1 %v3312_v22  ;;  %v3373_v1 = vld [vmem:[%s4922_s1 + $0x3f0] ss:$8 sps:$4 sm:$0xff]   ;;  %v3385_v4 = vld [vmem:[%s4922_s1 + $0x404] ss:$8 sps:$4 sm:$0xff]   ;;  %v3377_v5 = vld [vmem:[%s4922_s1 + $0x100] ss:$8 sps:$4 sm:$0xff]  }
  0x18   :  { %2199 = vmatpush1.bf16.msra.mxu0 %v3313_v23  ;;  %1897 = vmatprep.subr.bf16.mxu1 %v3314_v24  ;;  %v3374_v3 = vld [vmem:[%s4923_s0] ss:$56 sps:$4 sm:$0xff]   ;;  %v3388_v8 = vld [vmem:[%s4922_s1 + $0x114] ss:$8 sps:$4 sm:$0xff]   ;;  %v3409_v11 = vld [vmem:[%s4923_s0 + $0x8c] ss:$56 sps:$4 sm:$0xff]  }
  0x19   :  { %2200 = vmatprep.subr.bf16.mxu0 %v3316_v25  ;;  %v3380_v6 = vld [vmem:[%s4923_s0 + $0x18] ss:$56 sps:$4 sm:$0xff]   ;;  %v3383_v7 = vld [vmem:[%s4922_s1 + $0x400] ss:$8 sps:$4 sm:$0xff]   ;;  %v3391_v9 = vld [vmem:[%s4922_s1 + $0x414] ss:$8 sps:$4 sm:$0xff]  }
  0x1a   :  { %v3404_v10 = vld [vmem:[%s4923_s0 + $0x74] ss:$56 sps:$4 sm:$0xff]   ;;  %v3386_v12 = vld [vmem:[%s4922_s1 + $0x110] ss:$8 sps:$4 sm:$0xff]   ;;  %v3392_v16 = vld [vmem:[%s4922_s1 + $0x120] ss:$8 sps:$4 sm:$0xff]  }
  0x1b   :  { %1898 = vmatpush1.bf16.msra.mxu1 %v3318_v26  ;;  %v3389_v13 = vld [vmem:[%s4922_s1 + $0x410] ss:$8 sps:$4 sm:$0xff]   ;;  %v3394_v14 = vld [vmem:[%s4922_s1 + $0x124] ss:$8 sps:$4 sm:$0xff]   ;;  %v3395_v17 = vld [vmem:[%s4922_s1 + $0x420] ss:$8 sps:$4 sm:$0xff]  }
  0x1c   :  { %2201 = vmatpush1.bf16.msra.mxu0 %v3319_v27  ;;  %1899 = vmatprep.subr.bf16.mxu1 %v3320_v28  ;;  %v3397_v15 = vld [vmem:[%s4922_s1 + $0x424] ss:$8 sps:$4 sm:$0xff]   ;;  %v3400_v18 = vld [vmem:[%s4922_s1 + $0x134] ss:$8 sps:$4 sm:$0xff]   ;;  %v3414_v19 = vld [vmem:[%s4923_s0 + $0x70] ss:$56 sps:$4 sm:$0xff]  }
  0x1d   :  { %2202 = vmatprep.subr.bf16.mxu0 %v3322_v29  ;;  %v3415_v20 = vld [vmem:[%s4923_s0 + $0x88] ss:$56 sps:$4 sm:$0xff]   ;;  %v3403_v21 = vld [vmem:[%s4922_s1 + $0x434] ss:$8 sps:$4 sm:$0xff]   ;;  %v3398_v24 = vld [vmem:[%s4922_s1 + $0x130] ss:$8 sps:$4 sm:$0xff]  }
  0x1e   :  { %v3422_v22 = vld [vmem:[%s4923_s0 + $0xe4] ss:$56 sps:$4 sm:$0xff]   ;;  %v3401_v25 = vld [vmem:[%s4922_s1 + $0x430] ss:$8 sps:$4 sm:$0xff]   ;;  %v3406_v28 = vld [vmem:[%s4922_s1 + $0x140] ss:$8 sps:$4 sm:$0xff]  }
  0x1f   :  { %1900 = vmatpush1.bf16.msra.mxu1 %v3324_v30  ;;  %v3427_v23 = vld [vmem:[%s4923_s0 + $0xfc] ss:$56 sps:$4 sm:$0xff]   ;;  %v3408_v26 = vld [vmem:[%s4922_s1 + $0x144] ss:$8 sps:$4 sm:$0xff]   ;;  %v3411_v29 = vld [vmem:[%s4922_s1 + $0x440] ss:$8 sps:$4 sm:$0xff]  }
  0x20   :  { %2203 = vmatpush1.bf16.msra.mxu0 %v3325_v31  ;;  %1901 = vmatprep.subr.bf16.mxu1 %v3326_v32  ;;  %v3413_v27 = vld [vmem:[%s4922_s1 + $0x444] ss:$8 sps:$4 sm:$0xff]   ;;  %v3418_v30 = vld [vmem:[%s4922_s1 + $0x154] ss:$8 sps:$4 sm:$0xff]   ;;  %v3432_v31 = vld [vmem:[%s4923_s0 + $0xe0] ss:$56 sps:$4 sm:$0xff]  }
  0x21   :  { %2204 = vmatprep.subr.bf16.mxu0 %v3328_v33  ;;  %v3433_v32 = vld [vmem:[%s4923_s0 + $0xf8] ss:$56 sps:$4 sm:$0xff]   ;;  %v3421_v33 = vld [vmem:[%s4922_s1 + $0x454] ss:$8 sps:$4 sm:$0xff]   ;;  %v3449_v51 = vld [vmem:[%s4922_s1 + $0x484] ss:$8 sps:$4 sm:$0xff]  }
  0x22   :  { %v3434_v48 = vld [vmem:[%s4922_s1 + $0x170] ss:$8 sps:$4 sm:$0xff]   ;;  %vm2758_vm4 = vmor %vm2757_vm3, %vm2756_vm2 }
  0x23   :  { %1902 = vmatpush1.bf16.msra.mxu1 %v3330_v34  ;;  %v3440_v34 = vld [vmem:[%s4923_s0 + $0x154] ss:$56 sps:$4 sm:$0xff]  }
  0x24   :  { %2205 = vmatpush1.bf16.msra.mxu0 %v3331_v35  ;;  %1903 = vmatprep.subr.bf16.mxu1 %v3332_v36  ;;  %v3445_v35 = vld [vmem:[%s4923_s0 + $0x16c] ss:$56 sps:$4 sm:$0xff]   ;;  %v3416_v36 = vld [vmem:[%s4922_s1 + $0x150] ss:$8 sps:$4 sm:$0xff]  }
  0x25   :  { %2206 = vmatprep.subr.bf16.mxu0 %v3334_v37  ;;  %v3419_v37 = vld [vmem:[%s4922_s1 + $0x450] ss:$8 sps:$4 sm:$0xff]  }
  0x27   :  { %1904 = vmatpush1.bf16.msra.mxu1 %v3336_v38  ;;  %v3426_v38 = vld [vmem:[%s4922_s1 + $0x164] ss:$8 sps:$4 sm:$0xff]  }
  0x28   :  { %2207 = vmatpush1.bf16.msra.mxu0 %v3337_v39  ;;  %1905 = vmatprep.subr.bf16.mxu1 %v3338_v40  ;;  %v3431_v39 = vld [vmem:[%s4922_s1 + $0x464] ss:$8 sps:$4 sm:$0xff]   ;;  %v3424_v40 = vld [vmem:[%s4922_s1 + $0x160] ss:$8 sps:$4 sm:$0xff]  }
  0x29   :  { %2208 = vmatprep.subr.bf16.mxu0 %v3340_v41  ;;  %v3429_v41 = vld [vmem:[%s4922_s1 + $0x460] ss:$8 sps:$4 sm:$0xff]  }
  0x2b   :  { %1906 = vmatpush1.bf16.msra.mxu1 %v3342_v42  ;;  %v3436_v42 = vld [vmem:[%s4922_s1 + $0x174] ss:$8 sps:$4 sm:$0xff]  }
  0x2c   :  { %2209 = vmatpush1.bf16.msra.mxu0 %v3343_v43  ;;  %1907 = vmatprep.subr.bf16.mxu1 %v3344_v44  ;;  %v3450_v43 = vld [vmem:[%s4923_s0 + $0x150] ss:$56 sps:$4 sm:$0xff]  }
  0x2d   :  { %2210 = vmatprep.subr.bf16.mxu0 %v3346_v45  ;;  %v3451_v44 = vld [vmem:[%s4923_s0 + $0x168] ss:$56 sps:$4 sm:$0xff]   ;;  %v3439_v45 = vld [vmem:[%s4922_s1 + $0x474] ss:$8 sps:$4 sm:$0xff]  }
  0x2f   :  { %1908 = vmatpush1.bf16.msra.mxu1 %v3348_v46  ;;  %v3458_v46 = vld [vmem:[%s4923_s0 + $0x1c4] ss:$56 sps:$4 sm:$0xff]  }
  0x30   :  { %2211 = vmatpush1.bf16.msra.mxu0 %v3349_v47  ;;  %1909 = vmatprep.subr.bf16.mxu1 %v3350_v49  ;;  %v3463_v47 = vld [vmem:[%s4923_s0 + $0x1dc] ss:$56 sps:$4 sm:$0xff]   ;;  %v3437_v49 = vld [vmem:[%s4922_s1 + $0x470] ss:$8 sps:$4 sm:$0xff]  }
  0x31   :  { %2212 = vmatprep.subr.bf16.mxu0 %v3352_v50  ;;  %v3444_v50 = vld [vmem:[%s4922_s1 + $0x184] ss:$8 sps:$4 sm:$0xff]  }
  0x33   :  { %1910 = vmatpush1.bf16.msra.mxu1 %v3354_v52  ;;  %v3442_v52 = vld [vmem:[%s4922_s1 + $0x180] ss:$8 sps:$4 sm:$0xff]  }
  0x34   :  { %2213 = vmatpush1.bf16.msra.mxu0 %v3355_v53  ;;  %1911 = vmatprep.subr.bf16.mxu1 %v3356_v54  ;;  %v3468_v53 = vld [vmem:[%s4923_s0 + $0x1c0] ss:$56 sps:$4 sm:$0xff]  }
  0x35   :  { %2214 = vmatprep.subr.bf16.mxu0 %v3358_v55  ;;  %v3469_v54 = vld [vmem:[%s4923_s0 + $0x1d8] ss:$56 sps:$4 sm:$0xff]   ;;  %v3447_v55 = vld [vmem:[%s4922_s1 + $0x480] ss:$8 sps:$4 sm:$0xff]  }
  0x37   :  { %1912 = vmatpush1.bf16.msra.mxu1 %v3360_v56  ;;  %v3454_v56 = vld [vmem:[%s4922_s1 + $0x194] ss:$8 sps:$4 sm:$0xff]  }
  0x38   :  { %2215 = vmatpush1.bf16.msra.mxu0 %v3361_v57  ;;  %1913 = vmatprep.subr.bf16.mxu1 %v3362_v58  ;;  %v3457_v57 = vld [vmem:[%s4922_s1 + $0x494] ss:$8 sps:$4 sm:$0xff]  }
  0x39   :  { %2216 = vmatprep.subr.bf16.mxu0 %v3364_v59  ;;  %v3476_v58 = vld [vmem:[%s4923_s0 + $0x234] ss:$56 sps:$4 sm:$0xff]   ;;  %v3452_v59 = vld [vmem:[%s4922_s1 + $0x190] ss:$8 sps:$4 sm:$0xff]  }
  0x3b   :  { %1914 = vmatpush1.bf16.msra.mxu1 %v3366_v60  ;;  %v3481_v60 = vld [vmem:[%s4923_s0 + $0x24c] ss:$56 sps:$4 sm:$0xff]  }
  0x3c   :  { %2217 = vmatpush1.bf16.msra.mxu0 %v3367_v61  ;;  %1915 = vmatprep.subr.bf16.mxu1 %v3368_v62  ;;  %v3455_v61 = vld [vmem:[%s4922_s1 + $0x490] ss:$8 sps:$4 sm:$0xff]   ;;  %v3462_v62 = vld [vmem:[%s4922_s1 + $0x1a4] ss:$8 sps:$4 sm:$0xff]  }
  0x3d   :  { %2218 = vmatprep.subr.bf16.mxu0 %v3370_v63  ;;  %v3467_v63 = vld [vmem:[%s4922_s1 + $0x4a4] ss:$8 sps:$4 sm:$0xff]  }
  0x3f   :  { %1916 = vmatpush1.bf16.msra.mxu1 %v3372_v0  ;;  %v3486_v0 = vld [vmem:[%s4923_s0 + $0x230] ss:$56 sps:$4 sm:$0xff]  }
  0x40   :  { %2219 = vmatpush1.bf16.msra.mxu0 %v3373_v1  ;;  %1986 = vmatprep.subr.bf16.mxu1 %v3379_v2  ;;  %v3487_v1 = vld [vmem:[%s4923_s0 + $0x248] ss:$56 sps:$4 sm:$0xff]  }
  0x41   :  { %2289 = vmatprep.subr.bf16.mxu0 %v3385_v4  ;;  %v98_v2 = vld [vmem:[%s4923_s0 + $0x2a0] sm:$0xff] }
  0x42   :  { %1918 = vmatmul.mubr.bf16.vlgmr.msra.gmra.mrb[0].mxu1 %v3374_v3  ;;  %v101_v3 = vld [vmem:[%s4923_s0 + $0x2b8] sm:$0xff]  ;;  %v3460_v4 = vld [vmem:[%s4922_s1 + $0x1a0] ss:$8 sps:$4 sm:$0xff]  }
  0x43   :  { %2221 = vmatmul.mubr.bf16.vlgmr.msra.gmra.mrb[0].mxu0 %v3380_v6  ;;  %1987 = vmatpush1.bf16.msra.mxu1 %v3377_v5  ;;  %v3465_v5 = vld [vmem:[%s4922_s1 + $0x4a0] ss:$8 sps:$4 sm:$0xff]   ;;  %v3472_v6 = vld [vmem:[%s4922_s1 + $0x1b4] ss:$8 sps:$4 sm:$0xff]  }
  0x44   :  { %2290 = vmatpush1.bf16.msra.mxu0 %v3383_v7  ;;  %1988 = vmatprep.subr.bf16.mxu1 %v3388_v8  ;;  %v3475_v7 = vld [vmem:[%s4922_s1 + $0x4b4] ss:$8 sps:$4 sm:$0xff]   ;;  %v2853_v8 = vcombine.high %v98_v2, %v98_v2 }
  0x45   :  { %2291 = vmatprep.subr.bf16.mxu0 %v3391_v9  ;;  %1927 = vmatprep.mubr.bf16.mxu1 %v3404_v10  ;;  %v2859_v9 = vcombine.high %v101_v3, %v101_v3  ;;  %v3470_v10 = vld [vmem:[%s4922_s1 + $0x1b0] ss:$8 sps:$4 sm:$0xff]  }
  0x46   :  { %2230 = vmatprep.mubr.bf16.mxu0 %v3409_v11  ;;  %v3473_v11 = vld [vmem:[%s4922_s1 + $0x4b0] ss:$8 sps:$4 sm:$0xff]  }
  0x47   :  { %1989 = vmatpush1.bf16.msra.mxu1 %v3386_v12  ;;  %v3480_v12 = vld [vmem:[%s4922_s1 + $0x1c4] ss:$8 sps:$4 sm:$0xff]  }
  0x48   :  { %2292 = vmatpush1.bf16.msra.mxu0 %v3389_v13  ;;  %1990 = vmatprep.subr.bf16.mxu1 %v3394_v14  ;;  %v3485_v13 = vld [vmem:[%s4922_s1 + $0x4c4] ss:$8 sps:$4 sm:$0xff]   ;;  %v3478_v14 = vld [vmem:[%s4922_s1 + $0x1c0] ss:$8 sps:$4 sm:$0xff]  }
  0x49   :  { %2293 = vmatprep.subr.bf16.mxu0 %v3397_v15  ;;  %v2852_v15 = vcombine.low %v98_v2, %v98_v2  ;;  %v3552_v2 = vld [vmem:[%s4922_s1 + $0x250] ss:$8 sps:$4 sm:$0xff]  }
  0x4a   :  { %1928 = vmatmul.mubr.bf16.gmra.mrb[4].mxu1 %v3414_v19  ;;  %v3493_v19 = vld [vmem:[%s4922_s1 + $0x4d4] ss:$8 sps:$4 sm:$0xff]  }
  0x4b   :  { %2231 = vmatmul.mubr.bf16.gmra.mrb[4].mxu0 %v3415_v20  ;;  %1991 = vmatpush1.bf16.msra.mxu1 %v3392_v16  ;;  %v2858_v16 = vcombine.low %v101_v3, %v101_v3  ;;  %v3512_v20 = vld [vmem:[%s4923_s0 + $0xc] ss:$56 sps:$4 sm:$0xff]   ;;  %v3555_v3 = vld [vmem:[%s4922_s1 + $0x550] ss:$8 sps:$4 sm:$0xff]  }
  0x4c   :  { %2294 = vmatpush1.bf16.msra.mxu0 %v3395_v17  ;;  %1992 = vmatprep.subr.bf16.mxu1 %v3400_v18  ;;  %v3483_v17 = vld [vmem:[%s4922_s1 + $0x4c0] ss:$8 sps:$4 sm:$0xff]   ;;  %v3490_v18 = vld [vmem:[%s4922_s1 + $0x1d4] ss:$8 sps:$4 sm:$0xff]  }
  0x4d   :  { %2295 = vmatprep.subr.bf16.mxu0 %v3403_v21  ;;  %1937 = vmatprep.mubr.bf16.mxu1 %v3422_v22  ;;  %v3518_v21 = vld [vmem:[%s4923_s0 + $0x24] ss:$56 sps:$4 sm:$0xff]   ;;  %v3488_v22 = vld [vmem:[%s4922_s1 + $0x1d0] ss:$8 sps:$4 sm:$0xff]  }
  0x4e   :  { %2240 = vmatprep.mubr.bf16.mxu0 %v3427_v23  ;;  %v3491_v23 = vld [vmem:[%s4922_s1 + $0x4d0] ss:$8 sps:$4 sm:$0xff]  }
  0x4f   :  { %1993 = vmatpush1.bf16.msra.mxu1 %v3398_v24  ;;  %v3497_v24 = vld [vmem:[%s4922_s1 + $0x1e4] ss:$8 sps:$4 sm:$0xff]  }
  0x50   :  { %2296 = vmatpush1.bf16.msra.mxu0 %v3401_v25  ;;  %1994 = vmatprep.subr.bf16.mxu1 %v3408_v26  ;;  %v3501_v25 = vld [vmem:[%s4922_s1 + $0x4e4] ss:$8 sps:$4 sm:$0xff]   ;;  %v3495_v26 = vld [vmem:[%s4922_s1 + $0x1e0] ss:$8 sps:$4 sm:$0xff]  }
  0x51   :  { %2297 = vmatprep.subr.bf16.mxu0 %v3413_v27  ;;  %v3499_v27 = vld [vmem:[%s4922_s1 + $0x4e0] ss:$8 sps:$4 sm:$0xff]  }
  0x52   :  { %1938 = vmatmul.mubr.bf16.gmra.mrb[8].mxu1 %v3432_v31  ;;  %v3507_v31 = vld [vmem:[%s4922_s1 + $0x4f0] ss:$8 sps:$4 sm:$0xff]  }
  0x53   :  { %2241 = vmatmul.mubr.bf16.gmra.mrb[8].mxu0 %v3433_v32  ;;  %1995 = vmatpush1.bf16.msra.mxu1 %v3406_v28  ;;  %v3506_v28 = vld [vmem:[%s4922_s1 + $0x1f4] ss:$8 sps:$4 sm:$0xff]   ;;  %v3515_v32 = vld [vmem:[%s4922_s1 + $0x204] ss:$8 sps:$4 sm:$0xff]  }
  0x54   :  { %2298 = vmatpush1.bf16.msra.mxu0 %v3411_v29  ;;  %1996 = vmatprep.subr.bf16.mxu1 %v3418_v30  ;;  %v3509_v29 = vld [vmem:[%s4922_s1 + $0x4f4] ss:$8 sps:$4 sm:$0xff]   ;;  %v3504_v30 = vld [vmem:[%s4922_s1 + $0x1f0] ss:$8 sps:$4 sm:$0xff]  }
  0x55   :  { %2299 = vmatprep.subr.bf16.mxu0 %v3421_v33  ;;  %1947 = vmatprep.mubr.bf16.mxu1 %v3440_v34  ;;  %v3521_v33 = vld [vmem:[%s4922_s1 + $0x504] ss:$8 sps:$4 sm:$0xff]   ;;  %v3510_v34 = vld [vmem:[%s4923_s0 + $0x8] ss:$56 sps:$4 sm:$0xff]  }
  0x56   :  { %2250 = vmatprep.mubr.bf16.mxu0 %v3445_v35  ;;  %v3513_v35 = vld [vmem:[%s4922_s1 + $0x200] ss:$8 sps:$4 sm:$0xff]  }
  0x57   :  { %1997 = vmatpush1.bf16.msra.mxu1 %v3416_v36  ;;  %v3516_v36 = vld [vmem:[%s4923_s0 + $0x20] ss:$56 sps:$4 sm:$0xff]  }
  0x58   :  { %2300 = vmatpush1.bf16.msra.mxu0 %v3419_v37  ;;  %1998 = vmatprep.subr.bf16.mxu1 %v3426_v38  ;;  %v3519_v37 = vld [vmem:[%s4922_s1 + $0x500] ss:$8 sps:$4 sm:$0xff]   ;;  %v3524_v38 = vld [vmem:[%s4922_s1 + $0x214] ss:$8 sps:$4 sm:$0xff]  }
  0x59   :  { %2301 = vmatprep.subr.bf16.mxu0 %v3431_v39  ;;  %v3527_v39 = vld [vmem:[%s4922_s1 + $0x514] ss:$8 sps:$4 sm:$0xff]  }
  0x5a   :  { %1948 = vmatmul.mubr.bf16.gmra.mrb[12].mxu1 %v3450_v43  ;;  %v3525_v43 = vld [vmem:[%s4922_s1 + $0x510] ss:$8 sps:$4 sm:$0xff]  }
  0x5b   :  { %2251 = vmatmul.mubr.bf16.gmra.mrb[12].mxu0 %v3451_v44  ;;  %1999 = vmatpush1.bf16.msra.mxu1 %v3424_v40  ;;  %v3540_v40 = vld [vmem:[%s4923_s0 + $0x7c] ss:$56 sps:$4 sm:$0xff]   ;;  %v3530_v44 = vld [vmem:[%s4922_s1 + $0x224] ss:$8 sps:$4 sm:$0xff]  }
  0x5c   :  { %2302 = vmatpush1.bf16.msra.mxu0 %v3429_v41  ;;  %2000 = vmatprep.subr.bf16.mxu1 %v3436_v42  ;;  %v3542_v41 = vld [vmem:[%s4923_s0 + $0x94] ss:$56 sps:$4 sm:$0xff]   ;;  %v3522_v42 = vld [vmem:[%s4922_s1 + $0x210] ss:$8 sps:$4 sm:$0xff]  }
  0x5d   :  { %2303 = vmatprep.subr.bf16.mxu0 %v3439_v45  ;;  %1957 = vmatprep.mubr.bf16.mxu1 %v3458_v46  ;;  %v3533_v45 = vld [vmem:[%s4922_s1 + $0x524] ss:$8 sps:$4 sm:$0xff]   ;;  %v3528_v46 = vld [vmem:[%s4922_s1 + $0x220] ss:$8 sps:$4 sm:$0xff]  }
  0x5e   :  { %2260 = vmatprep.mubr.bf16.mxu0 %v3463_v47  ;;  %v3544_v47 = vld [vmem:[%s4923_s0 + $0x78] ss:$56 sps:$4 sm:$0xff]  }
  0x5f   :  { %2001 = vmatpush1.bf16.msra.mxu1 %v3434_v48  ;;  %v3548_v48 = vld [vmem:[%s4923_s0 + $0x90] ss:$56 sps:$4 sm:$0xff]  }
  0x60   :  { %2304 = vmatpush1.bf16.msra.mxu0 %v3437_v49  ;;  %2002 = vmatprep.subr.bf16.mxu1 %v3444_v50  ;;  %v3531_v49 = vld [vmem:[%s4922_s1 + $0x520] ss:$8 sps:$4 sm:$0xff]   ;;  %v3536_v50 = vld [vmem:[%s4922_s1 + $0x234] ss:$8 sps:$4 sm:$0xff]  }
  0x61   :  { %2305 = vmatprep.subr.bf16.mxu0 %v3449_v51  ;;  %v3539_v51 = vld [vmem:[%s4922_s1 + $0x534] ss:$8 sps:$4 sm:$0xff]  }
  0x62   :  { %1958 = vmatmul.mubr.bf16.gmra.mrb[16].mxu1 %v3468_v53  ;;  %v3560_v53 = vld [vmem:[%s4923_s0 + $0x104] ss:$56 sps:$4 sm:$0xff]  }
  0x63   :  { %2261 = vmatmul.mubr.bf16.gmra.mrb[16].mxu0 %v3469_v54  ;;  %2003 = vmatpush1.bf16.msra.mxu1 %v3442_v52  ;;  %v3558_v52 = vld [vmem:[%s4923_s0 + $0xec] ss:$56 sps:$4 sm:$0xff]   ;;  %v3534_v54 = vld [vmem:[%s4922_s1 + $0x230] ss:$8 sps:$4 sm:$0xff]  }
  0x64   :  { %2306 = vmatpush1.bf16.msra.mxu0 %v3447_v55  ;;  %2004 = vmatprep.subr.bf16.mxu1 %v3454_v56  ;;  %v3537_v55 = vld [vmem:[%s4922_s1 + $0x530] ss:$8 sps:$4 sm:$0xff]   ;;  %v3547_v56 = vld [vmem:[%s4922_s1 + $0x244] ss:$8 sps:$4 sm:$0xff]  }
  0x65   :  { %2307 = vmatprep.subr.bf16.mxu0 %v3457_v57  ;;  %1967 = vmatprep.mubr.bf16.mxu1 %v3476_v58  ;;  %v3551_v57 = vld [vmem:[%s4922_s1 + $0x544] ss:$8 sps:$4 sm:$0xff]   ;;  %v3545_v58 = vld [vmem:[%s4922_s1 + $0x240] ss:$8 sps:$4 sm:$0xff]  }
  0x66   :  { %2270 = vmatprep.mubr.bf16.mxu0 %v3481_v60  ;;  %v3566_v60 = vld [vmem:[%s4923_s0 + $0x100] ss:$56 sps:$4 sm:$0xff]  }
  0x67   :  { %2005 = vmatpush1.bf16.msra.mxu1 %v3452_v59  ;;  %v3562_v59 = vld [vmem:[%s4923_s0 + $0xe8] ss:$56 sps:$4 sm:$0xff]  }
  0x68   :  { %2308 = vmatpush1.bf16.msra.mxu0 %v3455_v61  ;;  %2006 = vmatprep.subr.bf16.mxu1 %v3462_v62  ;;  %v3549_v61 = vld [vmem:[%s4922_s1 + $0x540] ss:$8 sps:$4 sm:$0xff]   ;;  %v3554_v62 = vld [vmem:[%s4922_s1 + $0x254] ss:$8 sps:$4 sm:$0xff]  }
  0x69   :  { %2309 = vmatprep.subr.bf16.mxu0 %v3467_v63  ;;  %v3557_v63 = vld [vmem:[%s4922_s1 + $0x554] ss:$8 sps:$4 sm:$0xff]  }
  0x6a   :  { %1968 = vmatmul.mubr.bf16.gmra.mrb[20].mxu1 %v3486_v0  ;;  %v3576_v0 = vld [vmem:[%s4923_s0 + $0x15c] ss:$56 sps:$4 sm:$0xff]  }
  0x6b   :  { %2271 = vmatmul.mubr.bf16.gmra.mrb[20].mxu0 %v3487_v1  ;;  %2007 = vmatpush1.bf16.msra.mxu1 %v3460_v4  ;;  %v3578_v1 = vld [vmem:[%s4923_s0 + $0x174] ss:$56 sps:$4 sm:$0xff]  }
  0x6c   :  { %2310 = vmatpush1.bf16.msra.mxu0 %v3465_v5  ;;  %2008 = vmatprep.subr.bf16.mxu1 %v3472_v6  ;;  %v3565_v4 = vld [vmem:[%s4922_s1 + $0x264] ss:$8 sps:$4 sm:$0xff]   ;;  %v3563_v6 = vld [vmem:[%s4922_s1 + $0x260] ss:$8 sps:$4 sm:$0xff]  }
  0x6d   :  { %2311 = vmatprep.subr.bf16.mxu0 %v3475_v7  ;;  %1977 = vmatprep.mubr.bf16.mxu1 %v2853_v8  ;;  %v3569_v5 = vld [vmem:[%s4922_s1 + $0x564] ss:$8 sps:$4 sm:$0xff]   ;;  %v3580_v7 = vld [vmem:[%s4923_s0 + $0x158] ss:$56 sps:$4 sm:$0xff]  }
  0x6e   :  { %2280 = vmatprep.mubr.bf16.mxu0 %v2859_v9  ;;  %v3584_v8 = vld [vmem:[%s4923_s0 + $0x170] ss:$56 sps:$4 sm:$0xff]  }
  0x6f   :  { %2009 = vmatpush1.bf16.msra.mxu1 %v3470_v10  ;;  %v3567_v9 = vld [vmem:[%s4922_s1 + $0x560] ss:$8 sps:$4 sm:$0xff]   ;;  %v3572_v10 = vld [vmem:[%s4922_s1 + $0x274] ss:$8 sps:$4 sm:$0xff]  }
  0x70   :  { %2312 = vmatpush1.bf16.msra.mxu0 %v3473_v11  ;;  %2010 = vmatprep.subr.bf16.mxu1 %v3480_v12  ;;  %v3575_v11 = vld [vmem:[%s4922_s1 + $0x574] ss:$8 sps:$4 sm:$0xff]   ;;  %v3594_v12 = vld [vmem:[%s4923_s0 + $0x1cc] ss:$56 sps:$4 sm:$0xff]  }
  0x71   :  { %2313 = vmatprep.subr.bf16.mxu0 %v3485_v13  ;;  %v3596_v13 = vld [vmem:[%s4923_s0 + $0x1e4] ss:$56 sps:$4 sm:$0xff]  }
  0x72   :  { %1978 = vmatmul.mubr.bf16.gmra.mrb[24].mxu1 %v2852_v15  ;;  %v3573_v15 = vld [vmem:[%s4922_s1 + $0x570] ss:$8 sps:$4 sm:$0xff]  }
  0x73   :  { %2281 = vmatmul.mubr.bf16.gmra.mrb[24].mxu0 %v2858_v16  ;;  %2011 = vmatpush1.bf16.msra.mxu1 %v3478_v14  ;;  %v3570_v14 = vld [vmem:[%s4922_s1 + $0x270] ss:$8 sps:$4 sm:$0xff]   ;;  %v3583_v16 = vld [vmem:[%s4922_s1 + $0x284] ss:$8 sps:$4 sm:$0xff]  }
  0x74   :  { %2314 = vmatpush1.bf16.msra.mxu0 %v3483_v17  ;;  %2012 = vmatprep.subr.bf16.mxu1 %v3490_v18  ;;  %v3587_v17 = vld [vmem:[%s4922_s1 + $0x584] ss:$8 sps:$4 sm:$0xff]   ;;  %v3581_v18 = vld [vmem:[%s4922_s1 + $0x280] ss:$8 sps:$4 sm:$0xff]  }
  0x75   :  { %2315 = vmatprep.subr.bf16.mxu0 %v3493_v19  ;;  %2018 = vmatprep.mubr.bf16.mxu1 %v3512_v20  ;;  %v3585_v19 = vld [vmem:[%s4922_s1 + $0x580] ss:$8 sps:$4 sm:$0xff]  }
  0x76   :  { %2321 = vmatprep.mubr.bf16.mxu0 %v3518_v21  ;;  %v3598_v20 = vld [vmem:[%s4923_s0 + $0x1c8] ss:$56 sps:$4 sm:$0xff]  }
  0x77   :  { %2013 = vmatpush1.bf16.msra.mxu1 %v3488_v22  ;;  %v3602_v21 = vld [vmem:[%s4923_s0 + $0x1e0] ss:$56 sps:$4 sm:$0xff]   ;;  %v3590_v22 = vld [vmem:[%s4922_s1 + $0x294] ss:$8 sps:$4 sm:$0xff]  }
  0x78   :  { %2316 = vmatpush1.bf16.msra.mxu0 %v3491_v23  ;;  %2014 = vmatprep.subr.bf16.mxu1 %v3497_v24  ;;  %v3593_v23 = vld [vmem:[%s4922_s1 + $0x594] ss:$8 sps:$4 sm:$0xff]   ;;  %v3588_v24 = vld [vmem:[%s4922_s1 + $0x290] ss:$8 sps:$4 sm:$0xff]  }
  0x79   :  { %2317 = vmatprep.subr.bf16.mxu0 %v3501_v25  ;;  %v3612_v25 = vld [vmem:[%s4923_s0 + $0x23c] ss:$56 sps:$4 sm:$0xff]  }
  0x7b   :  { %2015 = vmatpush1.bf16.msra.mxu1 %v3495_v26  ;;  %v3614_v26 = vld [vmem:[%s4923_s0 + $0x254] ss:$56 sps:$4 sm:$0xff]  }
  0x7c   :  { %2318 = vmatpush1.bf16.msra.mxu0 %v3499_v27  ;;  %2016 = vmatprep.subr.bf16.mxu1 %v3506_v28  ;;  %v3591_v27 = vld [vmem:[%s4922_s1 + $0x590] ss:$8 sps:$4 sm:$0xff]   ;;  %v3601_v28 = vld [vmem:[%s4922_s1 + $0x2a4] ss:$8 sps:$4 sm:$0xff]  }
  0x7d   :  { %2319 = vmatprep.subr.bf16.mxu0 %v3509_v29  ;;  %v3605_v29 = vld [vmem:[%s4922_s1 + $0x5a4] ss:$8 sps:$4 sm:$0xff]  }
  0x7f   :  { %2017 = vmatpush1.bf16.msra.mxu1 %v3504_v30  ;;  %v3616_v30 = vld [vmem:[%s4923_s0 + $0x238] ss:$56 sps:$4 sm:$0xff]  }
  0x80   :  { %2320 = vmatpush1.bf16.msra.mxu0 %v3507_v31  ;;  %2087 = vmatprep.subr.bf16.mxu1 %v3515_v32  ;;  %v3599_v31 = vld [vmem:[%s4922_s1 + $0x2a0] ss:$8 sps:$4 sm:$0xff]  }
  0x81   :  { %2390 = vmatprep.subr.bf16.mxu0 %v3521_v33  ;;  %v3620_v32 = vld [vmem:[%s4923_s0 + $0x250] ss:$56 sps:$4 sm:$0xff]  }
  0x82   :  { %2019 = vmatmul.mubr.bf16.vlgmr.msra.gmra.mrb[0].mxu1 %v3510_v34  ;;  %v99_v33 = vld [vmem:[%s4923_s0 + $0x2a8] sm:$0xff]  ;;  %v102_v34 = vld [vmem:[%s4923_s0 + $0x2c0] sm:$0xff] }
  0x83   :  { %2322 = vmatmul.mubr.bf16.vlgmr.msra.gmra.mrb[0].mxu0 %v3516_v36  ;;  %2088 = vmatpush1.bf16.msra.mxu1 %v3513_v35  ;;  %v3603_v35 = vld [vmem:[%s4922_s1 + $0x5a0] ss:$8 sps:$4 sm:$0xff]   ;;  %v3608_v36 = vld [vmem:[%s4922_s1 + $0x2b4] ss:$8 sps:$4 sm:$0xff]  }
  0x84   :  { %2391 = vmatpush1.bf16.msra.mxu0 %v3519_v37  ;;  %2089 = vmatprep.subr.bf16.mxu1 %v3524_v38  ;;  %v3611_v37 = vld [vmem:[%s4922_s1 + $0x5b4] ss:$8 sps:$4 sm:$0xff]   ;;  %v2855_v38 = vcombine.high %v99_v33, %v99_v33 }
  0x85   :  { %2392 = vmatprep.subr.bf16.mxu0 %v3527_v39  ;;  %2028 = vmatprep.mubr.bf16.mxu1 %v3540_v40  ;;  %v2861_v39 = vcombine.high %v102_v34, %v102_v34  ;;  %v3606_v40 = vld [vmem:[%s4922_s1 + $0x2b0] ss:$8 sps:$4 sm:$0xff]  }
  0x86   :  { %2331 = vmatprep.mubr.bf16.mxu0 %v3542_v41  ;;  %v3609_v41 = vld [vmem:[%s4922_s1 + $0x5b0] ss:$8 sps:$4 sm:$0xff]  }
  0x87   :  { %2090 = vmatpush1.bf16.msra.mxu1 %v3522_v42  ;;  %v3619_v42 = vld [vmem:[%s4922_s1 + $0x2c4] ss:$8 sps:$4 sm:$0xff]  }
  0x88   :  { %2393 = vmatpush1.bf16.msra.mxu0 %v3525_v43  ;;  %2091 = vmatprep.subr.bf16.mxu1 %v3530_v44  ;;  %v3623_v43 = vld [vmem:[%s4922_s1 + $0x5c4] ss:$8 sps:$4 sm:$0xff]   ;;  %v3617_v44 = vld [vmem:[%s4922_s1 + $0x2c0] ss:$8 sps:$4 sm:$0xff]  }
  0x89   :  { %2394 = vmatprep.subr.bf16.mxu0 %v3533_v45  ;;  %v3621_v45 = vld [vmem:[%s4922_s1 + $0x5c0] ss:$8 sps:$4 sm:$0xff]  }
  0x8a   :  { %2029 = vmatmul.mubr.bf16.gmra.mrb[4].mxu1 %v3544_v47  ;;  %v2860_v47 = vcombine.low %v102_v34, %v102_v34  ;;  %v3700_v34 = vld [vmem:[%s4922_s1 + $0x680] ss:$8 sps:$4 sm:$0xff]  }
  0x8b   :  { %2332 = vmatmul.mubr.bf16.gmra.mrb[4].mxu0 %v3548_v48  ;;  %2092 = vmatpush1.bf16.msra.mxu1 %v3528_v46  ;;  %v2854_v46 = vcombine.low %v99_v33, %v99_v33  ;;  %v3626_v48 = vld [vmem:[%s4922_s1 + $0x2d4] ss:$8 sps:$4 sm:$0xff]  }
  0x8c   :  { %2395 = vmatpush1.bf16.msra.mxu0 %v3531_v49  ;;  %2093 = vmatprep.subr.bf16.mxu1 %v3536_v50  ;;  %v3629_v49 = vld [vmem:[%s4922_s1 + $0x5d4] ss:$8 sps:$4 sm:$0xff]  }
  0x8d   :  { %2396 = vmatprep.subr.bf16.mxu0 %v3539_v51  ;;  %2038 = vmatprep.mubr.bf16.mxu1 %v3558_v52  ;;  %v3648_v50 = vld [vmem:[%s4923_s0 + $0x14] ss:$56 sps:$4 sm:$0xff]   ;;  %v3624_v52 = vld [vmem:[%s4922_s1 + $0x2d0] ss:$8 sps:$4 sm:$0xff]   ;;  %v3703_v33 = vld [vmem:[%s4923_s0 + $0x244] ss:$56 sps:$4 sm:$0xff]  }
  0x8e   :  { %2341 = vmatprep.mubr.bf16.mxu0 %v3560_v53  ;;  %v3651_v51 = vld [vmem:[%s4923_s0 + $0x2c] ss:$56 sps:$4 sm:$0xff]   ;;  %v3627_v53 = vld [vmem:[%s4922_s1 + $0x5d0] ss:$8 sps:$4 sm:$0xff]  }
  0x8f   :  { %2094 = vmatpush1.bf16.msra.mxu1 %v3534_v54  ;;  %v3635_v54 = vld [vmem:[%s4922_s1 + $0x2e4] ss:$8 sps:$4 sm:$0xff]  }
  0x90   :  { %2397 = vmatpush1.bf16.msra.mxu0 %v3537_v55  ;;  %2095 = vmatprep.subr.bf16.mxu1 %v3547_v56  ;;  %v3639_v55 = vld [vmem:[%s4922_s1 + $0x5e4] ss:$8 sps:$4 sm:$0xff]   ;;  %v3633_v56 = vld [vmem:[%s4922_s1 + $0x2e0] ss:$8 sps:$4 sm:$0xff]  }
  0x91   :  { %2398 = vmatprep.subr.bf16.mxu0 %v3551_v57  ;;  %v3637_v57 = vld [vmem:[%s4922_s1 + $0x5e0] ss:$8 sps:$4 sm:$0xff]  }
  0x92   :  { %2039 = vmatmul.mubr.bf16.gmra.mrb[8].mxu1 %v3562_v59  ;;  %v3645_v59 = vld [vmem:[%s4922_s1 + $0x5f4] ss:$8 sps:$4 sm:$0xff]  }
  0x93   :  { %2342 = vmatmul.mubr.bf16.gmra.mrb[8].mxu0 %v3566_v60  ;;  %2096 = vmatpush1.bf16.msra.mxu1 %v3545_v58  ;;  %v3642_v58 = vld [vmem:[%s4922_s1 + $0x2f4] ss:$8 sps:$4 sm:$0xff]   ;;  %v3640_v60 = vld [vmem:[%s4922_s1 + $0x2f0] ss:$8 sps:$4 sm:$0xff]  }
  0x94   :  { %2399 = vmatpush1.bf16.msra.mxu0 %v3549_v61  ;;  %2097 = vmatprep.subr.bf16.mxu1 %v3554_v62  ;;  %v3643_v61 = vld [vmem:[%s4922_s1 + $0x5f0] ss:$8 sps:$4 sm:$0xff]   ;;  %v3654_v62 = vld [vmem:[%s4922_s1 + $0x604] ss:$8 sps:$4 sm:$0xff]  }
  0x95   :  { %2400 = vmatprep.subr.bf16.mxu0 %v3557_v63  ;;  %2048 = vmatprep.mubr.bf16.mxu1 %v3576_v0  ;;  %v3646_v63 = vld [vmem:[%s4923_s0 + $0x10] ss:$56 sps:$4 sm:$0xff]  }
  0x96   :  { %2351 = vmatprep.mubr.bf16.mxu0 %v3578_v1  ;;  %v3649_v0 = vld [vmem:[%s4923_s0 + $0x28] ss:$56 sps:$4 sm:$0xff]  }
  0x97   :  { %2098 = vmatpush1.bf16.msra.mxu1 %v3552_v2  ;;  %v3652_v1 = vld [vmem:[%s4922_s1 + $0x600] ss:$8 sps:$4 sm:$0xff]   ;;  %v3658_v2 = vld [vmem:[%s4923_s0 + $0x84] ss:$56 sps:$4 sm:$0xff]  }
  0x98   :  { %2401 = vmatpush1.bf16.msra.mxu0 %v3555_v3  ;;  %2099 = vmatprep.subr.bf16.mxu1 %v3565_v4  ;;  %v3657_v3 = vld [vmem:[%s4922_s1 + $0x614] ss:$8 sps:$4 sm:$0xff]  }
  0x99   :  { %2402 = vmatprep.subr.bf16.mxu0 %v3569_v5  ;;  %v3660_v4 = vld [vmem:[%s4923_s0 + $0x9c] ss:$56 sps:$4 sm:$0xff]   ;;  %v3655_v5 = vld [vmem:[%s4922_s1 + $0x610] ss:$8 sps:$4 sm:$0xff]  }
  0x9a   :  { %2049 = vmatmul.mubr.bf16.gmra.mrb[12].mxu1 %v3580_v7  ;;  %v3662_v7 = vld [vmem:[%s4923_s0 + $0x80] ss:$56 sps:$4 sm:$0xff]  }
  0x9b   :  { %2352 = vmatmul.mubr.bf16.gmra.mrb[12].mxu0 %v3584_v8  ;;  %2100 = vmatpush1.bf16.msra.mxu1 %v3563_v6  ;;  %v3666_v6 = vld [vmem:[%s4922_s1 + $0x624] ss:$8 sps:$4 sm:$0xff]   ;;  %v3663_v8 = vld [vmem:[%s4923_s0 + $0x98] ss:$56 sps:$4 sm:$0xff]  }
  0x9c   :  { %2403 = vmatpush1.bf16.msra.mxu0 %v3567_v9  ;;  %2101 = vmatprep.subr.bf16.mxu1 %v3572_v10  ;;  %v3664_v9 = vld [vmem:[%s4922_s1 + $0x620] ss:$8 sps:$4 sm:$0xff]   ;;  %v3669_v10 = vld [vmem:[%s4922_s1 + $0x634] ss:$8 sps:$4 sm:$0xff]  }
  0x9d   :  { %2404 = vmatprep.subr.bf16.mxu0 %v3575_v11  ;;  %2058 = vmatprep.mubr.bf16.mxu1 %v3594_v12  ;;  %v3670_v11 = vld [vmem:[%s4923_s0 + $0xf4] ss:$56 sps:$4 sm:$0xff]  }
  0x9e   :  { %2361 = vmatprep.mubr.bf16.mxu0 %v3596_v13  ;;  %v3672_v12 = vld [vmem:[%s4923_s0 + $0x10c] ss:$56 sps:$4 sm:$0xff]   ;;  %v3667_v13 = vld [vmem:[%s4922_s1 + $0x630] ss:$8 sps:$4 sm:$0xff]  }
  0x9f   :  { %2102 = vmatpush1.bf16.msra.mxu1 %v3570_v14  ;;  %v3678_v14 = vld [vmem:[%s4922_s1 + $0x644] ss:$8 sps:$4 sm:$0xff]  }
  0xa0   :  { %2405 = vmatpush1.bf16.msra.mxu0 %v3573_v15  ;;  %2103 = vmatprep.subr.bf16.mxu1 %v3583_v16  ;;  %v3674_v15 = vld [vmem:[%s4923_s0 + $0xf0] ss:$56 sps:$4 sm:$0xff]  }
  0xa1   :  { %2406 = vmatprep.subr.bf16.mxu0 %v3587_v17  ;;  %v3675_v16 = vld [vmem:[%s4923_s0 + $0x108] ss:$56 sps:$4 sm:$0xff]  }
  0xa2   :  { %2059 = vmatmul.mubr.bf16.gmra.mrb[16].mxu1 %v3598_v20  ;;  %v3676_v17 = vld [vmem:[%s4922_s1 + $0x640] ss:$8 sps:$4 sm:$0xff]   ;;  %v3687_v20 = vld [vmem:[%s4922_s1 + $0x654] ss:$8 sps:$4 sm:$0xff]  }
  0xa3   :  { %2362 = vmatmul.mubr.bf16.gmra.mrb[16].mxu0 %v3602_v21  ;;  %2104 = vmatpush1.bf16.msra.mxu1 %v3581_v18  ;;  %v3679_v18 = vld [vmem:[%s4923_s0 + $0x164] ss:$56 sps:$4 sm:$0xff]   ;;  %v3685_v21 = vld [vmem:[%s4922_s1 + $0x650] ss:$8 sps:$4 sm:$0xff]  }
  0xa4   :  { %2407 = vmatpush1.bf16.msra.mxu0 %v3585_v19  ;;  %2105 = vmatprep.subr.bf16.mxu1 %v3590_v22  ;;  %v3681_v19 = vld [vmem:[%s4923_s0 + $0x17c] ss:$56 sps:$4 sm:$0xff]   ;;  %v3690_v22 = vld [vmem:[%s4922_s1 + $0x664] ss:$8 sps:$4 sm:$0xff]  }
  0xa5   :  { %2408 = vmatprep.subr.bf16.mxu0 %v3593_v23  ;;  %2068 = vmatprep.mubr.bf16.mxu1 %v3612_v25  ;;  %v3683_v23 = vld [vmem:[%s4923_s0 + $0x160] ss:$56 sps:$4 sm:$0xff]  }
  0xa6   :  { %2371 = vmatprep.mubr.bf16.mxu0 %v3614_v26  ;;  %v3688_v25 = vld [vmem:[%s4922_s1 + $0x660] ss:$8 sps:$4 sm:$0xff]   ;;  %v3691_v26 = vld [vmem:[%s4923_s0 + $0x1d4] ss:$56 sps:$4 sm:$0xff]  }
  0xa7   :  { %2106 = vmatpush1.bf16.msra.mxu1 %v3588_v24  ;;  %v3684_v24 = vld [vmem:[%s4923_s0 + $0x178] ss:$56 sps:$4 sm:$0xff]  }
  0xa8   :  { %2409 = vmatpush1.bf16.msra.mxu0 %v3591_v27  ;;  %2107 = vmatprep.subr.bf16.mxu1 %v3601_v28  ;;  %v3693_v27 = vld [vmem:[%s4923_s0 + $0x1ec] ss:$56 sps:$4 sm:$0xff]   ;;  %v3699_v28 = vld [vmem:[%s4922_s1 + $0x674] ss:$8 sps:$4 sm:$0xff]  }
  0xa9   :  { %2410 = vmatprep.subr.bf16.mxu0 %v3605_v29  ;;  %v3697_v29 = vld [vmem:[%s4922_s1 + $0x670] ss:$8 sps:$4 sm:$0xff]  }
  0xaa   :  { %2069 = vmatmul.mubr.bf16.gmra.mrb[20].mxu1 %v3616_v30  ;;  %v3702_v30 = vld [vmem:[%s4922_s1 + $0x684] ss:$8 sps:$4 sm:$0xff]  }
  0xab   :  { %2372 = vmatmul.mubr.bf16.gmra.mrb[20].mxu0 %v3620_v32  ;;  %2108 = vmatpush1.bf16.msra.mxu1 %v3599_v31  ;;  %v3695_v31 = vld [vmem:[%s4923_s0 + $0x1d0] ss:$56 sps:$4 sm:$0xff]  }
  0xac   :  { %2411 = vmatpush1.bf16.msra.mxu0 %v3603_v35  ;;  %2109 = vmatprep.subr.bf16.mxu1 %v3608_v36  ;;  %v3696_v32 = vld [vmem:[%s4923_s0 + $0x1e8] ss:$56 sps:$4 sm:$0xff]   ;;  %v3705_v35 = vld [vmem:[%s4923_s0 + $0x25c] ss:$56 sps:$4 sm:$0xff]  }
  0xad   :  { %2412 = vmatprep.subr.bf16.mxu0 %v3611_v37  ;;  %2078 = vmatprep.mubr.bf16.mxu1 %v2855_v38  ;;  %v3711_v36 = vld [vmem:[%s4922_s1 + $0x694] ss:$8 sps:$4 sm:$0xff]   ;;  %v3709_v37 = vld [vmem:[%s4922_s1 + $0x690] ss:$8 sps:$4 sm:$0xff]  }
  0xae   :  { %2381 = vmatprep.mubr.bf16.mxu0 %v2861_v39  ;;  %v100_v38 = vld [vmem:[%s4923_s0 + $0x2b0] sm:$0xff]  ;;  %v103_v39 = vld [vmem:[%s4923_s0 + $0x2c8] sm:$0xff] }
  0xaf   :  { %2110 = vmatpush1.bf16.msra.mxu1 %v3606_v40  ;;  %v3716_v40 = vld [vmem:[%s4922_s1 + $0x6a4] ss:$8 sps:$4 sm:$0xff]  }
  0xb0   :  { %2413 = vmatpush1.bf16.msra.mxu0 %v3609_v41  ;;  %2111 = vmatprep.subr.bf16.mxu1 %v3619_v42  ;;  %v3707_v41 = vld [vmem:[%s4923_s0 + $0x240] ss:$56 sps:$4 sm:$0xff]  }
  0xb1   :  { %2414 = vmatprep.subr.bf16.mxu0 %v3623_v43  ;;  %v3708_v42 = vld [vmem:[%s4923_s0 + $0x258] ss:$56 sps:$4 sm:$0xff]   ;;  %v2857_v43 = vcombine.high %v100_v38, %v100_v38 }
  0xb2   :  { %2079 = vmatmul.mubr.bf16.gmra.mrb[24].mxu1 %v2854_v46  ;;  %v3721_v46 = vld [vmem:[%s4922_s1 + $0x6b4] ss:$8 sps:$4 sm:$0xff]  }
  0xb3   :  { %2382 = vmatmul.mubr.bf16.gmra.mrb[24].mxu0 %v2860_v47  ;;  %2112 = vmatpush1.bf16.msra.mxu1 %v3617_v44  ;;  %v2863_v44 = vcombine.high %v103_v39, %v103_v39  ;;  %v3719_v47 = vld [vmem:[%s4922_s1 + $0x6b0] ss:$8 sps:$4 sm:$0xff]  }
  0xb4   :  { %2415 = vmatpush1.bf16.msra.mxu0 %v3621_v45  ;;  %2113 = vmatprep.subr.bf16.mxu1 %v3626_v48  ;;  %v3714_v45 = vld [vmem:[%s4922_s1 + $0x6a0] ss:$8 sps:$4 sm:$0xff]   ;;  %v2856_v48 = vcombine.low %v100_v38, %v100_v38 }
  0xb5   :  { %2416 = vmatprep.subr.bf16.mxu0 %v3629_v49  ;;  %2119 = vmatprep.mubr.bf16.mxu1 %v3648_v50  ;;  %v2862_v49 = vcombine.low %v103_v39, %v103_v39  ;;  %v3724_v50 = vld [vmem:[%s4923_s0 + $0x34] ss:$56 sps:$4 sm:$0xff]  }
  0xb6   :  { %2422 = vmatprep.mubr.bf16.mxu0 %v3651_v51  ;;  %v3727_v51 = vld [vmem:[%s4923_s0 + $0x1f4] ss:$56 sps:$4 sm:$0xff]  }
  0xb7   :  { %2114 = vmatpush1.bf16.msra.mxu1 %v3624_v52  ;;  %v3722_v52 = vld [vmem:[%s4923_s0 + $0x30] ss:$56 sps:$4 sm:$0xff]  }
  0xb8   :  { %2417 = vmatpush1.bf16.msra.mxu0 %v3627_v53  ;;  %2115 = vmatprep.subr.bf16.mxu1 %v3635_v54  ;;  %v3725_v53 = vld [vmem:[%s4923_s0 + $0x1f0] ss:$56 sps:$4 sm:$0xff]   ;;  %v3728_v54 = vld [vmem:[%s4923_s0 + $0xa4] ss:$56 sps:$4 sm:$0xff]  }
  0xb9   :  { %2418 = vmatprep.subr.bf16.mxu0 %v3639_v55  ;;  %v3730_v55 = vld [vmem:[%s4923_s0 + $0x264] ss:$56 sps:$4 sm:$0xff]  }
  0xbb   :  { %2116 = vmatpush1.bf16.msra.mxu1 %v3633_v56  ;;  %v104_v56 = vld [vmem:[%s4923_s0 + $0x2d0] sm:$0xff] }
  0xbc   :  { %2419 = vmatpush1.bf16.msra.mxu0 %v3637_v57  ;;  %2117 = vmatprep.subr.bf16.mxu1 %v3642_v58  ;;  %v3732_v57 = vld [vmem:[%s4923_s0 + $0xa0] ss:$56 sps:$4 sm:$0xff]  }
  0xbd   :  { %2420 = vmatprep.subr.bf16.mxu0 %v3645_v59  ;;  %v3733_v58 = vld [vmem:[%s4923_s0 + $0x260] ss:$56 sps:$4 sm:$0xff]   ;;  %v3734_v59 = vld [vmem:[%s4923_s0 + $0x114] ss:$56 sps:$4 sm:$0xff]  }
  0xbf   :  { %2118 = vmatpush1.bf16.msra.mxu1 %v3640_v60  ;;  %v2865_v60 = vcombine.high %v104_v56, %v104_v56 }
  0xc0   :  { %2421 = vmatpush1.bf16.msra.mxu0 %v3643_v61  ;;  %3089 = vmatprep.subr.bf16.mxu1 %v3654_v62  ;;  %v3737_v61 = vld [vmem:[%s4923_s0 + $0x110] ss:$56 sps:$4 sm:$0xff]  }
  0xc1   :  { %2491 = vmatprep.subr.bf16.mxu0 %v3654_v62  ;;  %v2864_v62 = vcombine.low %v104_v56, %v104_v56 }
  0xc2   :  { %2120 = vmatmul.mubr.bf16.vlgmr.msra.gmra.mrb[0].mxu1 %v3646_v63  ;;  %v3739_v63 = vld [vmem:[%s4923_s0 + $0x184] ss:$56 sps:$4 sm:$0xff]  }
  0xc3   :  { %2423 = vmatmul.mubr.bf16.vlgmr.msra.gmra.mrb[0].mxu0 %v3649_v0  ;;  %2129 = vmatprep.mubr.bf16.mxu1 %v3658_v2  ;;  %v3741_v0 = vld [vmem:[%s4923_s0 + $0x180] ss:$56 sps:$4 sm:$0xff]  }
  0xc4   :  { %2492 = vmatpush1.bf16.msra.mxu0 %v3652_v1  ;;  %2432 = vmatprep.mubr.bf16.mxu0 %v3660_v4 }
  0xc5   :  { %2493 = vmatprep.subr.bf16.mxu0 %v3657_v3  ;;  %3101 = vmatpush1.bf16.msra.mxu1 %v3652_v1 }
  0xc6   :  { %3090 = vmatprep.subr.bf16.mxu1 %v3657_v3 }
  0xc8   :  { %2494 = vmatpush1.bf16.msra.mxu0 %v3655_v5 }
  0xc9   :  { %2495 = vmatprep.subr.bf16.mxu0 %v3666_v6  ;;  %3102 = vmatpush1.bf16.msra.mxu1 %v3655_v5 }
  0xca   :  { %2130 = vmatmul.mubr.bf16.gmra.mrb[4].mxu1 %v3662_v7  ;;  %3091 = vmatprep.subr.bf16.mxu1 %v3666_v6 }
  0xcb   :  { %2433 = vmatmul.mubr.bf16.gmra.mrb[4].mxu0 %v3663_v8  ;;  %2139 = vmatprep.mubr.bf16.mxu1 %v3670_v11 }
  0xcc   :  { %2496 = vmatpush1.bf16.msra.mxu0 %v3664_v9  ;;  %2442 = vmatprep.mubr.bf16.mxu0 %v3672_v12 }
  0xcd   :  { %2497 = vmatprep.subr.bf16.mxu0 %v3669_v10  ;;  %3103 = vmatpush1.bf16.msra.mxu1 %v3664_v9 }
  0xce   :  { %3092 = vmatprep.subr.bf16.mxu1 %v3669_v10 }
  0xd0   :  { %2498 = vmatpush1.bf16.msra.mxu0 %v3667_v13 }
  0xd1   :  { %2499 = vmatprep.subr.bf16.mxu0 %v3678_v14  ;;  %3104 = vmatpush1.bf16.msra.mxu1 %v3667_v13 }
  0xd2   :  { %2140 = vmatmul.mubr.bf16.gmra.mrb[8].mxu1 %v3674_v15  ;;  %3093 = vmatprep.subr.bf16.mxu1 %v3678_v14 }
  0xd3   :  { %2443 = vmatmul.mubr.bf16.gmra.mrb[8].mxu0 %v3675_v16  ;;  %2149 = vmatprep.mubr.bf16.mxu1 %v3679_v18 }
  0xd4   :  { %2500 = vmatpush1.bf16.msra.mxu0 %v3676_v17  ;;  %2452 = vmatprep.mubr.bf16.mxu0 %v3681_v19 }
  0xd5   :  { %2501 = vmatprep.subr.bf16.mxu0 %v3687_v20  ;;  %3105 = vmatpush1.bf16.msra.mxu1 %v3676_v17 }
  0xd6   :  { %3094 = vmatprep.subr.bf16.mxu1 %v3687_v20 }
  0xd8   :  { %2502 = vmatpush1.bf16.msra.mxu0 %v3685_v21 }
  0xd9   :  { %2503 = vmatprep.subr.bf16.mxu0 %v3690_v22  ;;  %3106 = vmatpush1.bf16.msra.mxu1 %v3685_v21 }
  0xda   :  { %2150 = vmatmul.mubr.bf16.gmra.mrb[12].mxu1 %v3683_v23  ;;  %3095 = vmatprep.subr.bf16.mxu1 %v3690_v22 }
  0xdb   :  { %2453 = vmatmul.mubr.bf16.gmra.mrb[12].mxu0 %v3684_v24  ;;  %2159 = vmatprep.mubr.bf16.mxu1 %v3691_v26 }
  0xdc   :  { %2504 = vmatpush1.bf16.msra.mxu0 %v3688_v25  ;;  %2462 = vmatprep.mubr.bf16.mxu0 %v3693_v27 }
  0xdd   :  { %2505 = vmatprep.subr.bf16.mxu0 %v3699_v28  ;;  %3107 = vmatpush1.bf16.msra.mxu1 %v3688_v25 }
  0xde   :  { %3096 = vmatprep.subr.bf16.mxu1 %v3699_v28 }
  0xe0   :  { %2506 = vmatpush1.bf16.msra.mxu0 %v3697_v29 }
  0xe1   :  { %2507 = vmatprep.subr.bf16.mxu0 %v3702_v30  ;;  %3108 = vmatpush1.bf16.msra.mxu1 %v3697_v29 }
  0xe2   :  { %2160 = vmatmul.mubr.bf16.gmra.mrb[16].mxu1 %v3695_v31  ;;  %3097 = vmatprep.subr.bf16.mxu1 %v3702_v30 }
  0xe3   :  { %2463 = vmatmul.mubr.bf16.gmra.mrb[16].mxu0 %v3696_v32  ;;  %2169 = vmatprep.mubr.bf16.mxu1 %v3703_v33 }
  0xe4   :  { %2472 = vmatprep.mubr.bf16.mxu0 %v3705_v35  ;;  %2508 = vmatpush1.bf16.msra.mxu0 %v3700_v34 }
  0xe5   :  { %2509 = vmatprep.subr.bf16.mxu0 %v3711_v36  ;;  %3109 = vmatpush1.bf16.msra.mxu1 %v3700_v34 }
  0xe6   :  { %3098 = vmatprep.subr.bf16.mxu1 %v3711_v36 }
  0xe8   :  { %2510 = vmatpush1.bf16.msra.mxu0 %v3709_v37 }
  0xe9   :  { %2511 = vmatprep.subr.bf16.mxu0 %v3716_v40  ;;  %3110 = vmatpush1.bf16.msra.mxu1 %v3709_v37 }
  0xea   :  { %2170 = vmatmul.mubr.bf16.gmra.mrb[20].mxu1 %v3707_v41  ;;  %3099 = vmatprep.subr.bf16.mxu1 %v3716_v40 }
  0xeb   :  { %2473 = vmatmul.mubr.bf16.gmra.mrb[20].mxu0 %v3708_v42  ;;  %2179 = vmatprep.mubr.bf16.mxu1 %v2857_v43 }
  0xec   :  { %2482 = vmatprep.mubr.bf16.mxu0 %v2863_v44  ;;  %2512 = vmatpush1.bf16.msra.mxu0 %v3714_v45 }
  0xed   :  { %2513 = vmatprep.subr.bf16.mxu0 %v3721_v46  ;;  %3111 = vmatpush1.bf16.msra.mxu1 %v3714_v45 }
  0xee   :  { %3100 = vmatprep.subr.bf16.mxu1 %v3721_v46 }
  0xf0   :  { %2514 = vmatpush1.bf16.msra.mxu0 %v3719_v47 }
  0xf1   :  { %3112 = vmatpush1.bf16.msra.mxu1 %v3719_v47 }
  0xf2   :  { %2180 = vmatmul.mubr.bf16.gmra.mrb[24].mxu1 %v2856_v48 }
  0xf3   :  { %2483 = vmatmul.mubr.bf16.gmra.mrb[24].mxu0 %v2862_v49  ;;  %3086 = vmatprep.mubr.msk.bf16.mxu1 %vm1863_vm0, %v3727_v51 }
  0xf4   :  { %3082 = vmatprep.mubr.msk.bf16.mxu0 %vm1863_vm0, %v3724_v50 }
  0xfa   :  { %2564 = vmatmul.mubr.bf16.vlgmr.msra.gmra.mrb[28].mxu1 %v3725_v53 }
  0xfb   :  { %2524 = vmatmul.mubr.bf16.vlgmr.msra.gmra.mrb[0].mxu0 %v3722_v52  ;;  %3087 = vmatprep.mubr.msk.bf16.mxu1 %vm1863_vm0, %v3730_v55 }
  0xfc   :  { %3083 = vmatprep.mubr.msk.bf16.mxu0 %vm1863_vm0, %v3728_v54 }
 0x102   :  { %2574 = vmatmul.mubr.bf16.gmra.mrb[32].mxu1 %v3733_v58 }
 0x103   :  { %2534 = vmatmul.mubr.bf16.gmra.mrb[4].mxu0 %v3732_v57  ;;  %3088 = vmatprep.mubr.msk.bf16.mxu1 %vm1863_vm0, %v2865_v60 }
 0x104   :  { %3084 = vmatprep.mubr.msk.bf16.mxu0 %vm1863_vm0, %v3734_v59 }
 0x10a   :  { %2584 = vmatmul.mubr.bf16.gmra.mrb[36].mxu1 %v2864_v62 }
 0x10b   :  { %2544 = vmatmul.mubr.bf16.gmra.mrb[8].mxu0 %v3737_v61 }
 0x10c   :  { %3085 = vmatprep.mubr.msk.bf16.mxu0 %vm1863_vm0, %v3739_v63 }
 0x113   :  { %2554 = vmatmul.mubr.bf16.gmra.mrb[12].mxu0 %v3741_v0 }
 0x195   :  { %v2121_v1 = vpop.f32.mrb[0].mxu1 }
 0x196   :  { %v2123_v2 = vpop.f32.mrb[1].mxu1 }
 0x197   :  { %v2125_v3 = vpop.f32.mrb[2].mxu1 }
 0x198   :  { %v4691_v4 = vpop.f32.mrb[3].mxu1 }
 0x19d   :  { %v4693_v5 = vpop.f32.mrb[4].mxu1 }
 0x19e   :  { %v4695_v6 = vpop.f32.mrb[5].mxu1 }
 0x19f   :  { %v4697_v7 = vpop.f32.mrb[6].mxu1 }
 0x1a0   :  { %v4699_v8 = vpop.f32.mrb[7].mxu1 }
 0x1a5   :  { %v4701_v9 = vpop.f32.mrb[8].mxu1 }
 0x1a6   :  { %v4703_v10 = vpop.f32.mrb[9].mxu1 }
 0x1a7   :  { %v4705_v11 = vpop.f32.mrb[10].mxu1 }
 0x1a8   :  { %v4707_v12 = vpop.f32.mrb[11].mxu1 }
 0x1ad   :  { %v4709_v13 = vpop.f32.mrb[12].mxu1 }
 0x1ae   :  { %v4711_v14 = vpop.f32.mrb[13].mxu1 }
 0x1af   :  { %v4713_v15 = vpop.f32.mrb[14].mxu1 }
 0x1b0   :  { %v4715_v16 = vpop.f32.mrb[15].mxu1 }
 0x1b5   :  { %v2161_v17 = vpop.f32.mrb[16].mxu1 }
 0x1b6   :  { %v2464_v18 = vpop.f32.mrb[16].mxu0  ;;  %v2163_v20 = vpop.f32.mrb[17].mxu1 }
 0x1b7   :  { %v3129_v19 = vadd.f32 %v2464_v18, %v2161_v17  ;;  %v2466_v21 = vpop.f32.mrb[17].mxu0  ;;  %v2165_v23 = vpop.f32.mrb[18].mxu1 }
 0x1b8   :  { %v3131_v22 = vadd.f32 %v2466_v21, %v2163_v20  ;;  %v2468_v24 = vpop.f32.mrb[18].mxu0  ;;  %v2167_v26 = vpop.f32.mrb[19].mxu1 }
 0x1b9   :  { %v3133_v25 = vadd.f32 %v2468_v24, %v2165_v23  ;;  %v2470_v27 = vpop.f32.mrb[19].mxu0 }
 0x1ba   :  { %v3135_v28 = vadd.f32 %v2470_v27, %v2167_v26 }
 0x1bd   :  { %v2171_v29 = vpop.f32.mrb[20].mxu1 }
 0x1be   :  { %v2474_v30 = vpop.f32.mrb[20].mxu0  ;;  %v2173_v32 = vpop.f32.mrb[21].mxu1 }
 0x1bf   :  { %v3137_v31 = vadd.f32 %v2474_v30, %v2171_v29  ;;  %v2476_v33 = vpop.f32.mrb[21].mxu0  ;;  %v2175_v35 = vpop.f32.mrb[22].mxu1 }
 0x1c0   :  { %v3139_v34 = vadd.f32 %v2476_v33, %v2173_v32  ;;  %v2478_v36 = vpop.f32.mrb[22].mxu0  ;;  %v2177_v38 = vpop.f32.mrb[23].mxu1 }
 0x1c1   :  { %v4717_v37 = vadd.f32 %v2478_v36, %v2175_v35  ;;  %v2480_v39 = vpop.f32.mrb[23].mxu0 }
 0x1c2   :  { %v4719_v40 = vadd.f32 %v2480_v39, %v2177_v38 }
 0x1c5   :  { %v2181_v41 = vpop.f32.mrb[24].mxu1 }
 0x1c6   :  { %v2484_v42 = vpop.f32.mrb[24].mxu0  ;;  %v2183_v44 = vpop.f32.mrb[25].mxu1 }
 0x1c7   :  { %v4721_v43 = vadd.f32 %v2484_v42, %v2181_v41  ;;  %v2486_v45 = vpop.f32.mrb[25].mxu0  ;;  %v2185_v47 = vpop.f32.mrb[26].mxu1 }
 0x1c8   :  { %v4723_v46 = vadd.f32 %v2486_v45, %v2183_v44  ;;  %v2488_v48 = vpop.f32.mrb[26].mxu0  ;;  %v2186_v49 = vpop.f32.mrb[27].mxu1 }
 0x1c9   :  { %v2489_v50 = vpop.f32.mrb[27].mxu0 }
 0x1cd   :  { %v2565_v52 = vpop.f32.mrb[28].mxu1 }
 0x1ce   :  { %v2525_v51 = vpop.f32.mrb[0].mxu0  ;;  %v4725_v54 = vadd.f32 %v3129_v19, %v2565_v52  ;;  %v2567_v56 = vpop.f32.mrb[29].mxu1 }
 0x1cf   :  { %v3113_v53 = vadd.f32 %v2525_v51, %v2121_v1  ;;  %v2527_v55 = vpop.f32.mrb[1].mxu0  ;;  %v4727_v58 = vadd.f32 %v3131_v22, %v2567_v56  ;;  %v2569_v60 = vpop.f32.mrb[30].mxu1 }
 0x1d0   :  { %v3114_v57 = vadd.f32 %v2527_v55, %v2123_v2  ;;  %v2529_v59 = vpop.f32.mrb[2].mxu0  ;;  %2608 = vst [vmem:[%s4924_s2 + $0x80] sm:$0xff] %v4725_v54  ;;  %v4736_v62 = vadd.f32 %v3133_v25, %v2569_v60  ;;  %v2571_v0 = vpop.f32.mrb[31].mxu1 }
 0x1d1   :  { %2592 = vst [vmem:[%s4924_s2] sm:$0xff] %v3113_v53  ;;  %v3115_v61 = vadd.f32 %v2529_v59, %v2125_v3  ;;  %v2531_v63 = vpop.f32.mrb[3].mxu0  ;;  %v2667_v1 = vmul.f32 %v3113_v53, %v3113_v53  ;;  %2609 = vst.msk [vmem:[%s4924_s2 + $0x88] sm:$0xff] %vm1863_vm0, %v4727_v58  ;;  %v4755_v19 = vadd.f32 %v3135_v28, %v2571_v0 }
 0x1d2   :  { %2593 = vst.msk [vmem:[%s4924_s2 + $0x8] sm:$0xff] %vm1863_vm0, %v3114_v57  ;;  %v2668_v2 = vmul.f32 %v3114_v57, %v3114_v57  ;;  %2610 = vst [vmem:[%s4924_s2 + $0x90] sm:$0xff] %v4736_v62  ;;  %v3116_v18 = vadd.f32 %v2531_v63, %v4691_v4  ;;  %v2636_v20 = vsel %vm1863_vm0, %v3114_v57, 0.0 }
 0x1d3   :  { %2594 = vst [vmem:[%s4924_s2 + $0x10] sm:$0xff] %v3115_v61  ;;  %v2618_v3 = vadd.f32 %v3115_v61, %v3113_v53  ;;  %v2669_v17 = vmul.f32 %v3115_v61, %v3115_v61  ;;  %2611 = vst.msk [vmem:[%s4924_s2 + $0x98] sm:$0xff] %vm1863_vm0, %v4755_v19 }
 0x1d4   :  { %2595 = vst.msk [vmem:[%s4924_s2 + $0x18] sm:$0xff] %vm1863_vm0, %v3116_v18  ;;  %v2637_v22 = vsel %vm1863_vm0, %v3116_v18, 0.0  ;;  %v2670_v23 = vmul.f32 %v3116_v18, %v3116_v18  ;;  %v2711_v26 = vsel %vm1863_vm0, %v2668_v2, 0.0 }
 0x1d5   :  { %v2693_v21 = vadd.f32 %v2669_v17, %v2667_v1  ;;  %v2638_v24 = vadd.f32 %v2637_v22, %v2636_v20  ;;  %v2575_v25 = vpop.f32.mrb[32].mxu1 }
 0x1d6   :  { %v2535_v4 = vpop.f32.mrb[4].mxu0  ;;  %v2712_v27 = vsel %vm1863_vm0, %v2670_v23, 0.0  ;;  %v4771_v29 = vadd.f32 %v3137_v31, %v2575_v25  ;;  %v2577_v32 = vpop.f32.mrb[33].mxu1 }
 0x1d7   :  { %v3117_v28 = vadd.f32 %v2535_v4, %v4693_v5  ;;  %v2537_v30 = vpop.f32.mrb[5].mxu0  ;;  %v2713_v33 = vadd.f32 %v2712_v27, %v2711_v26  ;;  %v4774_v36 = vadd.f32 %v3139_v34, %v2577_v32  ;;  %v2579_v39 = vpop.f32.mrb[34].mxu1 }
 0x1d8   :  { %v3118_v35 = vadd.f32 %v2537_v30, %v4695_v6  ;;  %v2539_v38 = vpop.f32.mrb[6].mxu0  ;;  %2612 = vst [vmem:[%s4924_s2 + $0xa0] sm:$0xff] %v4771_v29  ;;  %v2581_v44 = vpop.f32.mrb[35].mxu1  ;;  %v4799_v50 = vadd.f32 %v4717_v37, %v2579_v39 }
 0x1d9   :  { %2596 = vst [vmem:[%s4924_s2 + $0x20] sm:$0xff] %v3117_v28  ;;  %v2619_v41 = vadd.f32 %v3117_v28, %v2618_v3  ;;  %v2671_v42 = vmul.f32 %v3117_v28, %v3117_v28  ;;  %v3119_v5 = vadd.f32 %v2539_v38, %v4697_v7  ;;  %v2541_v31 = vpop.f32.mrb[7].mxu0  ;;  %2613 = vst.msk [vmem:[%s4924_s2 + $0xa8] sm:$0xff] %vm1863_vm0, %v4774_v36 }
 0x1da   :  { %2597 = vst.msk [vmem:[%s4924_s2 + $0x28] sm:$0xff] %vm1863_vm0, %v3118_v35  ;;  %v2639_v6 = vsel %vm1863_vm0, %v3118_v35, 0.0  ;;  %v2672_v34 = vmul.f32 %v3118_v35, %v3118_v35  ;;  %v3120_v51 = vadd.f32 %v2541_v31, %v4699_v8  ;;  %v4803_v55 = vadd.f32 %v4719_v40, %v2581_v44  ;;  %2614 = vst [vmem:[%s4924_s2 + $0xb0] sm:$0xff] %v4799_v50 }
 0x1db   :  { %v2694_v45 = vadd.f32 %v2693_v21, %v2671_v42  ;;  %v2640_v47 = vadd.f32 %v2639_v6, %v2638_v24  ;;  %2598 = vst [vmem:[%s4924_s2 + $0x30] sm:$0xff] %v3119_v5  ;;  %v2620_v7 = vadd.f32 %v3119_v5, %v2619_v41  ;;  %v2673_v48 = vmul.f32 %v3119_v5, %v3119_v5 }
 0x1dc   :  { %v2714_v49 = vsel %vm1863_vm0, %v2672_v34, 0.0  ;;  %2599 = vst.msk [vmem:[%s4924_s2 + $0x38] sm:$0xff] %vm1863_vm0, %v3120_v51  ;;  %v2641_v37 = vsel %vm1863_vm0, %v3120_v51, 0.0  ;;  %v2674_v56 = vmul.f32 %v3120_v51, %v3120_v51  ;;  %2615 = vst.msk [vmem:[%s4924_s2 + $0xb8] sm:$0xff] %vm1863_vm0, %v4803_v55  ;;  %v2684_v51 = vmul.f32 %v4727_v58, %v4727_v58 }
 0x1dd   :  { %v2715_v52 = vadd.f32 %v2714_v49, %v2713_v33  ;;  %v2695_v53 = vadd.f32 %v2694_v45, %v2673_v48  ;;  %v2585_v8 = vpop.f32.mrb[36].mxu1  ;;  %v2642_v59 = vadd.f32 %v2641_v37, %v2640_v47  ;;  %v2683_v45 = vmul.f32 %v4725_v54, %v4725_v54 }
 0x1de   :  { %v2545_v57 = vpop.f32.mrb[8].mxu0  ;;  %v2587_v61 = vpop.f32.mrb[37].mxu1  ;;  %v2716_v63 = vsel %vm1863_vm0, %v2674_v56, 0.0  ;;  %v4822_v0 = vadd.f32 %v4721_v43, %v2585_v8 }
 0x1df   :  { %v3121_v40 = vadd.f32 %v2545_v57, %v4701_v9  ;;  %v2547_v60 = vpop.f32.mrb[9].mxu0  ;;  %v4826_v2 = vadd.f32 %v4723_v46, %v2587_v61  ;;  %v2589_v17 = vpop.f32.mrb[38].mxu1  ;;  %v2717_v18 = vadd.f32 %v2716_v63, %v2715_v52 }
 0x1e0   :  { %v3122_v1 = vadd.f32 %v2547_v60, %v4703_v10  ;;  %v2549_v3 = vpop.f32.mrb[10].mxu0  ;;  %v2590_v22 = vpop.f32.mrb[39].mxu1  ;;  %2616 = vst [vmem:[%s4924_s2 + $0xc0] sm:$0xff] %v4822_v0  ;;  %v2686_v60 = vmul.f32 %v4755_v19, %v4755_v19 }
 0x1e1   :  { %2600 = vst [vmem:[%s4924_s2 + $0x40] sm:$0xff] %v3121_v40  ;;  %v2621_v9 = vadd.f32 %v3121_v40, %v2620_v7  ;;  %v2675_v20 = vmul.f32 %v3121_v40, %v3121_v40  ;;  %v2551_v21 = vpop.f32.mrb[11].mxu0  ;;  %2617 = vst.msk [vmem:[%s4924_s2 + $0xc8] sm:$0xff] %vm1863_vm0, %v4826_v2  ;;  %v3123_v24 = vadd.f32 %v2549_v3, %v4705_v11 }
 0x1e2   :  { %2601 = vst.msk [vmem:[%s4924_s2 + $0x48] sm:$0xff] %vm1863_vm0, %v3122_v1  ;;  %v2643_v10 = vsel %vm1863_vm0, %v3122_v1, 0.0  ;;  %v2676_v43 = vmul.f32 %v3122_v1, %v3122_v1  ;;  %v3124_v25 = vadd.f32 %v2551_v21, %v4707_v12  ;;  %v2685_v40 = vmul.f32 %v4736_v62, %v4736_v62 }
 0x1e3   :  { %v2696_v46 = vadd.f32 %v2695_v53, %v2675_v20  ;;  %v2644_v23 = vadd.f32 %v2643_v10, %v2642_v59  ;;  %2602 = vst [vmem:[%s4924_s2 + $0x50] sm:$0xff] %v3123_v24  ;;  %v2622_v27 = vadd.f32 %v3123_v24, %v2621_v9  ;;  %v2677_v28 = vmul.f32 %v3123_v24, %v3123_v24 }
 0x1e4   :  { %v2718_v4 = vsel %vm1863_vm0, %v2676_v43, 0.0  ;;  %2603 = vst.msk [vmem:[%s4924_s2 + $0x58] sm:$0xff] %vm1863_vm0, %v3124_v25  ;;  %v2645_v30 = vsel %vm1863_vm0, %v3124_v25, 0.0  ;;  %v2678_v32 = vmul.f32 %v3124_v25, %v3124_v25  ;;  %v2651_v59 = vsel %vm1863_vm0, %v4727_v58, 0.0 }
 0x1e5   :  { %v2719_v26 = vadd.f32 %v2718_v4, %v2717_v18  ;;  %v2697_v33 = vadd.f32 %v2696_v46, %v2677_v28  ;;  %v2646_v35 = vadd.f32 %v2645_v30, %v2644_v23  ;;  %v2653_v18 = vsel %vm1863_vm0, %v4755_v19, 0.0 }
 0x1e6   :  { %v2555_v11 = vpop.f32.mrb[12].mxu0  ;;  %v2720_v39 = vsel %vm1863_vm0, %v2678_v32, 0.0  ;;  %v2687_v58 = vmul.f32 %v4771_v29, %v4771_v29  ;;  %v2688_v9 = vmul.f32 %v4774_v36, %v4774_v36  ;;  %v2655_v43 = vsel %vm1863_vm0, %v4774_v36, 0.0 }
 0x1e7   :  { %v3125_v12 = vadd.f32 %v2555_v11, %v4709_v13  ;;  %v2557_v38 = vpop.f32.mrb[13].mxu0  ;;  %v2721_v5 = vadd.f32 %v2720_v39, %v2719_v26  ;;  %v2689_v46 = vmul.f32 %v4799_v50, %v4799_v50  ;;  %v2690_v19 = vmul.f32 %v4803_v55, %v4803_v55 }
 0x1e8   :  { %v3126_v41 = vadd.f32 %v2557_v38, %v4711_v14  ;;  %v2559_v42 = vpop.f32.mrb[14].mxu0  ;;  %v2657_v26 = vsel %vm1863_vm0, %v4803_v55, 0.0  ;;  %v2692_v36 = vmul.f32 %v4826_v2, %v4826_v2 }
 0x1e9   :  { %2604 = vst [vmem:[%s4924_s2 + $0x60] sm:$0xff] %v3125_v12  ;;  %v2623_v31 = vadd.f32 %v3125_v12, %v2622_v27  ;;  %v2679_v44 = vmul.f32 %v3125_v12, %v3125_v12  ;;  %v3127_v6 = vadd.f32 %v2559_v42, %v4713_v15  ;;  %v2561_v34 = vpop.f32.mrb[15].mxu0  ;;  %v2691_v27 = vmul.f32 %v4822_v0, %v4822_v0 }
 0x1ea   :  { %2605 = vst.msk [vmem:[%s4924_s2 + $0x68] sm:$0xff] %vm1863_vm0, %v3126_v41  ;;  %v2647_v13 = vsel %vm1863_vm0, %v3126_v41, 0.0  ;;  %v2680_v14 = vmul.f32 %v3126_v41, %v3126_v41  ;;  %v3128_v47 = vadd.f32 %v2561_v34, %v4715_v16  ;;  %v2734_v39 = vsel %vm1863_vm0, %v2692_v36, 0.0 }
 0x1eb   :  { %v2698_v7 = vadd.f32 %v2697_v33, %v2679_v44  ;;  %v2648_v48 = vadd.f32 %v2647_v13, %v2646_v35  ;;  %2606 = vst [vmem:[%s4924_s2 + $0x70] sm:$0xff] %v3127_v6  ;;  %v2624_v15 = vadd.f32 %v3127_v6, %v2623_v31  ;;  %v2681_v49 = vmul.f32 %v3127_v6, %v3127_v6 }
 0x1ec   :  { %v2722_v52 = vsel %vm1863_vm0, %v2680_v14, 0.0  ;;  %2607 = vst.msk [vmem:[%s4924_s2 + $0x78] sm:$0xff] %vm1863_vm0, %v3128_v47  ;;  %v2649_v16 = vsel %vm1863_vm0, %v3128_v47, 0.0  ;;  %v2682_v53 = vmul.f32 %v3128_v47, %v3128_v47  ;;  %v2659_v33 = vsel %vm1863_vm0, %v4826_v2, 0.0 }
 0x1ed   :  { %v2723_v37 = vadd.f32 %v2722_v52, %v2721_v5  ;;  %v2625_v56 = vadd.f32 %v4725_v54, %v2624_v15  ;;  %v2699_v57 = vadd.f32 %v2698_v7, %v2681_v49  ;;  %v2650_v8 = vadd.f32 %v2649_v16, %v2648_v48 }
 0x1ee   :  { %v2724_v61 = vsel %vm1863_vm0, %v2682_v53, 0.0  ;;  %v2726_v54 = vsel %vm1863_vm0, %v2684_v51, 0.0  ;;  %v3742_v7 = vmov 1983009808   ;;  %v2751_v48 = vlaneseq }
 0x1ef   :  { %v2626_v63 = vadd.f32 %v4736_v62, %v2625_v56  ;;  %v2700_v1 = vadd.f32 %v2699_v57, %v2683_v45  ;;  %v2652_v3 = vadd.f32 %v2651_v59, %v2650_v8  ;;  %v2725_v17 = vadd.f32 %v2724_v61, %v2723_v37 }
 0x1f0   :  { %v2728_v62 = vsel %vm1863_vm0, %v2686_v60, 0.0  ;;  %v2749_v2 = vunpack.c.l.s4 %v3742_v7  ;;  %v2752_v57 = vshrl.u32 %v2751_v48, 7 }
 0x1f1   :  { %v2627_v20 = vadd.f32 %v4771_v29, %v2626_v63  ;;  %v2701_v21 = vadd.f32 %v2700_v1, %v2685_v40  ;;  %v2654_v22 = vadd.f32 %v2653_v18, %v2652_v3  ;;  %v2727_v10 = vadd.f32 %v2726_v54, %v2725_v17 }
 0x1f2   :  { %v2730_v29 = vsel %vm1863_vm0, %v2688_v9, 0.0  ;;  %v2750_v56 = vunpack.c.0.s8 %v2749_v2 }
 0x1f3   :  { %v2628_v23 = vadd.f32 %v4799_v50, %v2627_v20  ;;  %v2702_v24 = vadd.f32 %v2701_v21, %v2687_v58  ;;  %v2656_v4 = vadd.f32 %v2655_v43, %v2654_v22  ;;  %v2729_v25 = vadd.f32 %v2728_v62, %v2727_v10 }
 0x1f4   :  { %v2732_v50 = vsel %vm1863_vm0, %v2690_v19, 0.0  ;;  %v2753_v1 = vsub.s32 %v2750_v56, %v2752_v57 }
 0x1f5   :  { %v2629_v28 = vadd.f32 %v4822_v0, %v2628_v23  ;;  %v2703_v30 = vadd.f32 %v2702_v24, %v2689_v46  ;;  %v2658_v32 = vadd.f32 %v2657_v26, %v2656_v4  ;;  %v2731_v11 = vadd.f32 %v2730_v29, %v2729_v25 }
 0x1f7   :  { %v2630_v35 = vrot.slane %v2629_v28, 4  ;;  %v2704_v12 = vadd.f32 %v2703_v30, %v2691_v27  ;;  %v2660_v38 = vadd.f32 %v2659_v33, %v2658_v32  ;;  %v2733_v55 = vadd.f32 %v2732_v50, %v2731_v11 }
 0x1f9   :  { %v2631_v41 = vadd.f32 %v2630_v35, %v2629_v28  ;;  %v2705_v42 = vrot.slane %v2704_v12, 4  ;;  %v2661_v5 = vrot.slane %v2660_v38, 4  ;;  %v2735_v31 = vadd.f32 %v2734_v39, %v2733_v55 }
 0x1fb   :  { %v2632_v44 = vrot.slane %v2631_v41, 2  ;;  %v2706_v0 = vadd.f32 %v2705_v42, %v2704_v12  ;;  %v2662_v6 = vadd.f32 %v2661_v5, %v2660_v38  ;;  %v2736_v34 = vrot.slane %v2735_v31, 4 }
 0x1fd   :  { %v2633_v45 = vadd.f32 %v2632_v44, %v2631_v41  ;;  %v2707_v13 = vrot.slane %v2706_v0, 2  ;;  %v2663_v14 = vrot.slane %v2662_v6, 2  ;;  %v2737_v47 = vadd.f32 %v2736_v34, %v2735_v31 }
 0x1ff   :  { %v2634_v15 = vrot.slane %v2633_v45, 1  ;;  %v2708_v49 = vadd.f32 %v2707_v13, %v2706_v0  ;;  %v2664_v51 = vadd.f32 %v2663_v14, %v2662_v6  ;;  %v2738_v52 = vrot.slane %v2737_v47, 2 }
 0x201   :  { %v2709_v16 = vrot.slane %v2708_v49, 1  ;;  %v2665_v53 = vrot.slane %v2664_v51, 1  ;;  %v2739_v37 = vadd.f32 %v2738_v52, %v2737_v47  ;;  %v2635_v8 = vadd.f32 %v2634_v15, %v2633_v45 }
 0x203   :  { %v2710_v59 = vadd.f32 %v2709_v16, %v2708_v49  ;;  %v2740_v40 = vrot.slane %v2739_v37, 1  ;;  %v2666_v61 = vadd.f32 %v2665_v53, %v2664_v51 }
 0x205   :  { %v2743_v60 = vsel %vm2742_vm1, %v2635_v8, %v2710_v59  ;;  %v2741_v63 = vadd.f32 %v2740_v40, %v2739_v37 }
 0x207   :  { %v2744_v3 = vsel %vm2742_vm1, %v2666_v61, %v2741_v63 }
 0x208   :  { %v2747_v17 = vcombine.low %v2743_v60, %v2744_v3 }
 0x20a   :  { %v2754_v54 = vrot.slane %v2747_v17, %v2753_v1 }
 0x20c   :  { %2759 = vst.msk [vmem:[%s4925_s3] sm:$0xf] %vm2758_vm4, %v2754_v54 }

// kernel: reduction_block_b.24
= control target key start
LH: loop header
LB: loop body
LE: loop exit
PB: predicated region body
PF: predicated region fallthrough
CT: control target
= control target key end

     0   :  { %v55_v0 = vlaneseq  ;;  %vm206_vm0 = vcmask 523264   ;;  %s611_s1 = inlined_call_operand.vmem [shape: f32[1,320], index: 1, kind: input, shape index: {}]   ;;  %s612_s2 = inlined_call_operand.vmem [shape: f32[1,320], index: 2, kind: input, shape index: {}]   ;;  %s613_s0 = inlined_call_operand.vmem [shape: f32[104,320], index: 0, kind: input, shape index: {}]   ;;  %s614_s3 = inlined_call_operand.vmem [shape: f32[104,320], index: 3, kind: output, shape index: {}]  }
   0x1   :  { %v53_v2 = vld [vmem:[%s611_s1] sm:$0x7]  ;;  %v15_v6 = vld [vmem:[%s613_s0 + $0x8] sm:$0xff]  ;;  %v16_v9 = vld [vmem:[%s613_s0 + $0x10] sm:$0xff] }
   0x2   :  { %v56_v1 = vshrl.u32 %v55_v0, 7  ;;  %v109_v3 = vld [vmem:[%s612_s2] sm:$0x7]  ;;  %v17_v10 = vld [vmem:[%s613_s0 + $0x18] sm:$0xff]  ;;  %v19_v16 = vld [vmem:[%s613_s0 + $0x28] sm:$0xff] }
   0x3   :  { %v14_v4 = vld [vmem:[%s613_s0] sm:$0xff]  ;;  %v20_v17 = vld [vmem:[%s613_s0 + $0x30] sm:$0xff]  ;;  %v21_v18 = vld [vmem:[%s613_s0 + $0x38] sm:$0xff] }
   0x4   :  { %v57_v5 = vsub.s32 0, %v56_v1  ;;  %v61_v7 = vsub.s32 1, %v56_v1  ;;  %v65_v8 = vsub.s32 2, %v56_v1  ;;  %v18_v11 = vld [vmem:[%s613_s0 + $0x20] sm:$0xff]  ;;  %v23_v34 = vld [vmem:[%s613_s0 + $0x48] sm:$0xff]  ;;  %v24_v35 = vld [vmem:[%s613_s0 + $0x50] sm:$0xff] }
   0x5   :  { %v22_v33 = vld [vmem:[%s613_s0 + $0x40] sm:$0xff]  ;;  %v25_v40 = vld [vmem:[%s613_s0 + $0x58] sm:$0xff]  ;;  %v27_v42 = vld [vmem:[%s613_s0 + $0x68] sm:$0xff] }
   0x6   :  { %v289_v12 = vrot.slane %v53_v2, %v57_v5  ;;  %v291_v13 = vrot.slane %v109_v3, %v57_v5  ;;  %v293_v14 = vrot.slane %v53_v2, %v61_v7  ;;  %v295_v15 = vrot.slane %v109_v3, %v61_v7  ;;  %v26_v41 = vld [vmem:[%s613_s0 + $0x60] sm:$0xff]  ;;  %v28_v47 = vld [vmem:[%s613_s0 + $0x70] sm:$0xff]  ;;  %v29_v48 = vld [vmem:[%s613_s0 + $0x78] sm:$0xff] }
   0x7   :  { %v306_v19 = vrot.slane %v53_v2, %v65_v8  ;;  %v308_v20 = vrot.slane %v109_v3, %v65_v8  ;;  %v30_v1 = vld [vmem:[%s613_s0 + $0x80] sm:$0xff]  ;;  %v31_v2 = vld [vmem:[%s613_s0 + $0x88] sm:$0xff]  ;;  %v32_v3 = vld [vmem:[%s613_s0 + $0x90] sm:$0xff] }
   0x8   :  { %v70_v21 = vmul.f32 %v289_v12, %v14_v4  ;;  %v71_v22 = vmul.f32 %v293_v14, %v15_v6  ;;  %v73_v23 = vmul.f32 %v289_v12, %v17_v10  ;;  %v74_v24 = vmul.f32 %v293_v14, %v18_v11  ;;  %v33_v8 = vld [vmem:[%s613_s0 + $0x98] sm:$0xff]  ;;  %v35_v10 = vld [vmem:[%s613_s0 + $0xa8] sm:$0xff] }
   0x9   :  { %v72_v25 = vmul.f32 %v306_v19, %v16_v9  ;;  %v75_v26 = vmul.f32 %v306_v19, %v19_v16  ;;  %v76_v27 = vmul.f32 %v289_v12, %v20_v17  ;;  %v77_v28 = vmul.f32 %v293_v14, %v21_v18  ;;  %v34_v9 = vld [vmem:[%s613_s0 + $0xa0] sm:$0xff] }
   0xa   :  { %v126_v29 = vadd.f32 %v291_v13, %v70_v21  ;;  %v127_v30 = vadd.f32 %v295_v15, %v71_v22  ;;  %v129_v31 = vadd.f32 %v291_v13, %v73_v23  ;;  %v130_v32 = vadd.f32 %v295_v15, %v74_v24  ;;  %v36_v21 = vld [vmem:[%s613_s0 + $0xb0] sm:$0xff]  ;;  %v37_v22 = vld [vmem:[%s613_s0 + $0xb8] sm:$0xff] }
   0xb   :  { %v128_v36 = vadd.f32 %v308_v20, %v72_v25  ;;  %v131_v37 = vadd.f32 %v308_v20, %v75_v26  ;;  %v132_v38 = vadd.f32 %v291_v13, %v76_v27  ;;  %v133_v39 = vadd.f32 %v295_v15, %v77_v28 }
   0xc   :  { %v165_v43 = vmax.f32 %v126_v29, 0.0  ;;  %v166_v44 = vmax.f32 %v127_v30, 0.0  ;;  %v168_v45 = vmax.f32 %v129_v31, 0.0  ;;  %v169_v46 = vmax.f32 %v130_v32, 0.0 }
   0xd   :  { %v167_v49 = vmax.f32 %v128_v36, 0.0  ;;  %v170_v50 = vmax.f32 %v131_v37, 0.0  ;;  %v171_v51 = vmax.f32 %v132_v38, 0.0  ;;  %v172_v52 = vmax.f32 %v133_v39, 0.0  ;;  %v38_v39 = vld [vmem:[%s613_s0 + $0xc0] sm:$0xff] }
   0xe   :  { %204 = vst [vmem:[%s614_s3] sm:$0xff] %v165_v43  ;;  %205 = vst [vmem:[%s614_s3 + $0x8] sm:$0xff] %v166_v44  ;;  %v78_v53 = vmul.f32 %v306_v19, %v22_v33  ;;  %v79_v54 = vmul.f32 %v289_v12, %v23_v34  ;;  %v80_v55 = vmul.f32 %v293_v14, %v24_v35 }
   0xf   :  { %208 = vst [vmem:[%s614_s3 + $0x18] sm:$0xff] %v168_v45  ;;  %209 = vst [vmem:[%s614_s3 + $0x20] sm:$0xff] %v169_v46  ;;  %v81_v56 = vmul.f32 %v306_v19, %v25_v40  ;;  %v82_v57 = vmul.f32 %v289_v12, %v26_v41  ;;  %v83_v58 = vmul.f32 %v293_v14, %v27_v42  ;;  %v39_v40 = vld [vmem:[%s613_s0 + $0xc8] sm:$0xff]  ;;  %v40_v41 = vld [vmem:[%s613_s0 + $0xd0] sm:$0xff] }
  0x10   :  { %207 = vst.msk [vmem:[%s614_s3 + $0x10] sm:$0xff] %vm206_vm0, %v167_v49  ;;  %210 = vst.msk [vmem:[%s614_s3 + $0x28] sm:$0xff] %vm206_vm0, %v170_v50  ;;  %v84_v59 = vmul.f32 %v306_v19, %v28_v47  ;;  %v85_v60 = vmul.f32 %v289_v12, %v29_v48  ;;  %v134_v61 = vadd.f32 %v308_v20, %v78_v53  ;;  %v41_v46 = vld [vmem:[%s613_s0 + $0xd8] sm:$0xff]  ;;  %v42_v47 = vld [vmem:[%s613_s0 + $0xe0] sm:$0xff] }
  0x11   :  { %211 = vst [vmem:[%s614_s3 + $0x30] sm:$0xff] %v171_v51  ;;  %212 = vst [vmem:[%s614_s3 + $0x38] sm:$0xff] %v172_v52  ;;  %v135_v62 = vadd.f32 %v291_v13, %v79_v54  ;;  %v136_v63 = vadd.f32 %v295_v15, %v80_v55  ;;  %v137_v0 = vadd.f32 %v308_v20, %v81_v56  ;;  %v43_v48 = vld [vmem:[%s613_s0 + $0xe8] sm:$0xff]  ;;  %v44_v53 = vld [vmem:[%s613_s0 + $0xf0] sm:$0xff] }
  0x12   :  { %v138_v4 = vadd.f32 %v291_v13, %v82_v57  ;;  %v139_v5 = vadd.f32 %v295_v15, %v83_v58  ;;  %v140_v6 = vadd.f32 %v308_v20, %v84_v59  ;;  %v141_v7 = vadd.f32 %v291_v13, %v85_v60  ;;  %v45_v54 = vld [vmem:[%s613_s0 + $0xf8] sm:$0xff] }
  0x13   :  { %v173_v11 = vmax.f32 %v134_v61, 0.0  ;;  %v174_v16 = vmax.f32 %v135_v62, 0.0  ;;  %v175_v17 = vmax.f32 %v136_v63, 0.0  ;;  %v176_v18 = vmax.f32 %v137_v0, 0.0 }
  0x14   :  { %v177_v23 = vmax.f32 %v138_v4, 0.0  ;;  %v178_v24 = vmax.f32 %v139_v5, 0.0  ;;  %v179_v25 = vmax.f32 %v140_v6, 0.0  ;;  %v180_v26 = vmax.f32 %v141_v7, 0.0  ;;  %v46_v7 = vld [vmem:[%s613_s0 + $0x100] sm:$0xff] }
  0x15   :  { %213 = vst.msk [vmem:[%s614_s3 + $0x40] sm:$0xff] %vm206_vm0, %v173_v11  ;;  %214 = vst [vmem:[%s614_s3 + $0x48] sm:$0xff] %v174_v16  ;;  %v86_v27 = vmul.f32 %v293_v14, %v30_v1  ;;  %v87_v28 = vmul.f32 %v306_v19, %v31_v2  ;;  %v88_v29 = vmul.f32 %v289_v12, %v32_v3 }
  0x16   :  { %215 = vst [vmem:[%s614_s3 + $0x50] sm:$0xff] %v175_v17  ;;  %216 = vst.msk [vmem:[%s614_s3 + $0x58] sm:$0xff] %vm206_vm0, %v176_v18  ;;  %v89_v30 = vmul.f32 %v293_v14, %v33_v8  ;;  %v90_v31 = vmul.f32 %v306_v19, %v34_v9  ;;  %v91_v32 = vmul.f32 %v289_v12, %v35_v10  ;;  %v47_v8 = vld [vmem:[%s613_s0 + $0x108] sm:$0xff]  ;;  %v48_v17 = vld [vmem:[%s613_s0 + $0x110] sm:$0xff] }
  0x17   :  { %217 = vst [vmem:[%s614_s3 + $0x60] sm:$0xff] %v177_v23  ;;  %218 = vst [vmem:[%s614_s3 + $0x68] sm:$0xff] %v178_v24  ;;  %v92_v33 = vmul.f32 %v293_v14, %v36_v21  ;;  %v93_v34 = vmul.f32 %v306_v19, %v37_v22  ;;  %v142_v35 = vadd.f32 %v295_v15, %v86_v27  ;;  %v49_v18 = vld [vmem:[%s613_s0 + $0x118] sm:$0xff]  ;;  %v50_v21 = vld [vmem:[%s613_s0 + $0x120] sm:$0xff] }
  0x18   :  { %219 = vst.msk [vmem:[%s614_s3 + $0x70] sm:$0xff] %vm206_vm0, %v179_v25  ;;  %220 = vst [vmem:[%s614_s3 + $0x78] sm:$0xff] %v180_v26  ;;  %v143_v36 = vadd.f32 %v308_v20, %v87_v28  ;;  %v144_v37 = vadd.f32 %v291_v13, %v88_v29  ;;  %v145_v38 = vadd.f32 %v295_v15, %v89_v30  ;;  %v51_v26 = vld [vmem:[%s613_s0 + $0x128] sm:$0xff]  ;;  %v52_v27 = vld [vmem:[%s613_s0 + $0x130] sm:$0xff] }
  0x19   :  { %v146_v42 = vadd.f32 %v308_v20, %v90_v31  ;;  %v147_v43 = vadd.f32 %v291_v13, %v91_v32  ;;  %v148_v44 = vadd.f32 %v295_v15, %v92_v33  ;;  %v149_v45 = vadd.f32 %v308_v20, %v93_v34 }
  0x1a   :  { %v181_v49 = vmax.f32 %v142_v35, 0.0  ;;  %v182_v50 = vmax.f32 %v143_v36, 0.0  ;;  %v183_v51 = vmax.f32 %v144_v37, 0.0  ;;  %v184_v52 = vmax.f32 %v145_v38, 0.0 }
  0x1b   :  { %v185_v55 = vmax.f32 %v146_v42, 0.0  ;;  %v186_v56 = vmax.f32 %v147_v43, 0.0  ;;  %v187_v57 = vmax.f32 %v148_v44, 0.0  ;;  %v188_v58 = vmax.f32 %v149_v45, 0.0 }
  0x1c   :  { %221 = vst [vmem:[%s614_s3 + $0x80] sm:$0xff] %v181_v49  ;;  %222 = vst.msk [vmem:[%s614_s3 + $0x88] sm:$0xff] %vm206_vm0, %v182_v50  ;;  %v94_v59 = vmul.f32 %v289_v12, %v38_v39  ;;  %v95_v60 = vmul.f32 %v293_v14, %v39_v40  ;;  %v96_v61 = vmul.f32 %v306_v19, %v40_v41 }
  0x1d   :  { %223 = vst [vmem:[%s614_s3 + $0x90] sm:$0xff] %v183_v51  ;;  %224 = vst [vmem:[%s614_s3 + $0x98] sm:$0xff] %v184_v52  ;;  %v97_v62 = vmul.f32 %v289_v12, %v41_v46  ;;  %v98_v63 = vmul.f32 %v293_v14, %v42_v47  ;;  %v99_v0 = vmul.f32 %v306_v19, %v43_v48 }
  0x1e   :  { %225 = vst.msk [vmem:[%s614_s3 + $0xa0] sm:$0xff] %vm206_vm0, %v185_v55  ;;  %226 = vst [vmem:[%s614_s3 + $0xa8] sm:$0xff] %v186_v56  ;;  %v100_v1 = vmul.f32 %v289_v12, %v44_v53  ;;  %v101_v2 = vmul.f32 %v293_v14, %v45_v54  ;;  %v150_v3 = vadd.f32 %v291_v13, %v94_v59 }
  0x1f   :  { %227 = vst [vmem:[%s614_s3 + $0xb0] sm:$0xff] %v187_v57  ;;  %228 = vst.msk [vmem:[%s614_s3 + $0xb8] sm:$0xff] %vm206_vm0, %v188_v58  ;;  %v151_v4 = vadd.f32 %v295_v15, %v95_v60  ;;  %v152_v5 = vadd.f32 %v308_v20, %v96_v61  ;;  %v153_v6 = vadd.f32 %v291_v13, %v97_v62 }
  0x20   :  { %v154_v9 = vadd.f32 %v295_v15, %v98_v63  ;;  %v155_v10 = vadd.f32 %v308_v20, %v99_v0  ;;  %v156_v11 = vadd.f32 %v291_v13, %v100_v1  ;;  %v157_v16 = vadd.f32 %v295_v15, %v101_v2 }
  0x21   :  { %v189_v22 = vmax.f32 %v150_v3, 0.0  ;;  %v190_v23 = vmax.f32 %v151_v4, 0.0  ;;  %v191_v24 = vmax.f32 %v152_v5, 0.0  ;;  %v192_v25 = vmax.f32 %v153_v6, 0.0 }
  0x22   :  { %v193_v28 = vmax.f32 %v154_v9, 0.0  ;;  %v194_v29 = vmax.f32 %v155_v10, 0.0  ;;  %v195_v30 = vmax.f32 %v156_v11, 0.0  ;;  %v196_v31 = vmax.f32 %v157_v16, 0.0 }
  0x23   :  { %229 = vst [vmem:[%s614_s3 + $0xc0] sm:$0xff] %v189_v22  ;;  %230 = vst [vmem:[%s614_s3 + $0xc8] sm:$0xff] %v190_v23  ;;  %v102_v32 = vmul.f32 %v306_v19, %v46_v7  ;;  %v103_v33 = vmul.f32 %v289_v12, %v47_v8  ;;  %v104_v34 = vmul.f32 %v293_v14, %v48_v17 }
  0x24   :  { %231 = vst.msk [vmem:[%s614_s3 + $0xd0] sm:$0xff] %vm206_vm0, %v191_v24  ;;  %232 = vst [vmem:[%s614_s3 + $0xd8] sm:$0xff] %v192_v25  ;;  %v105_v35 = vmul.f32 %v306_v19, %v49_v18  ;;  %v106_v36 = vmul.f32 %v289_v12, %v50_v21  ;;  %v107_v37 = vmul.f32 %v293_v14, %v51_v26 }
  0x25   :  { %233 = vst [vmem:[%s614_s3 + $0xe0] sm:$0xff] %v193_v28  ;;  %234 = vst.msk [vmem:[%s614_s3 + $0xe8] sm:$0xff] %vm206_vm0, %v194_v29  ;;  %v108_v38 = vmul.f32 %v306_v19, %v52_v27  ;;  %v158_v39 = vadd.f32 %v308_v20, %v102_v32  ;;  %v159_v40 = vadd.f32 %v291_v13, %v103_v33 }
  0x26   :  { %235 = vst [vmem:[%s614_s3 + $0xf0] sm:$0xff] %v195_v30  ;;  %236 = vst [vmem:[%s614_s3 + $0xf8] sm:$0xff] %v196_v31  ;;  %v160_v41 = vadd.f32 %v295_v15, %v104_v34  ;;  %v161_v42 = vadd.f32 %v308_v20, %v105_v35  ;;  %v162_v43 = vadd.f32 %v291_v13, %v106_v36 }
  0x27   :  { %v163_v44 = vadd.f32 %v295_v15, %v107_v37  ;;  %v164_v45 = vadd.f32 %v308_v20, %v108_v38  ;;  %v197_v46 = vmax.f32 %v158_v39, 0.0  ;;  %v198_v12 = vmax.f32 %v159_v40, 0.0 }
  0x28   :  { %v199_v47 = vmax.f32 %v160_v41, 0.0  ;;  %v200_v14 = vmax.f32 %v161_v42, 0.0  ;;  %v201_v48 = vmax.f32 %v162_v43, 0.0 }
  0x29   :  { %v202_v19 = vmax.f32 %v163_v44, 0.0  ;;  %v203_v49 = vmax.f32 %v164_v45, 0.0  ;;  %237 = vst.msk [vmem:[%s614_s3 + $0x100] sm:$0xff] %vm206_vm0, %v197_v46  ;;  %238 = vst [vmem:[%s614_s3 + $0x108] sm:$0xff] %v198_v12 }
  0x2a   :  { %239 = vst [vmem:[%s614_s3 + $0x110] sm:$0xff] %v199_v47  ;;  %240 = vst.msk [vmem:[%s614_s3 + $0x118] sm:$0xff] %vm206_vm0, %v200_v14 }
  0x2b   :  { %241 = vst [vmem:[%s614_s3 + $0x120] sm:$0xff] %v201_v48  ;;  %242 = vst [vmem:[%s614_s3 + $0x128] sm:$0xff] %v202_v19 }
  0x2c   :  { %243 = vst.msk [vmem:[%s614_s3 + $0x130] sm:$0xff] %vm206_vm0, %v203_v49 }

// kernel: reduction_block_b.23
= control target key start
LH: loop header
LB: loop body
LE: loop exit
PB: predicated region body
PF: predicated region fallthrough
CT: control target
= control target key end

     0   :  { %vm2727_vm0 = vcmask 523264   ;;  %vm4284_vm1 = vcmask 1040384   ;;  %vm4308_vm2 = vcmask 1041408   ;;  %vm4309_vm3 = vcmask 1043458   ;;  %s7710_s1 = inlined_call_operand.vmem [shape: bf16[1728,320], index: 1, kind: input, shape index: {}]   ;;  %s7711_s0 = inlined_call_operand.vmem [shape: bf16[104,1728], index: 0, kind: input, shape index: {}]   ;;  %s7712_s2 = inlined_call_operand.vmem [shape: f32[104,320], index: 2, kind: output, shape index: {0}]   ;;  %s7713_s3 = inlined_call_operand.vmem [shape: f32[1,2,320], index: 3, kind: output, shape index: {1}]  }
   0x1   :  { %v5304_v0 = vld [vmem:[%s7710_s1 + $0x4] ss:$12 sps:$4 sm:$0xff]   ;;  %v5308_v2 = vld [vmem:[%s7710_s1] ss:$12 sps:$4 sm:$0xff]   ;;  %v5310_v4 = vld [vmem:[%s7710_s1 + $0x1c] ss:$12 sps:$4 sm:$0xff]  }
   0x2   :  { %v5306_v1 = vld [vmem:[%s7710_s1 + $0x784] ss:$12 sps:$4 sm:$0xff]   ;;  %2749 = vmatprep.subr.bf16.mxu0 %v5304_v0  ;;  %v5309_v3 = vld [vmem:[%s7710_s1 + $0x780] ss:$12 sps:$4 sm:$0xff]   ;;  %v5312_v5 = vld [vmem:[%s7710_s1 + $0x79c] ss:$12 sps:$4 sm:$0xff]  }
   0x3   :  { %5106 = vmatprep.subr.bf16.mxu1 %v5306_v1  ;;  %2750 = vmatpush1.bf16.msra.mxu0 %v5308_v2  ;;  %v5314_v6 = vld [vmem:[%s7710_s1 + $0x18] ss:$12 sps:$4 sm:$0xff]   ;;  %v5316_v8 = vld [vmem:[%s7710_s1 + $0x34] ss:$12 sps:$4 sm:$0xff]   ;;  %v5320_v10 = vld [vmem:[%s7710_s1 + $0x30] ss:$12 sps:$4 sm:$0xff]  }
   0x4   :  { %5122 = vmatpush1.bf16.msra.mxu1 %v5309_v3  ;;  %2751 = vmatprep.subr.bf16.mxu0 %v5310_v4  ;;  %v5315_v7 = vld [vmem:[%s7710_s1 + $0x798] ss:$12 sps:$4 sm:$0xff]   ;;  %v5318_v9 = vld [vmem:[%s7710_s1 + $0x7b4] ss:$12 sps:$4 sm:$0xff]   ;;  %v5321_v11 = vld [vmem:[%s7710_s1 + $0x7b0] ss:$12 sps:$4 sm:$0xff]  }
   0x5   :  { %5107 = vmatprep.subr.bf16.mxu1 %v5312_v5  ;;  %v5322_v12 = vld [vmem:[%s7710_s1 + $0x4c] ss:$12 sps:$4 sm:$0xff]   ;;  %v5326_v14 = vld [vmem:[%s7710_s1 + $0x48] ss:$12 sps:$4 sm:$0xff]   ;;  %v5328_v16 = vld [vmem:[%s7710_s1 + $0x64] ss:$12 sps:$4 sm:$0xff]  }
   0x6   :  { %v5324_v13 = vld [vmem:[%s7710_s1 + $0x7cc] ss:$12 sps:$4 sm:$0xff]   ;;  %v5327_v15 = vld [vmem:[%s7710_s1 + $0x7c8] ss:$12 sps:$4 sm:$0xff]   ;;  %v5330_v17 = vld [vmem:[%s7710_s1 + $0x7e4] ss:$12 sps:$4 sm:$0xff]  }
   0x7   :  { %2752 = vmatpush1.bf16.msra.mxu0 %v5314_v6  ;;  %v5332_v18 = vld [vmem:[%s7710_s1 + $0x60] ss:$12 sps:$4 sm:$0xff]   ;;  %v5334_v20 = vld [vmem:[%s7710_s1 + $0x7c] ss:$12 sps:$4 sm:$0xff]   ;;  %v5338_v22 = vld [vmem:[%s7710_s1 + $0x78] ss:$12 sps:$4 sm:$0xff]  }
   0x8   :  { %5123 = vmatpush1.bf16.msra.mxu1 %v5315_v7  ;;  %2753 = vmatprep.subr.bf16.mxu0 %v5316_v8  ;;  %v5333_v19 = vld [vmem:[%s7710_s1 + $0x7e0] ss:$12 sps:$4 sm:$0xff]   ;;  %v5336_v21 = vld [vmem:[%s7710_s1 + $0x7fc] ss:$12 sps:$4 sm:$0xff]   ;;  %v5339_v23 = vld [vmem:[%s7710_s1 + $0x7f8] ss:$12 sps:$4 sm:$0xff]  }
   0x9   :  { %5108 = vmatprep.subr.bf16.mxu1 %v5318_v9  ;;  %v5340_v24 = vld [vmem:[%s7710_s1 + $0x94] ss:$12 sps:$4 sm:$0xff]   ;;  %v5344_v26 = vld [vmem:[%s7710_s1 + $0x90] ss:$12 sps:$4 sm:$0xff]   ;;  %v5346_v28 = vld [vmem:[%s7710_s1 + $0xac] ss:$12 sps:$4 sm:$0xff]  }
   0xa   :  { %v5342_v25 = vld [vmem:[%s7710_s1 + $0x814] ss:$12 sps:$4 sm:$0xff]   ;;  %v5345_v27 = vld [vmem:[%s7710_s1 + $0x810] ss:$12 sps:$4 sm:$0xff]   ;;  %v5348_v29 = vld [vmem:[%s7710_s1 + $0x82c] ss:$12 sps:$4 sm:$0xff]  }
   0xb   :  { %2754 = vmatpush1.bf16.msra.mxu0 %v5320_v10  ;;  %v5350_v30 = vld [vmem:[%s7710_s1 + $0xa8] ss:$12 sps:$4 sm:$0xff]   ;;  %v5352_v32 = vld [vmem:[%s7710_s1 + $0xc4] ss:$12 sps:$4 sm:$0xff]   ;;  %v5356_v34 = vld [vmem:[%s7710_s1 + $0xc0] ss:$12 sps:$4 sm:$0xff]  }
   0xc   :  { %5124 = vmatpush1.bf16.msra.mxu1 %v5321_v11  ;;  %2755 = vmatprep.subr.bf16.mxu0 %v5322_v12  ;;  %v5351_v31 = vld [vmem:[%s7710_s1 + $0x828] ss:$12 sps:$4 sm:$0xff]   ;;  %v5354_v33 = vld [vmem:[%s7710_s1 + $0x844] ss:$12 sps:$4 sm:$0xff]   ;;  %v5357_v35 = vld [vmem:[%s7710_s1 + $0x840] ss:$12 sps:$4 sm:$0xff]  }
   0xd   :  { %5109 = vmatprep.subr.bf16.mxu1 %v5324_v13  ;;  %v5358_v36 = vld [vmem:[%s7710_s1 + $0xdc] ss:$12 sps:$4 sm:$0xff]   ;;  %v5362_v38 = vld [vmem:[%s7710_s1 + $0xd8] ss:$12 sps:$4 sm:$0xff]   ;;  %v5364_v40 = vld [vmem:[%s7710_s1 + $0xf4] ss:$12 sps:$4 sm:$0xff]  }
   0xe   :  { %v5360_v37 = vld [vmem:[%s7710_s1 + $0x85c] ss:$12 sps:$4 sm:$0xff]   ;;  %v5363_v39 = vld [vmem:[%s7710_s1 + $0x858] ss:$12 sps:$4 sm:$0xff]   ;;  %v5366_v41 = vld [vmem:[%s7710_s1 + $0x874] ss:$12 sps:$4 sm:$0xff]  }
   0xf   :  { %2756 = vmatpush1.bf16.msra.mxu0 %v5326_v14  ;;  %v5368_v42 = vld [vmem:[%s7710_s1 + $0xf0] ss:$12 sps:$4 sm:$0xff]   ;;  %v5370_v44 = vld [vmem:[%s7710_s1 + $0x10c] ss:$12 sps:$4 sm:$0xff]   ;;  %v5374_v46 = vld [vmem:[%s7710_s1 + $0x108] ss:$12 sps:$4 sm:$0xff]  }
  0x10   :  { %5125 = vmatpush1.bf16.msra.mxu1 %v5327_v15  ;;  %2757 = vmatprep.subr.bf16.mxu0 %v5328_v16  ;;  %v5369_v43 = vld [vmem:[%s7710_s1 + $0x870] ss:$12 sps:$4 sm:$0xff]   ;;  %v5372_v45 = vld [vmem:[%s7710_s1 + $0x88c] ss:$12 sps:$4 sm:$0xff]   ;;  %v5375_v48 = vld [vmem:[%s7710_s1 + $0x888] ss:$12 sps:$4 sm:$0xff]  }
  0x11   :  { %5110 = vmatprep.subr.bf16.mxu1 %v5330_v17  ;;  %v103_v47 = vld [vmem:[%s7711_s0 + $0x2c8] sm:$0xff]  ;;  %v5404_v50 = vld [vmem:[%s7711_s0 + $0x4] ss:$56 sps:$4 sm:$0xff]   ;;  %v5388_v59 = vld [vmem:[%s7710_s1 + $0x154] ss:$12 sps:$4 sm:$0xff]   ;;  %vm4311_vm5 = vcmask 521220  }
  0x12   :  { %v6077_v49 = vcombine.high %v103_v47, %v103_v47  ;;  %v5376_v51 = vld [vmem:[%s7710_s1 + $0x124] ss:$12 sps:$4 sm:$0xff]   ;;  %2781 = vmatprep.mubr.bf16.mxu0 %v5404_v50  ;;  %v5380_v53 = vld [vmem:[%s7710_s1 + $0x120] ss:$12 sps:$4 sm:$0xff]   ;;  %v5382_v55 = vld [vmem:[%s7710_s1 + $0x13c] ss:$12 sps:$4 sm:$0xff]   ;;  %v6142_v6 = vcombine.low %v103_v47, %v103_v47 }
  0x13   :  { %2758 = vmatpush1.bf16.msra.mxu0 %v5332_v18  ;;  %v5378_v52 = vld [vmem:[%s7710_s1 + $0x8a4] ss:$12 sps:$4 sm:$0xff]   ;;  %v5381_v54 = vld [vmem:[%s7710_s1 + $0x8a0] ss:$12 sps:$4 sm:$0xff]   ;;  %v5384_v56 = vld [vmem:[%s7710_s1 + $0x8bc] ss:$12 sps:$4 sm:$0xff]  }
  0x14   :  { %5126 = vmatpush1.bf16.msra.mxu1 %v5333_v19  ;;  %2759 = vmatprep.subr.bf16.mxu0 %v5334_v20  ;;  %v5386_v57 = vld [vmem:[%s7710_s1 + $0x138] ss:$12 sps:$4 sm:$0xff]   ;;  %v5390_v60 = vld [vmem:[%s7710_s1 + $0x8d4] ss:$12 sps:$4 sm:$0xff]   ;;  %v5392_v61 = vld [vmem:[%s7710_s1 + $0x150] ss:$12 sps:$4 sm:$0xff]  }
  0x15   :  { %5111 = vmatprep.subr.bf16.mxu1 %v5336_v21  ;;  %3346 = vmatprep.mubr.bf16.mxu1 %v6077_v49  ;;  %v5387_v58 = vld [vmem:[%s7710_s1 + $0x8b8] ss:$12 sps:$4 sm:$0xff]   ;;  %v5393_v62 = vld [vmem:[%s7710_s1 + $0x8d0] ss:$12 sps:$4 sm:$0xff]   ;;  %v5398_v1 = vld [vmem:[%s7710_s1 + $0x168] ss:$12 sps:$4 sm:$0xff]  }
  0x16   :  { %v5394_v63 = vld [vmem:[%s7710_s1 + $0x16c] ss:$12 sps:$4 sm:$0xff]   ;;  %v5399_v2 = vld [vmem:[%s7710_s1 + $0x8e8] ss:$12 sps:$4 sm:$0xff]   ;;  %v5407_v3 = vld [vmem:[%s7710_s1 + $0x184] ss:$12 sps:$4 sm:$0xff]  }
  0x17   :  { %2760 = vmatpush1.bf16.msra.mxu0 %v5338_v22  ;;  %v5396_v0 = vld [vmem:[%s7710_s1 + $0x8ec] ss:$12 sps:$4 sm:$0xff]   ;;  %v5408_v4 = vld [vmem:[%s7710_s1 + $0xc8] ss:$12 sps:$4 sm:$0xff]   ;;  %v5415_v16 = vld [vmem:[%s7710_s1 + $0x1b0] ss:$12 sps:$4 sm:$0xff]  }
  0x18   :  { %5127 = vmatpush1.bf16.msra.mxu1 %v5339_v23  ;;  %2761 = vmatprep.subr.bf16.mxu0 %v5340_v24  ;;  %v6140_v5 = vld [vmem:[%s7711_s0] ss:$56 sps:$4 sm:$0xff]   ;;  %v5409_v8 = vld [vmem:[%s7710_s1 + $0x8] ss:$12 sps:$4 sm:$0xff]   ;;  %v5423_v20 = vld [vmem:[%s7710_s1 + $0x110] ss:$12 sps:$4 sm:$0xff]  }
  0x19   :  { %5112 = vmatprep.subr.bf16.mxu1 %v5342_v25  ;;  %v5405_v7 = vld [vmem:[%s7710_s1 + $0x180] ss:$12 sps:$4 sm:$0xff]   ;;  %v5412_v9 = vld [vmem:[%s7710_s1 + $0x19c] ss:$12 sps:$4 sm:$0xff]   ;;  %v5410_v12 = vld [vmem:[%s7710_s1 + $0x198] ss:$12 sps:$4 sm:$0xff]  }
  0x1a   :  { %v5413_v10 = vld [vmem:[%s7710_s1 + $0xe0] ss:$12 sps:$4 sm:$0xff]   ;;  %v5418_v15 = vld [vmem:[%s7710_s1 + $0xf8] ss:$12 sps:$4 sm:$0xff]   ;;  %v6185_v18 = vld [vmem:[%s7711_s0 + $0x70] ss:$56 sps:$4 sm:$0xff]  }
  0x1b   :  { %2762 = vmatpush1.bf16.msra.mxu0 %v5344_v26  ;;  %v6159_v11 = vld [vmem:[%s7711_s0 + $0x74] ss:$56 sps:$4 sm:$0xff]   ;;  %v5419_v17 = vld [vmem:[%s7710_s1 + $0x38] ss:$12 sps:$4 sm:$0xff]   ;;  %v5424_v23 = vld [vmem:[%s7710_s1 + $0x50] ss:$12 sps:$4 sm:$0xff]  }
  0x1c   :  { %5128 = vmatpush1.bf16.msra.mxu1 %v5345_v27  ;;  %2763 = vmatprep.subr.bf16.mxu0 %v5346_v28  ;;  %v5414_v13 = vld [vmem:[%s7710_s1 + $0x20] ss:$12 sps:$4 sm:$0xff]   ;;  %v6196_v21 = vld [vmem:[%s7711_s0 + $0xe4] ss:$56 sps:$4 sm:$0xff]   ;;  %v5420_v22 = vld [vmem:[%s7710_s1 + $0x1c8] ss:$12 sps:$4 sm:$0xff]  }
  0x1d   :  { %5113 = vmatprep.subr.bf16.mxu1 %v5348_v29  ;;  %v5417_v14 = vld [vmem:[%s7710_s1 + $0x1b4] ss:$12 sps:$4 sm:$0xff]   ;;  %v5422_v19 = vld [vmem:[%s7710_s1 + $0x1cc] ss:$12 sps:$4 sm:$0xff]   ;;  %v5429_v24 = vld [vmem:[%s7710_s1 + $0x1e4] ss:$12 sps:$4 sm:$0xff]  }
  0x1e   :  { %v5430_v25 = vld [vmem:[%s7710_s1 + $0x128] ss:$12 sps:$4 sm:$0xff]   ;;  %v5427_v26 = vld [vmem:[%s7710_s1 + $0x1e0] ss:$12 sps:$4 sm:$0xff]   ;;  %vm4310_vm4 = vmor %vm4309_vm3, %vm4308_vm2 }
  0x1f   :  { %2764 = vmatpush1.bf16.msra.mxu0 %v5350_v30  ;;  %v6218_v27 = vld [vmem:[%s7711_s0 + $0xe0] ss:$56 sps:$4 sm:$0xff]   ;;  %v5432_v28 = vld [vmem:[%s7710_s1 + $0x68] ss:$12 sps:$4 sm:$0xff]   ;;  %vm4312_vm6 = vmor %vm4311_vm5, %vm4310_vm4 }
  0x20   :  { %5129 = vmatpush1.bf16.msra.mxu1 %v5351_v31  ;;  %2765 = vmatprep.subr.bf16.mxu0 %v5352_v32  ;;  %v5435_v29 = vld [vmem:[%s7710_s1 + $0x1fc] ss:$12 sps:$4 sm:$0xff]   ;;  %v5436_v30 = vld [vmem:[%s7710_s1 + $0x140] ss:$12 sps:$4 sm:$0xff]   ;;  %v5433_v32 = vld [vmem:[%s7710_s1 + $0x1f8] ss:$12 sps:$4 sm:$0xff]  }
  0x21   :  { %5114 = vmatprep.subr.bf16.mxu1 %v5354_v33  ;;  %v6232_v31 = vld [vmem:[%s7711_s0 + $0x154] ss:$56 sps:$4 sm:$0xff]   ;;  %v6290_v47 = vld [vmem:[%s7711_s0 + $0x1c0] ss:$56 sps:$4 sm:$0xff]  }
  0x22   :  { %v5437_v33 = vld [vmem:[%s7710_s1 + $0x80] ss:$12 sps:$4 sm:$0xff]  }
  0x23   :  { %2766 = vmatpush1.bf16.msra.mxu0 %v5356_v34  ;;  %v5442_v34 = vld [vmem:[%s7710_s1 + $0x214] ss:$12 sps:$4 sm:$0xff]  }
  0x24   :  { %5130 = vmatpush1.bf16.msra.mxu1 %v5357_v35  ;;  %2767 = vmatprep.subr.bf16.mxu0 %v5358_v36  ;;  %v5443_v35 = vld [vmem:[%s7710_s1 + $0x158] ss:$12 sps:$4 sm:$0xff]   ;;  %v5440_v36 = vld [vmem:[%s7710_s1 + $0x210] ss:$12 sps:$4 sm:$0xff]  }
  0x25   :  { %5115 = vmatprep.subr.bf16.mxu1 %v5360_v37  ;;  %v5445_v37 = vld [vmem:[%s7710_s1 + $0x98] ss:$12 sps:$4 sm:$0xff]  }
  0x27   :  { %2768 = vmatpush1.bf16.msra.mxu0 %v5362_v38  ;;  %v6257_v38 = vld [vmem:[%s7711_s0 + $0x150] ss:$56 sps:$4 sm:$0xff]  }
  0x28   :  { %5131 = vmatpush1.bf16.msra.mxu1 %v5363_v39  ;;  %2769 = vmatprep.subr.bf16.mxu0 %v5364_v40  ;;  %v5448_v39 = vld [vmem:[%s7710_s1 + $0x22c] ss:$12 sps:$4 sm:$0xff]   ;;  %v5449_v40 = vld [vmem:[%s7710_s1 + $0x170] ss:$12 sps:$4 sm:$0xff]  }
  0x29   :  { %5116 = vmatprep.subr.bf16.mxu1 %v5366_v41  ;;  %v6268_v41 = vld [vmem:[%s7711_s0 + $0x1c4] ss:$56 sps:$4 sm:$0xff]  }
  0x2b   :  { %2770 = vmatpush1.bf16.msra.mxu0 %v5368_v42  ;;  %v5446_v42 = vld [vmem:[%s7710_s1 + $0x228] ss:$12 sps:$4 sm:$0xff]  }
  0x2c   :  { %5132 = vmatpush1.bf16.msra.mxu1 %v5369_v43  ;;  %2771 = vmatprep.subr.bf16.mxu0 %v5370_v44  ;;  %v5450_v43 = vld [vmem:[%s7710_s1 + $0xb0] ss:$12 sps:$4 sm:$0xff]  }
  0x2d   :  { %5117 = vmatprep.subr.bf16.mxu1 %v5372_v45  ;;  %v5455_v44 = vld [vmem:[%s7710_s1 + $0x244] ss:$12 sps:$4 sm:$0xff]   ;;  %v5457_v45 = vld [vmem:[%s7710_s1 + $0x248] ss:$12 sps:$4 sm:$0xff]  }
  0x2f   :  { %2772 = vmatpush1.bf16.msra.mxu0 %v5374_v46  ;;  %v5453_v46 = vld [vmem:[%s7710_s1 + $0x240] ss:$12 sps:$4 sm:$0xff]  }
  0x30   :  { %5133 = vmatpush1.bf16.msra.mxu1 %v5375_v48  ;;  %2773 = vmatprep.subr.bf16.mxu0 %v5376_v51  ;;  %v5458_v48 = vld [vmem:[%s7710_s1 + $0x188] ss:$12 sps:$4 sm:$0xff]   ;;  %v5468_v51 = vld [vmem:[%s7710_s1 + $0x260] ss:$12 sps:$4 sm:$0xff]  }
  0x31   :  { %5118 = vmatprep.subr.bf16.mxu1 %v5378_v52  ;;  %v6304_v52 = vld [vmem:[%s7711_s0 + $0x234] ss:$56 sps:$4 sm:$0xff]  }
  0x33   :  { %2774 = vmatpush1.bf16.msra.mxu0 %v5380_v53  ;;  %v5459_v53 = vld [vmem:[%s7710_s1 + $0x258] ss:$12 sps:$4 sm:$0xff]  }
  0x34   :  { %5134 = vmatpush1.bf16.msra.mxu1 %v5381_v54  ;;  %2775 = vmatprep.subr.bf16.mxu0 %v5382_v55  ;;  %v5466_v54 = vld [vmem:[%s7710_s1 + $0x274] ss:$12 sps:$4 sm:$0xff]  }
  0x35   :  { %5119 = vmatprep.subr.bf16.mxu1 %v5384_v56  ;;  %v5469_v55 = vld [vmem:[%s7710_s1 + $0x1a0] ss:$12 sps:$4 sm:$0xff]   ;;  %v5478_v56 = vld [vmem:[%s7710_s1 + $0x278] ss:$12 sps:$4 sm:$0xff]  }
  0x37   :  { %2776 = vmatpush1.bf16.msra.mxu0 %v5386_v57  ;;  %v6325_v57 = vld [vmem:[%s7711_s0 + $0x230] ss:$56 sps:$4 sm:$0xff]  }
  0x38   :  { %5135 = vmatpush1.bf16.msra.mxu1 %v5387_v58  ;;  %2777 = vmatprep.subr.bf16.mxu0 %v5388_v59  ;;  %v98_v58 = vld [vmem:[%s7711_s0 + $0x2a0] sm:$0xff]  ;;  %v5464_v59 = vld [vmem:[%s7710_s1 + $0x270] ss:$12 sps:$4 sm:$0xff]  }
  0x39   :  { %5120 = vmatprep.subr.bf16.mxu1 %v5390_v60  ;;  %v5472_v60 = vld [vmem:[%s7710_s1 + $0x28c] ss:$12 sps:$4 sm:$0xff]  }
  0x3b   :  { %2778 = vmatpush1.bf16.msra.mxu0 %v5392_v61  ;;  %v5480_v61 = vld [vmem:[%s7710_s1 + $0x1b8] ss:$12 sps:$4 sm:$0xff]  }
  0x3c   :  { %5136 = vmatpush1.bf16.msra.mxu1 %v5393_v62  ;;  %2779 = vmatprep.subr.bf16.mxu0 %v5394_v63  ;;  %v5484_v62 = vld [vmem:[%s7710_s1 + $0x290] ss:$12 sps:$4 sm:$0xff]   ;;  %v6342_v63 = vcombine.high %v98_v58, %v98_v58 }
  0x3d   :  { %5121 = vmatprep.subr.bf16.mxu1 %v5396_v0  ;;  %v5470_v0 = vld [vmem:[%s7710_s1 + $0x288] ss:$12 sps:$4 sm:$0xff]  }
  0x3f   :  { %2780 = vmatpush1.bf16.msra.mxu0 %v5398_v1  ;;  %v5477_v1 = vld [vmem:[%s7710_s1 + $0x2a4] ss:$12 sps:$4 sm:$0xff]  }
  0x40   :  { %5137 = vmatpush1.bf16.msra.mxu1 %v5399_v2  ;;  %2850 = vmatprep.subr.bf16.mxu0 %v5407_v3  ;;  %v5489_v2 = vld [vmem:[%s7710_s1 + $0x1d0] ss:$12 sps:$4 sm:$0xff]   ;;  %v5494_v3 = vld [vmem:[%s7710_s1 + $0x2a8] ss:$12 sps:$4 sm:$0xff]  }
  0x41   :  { %4758 = vmatprep.subr.bf16.mxu1 %v5408_v4  ;;  %v5475_v4 = vld [vmem:[%s7710_s1 + $0x2a0] ss:$12 sps:$4 sm:$0xff]  }
  0x42   :  { %2782 = vmatmul.mubr.bf16.vlgmr.msra.gmra.mrb[0].mxu0 %v6140_v5 }
  0x43   :  { %3347 = vmatmul.mubr.bf16.vlgmr.msra.gmra.mrb[0].mxu1 %v6142_v6  ;;  %2851 = vmatpush1.bf16.msra.mxu0 %v5405_v7  ;;  %v6366_v7 = vcombine.low %v98_v58, %v98_v58  ;;  %v5545_v58 = vld [vmem:[%s7710_s1 + $0x3d8] ss:$12 sps:$4 sm:$0xff]  }
  0x44   :  { %4759 = vmatpush3.bf16.msra.mxu1 %v5409_v8  ;;  %2852 = vmatprep.subr.bf16.mxu0 %v5412_v9  ;;  %v5495_v8 = vld [vmem:[%s7710_s1 + $0x1e8] ss:$12 sps:$4 sm:$0xff]   ;;  %v6374_v9 = vld [vmem:[%s7711_s0 + $0xc] ss:$56 sps:$4 sm:$0xff]  }
  0x45   :  { %4760 = vmatprep.subr.bf16.mxu1 %v5413_v10  ;;  %2791 = vmatprep.mubr.bf16.mxu0 %v6159_v11  ;;  %v5505_v10 = vld [vmem:[%s7710_s1 + $0x2c0] ss:$12 sps:$4 sm:$0xff]  }
  0x46   :  { %3488 = vmatprep.mubr.bf16.mxu1 %v5404_v50  ;;  %v5461_v50 = vld [vmem:[%s7710_s1 + $0x25c] ss:$12 sps:$4 sm:$0xff]  }
  0x47   :  { %2853 = vmatpush1.bf16.msra.mxu0 %v5410_v12  ;;  %v5488_v12 = vld [vmem:[%s7710_s1 + $0x2d4] ss:$12 sps:$4 sm:$0xff]  }
  0x48   :  { %4761 = vmatpush3.bf16.msra.mxu1 %v5414_v13  ;;  %2854 = vmatprep.subr.bf16.mxu0 %v5417_v14  ;;  %v5506_v13 = vld [vmem:[%s7710_s1 + $0x200] ss:$12 sps:$4 sm:$0xff]   ;;  %v5513_v14 = vld [vmem:[%s7710_s1 + $0x2d8] ss:$12 sps:$4 sm:$0xff]  }
  0x49   :  { %4762 = vmatprep.subr.bf16.mxu1 %v5418_v15  ;;  %v5486_v15 = vld [vmem:[%s7710_s1 + $0x2d0] ss:$12 sps:$4 sm:$0xff]  }
  0x4a   :  { %2792 = vmatmul.mubr.bf16.gmra.mrb[4].mxu0 %v6185_v18 }
  0x4b   :  { %2855 = vmatpush1.bf16.msra.mxu0 %v5415_v16  ;;  %2801 = vmatprep.mubr.bf16.mxu0 %v6196_v21  ;;  %v5493_v16 = vld [vmem:[%s7710_s1 + $0x2ec] ss:$12 sps:$4 sm:$0xff]  }
  0x4c   :  { %4763 = vmatpush3.bf16.msra.mxu1 %v5419_v17  ;;  %2856 = vmatprep.subr.bf16.mxu0 %v5422_v19  ;;  %v5514_v17 = vld [vmem:[%s7710_s1 + $0x218] ss:$12 sps:$4 sm:$0xff]   ;;  %v5491_v19 = vld [vmem:[%s7710_s1 + $0x2e8] ss:$12 sps:$4 sm:$0xff]  }
  0x4d   :  { %4764 = vmatprep.subr.bf16.mxu1 %v5423_v20  ;;  %v5501_v20 = vld [vmem:[%s7710_s1 + $0x304] ss:$12 sps:$4 sm:$0xff]  }
  0x4f   :  { %2857 = vmatpush1.bf16.msra.mxu0 %v5420_v22  ;;  %v5532_v22 = vld [vmem:[%s7710_s1 + $0x3c8] ss:$12 sps:$4 sm:$0xff]  }
  0x50   :  { %4765 = vmatpush3.bf16.msra.mxu1 %v5424_v23  ;;  %2858 = vmatprep.subr.bf16.mxu0 %v5429_v24  ;;  %v5496_v23 = vld [vmem:[%s7711_s0 + $0x8] ss:$56 sps:$4 sm:$0xff]  }
  0x51   :  { %4766 = vmatprep.subr.bf16.mxu1 %v5430_v25  ;;  %v5499_v24 = vld [vmem:[%s7710_s1 + $0x300] ss:$12 sps:$4 sm:$0xff]   ;;  %v5504_v25 = vld [vmem:[%s7710_s1 + $0x31c] ss:$12 sps:$4 sm:$0xff]  }
  0x52   :  { %2802 = vmatmul.mubr.bf16.gmra.mrb[8].mxu0 %v6218_v27 }
  0x53   :  { %2859 = vmatpush1.bf16.msra.mxu0 %v5427_v26  ;;  %2811 = vmatprep.mubr.bf16.mxu0 %v6232_v31  ;;  %v5515_v26 = vld [vmem:[%s7711_s0 + $0x7c] ss:$56 sps:$4 sm:$0xff]  }
  0x54   :  { %4767 = vmatpush3.bf16.msra.mxu1 %v5432_v28  ;;  %2860 = vmatprep.subr.bf16.mxu0 %v5435_v29  ;;  %v5509_v28 = vld [vmem:[%s7710_s1 + $0x334] ss:$12 sps:$4 sm:$0xff]   ;;  %v5520_v29 = vld [vmem:[%s7711_s0 + $0x78] ss:$56 sps:$4 sm:$0xff]  }
  0x55   :  { %4768 = vmatprep.subr.bf16.mxu1 %v5436_v30  ;;  %v5507_v30 = vld [vmem:[%s7710_s1 + $0x330] ss:$12 sps:$4 sm:$0xff]  }
  0x57   :  { %2861 = vmatpush1.bf16.msra.mxu0 %v5433_v32  ;;  %v5526_v32 = vld [vmem:[%s7711_s0 + $0xec] ss:$56 sps:$4 sm:$0xff]  }
  0x58   :  { %4769 = vmatpush3.bf16.msra.mxu1 %v5437_v33  ;;  %2862 = vmatprep.subr.bf16.mxu0 %v5442_v34  ;;  %v5510_v33 = vld [vmem:[%s7710_s1 + $0x348] ss:$12 sps:$4 sm:$0xff]   ;;  %v5519_v34 = vld [vmem:[%s7710_s1 + $0x364] ss:$12 sps:$4 sm:$0xff]  }
  0x59   :  { %4770 = vmatprep.subr.bf16.mxu1 %v5443_v35  ;;  %v5517_v35 = vld [vmem:[%s7710_s1 + $0x360] ss:$12 sps:$4 sm:$0xff]  }
  0x5a   :  { %2812 = vmatmul.mubr.bf16.gmra.mrb[12].mxu0 %v6257_v38 }
  0x5b   :  { %2863 = vmatpush1.bf16.msra.mxu0 %v5440_v36  ;;  %2821 = vmatprep.mubr.bf16.mxu0 %v6268_v41  ;;  %v6467_v36 = vld [vmem:[%s7711_s0 + $0xe8] ss:$56 sps:$4 sm:$0xff]  }
  0x5c   :  { %4771 = vmatpush3.bf16.msra.mxu1 %v5445_v37  ;;  %2864 = vmatprep.subr.bf16.mxu0 %v5448_v39  ;;  %v5524_v37 = vld [vmem:[%s7710_s1 + $0x37c] ss:$12 sps:$4 sm:$0xff]   ;;  %v5522_v39 = vld [vmem:[%s7710_s1 + $0x378] ss:$12 sps:$4 sm:$0xff]  }
  0x5d   :  { %4772 = vmatprep.subr.bf16.mxu1 %v5449_v40  ;;  %v5530_v40 = vld [vmem:[%s7710_s1 + $0x394] ss:$12 sps:$4 sm:$0xff]  }
  0x5f   :  { %2865 = vmatpush1.bf16.msra.mxu0 %v5446_v42  ;;  %v6493_v42 = vld [vmem:[%s7711_s0 + $0x158] ss:$56 sps:$4 sm:$0xff]  }
  0x60   :  { %4773 = vmatpush3.bf16.msra.mxu1 %v5450_v43  ;;  %2866 = vmatprep.subr.bf16.mxu0 %v5455_v44  ;;  %v5533_v43 = vld [vmem:[%s7710_s1 + $0x308] ss:$12 sps:$4 sm:$0xff]   ;;  %v5536_v44 = vld [vmem:[%s7710_s1 + $0x3ac] ss:$12 sps:$4 sm:$0xff]  }
  0x61   :  { %4816 = vmatprep.subr.bf16.mxu1 %v5457_v45  ;;  %v5543_v45 = vld [vmem:[%s7710_s1 + $0x3e0] ss:$12 sps:$4 sm:$0xff]  }
  0x62   :  { %2822 = vmatmul.mubr.bf16.gmra.mrb[16].mxu0 %v6290_v47 }
  0x63   :  { %3489 = vmatmul.mubr.bf16.vlgmr.msra.gmra.mrb[4].mxu1 %v6140_v5  ;;  %2867 = vmatpush1.bf16.msra.mxu0 %v5453_v46  ;;  %v5483_v5 = vld [vmem:[%s7710_s1 + $0x2bc] ss:$12 sps:$4 sm:$0xff]   ;;  %v6507_v46 = vld [vmem:[%s7711_s0 + $0x1cc] ss:$56 sps:$4 sm:$0xff]  }
  0x64   :  { %4817 = vmatpush3.bf16.msra.mxu1 %v5458_v48  ;;  %2868 = vmatprep.subr.bf16.mxu0 %v5461_v50  ;;  %v5541_v48 = vld [vmem:[%s7710_s1 + $0x3c4] ss:$12 sps:$4 sm:$0xff]   ;;  %v5544_v50 = vld [vmem:[%s7710_s1 + $0x320] ss:$12 sps:$4 sm:$0xff]  }
  0x65   :  { %3496 = vmatprep.mubr.bf16.mxu1 %v6159_v11  ;;  %4818 = vmatprep.subr.bf16.mxu1 %v5468_v51  ;;  %v5481_v11 = vld [vmem:[%s7710_s1 + $0x2b8] ss:$12 sps:$4 sm:$0xff]  }
  0x66   :  { %2831 = vmatprep.mubr.bf16.mxu0 %v6304_v52  ;;  %v5553_v51 = vld [vmem:[%s7710_s1 + $0x3f8] ss:$12 sps:$4 sm:$0xff]  }
  0x67   :  { %2869 = vmatpush1.bf16.msra.mxu0 %v5459_v53  ;;  %v6529_v53 = vld [vmem:[%s7711_s0 + $0x1c8] ss:$56 sps:$4 sm:$0xff]  }
  0x68   :  { %4819 = vmatpush3.bf16.msra.mxu1 %v5469_v55  ;;  %2870 = vmatprep.subr.bf16.mxu0 %v5466_v54  ;;  %v5547_v54 = vld [vmem:[%s7710_s1 + $0x3dc] ss:$12 sps:$4 sm:$0xff]   ;;  %v5555_v55 = vld [vmem:[%s7710_s1 + $0x338] ss:$12 sps:$4 sm:$0xff]  }
  0x69   :  { %4820 = vmatprep.subr.bf16.mxu1 %v5478_v56  ;;  %v5559_v56 = vld [vmem:[%s7710_s1 + $0x410] ss:$12 sps:$4 sm:$0xff]  }
  0x6a   :  { %2832 = vmatmul.mubr.bf16.gmra.mrb[20].mxu0 %v6325_v57 }
  0x6b   :  { %3497 = vmatmul.mubr.bf16.gmra.mrb[8].mxu1 %v6185_v18  ;;  %2871 = vmatpush1.bf16.msra.mxu0 %v5464_v59  ;;  %v5521_v18 = vld [vmem:[%s7710_s1 + $0x2f0] ss:$12 sps:$4 sm:$0xff]   ;;  %v5552_v59 = vld [vmem:[%s7710_s1 + $0x3f4] ss:$12 sps:$4 sm:$0xff]  }
  0x6c   :  { %3504 = vmatprep.mubr.bf16.mxu1 %v6196_v21  ;;  %2872 = vmatprep.subr.bf16.mxu0 %v5472_v60  ;;  %v5525_v21 = vld [vmem:[%s7710_s1 + $0x230] ss:$12 sps:$4 sm:$0xff]  }
  0x6d   :  { %4821 = vmatpush3.bf16.msra.mxu1 %v5480_v61  ;;  %2841 = vmatprep.mubr.bf16.mxu0 %v6342_v63  ;;  %v5565_v60 = vld [vmem:[%s7710_s1 + $0x350] ss:$12 sps:$4 sm:$0xff]  }
  0x6e   :  { %4822 = vmatprep.subr.bf16.mxu1 %v5484_v62  ;;  %v6558_v61 = vld [vmem:[%s7711_s0 + $0x238] ss:$56 sps:$4 sm:$0xff]   ;;  %v5570_v62 = vld [vmem:[%s7710_s1 + $0x428] ss:$12 sps:$4 sm:$0xff]  }
  0x6f   :  { %2873 = vmatpush1.bf16.msra.mxu0 %v5470_v0  ;;  %v5550_v0 = vld [vmem:[%s7710_s1 + $0x3f0] ss:$12 sps:$4 sm:$0xff]  }
  0x70   :  { %2874 = vmatprep.subr.bf16.mxu0 %v5477_v1  ;;  %v5558_v1 = vld [vmem:[%s7710_s1 + $0x40c] ss:$12 sps:$4 sm:$0xff]  }
  0x71   :  { %4823 = vmatpush3.bf16.msra.mxu1 %v5489_v2  ;;  %v5571_v2 = vld [vmem:[%s7710_s1 + $0x368] ss:$12 sps:$4 sm:$0xff]  }
  0x72   :  { %4824 = vmatprep.subr.bf16.mxu1 %v5494_v3  ;;  %2842 = vmatmul.mubr.bf16.gmra.mrb[24].mxu0 %v6366_v7 }
  0x73   :  { %3505 = vmatmul.mubr.bf16.gmra.mrb[12].mxu1 %v6218_v27  ;;  %2875 = vmatpush1.bf16.msra.mxu0 %v5475_v4  ;;  %v5502_v27 = vld [vmem:[%s7710_s1 + $0x318] ss:$12 sps:$4 sm:$0xff]   ;;  %v5580_v4 = vld [vmem:[%s7710_s1 + $0x440] ss:$12 sps:$4 sm:$0xff]  }
  0x74   :  { %3512 = vmatprep.mubr.bf16.mxu1 %v6232_v31  ;;  %2876 = vmatprep.subr.bf16.mxu0 %v5483_v5  ;;  %v5512_v31 = vld [vmem:[%s7710_s1 + $0x34c] ss:$12 sps:$4 sm:$0xff]   ;;  %v5556_v5 = vld [vmem:[%s7710_s1 + $0x408] ss:$12 sps:$4 sm:$0xff]  }
  0x75   :  { %4825 = vmatpush3.bf16.msra.mxu1 %v5495_v8  ;;  %2882 = vmatprep.mubr.bf16.mxu0 %v6374_v9  ;;  %v5581_v8 = vld [vmem:[%s7710_s1 + $0x380] ss:$12 sps:$4 sm:$0xff]  }
  0x76   :  { %4826 = vmatprep.subr.bf16.mxu1 %v5505_v10  ;;  %v5562_v10 = vld [vmem:[%s7710_s1 + $0x420] ss:$12 sps:$4 sm:$0xff]  }
  0x77   :  { %2877 = vmatpush1.bf16.msra.mxu0 %v5481_v11 }
  0x78   :  { %2878 = vmatprep.subr.bf16.mxu0 %v5488_v12  ;;  %v5569_v12 = vld [vmem:[%s7710_s1 + $0x43c] ss:$12 sps:$4 sm:$0xff]  }
  0x79   :  { %4827 = vmatpush3.bf16.msra.mxu1 %v5506_v13  ;;  %v5584_v13 = vld [vmem:[%s7711_s0 + $0x14] ss:$56 sps:$4 sm:$0xff]  }
  0x7a   :  { %4828 = vmatprep.subr.bf16.mxu1 %v5513_v14  ;;  %v5592_v14 = vld [vmem:[%s7710_s1 + $0x398] ss:$12 sps:$4 sm:$0xff]  }
  0x7b   :  { %3513 = vmatmul.mubr.bf16.gmra.mrb[16].mxu1 %v6257_v38  ;;  %2879 = vmatpush1.bf16.msra.mxu0 %v5486_v15  ;;  %v6475_v38 = vld [vmem:[%s7711_s0 + $0x15c] ss:$56 sps:$4 sm:$0xff]  }
  0x7c   :  { %3520 = vmatprep.mubr.bf16.mxu1 %v6268_v41  ;;  %2880 = vmatprep.subr.bf16.mxu0 %v5493_v16  ;;  %v5528_v41 = vld [vmem:[%s7710_s1 + $0x390] ss:$12 sps:$4 sm:$0xff]   ;;  %v5567_v16 = vld [vmem:[%s7710_s1 + $0x438] ss:$12 sps:$4 sm:$0xff]  }
  0x7d   :  { %4829 = vmatpush3.bf16.msra.mxu1 %v5514_v17  ;;  %v5596_v15 = vld [vmem:[%s7710_s1 + $0x470] ss:$12 sps:$4 sm:$0xff]   ;;  %v5575_v17 = vld [vmem:[%s7710_s1 + $0x454] ss:$12 sps:$4 sm:$0xff]  }
  0x7e   :  { %4830 = vmatprep.subr.bf16.mxu1 %v5521_v18  ;;  %v5600_v18 = vld [vmem:[%s7710_s1 + $0x3b0] ss:$12 sps:$4 sm:$0xff]  }
  0x7f   :  { %2881 = vmatpush1.bf16.msra.mxu0 %v5491_v19  ;;  %v5607_v19 = vld [vmem:[%s7710_s1 + $0x548] ss:$12 sps:$4 sm:$0xff]  }
  0x80   :  { %2951 = vmatprep.subr.bf16.mxu0 %v5501_v20  ;;  %v5573_v20 = vld [vmem:[%s7710_s1 + $0x450] ss:$12 sps:$4 sm:$0xff]  }
  0x81   :  { %4831 = vmatpush3.bf16.msra.mxu1 %v5525_v21  ;;  %v5579_v21 = vld [vmem:[%s7710_s1 + $0x46c] ss:$12 sps:$4 sm:$0xff]  }
  0x82   :  { %4874 = vmatprep.subr.bf16.mxu1 %v5532_v22  ;;  %2883 = vmatmul.mubr.bf16.vlgmr.msra.gmra.mrb[0].mxu0 %v5496_v23  ;;  %v5577_v22 = vld [vmem:[%s7710_s1 + $0x468] ss:$12 sps:$4 sm:$0xff]  }
  0x83   :  { %3521 = vmatmul.mubr.bf16.gmra.mrb[20].mxu1 %v6290_v47  ;;  %2952 = vmatpush1.bf16.msra.mxu0 %v5499_v24  ;;  %v5534_v47 = vld [vmem:[%s7710_s1 + $0x3a8] ss:$12 sps:$4 sm:$0xff]  }
  0x84   :  { %3528 = vmatprep.mubr.bf16.mxu1 %v6304_v52  ;;  %2953 = vmatprep.subr.bf16.mxu0 %v5504_v25  ;;  %v5539_v52 = vld [vmem:[%s7710_s1 + $0x3c0] ss:$12 sps:$4 sm:$0xff]   ;;  %v5582_v24 = vld [vmem:[%s7711_s0 + $0x10] ss:$56 sps:$4 sm:$0xff]  }
  0x85   :  { %2892 = vmatprep.mubr.bf16.mxu0 %v5515_v26  ;;  %v5585_v25 = vld [vmem:[%s7710_s1 + $0x480] ss:$12 sps:$4 sm:$0xff]  }
  0x87   :  { %2954 = vmatpush1.bf16.msra.mxu0 %v5502_v27  ;;  %v5601_v27 = vld [vmem:[%s7711_s0 + $0x84] ss:$56 sps:$4 sm:$0xff]  }
  0x88   :  { %2955 = vmatprep.subr.bf16.mxu0 %v5509_v28  ;;  %v5588_v28 = vld [vmem:[%s7710_s1 + $0x498] ss:$12 sps:$4 sm:$0xff]  }
  0x8a   :  { %2893 = vmatmul.mubr.bf16.gmra.mrb[4].mxu0 %v5520_v29 }
  0x8b   :  { %3529 = vmatmul.mubr.bf16.gmra.mrb[24].mxu1 %v6325_v57  ;;  %2956 = vmatpush1.bf16.msra.mxu0 %v5507_v30  ;;  %v6543_v57 = vld [vmem:[%s7711_s0 + $0x23c] ss:$56 sps:$4 sm:$0xff]  }
  0x8c   :  { %3536 = vmatprep.mubr.bf16.mxu1 %v6342_v63  ;;  %2957 = vmatprep.subr.bf16.mxu0 %v5512_v31  ;;  %v99_v63 = vld [vmem:[%s7711_s0 + $0x2a8] sm:$0xff]  ;;  %v5593_v30 = vld [vmem:[%s7710_s1 + $0x4b0] ss:$12 sps:$4 sm:$0xff]   ;;  %v5606_v31 = vld [vmem:[%s7711_s0 + $0x80] ss:$56 sps:$4 sm:$0xff]  }
  0x8d   :  { %2902 = vmatprep.mubr.bf16.mxu0 %v5526_v32  ;;  %v4409_v3 = vcombine.high %v99_v63, %v99_v63  ;;  %v4408_v11 = vcombine.low %v99_v63, %v99_v63  ;;  %v5631_v63 = vld [vmem:[%s7710_s1 + $0x558] ss:$12 sps:$4 sm:$0xff]  }
  0x8f   :  { %2958 = vmatpush1.bf16.msra.mxu0 %v5510_v33  ;;  %v5612_v33 = vld [vmem:[%s7711_s0 + $0xf4] ss:$56 sps:$4 sm:$0xff]  }
  0x90   :  { %2959 = vmatprep.subr.bf16.mxu0 %v5519_v34  ;;  %v5597_v34 = vld [vmem:[%s7710_s1 + $0x4c8] ss:$12 sps:$4 sm:$0xff]  }
  0x92   :  { %2903 = vmatmul.mubr.bf16.gmra.mrb[8].mxu0 %v6467_v36 }
  0x93   :  { %3537 = vmatmul.mubr.bf16.gmra.mrb[28].mxu1 %v6366_v7  ;;  %2960 = vmatpush1.bf16.msra.mxu0 %v5517_v35  ;;  %v5564_v7 = vld [vmem:[%s7710_s1 + $0x424] ss:$12 sps:$4 sm:$0xff]  }
  0x94   :  { %3576 = vmatprep.mubr.bf16.mxu1 %v6374_v9  ;;  %2961 = vmatprep.subr.bf16.mxu0 %v5524_v37  ;;  %v5591_v9 = vld [vmem:[%s7710_s1 + $0x458] ss:$12 sps:$4 sm:$0xff]   ;;  %v5617_v37 = vld [vmem:[%s7711_s0 + $0xf0] ss:$56 sps:$4 sm:$0xff]  }
  0x95   :  { %2912 = vmatprep.mubr.bf16.mxu0 %v6475_v38  ;;  %v5605_v35 = vld [vmem:[%s7710_s1 + $0x4e4] ss:$12 sps:$4 sm:$0xff]  }
  0x97   :  { %2962 = vmatpush1.bf16.msra.mxu0 %v5522_v39  ;;  %v5611_v39 = vld [vmem:[%s7710_s1 + $0x4fc] ss:$12 sps:$4 sm:$0xff]  }
  0x98   :  { %2963 = vmatprep.subr.bf16.mxu0 %v5530_v40  ;;  %v5618_v40 = vld [vmem:[%s7710_s1 + $0x560] ss:$12 sps:$4 sm:$0xff]  }
  0x9a   :  { %2913 = vmatmul.mubr.bf16.gmra.mrb[12].mxu0 %v6493_v42 }
  0x9b   :  { %3577 = vmatmul.mubr.bf16.vlgmr.msra.gmra.mrb[32].mxu1 %v5496_v23  ;;  %2964 = vmatpush1.bf16.msra.mxu0 %v5528_v41  ;;  %v5587_v23 = vld [vmem:[%s7710_s1 + $0x484] ss:$12 sps:$4 sm:$0xff]  }
  0x9c   :  { %4875 = vmatpush3.bf16.msra.mxu1 %v5533_v43  ;;  %2965 = vmatprep.subr.bf16.mxu0 %v5536_v44  ;;  %v5623_v41 = vld [vmem:[%s7711_s0 + $0x164] ss:$56 sps:$4 sm:$0xff]   ;;  %v5616_v43 = vld [vmem:[%s7710_s1 + $0x514] ss:$12 sps:$4 sm:$0xff]  }
  0x9d   :  { %3584 = vmatprep.mubr.bf16.mxu1 %v5515_v26  ;;  %4876 = vmatprep.subr.bf16.mxu1 %v5543_v45  ;;  %v5590_v26 = vld [vmem:[%s7710_s1 + $0x49c] ss:$12 sps:$4 sm:$0xff]   ;;  %v5619_v44 = vld [vmem:[%s7710_s1 + $0x4a0] ss:$12 sps:$4 sm:$0xff]   ;;  %v5628_v45 = vld [vmem:[%s7710_s1 + $0x578] ss:$12 sps:$4 sm:$0xff]  }
  0x9e   :  { %2922 = vmatprep.mubr.bf16.mxu0 %v6507_v46 }
  0x9f   :  { %2966 = vmatpush1.bf16.msra.mxu0 %v5534_v47  ;;  %v5614_v47 = vld [vmem:[%s7710_s1 + $0x510] ss:$12 sps:$4 sm:$0xff]  }
  0xa0   :  { %4877 = vmatpush3.bf16.msra.mxu1 %v5544_v50  ;;  %2967 = vmatprep.subr.bf16.mxu0 %v5541_v48  ;;  %v5622_v48 = vld [vmem:[%s7710_s1 + $0x52c] ss:$12 sps:$4 sm:$0xff]  }
  0xa1   :  { %4878 = vmatprep.subr.bf16.mxu1 %v5553_v51  ;;  %v5630_v50 = vld [vmem:[%s7710_s1 + $0x4b8] ss:$12 sps:$4 sm:$0xff]   ;;  %v5634_v51 = vld [vmem:[%s7710_s1 + $0x590] ss:$12 sps:$4 sm:$0xff]  }
  0xa2   :  { %2923 = vmatmul.mubr.bf16.gmra.mrb[16].mxu0 %v6529_v53 }
  0xa3   :  { %3585 = vmatmul.mubr.bf16.gmra.mrb[36].mxu1 %v5520_v29  ;;  %2968 = vmatpush1.bf16.msra.mxu0 %v5539_v52  ;;  %v5595_v29 = vld [vmem:[%s7710_s1 + $0x4b4] ss:$12 sps:$4 sm:$0xff]  }
  0xa4   :  { %3592 = vmatprep.mubr.bf16.mxu1 %v5526_v32  ;;  %2969 = vmatprep.subr.bf16.mxu0 %v5547_v54  ;;  %v5599_v32 = vld [vmem:[%s7710_s1 + $0x4cc] ss:$12 sps:$4 sm:$0xff]   ;;  %v5627_v54 = vld [vmem:[%s7710_s1 + $0x544] ss:$12 sps:$4 sm:$0xff]  }
  0xa5   :  { %4879 = vmatpush3.bf16.msra.mxu1 %v5555_v55  ;;  %2932 = vmatprep.mubr.bf16.mxu0 %v6543_v57  ;;  %v5635_v52 = vld [vmem:[%s7711_s0 + $0x1d4] ss:$56 sps:$4 sm:$0xff]   ;;  %v5640_v55 = vld [vmem:[%s7710_s1 + $0x4d0] ss:$12 sps:$4 sm:$0xff]  }
  0xa6   :  { %4880 = vmatprep.subr.bf16.mxu1 %v5559_v56  ;;  %v5625_v56 = vld [vmem:[%s7710_s1 + $0x540] ss:$12 sps:$4 sm:$0xff]  }
  0xa7   :  { %2970 = vmatpush1.bf16.msra.mxu0 %v5545_v58  ;;  %v5641_v58 = vld [vmem:[%s7711_s0 + $0x1d0] ss:$56 sps:$4 sm:$0xff]  }
  0xa8   :  { %2971 = vmatprep.subr.bf16.mxu0 %v5552_v59  ;;  %v5633_v59 = vld [vmem:[%s7710_s1 + $0x55c] ss:$12 sps:$4 sm:$0xff]  }
  0xa9   :  { %4881 = vmatpush3.bf16.msra.mxu1 %v5565_v60  ;;  %v5646_v60 = vld [vmem:[%s7710_s1 + $0x4e8] ss:$12 sps:$4 sm:$0xff]  }
  0xaa   :  { %4882 = vmatprep.subr.bf16.mxu1 %v5570_v62  ;;  %2933 = vmatmul.mubr.bf16.gmra.mrb[20].mxu0 %v6558_v61  ;;  %v5656_v62 = vld [vmem:[%s7710_s1 + $0x5c0] ss:$12 sps:$4 sm:$0xff]  }
  0xab   :  { %3593 = vmatmul.mubr.bf16.gmra.mrb[40].mxu1 %v6467_v36  ;;  %2972 = vmatpush1.bf16.msra.mxu0 %v5550_v0  ;;  %v5603_v36 = vld [vmem:[%s7710_s1 + $0x4e0] ss:$12 sps:$4 sm:$0xff]  }
  0xac   :  { %3600 = vmatprep.mubr.bf16.mxu1 %v6475_v38  ;;  %2973 = vmatprep.subr.bf16.mxu0 %v5558_v1  ;;  %v5608_v38 = vld [vmem:[%s7710_s1 + $0x488] ss:$12 sps:$4 sm:$0xff]   ;;  %v5657_v1 = vld [vmem:[%s7710_s1 + $0x500] ss:$12 sps:$4 sm:$0xff]  }
  0xad   :  { %4883 = vmatpush3.bf16.msra.mxu1 %v5571_v2  ;;  %2942 = vmatprep.mubr.bf16.mxu0 %v4409_v3  ;;  %v5639_v0 = vld [vmem:[%s7710_s1 + $0x574] ss:$12 sps:$4 sm:$0xff]  }
  0xae   :  { %4884 = vmatprep.subr.bf16.mxu1 %v5580_v4  ;;  %v100_v2 = vld [vmem:[%s7711_s0 + $0x2b0] sm:$0xff]  ;;  %v5652_v4 = vld [vmem:[%s7711_s0 + $0x240] ss:$56 sps:$4 sm:$0xff]  }
  0xaf   :  { %2974 = vmatpush1.bf16.msra.mxu0 %v5556_v5  ;;  %v5637_v5 = vld [vmem:[%s7710_s1 + $0x570] ss:$12 sps:$4 sm:$0xff]  }
  0xb0   :  { %2975 = vmatprep.subr.bf16.mxu0 %v5564_v7  ;;  %v5644_v7 = vld [vmem:[%s7710_s1 + $0x58c] ss:$12 sps:$4 sm:$0xff]  }
  0xb1   :  { %4885 = vmatpush3.bf16.msra.mxu1 %v5581_v8  ;;  %v4411_v8 = vcombine.high %v100_v2, %v100_v2 }
  0xb2   :  { %4886 = vmatprep.subr.bf16.mxu1 %v5591_v9  ;;  %2943 = vmatmul.mubr.bf16.gmra.mrb[24].mxu0 %v4408_v11  ;;  %v5667_v9 = vld [vmem:[%s7710_s1 + $0x518] ss:$12 sps:$4 sm:$0xff]  }
  0xb3   :  { %3601 = vmatmul.mubr.bf16.gmra.mrb[44].mxu1 %v6493_v42  ;;  %2976 = vmatpush1.bf16.msra.mxu0 %v5562_v10  ;;  %v5609_v42 = vld [vmem:[%s7710_s1 + $0x4f8] ss:$12 sps:$4 sm:$0xff]   ;;  %v5674_v10 = vld [vmem:[%s7710_s1 + $0x5f0] ss:$12 sps:$4 sm:$0xff]  }
  0xb4   :  { %3608 = vmatprep.mubr.bf16.mxu1 %v6507_v46  ;;  %2977 = vmatprep.subr.bf16.mxu0 %v5569_v12  ;;  %v5629_v46 = vld [vmem:[%s7711_s0 + $0x160] ss:$56 sps:$4 sm:$0xff]   ;;  %v5651_v12 = vld [vmem:[%s7710_s1 + $0x5a4] ss:$12 sps:$4 sm:$0xff]  }
  0xb5   :  { %2983 = vmatprep.mubr.bf16.mxu0 %v5584_v13  ;;  %4887 = vmatpush3.bf16.msra.mxu1 %v5592_v14  ;;  %v4410_v14 = vcombine.low %v100_v2, %v100_v2  ;;  %v5713_v2 = vld [vmem:[%s7710_s1 + $0x6c0] ss:$12 sps:$4 sm:$0xff]  }
  0xb6   :  { %4888 = vmatprep.subr.bf16.mxu1 %v5596_v15  ;;  %v5649_v15 = vld [vmem:[%s7710_s1 + $0x5a0] ss:$12 sps:$4 sm:$0xff]  }
  0xb7   :  { %2978 = vmatpush1.bf16.msra.mxu0 %v5567_v16  ;;  %v5655_v16 = vld [vmem:[%s7710_s1 + $0x5bc] ss:$12 sps:$4 sm:$0xff]  }
  0xb8   :  { %2979 = vmatprep.subr.bf16.mxu0 %v5575_v17  ;;  %v5670_v17 = vld [vmem:[%s7711_s0 + $0x1c] ss:$56 sps:$4 sm:$0xff]  }
  0xb9   :  { %4889 = vmatpush3.bf16.msra.mxu1 %v5600_v18  ;;  %v5682_v18 = vld [vmem:[%s7710_s1 + $0x6c8] ss:$12 sps:$4 sm:$0xff]  }
  0xba   :  { %4932 = vmatprep.subr.bf16.mxu1 %v5607_v19  ;;  %v5653_v19 = vld [vmem:[%s7710_s1 + $0x5b8] ss:$12 sps:$4 sm:$0xff]  }
  0xbb   :  { %3609 = vmatmul.mubr.bf16.gmra.mrb[48].mxu1 %v6529_v53  ;;  %2980 = vmatpush1.bf16.msra.mxu0 %v5573_v20  ;;  %v5620_v53 = vld [vmem:[%s7710_s1 + $0x528] ss:$12 sps:$4 sm:$0xff]  }
  0xbc   :  { %3616 = vmatprep.mubr.bf16.mxu1 %v6543_v57  ;;  %2981 = vmatprep.subr.bf16.mxu0 %v5579_v21  ;;  %v5645_v57 = vld [vmem:[%s7710_s1 + $0x5a8] ss:$12 sps:$4 sm:$0xff]   ;;  %v5659_v21 = vld [vmem:[%s7710_s1 + $0x5d0] ss:$12 sps:$4 sm:$0xff]  }
  0xbd   :  { %v5661_v20 = vld [vmem:[%s7710_s1 + $0x5d4] ss:$12 sps:$4 sm:$0xff]  }
  0xbf   :  { %2982 = vmatpush1.bf16.msra.mxu0 %v5577_v22  ;;  %v5665_v22 = vld [vmem:[%s7710_s1 + $0x5ec] ss:$12 sps:$4 sm:$0xff]  }
  0xc0   :  { %3052 = vmatprep.subr.bf16.mxu0 %v5587_v23  ;;  %v5663_v23 = vld [vmem:[%s7710_s1 + $0x5e8] ss:$12 sps:$4 sm:$0xff]  }
  0xc2   :  { %2984 = vmatmul.mubr.bf16.vlgmr.msra.gmra.mrb[0].mxu0 %v5582_v24 }
  0xc3   :  { %3617 = vmatmul.mubr.bf16.gmra.mrb[52].mxu1 %v6558_v61  ;;  %3053 = vmatpush1.bf16.msra.mxu0 %v5585_v25  ;;  %v5647_v61 = vld [vmem:[%s7711_s0 + $0x244] ss:$56 sps:$4 sm:$0xff]   ;;  %v5668_v25 = vld [vmem:[%s7711_s0 + $0x18] ss:$56 sps:$4 sm:$0xff]  }
  0xc4   :  { %3624 = vmatprep.mubr.bf16.mxu1 %v4409_v3  ;;  %3054 = vmatprep.subr.bf16.mxu0 %v5590_v26  ;;  %v5666_v3 = vld [vmem:[%s7710_s1 + $0x5d8] ss:$12 sps:$4 sm:$0xff]   ;;  %v5671_v26 = vld [vmem:[%s7710_s1 + $0x600] ss:$12 sps:$4 sm:$0xff]  }
  0xc5   :  { %2993 = vmatprep.mubr.bf16.mxu0 %v5601_v27 }
  0xc7   :  { %3055 = vmatpush1.bf16.msra.mxu0 %v5588_v28  ;;  %v5687_v28 = vld [vmem:[%s7711_s0 + $0x8c] ss:$56 sps:$4 sm:$0xff]  }
  0xc8   :  { %3056 = vmatprep.subr.bf16.mxu0 %v5595_v29  ;;  %v5675_v29 = vld [vmem:[%s7710_s1 + $0x618] ss:$12 sps:$4 sm:$0xff]  }
  0xca   :  { %2994 = vmatmul.mubr.bf16.gmra.mrb[4].mxu0 %v5606_v31 }
  0xcb   :  { %3625 = vmatmul.mubr.bf16.gmra.mrb[56].mxu1 %v4408_v11  ;;  %3057 = vmatpush1.bf16.msra.mxu0 %v5593_v30  ;;  %v5642_v11 = vld [vmem:[%s7710_s1 + $0x588] ss:$12 sps:$4 sm:$0xff]  }
  0xcc   :  { %3664 = vmatprep.mubr.bf16.mxu1 %v5584_v13  ;;  %3058 = vmatprep.subr.bf16.mxu0 %v5599_v32  ;;  %v5678_v13 = vld [vmem:[%s7710_s1 + $0x530] ss:$12 sps:$4 sm:$0xff]   ;;  %v5681_v30 = vld [vmem:[%s7710_s1 + $0x634] ss:$12 sps:$4 sm:$0xff]  }
  0xcd   :  { %3003 = vmatprep.mubr.bf16.mxu0 %v5612_v33  ;;  %v5683_v32 = vld [vmem:[%s7710_s1 + $0x608] ss:$12 sps:$4 sm:$0xff]  }
  0xcf   :  { %3059 = vmatpush1.bf16.msra.mxu0 %v5597_v34  ;;  %v5686_v34 = vld [vmem:[%s7710_s1 + $0x64c] ss:$12 sps:$4 sm:$0xff]  }
  0xd0   :  { %3060 = vmatprep.subr.bf16.mxu0 %v5605_v35  ;;  %v5693_v35 = vld [vmem:[%s7710_s1 + $0x6e0] ss:$12 sps:$4 sm:$0xff]  }
  0xd2   :  { %3004 = vmatmul.mubr.bf16.gmra.mrb[8].mxu0 %v5617_v37 }
  0xd3   :  { %3665 = vmatmul.mubr.bf16.vlgmr.msra.gmra.mrb[60].mxu1 %v5582_v24  ;;  %3061 = vmatpush1.bf16.msra.mxu0 %v5603_v36  ;;  %v5673_v24 = vld [vmem:[%s7710_s1 + $0x604] ss:$12 sps:$4 sm:$0xff]   ;;  %v5684_v36 = vld [vmem:[%s7710_s1 + $0x648] ss:$12 sps:$4 sm:$0xff]  }
  0xd4   :  { %4933 = vmatpush3.bf16.msra.mxu1 %v5608_v38  ;;  %3062 = vmatprep.subr.bf16.mxu0 %v5611_v39  ;;  %v5692_v38 = vld [vmem:[%s7710_s1 + $0x664] ss:$12 sps:$4 sm:$0xff]   ;;  %v5694_v39 = vld [vmem:[%s7710_s1 + $0x620] ss:$12 sps:$4 sm:$0xff]  }
  0xd5   :  { %3672 = vmatprep.mubr.bf16.mxu1 %v5601_v27  ;;  %4934 = vmatprep.subr.bf16.mxu1 %v5618_v40  ;;  %v5677_v27 = vld [vmem:[%s7710_s1 + $0x61c] ss:$12 sps:$4 sm:$0xff]   ;;  %v5704_v40 = vld [vmem:[%s7710_s1 + $0x6f8] ss:$12 sps:$4 sm:$0xff]  }
  0xd6   :  { %3013 = vmatprep.mubr.bf16.mxu0 %v5623_v41 }
  0xd7   :  { %3063 = vmatpush1.bf16.msra.mxu0 %v5609_v42  ;;  %v5697_v42 = vld [vmem:[%s7710_s1 + $0x67c] ss:$12 sps:$4 sm:$0xff]  }
  0xd8   :  { %4935 = vmatpush3.bf16.msra.mxu1 %v5619_v44  ;;  %3064 = vmatprep.subr.bf16.mxu0 %v5616_v43  ;;  %v5700_v43 = vld [vmem:[%s7711_s0 + $0xf8] ss:$56 sps:$4 sm:$0xff]  }
  0xd9   :  { %4936 = vmatprep.subr.bf16.mxu1 %v5628_v45  ;;  %v5705_v44 = vld [vmem:[%s7710_s1 + $0x638] ss:$12 sps:$4 sm:$0xff]  }
  0xda   :  { %3014 = vmatmul.mubr.bf16.gmra.mrb[12].mxu0 %v5629_v46  ;;  %v5709_v45 = vld [vmem:[%s7711_s0 + $0x16c] ss:$56 sps:$4 sm:$0xff]  }
  0xdb   :  { %3673 = vmatmul.mubr.bf16.gmra.mrb[64].mxu1 %v5606_v31  ;;  %3065 = vmatpush1.bf16.msra.mxu0 %v5614_v47  ;;  %v5679_v31 = vld [vmem:[%s7710_s1 + $0x630] ss:$12 sps:$4 sm:$0xff]   ;;  %v5695_v47 = vld [vmem:[%s7710_s1 + $0x678] ss:$12 sps:$4 sm:$0xff]  }
  0xdc   :  { %3680 = vmatprep.mubr.bf16.mxu1 %v5612_v33  ;;  %3066 = vmatprep.subr.bf16.mxu0 %v5622_v48  ;;  %v5689_v33 = vld [vmem:[%s7711_s0 + $0x88] ss:$56 sps:$4 sm:$0xff]  }
  0xdd   :  { %4937 = vmatpush3.bf16.msra.mxu1 %v5630_v50  ;;  %3023 = vmatprep.mubr.bf16.mxu0 %v5635_v52  ;;  %v5703_v48 = vld [vmem:[%s7710_s1 + $0x694] ss:$12 sps:$4 sm:$0xff]   ;;  %v5716_v50 = vld [vmem:[%s7710_s1 + $0x650] ss:$12 sps:$4 sm:$0xff]  }
  0xde   :  { %4938 = vmatprep.subr.bf16.mxu1 %v5634_v51 }
  0xdf   :  { %3067 = vmatpush1.bf16.msra.mxu0 %v5620_v53  ;;  %v5720_v53 = vld [vmem:[%s7710_s1 + $0x728] ss:$12 sps:$4 sm:$0xff]  }
  0xe0   :  { %3068 = vmatprep.subr.bf16.mxu0 %v5627_v54 }
  0xe1   :  { %4939 = vmatpush3.bf16.msra.mxu1 %v5640_v55  ;;  %v5712_v55 = vld [vmem:[%s7711_s0 + $0x168] ss:$56 sps:$4 sm:$0xff]  }
  0xe2   :  { %4940 = vmatprep.subr.bf16.mxu1 %v5645_v57  ;;  %3024 = vmatmul.mubr.bf16.gmra.mrb[16].mxu0 %v5641_v58  ;;  %v5708_v57 = vld [vmem:[%s7710_s1 + $0x6ac] ss:$12 sps:$4 sm:$0xff]  }
  0xe3   :  { %3681 = vmatmul.mubr.bf16.gmra.mrb[68].mxu1 %v5617_v37  ;;  %3069 = vmatpush1.bf16.msra.mxu0 %v5625_v56  ;;  %v5698_v37 = vld [vmem:[%s7711_s0 + $0xfc] ss:$56 sps:$4 sm:$0xff]  }
  0xe4   :  { %3688 = vmatprep.mubr.bf16.mxu1 %v5623_v41  ;;  %3070 = vmatprep.subr.bf16.mxu0 %v5633_v59  ;;  %v5690_v41 = vld [vmem:[%s7710_s1 + $0x660] ss:$12 sps:$4 sm:$0xff]   ;;  %v5721_v59 = vld [vmem:[%s7711_s0 + $0x1dc] ss:$56 sps:$4 sm:$0xff]  }
  0xe5   :  { %4941 = vmatpush3.bf16.msra.mxu1 %v5646_v60  ;;  %3033 = vmatprep.mubr.bf16.mxu0 %v5647_v61  ;;  %v5723_v60 = vld [vmem:[%s7710_s1 + $0x668] ss:$12 sps:$4 sm:$0xff]  }
  0xe6   :  { %4942 = vmatprep.subr.bf16.mxu1 %v5656_v62  ;;  %v5706_v62 = vld [vmem:[%s7710_s1 + $0x6a8] ss:$12 sps:$4 sm:$0xff]  }
  0xe7   :  { %3071 = vmatpush1.bf16.msra.mxu0 %v5631_v63  ;;  %v5715_v63 = vld [vmem:[%s7710_s1 + $0x6c4] ss:$12 sps:$4 sm:$0xff]  }
  0xe8   :  { %3072 = vmatprep.subr.bf16.mxu0 %v5639_v0  ;;  %v5732_v0 = vld [vmem:[%s7710_s1 + $0x680] ss:$12 sps:$4 sm:$0xff]  }
  0xe9   :  { %4943 = vmatpush3.bf16.msra.mxu1 %v5657_v1  ;;  %v5724_v1 = vld [vmem:[%s7711_s0 + $0x1d8] ss:$56 sps:$4 sm:$0xff]  }
  0xea   :  { %4944 = vmatprep.subr.bf16.mxu1 %v5666_v3  ;;  %3034 = vmatmul.mubr.bf16.gmra.mrb[20].mxu0 %v5652_v4  ;;  %v5719_v3 = vld [vmem:[%s7710_s1 + $0x6dc] ss:$12 sps:$4 sm:$0xff]  }
  0xeb   :  { %3689 = vmatmul.mubr.bf16.gmra.mrb[72].mxu1 %v5629_v46  ;;  %3073 = vmatpush1.bf16.msra.mxu0 %v5637_v5  ;;  %v5711_v46 = vld [vmem:[%s7710_s1 + $0x710] ss:$12 sps:$4 sm:$0xff]   ;;  %v5717_v5 = vld [vmem:[%s7710_s1 + $0x6d8] ss:$12 sps:$4 sm:$0xff]  }
  0xec   :  { %3696 = vmatprep.mubr.bf16.mxu1 %v5635_v52  ;;  %3074 = vmatprep.subr.bf16.mxu0 %v5644_v7  ;;  %v5701_v52 = vld [vmem:[%s7710_s1 + $0x690] ss:$12 sps:$4 sm:$0xff]   ;;  %v5742_v7 = vld [vmem:[%s7710_s1 + $0x758] ss:$12 sps:$4 sm:$0xff]  }
  0xed   :  { %3043 = vmatprep.mubr.bf16.mxu0 %v4411_v8  ;;  %4945 = vmatpush3.bf16.msra.mxu1 %v5667_v9  ;;  %v5749_v9 = vld [vmem:[%s7710_s1 + $0x770] ss:$12 sps:$4 sm:$0xff]  }
  0xee   :  { %4946 = vmatprep.subr.bf16.mxu1 %v5674_v10  ;;  %v5727_v10 = vld [vmem:[%s7710_s1 + $0x6f4] ss:$12 sps:$4 sm:$0xff]  }
  0xef   :  { %3075 = vmatpush1.bf16.msra.mxu0 %v5642_v11  ;;  %v101_v11 = vld [vmem:[%s7711_s0 + $0x2b8] sm:$0xff] }
  0xf0   :  { %3076 = vmatprep.subr.bf16.mxu0 %v5651_v12  ;;  %v5735_v12 = vld [vmem:[%s7711_s0 + $0x248] ss:$56 sps:$4 sm:$0xff]  }
  0xf1   :  { %4947 = vmatpush3.bf16.msra.mxu1 %v5678_v13  ;;  %v5725_v13 = vld [vmem:[%s7710_s1 + $0x6f0] ss:$12 sps:$4 sm:$0xff]  }
  0xf2   :  { %3044 = vmatmul.mubr.bf16.gmra.mrb[24].mxu0 %v4410_v14  ;;  %4990 = vmatprep.subr.bf16.mxu1 %v5682_v18  ;;  %v5757_v18 = vld [vmem:[%s7710_s1 + $0x848] ss:$12 sps:$4 sm:$0xff]  }
  0xf3   :  { %3697 = vmatmul.mubr.bf16.gmra.mrb[76].mxu1 %v5641_v58  ;;  %3077 = vmatpush1.bf16.msra.mxu0 %v5649_v15  ;;  %v4413_v15 = vcombine.high %v101_v11, %v101_v11 }
  0xf4   :  { %3704 = vmatprep.mubr.bf16.mxu1 %v5647_v61  ;;  %3078 = vmatprep.subr.bf16.mxu0 %v5655_v16  ;;  %v5731_v61 = vld [vmem:[%s7710_s1 + $0x740] ss:$12 sps:$4 sm:$0xff]   ;;  %v5728_v16 = vld [vmem:[%s7710_s1 + $0x708] ss:$12 sps:$4 sm:$0xff]  }
  0xf5   :  { %3084 = vmatprep.mubr.bf16.mxu0 %v5670_v17 }
  0xf7   :  { %3079 = vmatpush1.bf16.msra.mxu0 %v5653_v19  ;;  %v5738_v19 = vld [vmem:[%s7710_s1 + $0x724] ss:$12 sps:$4 sm:$0xff]  }
  0xf8   :  { %3080 = vmatprep.subr.bf16.mxu0 %v5661_v20  ;;  %v5736_v20 = vld [vmem:[%s7710_s1 + $0x720] ss:$12 sps:$4 sm:$0xff]  }
  0xfb   :  { %3705 = vmatmul.mubr.bf16.gmra.mrb[80].mxu1 %v5652_v4  ;;  %3081 = vmatpush1.bf16.msra.mxu0 %v5659_v21  ;;  %v5733_v4 = vld [vmem:[%s7711_s0 + $0x24c] ss:$56 sps:$4 sm:$0xff]   ;;  %v4412_v21 = vcombine.low %v101_v11, %v101_v11 }
  0xfc   :  { %3712 = vmatprep.mubr.bf16.mxu1 %v4411_v8  ;;  %3082 = vmatprep.subr.bf16.mxu0 %v5665_v22  ;;  %v5743_v8 = vld [vmem:[%s7710_s1 + $0x698] ss:$12 sps:$4 sm:$0xff]   ;;  %v5741_v22 = vld [vmem:[%s7710_s1 + $0x73c] ss:$12 sps:$4 sm:$0xff]   ;;  %v5769_v11 = vld [vmem:[%s7711_s0 + $0x174] ss:$56 sps:$4 sm:$0xff]  }
  0xff   :  { %3083 = vmatpush1.bf16.msra.mxu0 %v5663_v23  ;;  %v5756_v23 = vld [vmem:[%s7711_s0 + $0x24] ss:$56 sps:$4 sm:$0xff]  }
 0x100   :  { %3153 = vmatprep.subr.bf16.mxu0 %v5673_v24  ;;  %v5739_v24 = vld [vmem:[%s7710_s1 + $0x738] ss:$12 sps:$4 sm:$0xff]  }
 0x102   :  { %3085 = vmatmul.mubr.bf16.vlgmr.msra.gmra.mrb[0].mxu0 %v5668_v25 }
 0x103   :  { %3713 = vmatmul.mubr.bf16.gmra.mrb[84].mxu1 %v4410_v14  ;;  %3154 = vmatpush1.bf16.msra.mxu0 %v5671_v26  ;;  %v5730_v14 = vld [vmem:[%s7710_s1 + $0x70c] ss:$12 sps:$4 sm:$0xff]  }
 0x104   :  { %3752 = vmatprep.mubr.bf16.mxu1 %v5670_v17  ;;  %3155 = vmatprep.subr.bf16.mxu0 %v5677_v27  ;;  %v5753_v17 = vld [vmem:[%s7710_s1 + $0x6b0] ss:$12 sps:$4 sm:$0xff]  }
 0x105   :  { %3094 = vmatprep.mubr.bf16.mxu0 %v5687_v28 }
 0x107   :  { %3156 = vmatpush1.bf16.msra.mxu0 %v5675_v29 }
 0x108   :  { %3157 = vmatprep.subr.bf16.mxu0 %v5681_v30  ;;  %v5746_v30 = vld [vmem:[%s7710_s1 + $0x750] ss:$12 sps:$4 sm:$0xff]  }
 0x10a   :  { %3095 = vmatmul.mubr.bf16.gmra.mrb[4].mxu0 %v5689_v33 }
 0x10b   :  { %3753 = vmatmul.mubr.bf16.vlgmr.msra.gmra.mrb[88].mxu1 %v5668_v25  ;;  %3158 = vmatpush1.bf16.msra.mxu0 %v5679_v31  ;;  %v5748_v25 = vld [vmem:[%s7710_s1 + $0x754] ss:$12 sps:$4 sm:$0xff]  }
 0x10c   :  { %4991 = vmatpush3.bf16.msra.mxu1 %v5683_v32  ;;  %3159 = vmatprep.subr.bf16.mxu0 %v5686_v34  ;;  %v5752_v32 = vld [vmem:[%s7710_s1 + $0x76c] ss:$12 sps:$4 sm:$0xff]   ;;  %v5750_v34 = vld [vmem:[%s7710_s1 + $0x768] ss:$12 sps:$4 sm:$0xff]  }
 0x10d   :  { %3760 = vmatprep.mubr.bf16.mxu1 %v5687_v28  ;;  %4992 = vmatprep.subr.bf16.mxu1 %v5693_v35 }
 0x10e   :  { %3104 = vmatprep.mubr.bf16.mxu0 %v5698_v37 }
 0x10f   :  { %3160 = vmatpush1.bf16.msra.mxu0 %v5684_v36 }
 0x110   :  { %4993 = vmatpush3.bf16.msra.mxu1 %v5694_v39  ;;  %3161 = vmatprep.subr.bf16.mxu0 %v5692_v38 }
 0x111   :  { %4994 = vmatprep.subr.bf16.mxu1 %v5704_v40  ;;  %v5758_v40 = vld [vmem:[%s7710_s1 + $0x788] ss:$12 sps:$4 sm:$0xff]  }
 0x112   :  { %3105 = vmatmul.mubr.bf16.gmra.mrb[8].mxu0 %v5700_v43 }
 0x113   :  { %3761 = vmatmul.mubr.bf16.gmra.mrb[92].mxu1 %v5689_v33  ;;  %3162 = vmatpush1.bf16.msra.mxu0 %v5690_v41 }
 0x114   :  { %3768 = vmatprep.mubr.bf16.mxu1 %v5698_v37  ;;  %3163 = vmatprep.subr.bf16.mxu0 %v5697_v42  ;;  %v5754_v37 = vld [vmem:[%s7711_s0 + $0x20] ss:$56 sps:$4 sm:$0xff]   ;;  %v5876_v42 = vld [vmem:[%s7710_s1 + $0x784] ss:$12 sps:$4 sm:$0xff]  }
 0x115   :  { %4995 = vmatpush3.bf16.msra.mxu1 %v5705_v44  ;;  %3114 = vmatprep.mubr.bf16.mxu0 %v5709_v45 }
 0x116   :  { %v6896_v51 = vpop.f32.mrb[0].mxu1  ;;  %4996 = vmatprep.subr.bf16.mxu1 %v5711_v46  ;;  %v5877_v46 = vld [vmem:[%s7710_s1 + $0x780] ss:$12 sps:$4 sm:$0xff]  }
 0x117   :  { %v6904_v54 = vpop.f32.mrb[1].mxu1  ;;  %3164 = vmatpush1.bf16.msra.mxu0 %v5695_v47  ;;  %v5763_v47 = vld [vmem:[%s7710_s1 + $0x7a0] ss:$12 sps:$4 sm:$0xff]  }
 0x118   :  { %v3352_v56 = vpop.f32.mrb[2].mxu1  ;;  %3165 = vmatprep.subr.bf16.mxu0 %v5703_v48  ;;  %v5878_v48 = vld [vmem:[%s7710_s1 + $0x79c] ss:$12 sps:$4 sm:$0xff]  }
 0x119   :  { %v3353_v58 = vpop.f32.mrb[3].mxu1  ;;  %4997 = vmatpush3.bf16.msra.mxu1 %v5716_v50  ;;  %v5767_v50 = vld [vmem:[%s7710_s1 + $0x878] ss:$12 sps:$4 sm:$0xff]  }
 0x11a   :  { %4998 = vmatprep.subr.bf16.mxu1 %v5720_v53  ;;  %3115 = vmatmul.mubr.bf16.gmra.mrb[12].mxu0 %v5712_v55 }
 0x11b   :  { %3769 = vmatmul.mubr.bf16.gmra.mrb[96].mxu1 %v5700_v43  ;;  %3166 = vmatpush1.bf16.msra.mxu0 %v5701_v52  ;;  %v5759_v43 = vld [vmem:[%s7711_s0 + $0x94] ss:$56 sps:$4 sm:$0xff]  }
 0x11c   :  { %3776 = vmatprep.mubr.bf16.mxu1 %v5709_v45  ;;  %3167 = vmatprep.subr.bf16.mxu0 %v5708_v57  ;;  %v5762_v45 = vld [vmem:[%s7710_s1 + $0x860] ss:$12 sps:$4 sm:$0xff]   ;;  %v5879_v57 = vld [vmem:[%s7710_s1 + $0x798] ss:$12 sps:$4 sm:$0xff]  }
 0x11d   :  { %3124 = vmatprep.mubr.bf16.mxu0 %v5721_v59  ;;  %4999 = vmatpush3.bf16.msra.mxu1 %v5723_v60 }
 0x11e   :  { %5000 = vmatprep.subr.bf16.mxu1 %v5731_v61  ;;  %v5880_v61 = vld [vmem:[%s7710_s1 + $0x7b4] ss:$12 sps:$4 sm:$0xff]  }
 0x11f   :  { %3168 = vmatpush1.bf16.msra.mxu0 %v5706_v62 }
 0x120   :  { %3169 = vmatprep.subr.bf16.mxu0 %v5715_v63  ;;  %v5768_v63 = vld [vmem:[%s7710_s1 + $0x7b8] ss:$12 sps:$4 sm:$0xff]  }
 0x121   :  { %5001 = vmatpush3.bf16.msra.mxu1 %v5732_v0  ;;  %v5771_v0 = vld [vmem:[%s7710_s1 + $0x890] ss:$12 sps:$4 sm:$0xff]  }
 0x122   :  { %3125 = vmatmul.mubr.bf16.gmra.mrb[16].mxu0 %v5724_v1  ;;  %5002 = vmatprep.subr.bf16.mxu1 %v5742_v7  ;;  %v5766_v7 = vld [vmem:[%s7711_s0 + $0x100] ss:$56 sps:$4 sm:$0xff]  }
 0x123   :  { %3777 = vmatmul.mubr.bf16.gmra.mrb[100].mxu1 %v5712_v55  ;;  %3170 = vmatpush1.bf16.msra.mxu0 %v5713_v2  ;;  %v5761_v55 = vld [vmem:[%s7711_s0 + $0x90] ss:$56 sps:$4 sm:$0xff]   ;;  %v5882_v2 = vld [vmem:[%s7710_s1 + $0x7cc] ss:$12 sps:$4 sm:$0xff]  }
 0x124   :  { %3784 = vmatprep.mubr.bf16.mxu1 %v5721_v59  ;;  %3171 = vmatprep.subr.bf16.mxu0 %v5719_v3  ;;  %v5764_v59 = vld [vmem:[%s7711_s0 + $0x104] ss:$56 sps:$4 sm:$0xff]  }
 0x125   :  { %3134 = vmatprep.mubr.bf16.mxu0 %v5733_v4  ;;  %5003 = vmatpush3.bf16.msra.mxu1 %v5743_v8 }
 0x126   :  { %5004 = vmatprep.subr.bf16.mxu1 %v5749_v9  ;;  %v5883_v9 = vld [vmem:[%s7710_s1 + $0x7c8] ss:$12 sps:$4 sm:$0xff]  }
 0x127   :  { %3172 = vmatpush1.bf16.msra.mxu0 %v5717_v5 }
 0x128   :  { %3173 = vmatprep.subr.bf16.mxu0 %v5727_v10 }
 0x129   :  { %5005 = vmatpush3.bf16.msra.mxu1 %v5753_v17  ;;  %v5885_v17 = vld [vmem:[%s7710_s1 + $0x7e0] ss:$12 sps:$4 sm:$0xff]  }
 0x12a   :  { %3135 = vmatmul.mubr.bf16.gmra.mrb[20].mxu0 %v5735_v12  ;;  %5048 = vmatprep.subr.bf16.mxu1 %v5757_v18  ;;  %v5779_v18 = vld [vmem:[%s7710_s1 + $0x8c0] ss:$12 sps:$4 sm:$0xff]  }
 0x12b   :  { %3785 = vmatmul.mubr.bf16.gmra.mrb[104].mxu1 %v5724_v1  ;;  %3174 = vmatpush1.bf16.msra.mxu0 %v5725_v13  ;;  %v5881_v1 = vld [vmem:[%s7710_s1 + $0x7b0] ss:$12 sps:$4 sm:$0xff]  }
 0x12c   :  { %3792 = vmatprep.mubr.bf16.mxu1 %v5733_v4  ;;  %3175 = vmatprep.subr.bf16.mxu0 %v5730_v14  ;;  %v5773_v4 = vld [vmem:[%s7710_s1 + $0x7d0] ss:$12 sps:$4 sm:$0xff]  }
 0x12d   :  { %3144 = vmatprep.mubr.bf16.mxu0 %v4413_v15  ;;  %v5884_v13 = vld [vmem:[%s7710_s1 + $0x7e4] ss:$12 sps:$4 sm:$0xff]  }
 0x12f   :  { %3176 = vmatpush1.bf16.msra.mxu0 %v5728_v16  ;;  %v5777_v16 = vld [vmem:[%s7710_s1 + $0x7e8] ss:$12 sps:$4 sm:$0xff]  }
 0x130   :  { %3177 = vmatprep.subr.bf16.mxu0 %v5738_v19  ;;  %v5886_v19 = vld [vmem:[%s7710_s1 + $0x7fc] ss:$12 sps:$4 sm:$0xff]  }
 0x132   :  { %3145 = vmatmul.mubr.bf16.gmra.mrb[24].mxu0 %v4412_v21 }
 0x133   :  { %3793 = vmatmul.mubr.bf16.gmra.mrb[108].mxu1 %v5735_v12  ;;  %3178 = vmatpush1.bf16.msra.mxu0 %v5736_v20 }
 0x134   :  { %3800 = vmatprep.mubr.bf16.mxu1 %v4413_v15  ;;  %3179 = vmatprep.subr.bf16.mxu0 %v5741_v22  ;;  %v5774_v15 = vld [vmem:[%s7710_s1 + $0x8a8] ss:$12 sps:$4 sm:$0xff]  }
 0x135   :  { %3185 = vmatprep.mubr.bf16.mxu0 %v5756_v23  ;;  %v5772_v22 = vld [vmem:[%s7711_s0 + $0x170] ss:$56 sps:$4 sm:$0xff]  }
 0x136   :  { %v4774_v26 = vpop.f32.mrb[4].mxu1 }
 0x137   :  { %v4775_v27 = vpop.f32.mrb[5].mxu1  ;;  %3180 = vmatpush1.bf16.msra.mxu0 %v5739_v24  ;;  %v5887_v24 = vld [vmem:[%s7710_s1 + $0x7f8] ss:$12 sps:$4 sm:$0xff]  }
 0x138   :  { %v6996_v28 = vadd.f32 %v4775_v27, %v4774_v26  ;;  %v4777_v29 = vpop.f32.mrb[6].mxu1  ;;  %3181 = vmatprep.subr.bf16.mxu0 %v5748_v25  ;;  %v5775_v26 = vld [vmem:[%s7711_s0 + $0x1e4] ss:$56 sps:$4 sm:$0xff]  }
 0x139   :  { %v4778_v31 = vpop.f32.mrb[7].mxu1 }
 0x13a   :  { %v7004_v33 = vadd.f32 %v4778_v31, %v4777_v29  ;;  %v5888_v29 = vld [vmem:[%s7710_s1 + $0x814] ss:$12 sps:$4 sm:$0xff]  }
 0x13b   :  { %3801 = vmatmul.mubr.bf16.gmra.mrb[112].mxu1 %v4412_v21  ;;  %3182 = vmatpush1.bf16.msra.mxu0 %v5746_v30  ;;  %v5780_v31 = vld [vmem:[%s7710_s1 + $0x800] ss:$12 sps:$4 sm:$0xff]  }
 0x13c   :  { %3840 = vmatprep.mubr.bf16.mxu1 %v5756_v23  ;;  %3183 = vmatprep.subr.bf16.mxu0 %v5752_v32  ;;  %v5784_v32 = vld [vmem:[%s7710_s1 + $0x8d8] ss:$12 sps:$4 sm:$0xff]  }
 0x13e   :  { %v4780_v35 = vpop.f32.mrb[8].mxu1 }
 0x13f   :  { %v4781_v36 = vpop.f32.mrb[9].mxu1  ;;  %3184 = vmatpush1.bf16.msra.mxu0 %v5750_v34  ;;  %v5889_v34 = vld [vmem:[%s7710_s1 + $0x810] ss:$12 sps:$4 sm:$0xff]  }
 0x140   :  { %v7012_v38 = vadd.f32 %v4781_v36, %v4780_v35  ;;  %v4783_v39 = vpop.f32.mrb[10].mxu1  ;;  %3254 = vmatprep.subr.bf16.mxu0 %v5876_v42  ;;  %v5890_v35 = vld [vmem:[%s7710_s1 + $0x82c] ss:$12 sps:$4 sm:$0xff]   ;;  %v5891_v42 = vld [vmem:[%s7710_s1 + $0x828] ss:$12 sps:$4 sm:$0xff]  }
 0x141   :  { %v4784_v41 = vpop.f32.mrb[11].mxu1 }
 0x142   :  { %v7023_v44 = vadd.f32 %v4784_v41, %v4783_v39  ;;  %3186 = vmatmul.mubr.bf16.vlgmr.msra.gmra.mrb[0].mxu0 %v5754_v37 }
 0x143   :  { %3841 = vmatmul.mubr.bf16.vlgmr.msra.gmra.mrb[116].mxu1 %v5754_v37  ;;  %3255 = vmatpush1.bf16.msra.mxu0 %v5877_v46  ;;  %v5785_v37 = vld [vmem:[%s7710_s1 + $0x818] ss:$12 sps:$4 sm:$0xff]  }
 0x144   :  { %5049 = vmatpush3.bf16.msra.mxu1 %v5758_v40  ;;  %3256 = vmatprep.subr.bf16.mxu0 %v5878_v48  ;;  %v5778_v40 = vld [vmem:[%s7711_s0 + $0x1e0] ss:$56 sps:$4 sm:$0xff]  }
 0x145   :  { %3195 = vmatprep.mubr.bf16.mxu0 %v5759_v43  ;;  %3848 = vmatprep.mubr.bf16.mxu1 %v5759_v43 }
 0x146   :  { %v4786_v52 = vpop.f32.mrb[12].mxu1  ;;  %5050 = vmatprep.subr.bf16.mxu1 %v5762_v45  ;;  %v5781_v45 = vld [vmem:[%s7711_s0 + $0x254] ss:$56 sps:$4 sm:$0xff]  }
 0x147   :  { %v4787_v53 = vpop.f32.mrb[13].mxu1  ;;  %3257 = vmatpush1.bf16.msra.mxu0 %v5879_v57  ;;  %v102_v57 = vld [vmem:[%s7711_s0 + $0x2c0] sm:$0xff] }
 0x148   :  { %v7043_v56 = vadd.f32 %v4787_v53, %v4786_v52  ;;  %v4789_v58 = vpop.f32.mrb[14].mxu1  ;;  %5051 = vmatpush3.bf16.msra.mxu1 %v5763_v47  ;;  %3258 = vmatprep.subr.bf16.mxu0 %v5880_v61  ;;  %v5892_v47 = vld [vmem:[%s7710_s1 + $0x844] ss:$12 sps:$4 sm:$0xff]   ;;  %v5893_v53 = vld [vmem:[%s7710_s1 + $0x840] ss:$12 sps:$4 sm:$0xff]  }
 0x149   :  { %v4790_v60 = vpop.f32.mrb[15].mxu1  ;;  %5052 = vmatprep.subr.bf16.mxu1 %v5767_v50  ;;  %v5788_v50 = vld [vmem:[%s7710_s1 + $0x8f0] ss:$12 sps:$4 sm:$0xff]  }
 0x14a   :  { %v7054_v62 = vadd.f32 %v4790_v60, %v4789_v58  ;;  %3196 = vmatmul.mubr.bf16.gmra.mrb[4].mxu0 %v5761_v55  ;;  %v5789_v52 = vld [vmem:[%s7710_s1 + $0x830] ss:$12 sps:$4 sm:$0xff]  }
 0x14b   :  { %3849 = vmatmul.mubr.bf16.gmra.mrb[120].mxu1 %v5761_v55  ;;  %3259 = vmatpush1.bf16.msra.mxu0 %v5881_v1  ;;  %v5894_v55 = vld [vmem:[%s7710_s1 + $0x85c] ss:$12 sps:$4 sm:$0xff]   ;;  %v4415_v1 = vcombine.high %v102_v57, %v102_v57 }
 0x14c   :  { %3205 = vmatprep.mubr.bf16.mxu0 %v5764_v59  ;;  %3260 = vmatprep.subr.bf16.mxu0 %v5882_v2  ;;  %v5783_v60 = vld [vmem:[%s7711_s0 + $0x250] ss:$56 sps:$4 sm:$0xff]   ;;  %v5908_v2 = vmov 0  }
 0x14d   :  { %3856 = vmatprep.mubr.bf16.mxu1 %v5764_v59  ;;  %5053 = vmatpush3.bf16.msra.mxu1 %v5768_v63  ;;  %v5895_v63 = vld [vmem:[%s7710_s1 + $0x858] ss:$12 sps:$4 sm:$0xff]  }
 0x14e   :  { %v4792_v3 = vpop.f32.mrb[16].mxu1  ;;  %5054 = vmatprep.subr.bf16.mxu1 %v5771_v0 }
 0x14f   :  { %v4793_v5 = vpop.f32.mrb[17].mxu1  ;;  %3261 = vmatpush1.bf16.msra.mxu0 %v5883_v9 }
 0x150   :  { %v7074_v8 = vadd.f32 %v4793_v5, %v4792_v3  ;;  %v4795_v10 = vpop.f32.mrb[18].mxu1  ;;  %3262 = vmatprep.subr.bf16.mxu0 %v5884_v13  ;;  %v5897_v5 = vld [vmem:[%s7710_s1 + $0x870] ss:$12 sps:$4 sm:$0xff]   ;;  %v5899_v13 = vld [vmem:[%s7710_s1 + $0x888] ss:$12 sps:$4 sm:$0xff]  }
 0x151   :  { %v4796_v12 = vpop.f32.mrb[19].mxu1  ;;  %5055 = vmatpush3.bf16.msra.mxu1 %v5773_v4  ;;  %v5896_v4 = vld [vmem:[%s7710_s1 + $0x874] ss:$12 sps:$4 sm:$0xff]  }
 0x152   :  { %v7085_v14 = vadd.f32 %v4796_v12, %v4795_v10  ;;  %3206 = vmatmul.mubr.bf16.gmra.mrb[8].mxu0 %v5766_v7  ;;  %5056 = vmatprep.subr.bf16.mxu1 %v5774_v15 }
 0x153   :  { %3857 = vmatmul.mubr.bf16.gmra.mrb[124].mxu1 %v5766_v7  ;;  %3263 = vmatpush1.bf16.msra.mxu0 %v5885_v17  ;;  %v5898_v7 = vld [vmem:[%s7710_s1 + $0x88c] ss:$12 sps:$4 sm:$0xff]  }
 0x154   :  { %3215 = vmatprep.mubr.bf16.mxu0 %v5769_v11  ;;  %3264 = vmatprep.subr.bf16.mxu0 %v5886_v19 }
 0x155   :  { %3864 = vmatprep.mubr.bf16.mxu1 %v5769_v11  ;;  %5057 = vmatpush3.bf16.msra.mxu1 %v5777_v16  ;;  %v4414_v11 = vcombine.low %v102_v57, %v102_v57  ;;  %v5792_v16 = vld [vmem:[%s7711_s0 + $0x2c] ss:$56 sps:$4 sm:$0xff]  }
 0x156   :  { %v4798_v20 = vpop.f32.mrb[20].mxu1  ;;  %5058 = vmatprep.subr.bf16.mxu1 %v5779_v18  ;;  %v5900_v18 = vld [vmem:[%s7710_s1 + $0x8a4] ss:$12 sps:$4 sm:$0xff]  }
 0x157   :  { %v4799_v21 = vpop.f32.mrb[21].mxu1  ;;  %3265 = vmatpush1.bf16.msra.mxu0 %v5887_v24  ;;  %v5902_v24 = vld [vmem:[%s7710_s1 + $0x8bc] ss:$12 sps:$4 sm:$0xff]  }
 0x158   :  { %v7105_v23 = vadd.f32 %v4799_v21, %v4798_v20  ;;  %v4801_v25 = vpop.f32.mrb[22].mxu1  ;;  %3266 = vmatprep.subr.bf16.mxu0 %v5888_v29 }
 0x159   :  { %v4802_v27 = vpop.f32.mrb[23].mxu1  ;;  %5059 = vmatpush3.bf16.msra.mxu1 %v5780_v31  ;;  %v5793_v31 = vld [vmem:[%s7710_s1 + $0x908] ss:$12 sps:$4 sm:$0xff]  }
 0x15a   :  { %v7116_v30 = vadd.f32 %v4802_v27, %v4801_v25  ;;  %3216 = vmatmul.mubr.bf16.gmra.mrb[12].mxu0 %v5772_v22  ;;  %5060 = vmatprep.subr.bf16.mxu1 %v5784_v32  ;;  %v5903_v27 = vld [vmem:[%s7710_s1 + $0x8b8] ss:$12 sps:$4 sm:$0xff]  }
 0x15b   :  { %3865 = vmatmul.mubr.bf16.gmra.mrb[128].mxu1 %v5772_v22  ;;  %3267 = vmatpush1.bf16.msra.mxu0 %v5889_v34  ;;  %v5901_v22 = vld [vmem:[%s7710_s1 + $0x8a0] ss:$12 sps:$4 sm:$0xff]  }
 0x15c   :  { %3225 = vmatprep.mubr.bf16.mxu0 %v5775_v26  ;;  %3268 = vmatprep.subr.bf16.mxu0 %v5890_v35  ;;  %v5904_v34 = vld [vmem:[%s7710_s1 + $0x8d4] ss:$12 sps:$4 sm:$0xff]  }
 0x15d   :  { %3872 = vmatprep.mubr.bf16.mxu1 %v5775_v26  ;;  %5061 = vmatpush3.bf16.msra.mxu1 %v5785_v37  ;;  %v5790_v26 = vld [vmem:[%s7711_s0 + $0x28] ss:$56 sps:$4 sm:$0xff]   ;;  %v5794_v35 = vld [vmem:[%s7711_s0 + $0x9c] ss:$56 sps:$4 sm:$0xff]  }
 0x15e   :  { %v4804_v36 = vpop.f32.mrb[24].mxu1  ;;  %5062 = vmatprep.subr.bf16.mxu1 %v5788_v50  ;;  %v5907_v50 = vld [vmem:[%s7710_s1 + $0x8e8] ss:$12 sps:$4 sm:$0xff]  }
 0x15f   :  { %v4805_v39 = vpop.f32.mrb[25].mxu1  ;;  %3269 = vmatpush1.bf16.msra.mxu0 %v5891_v42  ;;  %v5800_v42 = vld [vmem:[%s7710_s1 + $0x920] ss:$12 sps:$4 sm:$0xff]  }
 0x160   :  { %v7136_v41 = vadd.f32 %v4805_v39, %v4804_v36  ;;  %v4807_v43 = vpop.f32.mrb[26].mxu1  ;;  %3270 = vmatprep.subr.bf16.mxu0 %v5892_v47 }
 0x161   :  { %v4808_v46 = vpop.f32.mrb[27].mxu1  ;;  %5063 = vmatpush3.bf16.msra.mxu1 %v5789_v52 }
 0x162   :  { %v7147_v48 = vadd.f32 %v4808_v46, %v4807_v43  ;;  %3226 = vmatmul.mubr.bf16.gmra.mrb[16].mxu0 %v5778_v40  ;;  %3984 = vmatprep.subr.bf16.mxu1 %v5908_v2  ;;  %v5799_v46 = vld [vmem:[%s7711_s0 + $0x98] ss:$56 sps:$4 sm:$0xff]  }
 0x163   :  { %3873 = vmatmul.mubr.bf16.gmra.mrb[132].mxu1 %v5778_v40  ;;  %3271 = vmatpush1.bf16.msra.mxu0 %v5893_v53  ;;  %v5905_v40 = vld [vmem:[%s7710_s1 + $0x8d0] ss:$12 sps:$4 sm:$0xff]   ;;  %v5796_v53 = vld [vmem:[%s7710_s1 + $0x900] ss:$12 sps:$4 sm:$0xff]  }
 0x164   :  { %3235 = vmatprep.mubr.bf16.mxu0 %v5781_v45  ;;  %3272 = vmatprep.subr.bf16.mxu0 %v5894_v55  ;;  %v5804_v55 = vld [vmem:[%s7710_s1 + $0x938] ss:$12 sps:$4 sm:$0xff]  }
 0x165   :  { %3880 = vmatprep.mubr.bf16.mxu1 %v5781_v45 }
 0x166   :  { %v4810_v58 = vpop.f32.mrb[28].mxu1 }
 0x167   :  { %v4811_v59 = vpop.f32.mrb[29].mxu1  ;;  %3273 = vmatpush1.bf16.msra.mxu0 %v5895_v63  ;;  %v5805_v63 = vld [vmem:[%s7711_s0 + $0x10c] ss:$56 sps:$4 sm:$0xff]  }
 0x168   :  { %v7167_v61 = vadd.f32 %v4811_v59, %v4810_v58  ;;  %v4813_v0 = vpop.f32.mrb[30].mxu1  ;;  %3274 = vmatprep.subr.bf16.mxu0 %v5896_v4  ;;  %v5803_v58 = vld [vmem:[%s7710_s1 + $0x91c] ss:$12 sps:$4 sm:$0xff]  }
 0x169   :  { %v4814_v3 = vpop.f32.mrb[31].mxu1 }
 0x16a   :  { %3236 = vmatmul.mubr.bf16.gmra.mrb[20].mxu0 %v5783_v60  ;;  %v5809_v3 = vld [vmem:[%s7710_s1 + $0x934] ss:$12 sps:$4 sm:$0xff]  }
 0x16b   :  { %3881 = vmatmul.mubr.bf16.gmra.mrb[136].mxu1 %v5783_v60  ;;  %3275 = vmatpush1.bf16.msra.mxu0 %v5897_v5  ;;  %v5810_v5 = vld [vmem:[%s7711_s0 + $0x108] ss:$56 sps:$4 sm:$0xff]  }
 0x16c   :  { %3245 = vmatprep.mubr.bf16.mxu0 %v4415_v1  ;;  %3276 = vmatprep.subr.bf16.mxu0 %v5898_v7 }
 0x16d   :  { %3888 = vmatprep.mubr.bf16.mxu1 %v4415_v1  ;;  %v5801_v1 = vld [vmem:[%s7710_s1 + $0x918] ss:$12 sps:$4 sm:$0xff]  }
 0x16e   :  { %v4832_v9 = vpop.f32.mrb[32].mxu1 }
 0x16f   :  { %v4833_v10 = vpop.f32.mrb[33].mxu1  ;;  %3277 = vmatpush1.bf16.msra.mxu0 %v5899_v13  ;;  %v5814_v13 = vld [vmem:[%s7710_s1 + $0x94c] ss:$12 sps:$4 sm:$0xff]  }
 0x170   :  { %v4834_v12 = vadd.f32 %v4833_v10, %v4832_v9  ;;  %v4835_v15 = vpop.f32.mrb[34].mxu1  ;;  %3278 = vmatprep.subr.bf16.mxu0 %v5900_v18  ;;  %v5807_v10 = vld [vmem:[%s7710_s1 + $0x930] ss:$12 sps:$4 sm:$0xff]  }
 0x171   :  { %v4836_v17 = vpop.f32.mrb[35].mxu1 }
 0x172   :  { %v7192_v19 = vadd.f32 %v4834_v12, %v6996_v28  ;;  %v4837_v20 = vadd.f32 %v4836_v17, %v4835_v15  ;;  %3246 = vmatmul.mubr.bf16.gmra.mrb[24].mxu0 %v4414_v11  ;;  %v5816_v17 = vld [vmem:[%s7711_s0 + $0x17c] ss:$56 sps:$4 sm:$0xff]  }
 0x173   :  { %3889 = vmatmul.mubr.bf16.gmra.mrb[140].mxu1 %v4414_v11  ;;  %3279 = vmatpush1.bf16.msra.mxu0 %v5901_v22  ;;  %v5815_v11 = vld [vmem:[%s7710_s1 + $0x968] ss:$12 sps:$4 sm:$0xff]   ;;  %v5820_v22 = vld [vmem:[%s7710_s1 + $0x964] ss:$12 sps:$4 sm:$0xff]  }
 0x174   :  { %v7195_v21 = vadd.f32 %v4837_v20, %v7004_v33  ;;  %3928 = vmatprep.mubr.bf16.mxu1 %v5792_v16  ;;  %3280 = vmatprep.subr.bf16.mxu0 %v5902_v24  ;;  %v5812_v20 = vld [vmem:[%s7710_s1 + $0x948] ss:$12 sps:$4 sm:$0xff]  }
 0x175   :  { %3286 = vmatprep.mubr.bf16.mxu0 %v5792_v16 }
 0x176   :  { %v4838_v28 = vpop.f32.mrb[36].mxu1 }
 0x177   :  { %v4839_v25 = vpop.f32.mrb[37].mxu1  ;;  %3281 = vmatpush1.bf16.msra.mxu0 %v5903_v27 }
 0x178   :  { %v4840_v33 = vadd.f32 %v4839_v25, %v4838_v28  ;;  %v4841_v29 = vpop.f32.mrb[38].mxu1  ;;  %3282 = vmatprep.subr.bf16.mxu0 %v5904_v34  ;;  %v5821_v28 = vld [vmem:[%s7711_s0 + $0x178] ss:$56 sps:$4 sm:$0xff]  }
 0x179   :  { %v4842_v32 = vpop.f32.mrb[39].mxu1 }
 0x17a   :  { %v7219_v36 = vadd.f32 %v4840_v33, %v7012_v38  ;;  %v4843_v37 = vadd.f32 %v4842_v32, %v4841_v29  ;;  %v5906_v38 = vld [vmem:[%s7710_s1 + $0x8ec] ss:$12 sps:$4 sm:$0xff]   ;;  %v5825_v29 = vld [vmem:[%s7710_s1 + $0x97c] ss:$12 sps:$4 sm:$0xff]  }
 0x17b   :  { %3929 = vmatmul.mubr.bf16.vlgmr.msra.gmra.mrb[144].mxu1 %v5790_v26  ;;  %3283 = vmatpush1.bf16.msra.mxu0 %v5905_v40  ;;  %v5818_v33 = vld [vmem:[%s7710_s1 + $0x960] ss:$12 sps:$4 sm:$0xff]   ;;  %v5823_v40 = vld [vmem:[%s7710_s1 + $0x978] ss:$12 sps:$4 sm:$0xff]  }
 0x17c   :  { %v7222_v39 = vadd.f32 %v4843_v37, %v7023_v44  ;;  %3985 = vmatpush1.bf16.msra.mxu1 %v5793_v31  ;;  %3284 = vmatprep.subr.bf16.mxu0 %v5906_v38  ;;  %v5798_v44 = vld [vmem:[%s7710_s1 + $0x904] ss:$12 sps:$4 sm:$0xff]  }
 0x17d   :  { %3936 = vmatprep.mubr.bf16.mxu1 %v5794_v35  ;;  %3986 = vmatprep.subr.bf16.mxu1 %v5908_v2  ;;  %v5826_v31 = vld [vmem:[%s7711_s0 + $0x1ec] ss:$56 sps:$4 sm:$0xff]   ;;  %v5836_v38 = vld [vmem:[%s7710_s1 + $0x9b0] ss:$12 sps:$4 sm:$0xff]  }
 0x17e   :  { %v4844_v43 = vpop.f32.mrb[40].mxu1 }
 0x17f   :  { %v4845_v45 = vpop.f32.mrb[41].mxu1  ;;  %3285 = vmatpush1.bf16.msra.mxu0 %v5907_v50  ;;  %v5835_v50 = vld [vmem:[%s7710_s1 + $0x9ac] ss:$12 sps:$4 sm:$0xff]  }
 0x180   :  { %v4846_v47 = vadd.f32 %v4845_v45, %v4844_v43  ;;  %v4847_v52 = vpop.f32.mrb[42].mxu1  ;;  %3987 = vmatpush1.bf16.msra.mxu1 %v5800_v42  ;;  %3355 = vmatprep.subr.bf16.mxu0 %v5798_v44  ;;  %v5832_v44 = vld [vmem:[%s7711_s0 + $0x1e8] ss:$56 sps:$4 sm:$0xff]  }
 0x181   :  { %v4848_v57 = vpop.f32.mrb[43].mxu1  ;;  %3988 = vmatprep.subr.bf16.mxu1 %v5908_v2 }
 0x182   :  { %v7254_v59 = vadd.f32 %v4846_v47, %v7043_v56  ;;  %v4849_v60 = vadd.f32 %v4848_v57, %v4847_v52  ;;  %3287 = vmatmul.mubr.bf16.vlgmr.msra.gmra.mrb[0].mxu0 %v5790_v26  ;;  %v5811_v56 = vld [vmem:[%s7710_s1 + $0x950] ss:$12 sps:$4 sm:$0xff]   ;;  %v5843_v57 = vld [vmem:[%s7710_s1 + $0x9c8] ss:$12 sps:$4 sm:$0xff]  }
 0x183   :  { %3937 = vmatmul.mubr.bf16.gmra.mrb[148].mxu1 %v5799_v46  ;;  %3356 = vmatpush1.bf16.msra.mxu0 %v5796_v53  ;;  %v5837_v52 = vld [vmem:[%s7711_s0 + $0x25c] ss:$56 sps:$4 sm:$0xff]  }
 0x184   :  { %v7260_v0 = vadd.f32 %v4849_v60, %v7054_v62  ;;  %3989 = vmatpush1.bf16.msra.mxu1 %v5804_v55  ;;  %3357 = vmatprep.subr.bf16.mxu0 %v5803_v58  ;;  %v5833_v60 = vld [vmem:[%s7710_s1 + $0x9a8] ss:$12 sps:$4 sm:$0xff]  }
 0x185   :  { %3296 = vmatprep.mubr.bf16.mxu0 %v5794_v35  ;;  %3944 = vmatprep.mubr.bf16.mxu1 %v5805_v63  ;;  %v5828_v35 = vld [vmem:[%s7710_s1 + $0x998] ss:$12 sps:$4 sm:$0xff]  }
 0x186   :  { %v4850_v4 = vpop.f32.mrb[44].mxu1  ;;  %3990 = vmatprep.subr.bf16.mxu1 %v5908_v2 }
 0x187   :  { %v4851_v62 = vpop.f32.mrb[45].mxu1  ;;  %3358 = vmatpush1.bf16.msra.mxu0 %v5801_v1 }
 0x188   :  { %v4852_v7 = vadd.f32 %v4851_v62, %v4850_v4  ;;  %v4853_v9 = vpop.f32.mrb[46].mxu1  ;;  %3991 = vmatpush1.bf16.msra.mxu1 %v5811_v56  ;;  %3359 = vmatprep.subr.bf16.mxu0 %v5809_v3  ;;  %v5839_v4 = vld [vmem:[%s7710_s1 + $0x9c0] ss:$12 sps:$4 sm:$0xff]  }
 0x189   :  { %v4854_v12 = vpop.f32.mrb[47].mxu1  ;;  %3992 = vmatprep.subr.bf16.mxu1 %v5908_v2  ;;  %v5847_v62 = vld [vmem:[%s7710_s1 + $0x9e0] ss:$12 sps:$4 sm:$0xff]  }
 0x18a   :  { %v7286_v15 = vadd.f32 %v4852_v7, %v7074_v8  ;;  %v4855_v16 = vadd.f32 %v4854_v12, %v4853_v9  ;;  %3297 = vmatmul.mubr.bf16.gmra.mrb[4].mxu0 %v5799_v46  ;;  %v5822_v8 = vld [vmem:[%s7710_s1 + $0x980] ss:$12 sps:$4 sm:$0xff]   ;;  %v5829_v46 = vld [vmem:[%s7710_s1 + $0x990] ss:$12 sps:$4 sm:$0xff]  }
 0x18b   :  { %3945 = vmatmul.mubr.bf16.gmra.mrb[152].mxu1 %v5810_v5  ;;  %3360 = vmatpush1.bf16.msra.mxu0 %v5807_v10  ;;  %v5846_v7 = vld [vmem:[%s7710_s1 + $0x9dc] ss:$12 sps:$4 sm:$0xff]   ;;  %v5844_v10 = vld [vmem:[%s7710_s1 + $0x9d8] ss:$12 sps:$4 sm:$0xff]   ;;  %v5850_v12 = vld [vmem:[%s7710_s1 + $0x9f4] ss:$12 sps:$4 sm:$0xff]  }
 0x18c   :  { %v7292_v18 = vadd.f32 %v4855_v16, %v7085_v14  ;;  %3993 = vmatpush1.bf16.msra.mxu1 %v5815_v11  ;;  %3361 = vmatprep.subr.bf16.mxu0 %v5814_v13  ;;  %v5851_v11 = vld [vmem:[%s7710_s1 + $0x9f8] ss:$12 sps:$4 sm:$0xff]  }
 0x18d   :  { %3306 = vmatprep.mubr.bf16.mxu0 %v5805_v63  ;;  %3952 = vmatprep.mubr.bf16.mxu1 %v5816_v17 }
 0x18e   :  { %v4856_v24 = vpop.f32.mrb[48].mxu1  ;;  %3994 = vmatprep.subr.bf16.mxu1 %v5908_v2 }
 0x18f   :  { %v4857_v14 = vpop.f32.mrb[49].mxu1  ;;  %3362 = vmatpush1.bf16.msra.mxu0 %v5812_v20  ;;  %v5848_v20 = vld [vmem:[%s7710_s1 + $0x9f0] ss:$12 sps:$4 sm:$0xff]  }
 0x190   :  { %v4858_v25 = vadd.f32 %v4857_v14, %v4856_v24  ;;  %v4859_v26 = vpop.f32.mrb[50].mxu1  ;;  %3995 = vmatpush1.bf16.msra.mxu1 %v5822_v8  ;;  %3363 = vmatprep.subr.bf16.mxu0 %v5820_v22  ;;  %v5855_v8 = vld [vmem:[%s7710_s1 + $0xa10] ss:$12 sps:$4 sm:$0xff]   ;;  %v5858_v24 = vld [vmem:[%s7711_s0 + $0x34] ss:$56 sps:$4 sm:$0xff]  }
 0x191   :  { %v4860_v27 = vpop.f32.mrb[51].mxu1  ;;  %3996 = vmatprep.subr.bf16.mxu1 %v5908_v2 }
 0x192   :  { %v7318_v32 = vadd.f32 %v4858_v25, %v7105_v23  ;;  %v4861_v34 = vadd.f32 %v4860_v27, %v4859_v26  ;;  %3307 = vmatmul.mubr.bf16.gmra.mrb[8].mxu0 %v5810_v5  ;;  %v5831_v23 = vld [vmem:[%s7710_s1 + $0x994] ss:$12 sps:$4 sm:$0xff]   ;;  %v5859_v27 = vld [vmem:[%s7711_s0 + $0xa4] ss:$56 sps:$4 sm:$0xff]  }
 0x193   :  { %3953 = vmatmul.mubr.bf16.gmra.mrb[156].mxu1 %v5821_v28  ;;  %3364 = vmatpush1.bf16.msra.mxu0 %v5818_v33 }
 0x194   :  { %v7324_v37 = vadd.f32 %v4861_v34, %v7116_v30  ;;  %3316 = vmatprep.mubr.bf16.mxu0 %v5816_v17  ;;  %3365 = vmatprep.subr.bf16.mxu0 %v5825_v29 }
 0x195   :  { %3960 = vmatprep.mubr.bf16.mxu1 %v5826_v31  ;;  %3997 = vmatpush1.bf16.msra.mxu1 %v5828_v35 }
 0x196   :  { %v4862_v42 = vpop.f32.mrb[52].mxu1  ;;  %3998 = vmatprep.subr.bf16.mxu1 %v5908_v2 }
 0x197   :  { %v4863_v30 = vpop.f32.mrb[53].mxu1  ;;  %3366 = vmatpush1.bf16.msra.mxu0 %v5823_v40 }
 0x198   :  { %v4864_v43 = vadd.f32 %v4863_v30, %v4862_v42  ;;  %v4865_v45 = vpop.f32.mrb[54].mxu1  ;;  %3367 = vmatprep.subr.bf16.mxu0 %v5831_v23  ;;  %v5861_v42 = vld [vmem:[%s7711_s0 + $0xa0] ss:$56 sps:$4 sm:$0xff]  }
 0x199   :  { %v4866_v47 = vpop.f32.mrb[55].mxu1  ;;  %3999 = vmatpush1.bf16.msra.mxu1 %v5836_v38 }
 0x19a   :  { %v7349_v53 = vadd.f32 %v4864_v43, %v7136_v41  ;;  %v4867_v55 = vadd.f32 %v4866_v47, %v4865_v45  ;;  %3317 = vmatmul.mubr.bf16.gmra.mrb[12].mxu0 %v5821_v28  ;;  %v5841_v41 = vld [vmem:[%s7710_s1 + $0x9c4] ss:$12 sps:$4 sm:$0xff]   ;;  %4000 = vmatprep.subr.bf16.mxu1 %v5908_v2 }
 0x19b   :  { %3961 = vmatmul.mubr.bf16.gmra.mrb[160].mxu1 %v5832_v44  ;;  %3368 = vmatpush1.bf16.msra.mxu0 %v5829_v46 }
 0x19c   :  { %v7355_v58 = vadd.f32 %v4867_v55, %v7147_v48  ;;  %3326 = vmatprep.mubr.bf16.mxu0 %v5826_v31  ;;  %3369 = vmatprep.subr.bf16.mxu0 %v5835_v50  ;;  %v5842_v48 = vld [vmem:[%s7711_s0 + $0x258] ss:$56 sps:$4 sm:$0xff]  }
 0x19d   :  { %3968 = vmatprep.mubr.bf16.mxu1 %v5837_v52  ;;  %4001 = vmatpush1.bf16.msra.mxu1 %v5843_v57  ;;  %v5864_v50 = vld [vmem:[%s7711_s0 + $0x110] ss:$56 sps:$4 sm:$0xff]  }
 0x19e   :  { %v4868_v63 = vpop.f32.mrb[56].mxu1  ;;  %4002 = vmatprep.subr.bf16.mxu1 %v5908_v2 }
 0x19f   :  { %v4869_v1 = vpop.f32.mrb[57].mxu1  ;;  %3370 = vmatpush1.bf16.msra.mxu0 %v5833_v60 }
 0x1a0   :  { %v4870_v56 = vadd.f32 %v4869_v1, %v4868_v63  ;;  %v4871_v3 = vpop.f32.mrb[58].mxu1  ;;  %3371 = vmatprep.subr.bf16.mxu0 %v5841_v41 }
 0x1a1   :  { %v4872_v5 = vpop.f32.mrb[59].mxu1  ;;  %4003 = vmatpush1.bf16.msra.mxu1 %v5847_v62 }
 0x1a2   :  { %v7378_v9 = vadd.f32 %v4870_v56, %v7167_v61  ;;  %3327 = vmatmul.mubr.bf16.gmra.mrb[16].mxu0 %v5832_v44  ;;  %4004 = vmatprep.subr.bf16.mxu1 %v5908_v2 }
 0x1a3   :  { %3969 = vmatmul.mubr.bf16.gmra.mrb[164].mxu1 %v5842_v48  ;;  %3372 = vmatpush1.bf16.msra.mxu0 %v5839_v4 }
 0x1a4   :  { %3373 = vmatprep.subr.bf16.mxu0 %v5846_v7  ;;  %3336 = vmatprep.mubr.bf16.mxu0 %v5837_v52 }
 0x1a5   :  { %3976 = vmatprep.mubr.bf16.mxu1 %v6077_v49  ;;  %4005 = vmatpush1.bf16.msra.mxu1 %v5851_v11  ;;  %v5854_v49 = vld [vmem:[%s7710_s1 + $0xa0c] ss:$12 sps:$4 sm:$0xff]   ;;  %v5870_v11 = vld [vmem:[%s7711_s0 + $0x1f0] ss:$56 sps:$4 sm:$0xff]  }
 0x1a6   :  { %v4890_v61 = vpop.f32.mrb[60].mxu1  ;;  %4006 = vmatprep.subr.bf16.mxu1 %v5908_v2  ;;  %v5852_v2 = vld [vmem:[%s7710_s1 + $0xa08] ss:$12 sps:$4 sm:$0xff]  }
 0x1a7   :  { %v4891_v13 = vpop.f32.mrb[61].mxu1  ;;  %3374 = vmatpush1.bf16.msra.mxu0 %v5844_v10 }
 0x1a8   :  { %v4892_v16 = vadd.f32 %v4891_v13, %v4890_v61  ;;  %v4893_v17 = vpop.f32.mrb[62].mxu1  ;;  %3375 = vmatprep.subr.bf16.mxu0 %v5850_v12 }
 0x1a9   :  { %v4894_v22 = vpop.f32.mrb[63].mxu1  ;;  %4007 = vmatpush1.bf16.msra.mxu1 %v5855_v8 }
 0x1aa   :  { %v7405_v14 = vadd.f32 %v4892_v16, %v7192_v19  ;;  %v4895_v28 = vadd.f32 %v4894_v22, %v4893_v17  ;;  %3337 = vmatmul.mubr.bf16.gmra.mrb[20].mxu0 %v5842_v48  ;;  %v5867_v48 = vld [vmem:[%s7711_s0 + $0x180] ss:$56 sps:$4 sm:$0xff]  }
 0x1ab   :  { %3977 = vmatmul.mubr.bf16.gmra.mrb[168].mxu1 %v6142_v6  ;;  %3376 = vmatpush1.bf16.msra.mxu0 %v5848_v20  ;;  %v5856_v6 = vld [vmem:[%s7711_s0 + $0x30] ss:$56 sps:$4 sm:$0xff]  }
 0x1ac   :  { %v7409_v25 = vadd.f32 %v4895_v28, %v7195_v21  ;;  %3377 = vmatprep.subr.bf16.mxu0 %v5854_v49  ;;  %4744 = vmatprep.mubr.msk.bf16.mxu0 %vm2727_vm0, %v5858_v24  ;;  %v104_v20 = vld [vmem:[%s7711_s0 + $0x2d0] sm:$0xff] }
 0x1ad   :  { %4751 = vmatprep.mubr.msk.bf16.mxu1 %vm2727_vm0, %v5858_v24  ;;  %v4419_v28 = vcombine.high %v104_v20, %v104_v20 }
 0x1ae   :  { %v4896_v26 = vpop.f32.mrb[64].mxu1 }
 0x1af   :  { %v4897_v19 = vpop.f32.mrb[65].mxu1  ;;  %3378 = vmatpush1.bf16.msra.mxu0 %v5852_v2 }
 0x1b0   :  { %v4898_v33 = vadd.f32 %v4897_v19, %v4896_v26  ;;  %v4899_v21 = vpop.f32.mrb[66].mxu1 }
 0x1b1   :  { %v4900_v29 = vpop.f32.mrb[67].mxu1 }
 0x1b2   :  { %v7423_v31 = vadd.f32 %v4898_v33, %v7219_v36  ;;  %v4901_v34 = vadd.f32 %v4900_v29, %v4899_v21  ;;  %3388 = vmatmul.mubr.bf16.vlgmr.msra.gmra.mrb[0].mxu0 %v5856_v6  ;;  %v5862_v36 = vld [vmem:[%s7711_s0 + $0x114] ss:$56 sps:$4 sm:$0xff]  }
 0x1b3   :  { %4017 = vmatmul.mubr.bf16.vlgmr.msra.gmra.mrb[172].mxu1 %v5856_v6  ;;  %4745 = vmatprep.mubr.msk.bf16.mxu0 %vm2727_vm0, %v5859_v27  ;;  %v4418_v6 = vcombine.low %v104_v20, %v104_v20 }
 0x1b4   :  { %v7426_v35 = vadd.f32 %v4901_v34, %v7222_v39  ;;  %4752 = vmatprep.mubr.msk.bf16.mxu1 %vm2727_vm0, %v5859_v27 }
 0x1b6   :  { %v4902_v40 = vpop.f32.mrb[68].mxu1 }
 0x1b7   :  { %v4903_v23 = vpop.f32.mrb[69].mxu1 }
 0x1b8   :  { %v4904_v38 = vadd.f32 %v4903_v23, %v4902_v40  ;;  %v4905_v30 = vpop.f32.mrb[70].mxu1 }
 0x1b9   :  { %v4906_v44 = vpop.f32.mrb[71].mxu1 }
 0x1ba   :  { %v7437_v39 = vadd.f32 %v4904_v38, %v7254_v59  ;;  %v4907_v43 = vadd.f32 %v4906_v44, %v4905_v30  ;;  %3398 = vmatmul.mubr.bf16.gmra.mrb[4].mxu0 %v5861_v42  ;;  %v5865_v59 = vld [vmem:[%s7711_s0 + $0x184] ss:$56 sps:$4 sm:$0xff]  }
 0x1bb   :  { %4025 = vmatmul.mubr.bf16.gmra.mrb[176].mxu1 %v5861_v42  ;;  %4746 = vmatprep.mubr.msk.bf16.mxu0 %vm2727_vm0, %v5862_v36 }
 0x1bc   :  { %v7440_v45 = vadd.f32 %v4907_v43, %v7260_v0  ;;  %4753 = vmatprep.mubr.msk.bf16.mxu1 %vm2727_vm0, %v5862_v36 }
 0x1be   :  { %v4908_v46 = vpop.f32.mrb[72].mxu1 }
 0x1bf   :  { %v4909_v47 = vpop.f32.mrb[73].mxu1 }
 0x1c0   :  { %v4910_v52 = vadd.f32 %v4909_v47, %v4908_v46  ;;  %v4911_v55 = vpop.f32.mrb[74].mxu1 }
 0x1c1   :  { %v4912_v57 = vpop.f32.mrb[75].mxu1 }
 0x1c2   :  { %v7451_v0 = vadd.f32 %v4910_v52, %v7286_v15  ;;  %v4913_v60 = vadd.f32 %v4912_v57, %v4911_v55  ;;  %3408 = vmatmul.mubr.bf16.gmra.mrb[8].mxu0 %v5864_v50  ;;  %v5868_v15 = vld [vmem:[%s7711_s0 + $0x1f4] ss:$56 sps:$4 sm:$0xff]  }
 0x1c3   :  { %4033 = vmatmul.mubr.bf16.gmra.mrb[180].mxu1 %v5864_v50  ;;  %4747 = vmatprep.mubr.msk.bf16.mxu0 %vm2727_vm0, %v5865_v59 }
 0x1c4   :  { %v7454_v41 = vadd.f32 %v4913_v60, %v7292_v18  ;;  %4754 = vmatprep.mubr.msk.bf16.mxu1 %vm2727_vm0, %v5865_v59 }
 0x1c6   :  { %v4914_v63 = vpop.f32.mrb[76].mxu1 }
 0x1c7   :  { %v4915_v1 = vpop.f32.mrb[77].mxu1 }
 0x1c8   :  { %v4916_v56 = vadd.f32 %v4915_v1, %v4914_v63  ;;  %v4917_v3 = vpop.f32.mrb[78].mxu1 }
 0x1c9   :  { %v4918_v4 = vpop.f32.mrb[79].mxu1 }
 0x1ca   :  { %v7465_v18 = vadd.f32 %v4916_v56, %v7318_v32  ;;  %v4919_v62 = vadd.f32 %v4918_v4, %v4917_v3  ;;  %3418 = vmatmul.mubr.bf16.gmra.mrb[12].mxu0 %v5867_v48  ;;  %v5871_v32 = vld [vmem:[%s7711_s0 + $0x264] ss:$56 sps:$4 sm:$0xff]  }
 0x1cb   :  { %4041 = vmatmul.mubr.bf16.gmra.mrb[184].mxu1 %v5867_v48  ;;  %4748 = vmatprep.mubr.msk.bf16.mxu0 %vm2727_vm0, %v5868_v15 }
 0x1cc   :  { %v7468_v5 = vadd.f32 %v4919_v62, %v7324_v37  ;;  %4755 = vmatprep.mubr.msk.bf16.mxu1 %vm2727_vm0, %v5868_v15 }
 0x1ce   :  { %v4920_v7 = vpop.f32.mrb[80].mxu1 }
 0x1cf   :  { %v4921_v10 = vpop.f32.mrb[81].mxu1 }
 0x1d0   :  { %v4922_v12 = vadd.f32 %v4921_v10, %v4920_v7  ;;  %v4923_v61 = vpop.f32.mrb[82].mxu1 }
 0x1d1   :  { %v4924_v13 = vpop.f32.mrb[83].mxu1 }
 0x1d2   :  { %v7479_v37 = vadd.f32 %v4922_v12, %v7349_v53  ;;  %v4925_v16 = vadd.f32 %v4924_v13, %v4923_v61  ;;  %3428 = vmatmul.mubr.bf16.gmra.mrb[16].mxu0 %v5870_v11  ;;  %v5873_v53 = vld [vmem:[%s7711_s0 + $0x260] ss:$56 sps:$4 sm:$0xff]  }
 0x1d3   :  { %4049 = vmatmul.mubr.bf16.gmra.mrb[188].mxu1 %v5870_v11  ;;  %4749 = vmatprep.mubr.msk.bf16.mxu0 %vm2727_vm0, %v5871_v32 }
 0x1d4   :  { %v7482_v17 = vadd.f32 %v4925_v16, %v7355_v58  ;;  %4756 = vmatprep.mubr.msk.bf16.mxu1 %vm2727_vm0, %v5871_v32 }
 0x1d6   :  { %v4926_v8 = vpop.f32.mrb[84].mxu1 }
 0x1d7   :  { %v4927_v22 = vpop.f32.mrb[85].mxu1 }
 0x1d8   :  { %v4928_v49 = vadd.f32 %v4927_v22, %v4926_v8  ;;  %v4929_v24 = vpop.f32.mrb[86].mxu1 }
 0x1d9   :  { %v4930_v2 = vpop.f32.mrb[87].mxu1 }
 0x1da   :  { %v3715_v58 = vadd.f32 %v4928_v49, %v7378_v9  ;;  %3438 = vmatmul.mubr.bf16.gmra.mrb[20].mxu0 %v5873_v53 }
 0x1db   :  { %4057 = vmatmul.mubr.bf16.gmra.mrb[192].mxu1 %v5873_v53  ;;  %4750 = vmatprep.mubr.msk.bf16.mxu0 %vm2727_vm0, %v4419_v28 }
 0x1dc   :  { %4757 = vmatprep.mubr.msk.bf16.mxu1 %vm2727_vm0, %v4419_v28 }
 0x1de   :  { %v4948_v26 = vpop.f32.mrb[88].mxu1 }
 0x1df   :  { %v4949_v19 = vpop.f32.mrb[89].mxu1 }
 0x1e0   :  { %v4950_v33 = vadd.f32 %v4949_v19, %v4948_v26  ;;  %v4951_v21 = vpop.f32.mrb[90].mxu1 }
 0x1e1   :  { %v4952_v27 = vpop.f32.mrb[91].mxu1 }
 0x1e2   :  { %v3755_v29 = vadd.f32 %v4950_v33, %v7405_v14  ;;  %v4953_v34 = vadd.f32 %v4952_v27, %v4951_v21  ;;  %3448 = vmatmul.mubr.bf16.gmra.mrb[28].mxu0 %v4418_v6 }
 0x1e3   :  { %4065 = vmatmul.mubr.bf16.gmra.mrb[196].mxu1 %v4418_v6 }
 0x1e4   :  { %v3758_v40 = vadd.f32 %v4953_v34, %v7409_v25 }
 0x1e6   :  { %v4954_v9 = vpop.f32.mrb[92].mxu1 }
 0x1e7   :  { %v4955_v23 = vpop.f32.mrb[93].mxu1 }
 0x1e8   :  { %v4956_v42 = vadd.f32 %v4955_v23, %v4954_v9  ;;  %v4957_v38 = vpop.f32.mrb[94].mxu1 }
 0x1e9   :  { %v4958_v30 = vpop.f32.mrb[95].mxu1 }
 0x1ea   :  { %v3763_v36 = vadd.f32 %v4956_v42, %v7423_v31  ;;  %v4959_v44 = vadd.f32 %v4958_v30, %v4957_v38 }
 0x1ec   :  { %v3766_v43 = vadd.f32 %v4959_v44, %v7426_v35 }
 0x1ee   :  { %v4960_v46 = vpop.f32.mrb[96].mxu1 }
 0x1ef   :  { %v4961_v47 = vpop.f32.mrb[97].mxu1 }
 0x1f0   :  { %v4962_v50 = vadd.f32 %v4961_v47, %v4960_v46  ;;  %v4963_v52 = vpop.f32.mrb[98].mxu1 }
 0x1f1   :  { %v4964_v14 = vpop.f32.mrb[99].mxu1 }
 0x1f2   :  { %v3771_v55 = vadd.f32 %v4962_v50, %v7437_v39  ;;  %v4965_v59 = vadd.f32 %v4964_v14, %v4963_v52 }
 0x1f4   :  { %v3774_v25 = vadd.f32 %v4965_v59, %v7440_v45 }
 0x1f6   :  { %v4966_v57 = vpop.f32.mrb[100].mxu1 }
 0x1f7   :  { %v4967_v60 = vpop.f32.mrb[101].mxu1 }
 0x1f8   :  { %v4968_v63 = vadd.f32 %v4967_v60, %v4966_v57  ;;  %v4969_v1 = vpop.f32.mrb[102].mxu1 }
 0x1f9   :  { %v4970_v48 = vpop.f32.mrb[103].mxu1 }
 0x1fa   :  { %v3779_v31 = vadd.f32 %v4968_v63, %v7451_v0  ;;  %v4971_v56 = vadd.f32 %v4970_v48, %v4969_v1 }
 0x1fc   :  { %v3782_v35 = vadd.f32 %v4971_v56, %v7454_v41 }
 0x1fe   :  { %v4972_v3 = vpop.f32.mrb[104].mxu1 }
 0x1ff   :  { %v4973_v15 = vpop.f32.mrb[105].mxu1 }
 0x200   :  { %v4974_v4 = vadd.f32 %v4973_v15, %v4972_v3  ;;  %v4975_v62 = vpop.f32.mrb[106].mxu1 }
 0x201   :  { %v4976_v7 = vpop.f32.mrb[107].mxu1 }
 0x202   :  { %v3787_v39 = vadd.f32 %v4974_v4, %v7465_v18  ;;  %v4977_v10 = vadd.f32 %v4976_v7, %v4975_v62 }
 0x204   :  { %v3790_v45 = vadd.f32 %v4977_v10, %v7468_v5 }
 0x206   :  { %v4978_v11 = vpop.f32.mrb[108].mxu1 }
 0x207   :  { %v4979_v12 = vpop.f32.mrb[109].mxu1 }
 0x208   :  { %v4980_v61 = vadd.f32 %v4979_v12, %v4978_v11  ;;  %v4981_v32 = vpop.f32.mrb[110].mxu1 }
 0x209   :  { %v4982_v13 = vpop.f32.mrb[111].mxu1 }
 0x20a   :  { %v3795_v0 = vadd.f32 %v4980_v61, %v7479_v37  ;;  %v4983_v16 = vadd.f32 %v4982_v13, %v4981_v32 }
 0x20c   :  { %v3798_v41 = vadd.f32 %v4983_v16, %v7482_v17 }
 0x20e   :  { %v4984_v20 = vpop.f32.mrb[112].mxu1 }
 0x20f   :  { %v4985_v8 = vpop.f32.mrb[113].mxu1 }
 0x210   :  { %v4986_v22 = vadd.f32 %v4985_v8, %v4984_v20  ;;  %v4987_v53 = vpop.f32.mrb[114].mxu1 }
 0x211   :  { %v4988_v49 = vpop.f32.mrb[115].mxu1 }
 0x212   :  { %v3803_v24 = vadd.f32 %v4986_v22, %v3715_v58 }
 0x216   :  { %v5006_v18 = vpop.f32.mrb[116].mxu1 }
 0x217   :  { %v5007_v28 = vpop.f32.mrb[117].mxu1 }
 0x218   :  { %v5008_v2 = vadd.f32 %v5007_v28, %v5006_v18  ;;  %v5009_v5 = vpop.f32.mrb[118].mxu1 }
 0x219   :  { %v5010_v26 = vpop.f32.mrb[119].mxu1 }
 0x21a   :  { %v3843_v19 = vadd.f32 %v5008_v2, %v3755_v29  ;;  %v5011_v6 = vadd.f32 %v5010_v26, %v5009_v5 }
 0x21c   :  { %v3846_v33 = vadd.f32 %v5011_v6, %v3758_v40 }
 0x21e   :  { %v5012_v21 = vpop.f32.mrb[120].mxu1 }
 0x21f   :  { %v5013_v27 = vpop.f32.mrb[121].mxu1 }
 0x220   :  { %v5014_v37 = vadd.f32 %v5013_v27, %v5012_v21  ;;  %v5015_v34 = vpop.f32.mrb[122].mxu1 }
 0x221   :  { %v5016_v9 = vpop.f32.mrb[123].mxu1 }
 0x222   :  { %v3851_v17 = vadd.f32 %v5014_v37, %v3763_v36  ;;  %v5017_v23 = vadd.f32 %v5016_v9, %v5015_v34 }
 0x224   :  { %v3854_v42 = vadd.f32 %v5017_v23, %v3766_v43 }
 0x226   :  { %v5018_v38 = vpop.f32.mrb[124].mxu1 }
 0x227   :  { %v5019_v30 = vpop.f32.mrb[125].mxu1 }
 0x228   :  { %v5020_v44 = vadd.f32 %v5019_v30, %v5018_v38  ;;  %v5021_v58 = vpop.f32.mrb[126].mxu1 }
 0x229   :  { %v5022_v46 = vpop.f32.mrb[127].mxu1 }
 0x22a   :  { %v3859_v47 = vadd.f32 %v5020_v44, %v3771_v55  ;;  %v5023_v50 = vadd.f32 %v5022_v46, %v5021_v58 }
 0x22c   :  { %v3862_v52 = vadd.f32 %v5023_v50, %v3774_v25 }
 0x22e   :  { %v5024_v14 = vpop.f32.mrb[128].mxu1 }
 0x22f   :  { %v5025_v29 = vpop.f32.mrb[129].mxu1 }
 0x230   :  { %v5026_v59 = vadd.f32 %v5025_v29, %v5024_v14  ;;  %v5027_v40 = vpop.f32.mrb[130].mxu1 }
 0x231   :  { %v5028_v57 = vpop.f32.mrb[131].mxu1 }
 0x232   :  { %v3867_v60 = vadd.f32 %v5026_v59, %v3779_v31  ;;  %v5029_v63 = vadd.f32 %v5028_v57, %v5027_v40 }
 0x234   :  { %v3870_v1 = vadd.f32 %v5029_v63, %v3782_v35 }
 0x236   :  { %v5030_v48 = vpop.f32.mrb[132].mxu1 }
 0x237   :  { %v5031_v36 = vpop.f32.mrb[133].mxu1 }
 0x238   :  { %v5032_v56 = vadd.f32 %v5031_v36, %v5030_v48  ;;  %v5033_v43 = vpop.f32.mrb[134].mxu1 }
 0x239   :  { %v5034_v3 = vpop.f32.mrb[135].mxu1 }
 0x23a   :  { %v3875_v15 = vadd.f32 %v5032_v56, %v3787_v39  ;;  %v5035_v4 = vadd.f32 %v5034_v3, %v5033_v43 }
 0x23c   :  { %v3878_v62 = vadd.f32 %v5035_v4, %v3790_v45 }
 0x23e   :  { %v5036_v7 = vpop.f32.mrb[136].mxu1 }
 0x23f   :  { %v5037_v55 = vpop.f32.mrb[137].mxu1 }
 0x240   :  { %v5038_v10 = vadd.f32 %v5037_v55, %v5036_v7  ;;  %v5039_v25 = vpop.f32.mrb[138].mxu1 }
 0x241   :  { %v5040_v11 = vpop.f32.mrb[139].mxu1 }
 0x242   :  { %v3883_v12 = vadd.f32 %v5038_v10, %v3795_v0  ;;  %v5041_v61 = vadd.f32 %v5040_v11, %v5039_v25 }
 0x244   :  { %v3886_v32 = vadd.f32 %v5041_v61, %v3798_v41 }
 0x245   :  { %v3247_v13 = vpop.f32.mrb[24].mxu0 }
 0x246   :  { %v5042_v31 = vpop.f32.mrb[140].mxu1  ;;  %v7508_v35 = vadd.f32 %v6896_v51, %v3247_v13  ;;  %v3249_v16 = vpop.f32.mrb[25].mxu0 }
 0x247   :  { %v5043_v20 = vpop.f32.mrb[141].mxu1  ;;  %v7511_v8 = vadd.f32 %v6904_v54, %v3249_v16  ;;  %v3251_v45 = vpop.f32.mrb[26].mxu0 }
 0x248   :  { %v5044_v39 = vadd.f32 %v5043_v20, %v5042_v31  ;;  %v5045_v22 = vpop.f32.mrb[142].mxu1  ;;  %v3252_v53 = vpop.f32.mrb[27].mxu0 }
 0x249   :  { %v5046_v49 = vpop.f32.mrb[143].mxu1 }
 0x24a   :  { %v3891_v18 = vadd.f32 %v5044_v39, %v3803_v24 }
 0x24e   :  { %v5064_v28 = vpop.f32.mrb[144].mxu1 }
 0x24f   :  { %v5065_v0 = vpop.f32.mrb[145].mxu1 }
 0x250   :  { %v5066_v2 = vadd.f32 %v5065_v0, %v5064_v28  ;;  %v5067_v41 = vpop.f32.mrb[146].mxu1 }
 0x251   :  { %v5068_v5 = vpop.f32.mrb[147].mxu1 }
 0x252   :  { %v5069_v26 = vadd.f32 %v5068_v5, %v5067_v41  ;;  %v3931_v6 = vadd.f32 %v5066_v2, %v3843_v19 }
 0x254   :  { %v7513_v51 = vadd.f32 %v5069_v26, %v3846_v33 }
 0x256   :  { %v5070_v21 = vpop.f32.mrb[148].mxu1 }
 0x257   :  { %v5071_v27 = vpop.f32.mrb[149].mxu1 }
 0x258   :  { %v5072_v37 = vadd.f32 %v5071_v27, %v5070_v21  ;;  %v5073_v54 = vpop.f32.mrb[150].mxu1 }
 0x259   :  { %v5074_v34 = vpop.f32.mrb[151].mxu1 }
 0x25a   :  { %v5075_v9 = vadd.f32 %v5074_v34, %v5073_v54  ;;  %v7515_v23 = vadd.f32 %v5072_v37, %v3851_v17 }
 0x25c   :  { %v7517_v38 = vadd.f32 %v5075_v9, %v3854_v42 }
 0x25e   :  { %v5076_v24 = vpop.f32.mrb[152].mxu1 }
 0x25f   :  { %v5077_v30 = vpop.f32.mrb[153].mxu1 }
 0x260   :  { %v5078_v44 = vadd.f32 %v5077_v30, %v5076_v24  ;;  %v5079_v58 = vpop.f32.mrb[154].mxu1 }
 0x261   :  { %v5080_v46 = vpop.f32.mrb[155].mxu1 }
 0x262   :  { %v5081_v50 = vadd.f32 %v5080_v46, %v5079_v58  ;;  %v7519_v14 = vadd.f32 %v5078_v44, %v3859_v47 }
 0x264   :  { %v7521_v19 = vadd.f32 %v5081_v50, %v3862_v52 }
 0x266   :  { %v5082_v33 = vpop.f32.mrb[156].mxu1 }
 0x267   :  { %v5083_v29 = vpop.f32.mrb[157].mxu1 }
 0x268   :  { %v5084_v59 = vadd.f32 %v5083_v29, %v5082_v33  ;;  %v5085_v40 = vpop.f32.mrb[158].mxu1 }
 0x269   :  { %v5086_v57 = vpop.f32.mrb[159].mxu1 }
 0x26a   :  { %v5087_v63 = vadd.f32 %v5086_v57, %v5085_v40  ;;  %v7523_v17 = vadd.f32 %v5084_v59, %v3867_v60 }
 0x26c   :  { %v7525_v42 = vadd.f32 %v5087_v63, %v3870_v1 }
 0x26e   :  { %v5088_v48 = vpop.f32.mrb[160].mxu1 }
 0x26f   :  { %v5089_v36 = vpop.f32.mrb[161].mxu1 }
 0x270   :  { %v5090_v56 = vadd.f32 %v5089_v36, %v5088_v48  ;;  %v5091_v43 = vpop.f32.mrb[162].mxu1 }
 0x271   :  { %v5092_v3 = vpop.f32.mrb[163].mxu1 }
 0x272   :  { %v5093_v4 = vadd.f32 %v5092_v3, %v5091_v43  ;;  %v7527_v47 = vadd.f32 %v5090_v56, %v3875_v15 }
 0x274   :  { %v7529_v52 = vadd.f32 %v5093_v4, %v3878_v62 }
 0x276   :  { %v5094_v7 = vpop.f32.mrb[164].mxu1 }
 0x277   :  { %v5095_v55 = vpop.f32.mrb[165].mxu1 }
 0x278   :  { %v5096_v10 = vadd.f32 %v5095_v55, %v5094_v7  ;;  %v5097_v25 = vpop.f32.mrb[166].mxu1 }
 0x279   :  { %v5098_v11 = vpop.f32.mrb[167].mxu1 }
 0x27a   :  { %v5099_v61 = vadd.f32 %v5098_v11, %v5097_v25  ;;  %v7531_v60 = vadd.f32 %v5096_v10, %v3883_v12 }
 0x27c   :  { %v7533_v1 = vadd.f32 %v5099_v61, %v3886_v32 }
 0x27e   :  { %v5100_v13 = vpop.f32.mrb[168].mxu1 }
 0x27f   :  { %v5101_v31 = vpop.f32.mrb[169].mxu1 }
 0x280   :  { %v5102_v16 = vadd.f32 %v5101_v31, %v5100_v13  ;;  %v5103_v20 = vpop.f32.mrb[170].mxu1 }
 0x281   :  { %v5104_v39 = vpop.f32.mrb[171].mxu1 }
 0x282   :  { %v7535_v45 = vadd.f32 %v5102_v16, %v3891_v18 }
 0x285   :  { %v3389_v15 = vpop.f32.mrb[0].mxu0 }
 0x286   :  { %v4018_v62 = vpop.f32.mrb[172].mxu1  ;;  %4072 = vst [vmem:[%s7712_s2] sm:$0xff] %v3389_v15  ;;  %v3391_v53 = vpop.f32.mrb[1].mxu0  ;;  %v4178_v28 = vmul.f32 %v3389_v15, %v3389_v15 }
 0x287   :  { %v4019_v22 = vadd.f32 %v4018_v62, %v3931_v6  ;;  %v4020_v49 = vpop.f32.mrb[173].mxu1  ;;  %4073 = vst [vmem:[%s7712_s2 + $0x8] sm:$0xff] %v3391_v53  ;;  %v3393_v12 = vpop.f32.mrb[2].mxu0  ;;  %v4179_v18 = vmul.f32 %v3391_v53, %v3391_v53 }
 0x288   :  { %v4021_v32 = vpop.f32.mrb[174].mxu1  ;;  %4075 = vst [vmem:[%s7712_s2 + $0x18] sm:$0xff] %v3393_v12  ;;  %v4111_v0 = vadd.f32 %v3393_v12, %v3389_v15  ;;  %v4181_v2 = vmul.f32 %v3393_v12, %v3393_v12  ;;  %v3395_v41 = vpop.f32.mrb[3].mxu0 }
 0x289   :  { %4074 = vst.msk [vmem:[%s7712_s2 + $0x10] sm:$0xff] %vm2727_vm0, %v4019_v22  ;;  %v4023_v5 = vpop.f32.mrb[175].mxu1  ;;  %v4180_v26 = vmul.f32 %v4019_v22, %v4019_v22  ;;  %v4022_v6 = vadd.f32 %v4021_v32, %v7513_v51  ;;  %4076 = vst [vmem:[%s7712_s2 + $0x20] sm:$0xff] %v3395_v41  ;;  %v4129_v21 = vadd.f32 %v3395_v41, %v3391_v53  ;;  %v4147_v54 = vsel %vm2727_vm0, %v4019_v22, 0.0 }
 0x28a   :  { %v4182_v27 = vmul.f32 %v3395_v41, %v3395_v41  ;;  %v4217_v37 = vadd.f32 %v4181_v2, %v4178_v28 }
 0x28b   :  { %4077 = vst.msk [vmem:[%s7712_s2 + $0x28] sm:$0xff] %vm2727_vm0, %v4022_v6  ;;  %v4148_v34 = vsel %vm2727_vm0, %v4022_v6, 0.0  ;;  %v4183_v9 = vmul.f32 %v4022_v6, %v4022_v6  ;;  %v4253_v51 = vsel %vm2727_vm0, %v4180_v26, 0.0 }
 0x28c   :  { %v4235_v24 = vadd.f32 %v4182_v27, %v4179_v18  ;;  %v4149_v30 = vadd.f32 %v4148_v34, %v4147_v54 }
 0x28d   :  { %v4254_v44 = vsel %vm2727_vm0, %v4183_v9, 0.0  ;;  %v3399_v58 = vpop.f32.mrb[4].mxu0 }
 0x28e   :  { %v4026_v46 = vpop.f32.mrb[176].mxu1  ;;  %v4255_v50 = vadd.f32 %v4254_v44, %v4253_v51  ;;  %4078 = vst [vmem:[%s7712_s2 + $0x30] sm:$0xff] %v3399_v58  ;;  %v4112_v33 = vadd.f32 %v4111_v0, %v3399_v58  ;;  %v4184_v29 = vmul.f32 %v3399_v58, %v3399_v58  ;;  %v3401_v40 = vpop.f32.mrb[5].mxu0 }
 0x28f   :  { %v4027_v59 = vadd.f32 %v4026_v46, %v7515_v23  ;;  %v4028_v57 = vpop.f32.mrb[177].mxu1  ;;  %4079 = vst [vmem:[%s7712_s2 + $0x38] sm:$0xff] %v3401_v40  ;;  %v4130_v63 = vadd.f32 %v4129_v21, %v3401_v40  ;;  %v4185_v48 = vmul.f32 %v3401_v40, %v3401_v40  ;;  %v3403_v36 = vpop.f32.mrb[6].mxu0 }
 0x290   :  { %v4029_v56 = vpop.f32.mrb[178].mxu1  ;;  %v4218_v43 = vadd.f32 %v4217_v37, %v4184_v29  ;;  %4081 = vst [vmem:[%s7712_s2 + $0x48] sm:$0xff] %v3403_v36  ;;  %v4113_v23 = vadd.f32 %v4112_v33, %v3403_v36  ;;  %v3405_v7 = vpop.f32.mrb[7].mxu0  ;;  %v4187_v11 = vmul.f32 %v3403_v36, %v3403_v36 }
 0x291   :  { %4080 = vst.msk [vmem:[%s7712_s2 + $0x40] sm:$0xff] %vm2727_vm0, %v4027_v59  ;;  %v4150_v3 = vsel %vm2727_vm0, %v4027_v59, 0.0  ;;  %v4186_v4 = vmul.f32 %v4027_v59, %v4027_v59  ;;  %v4031_v55 = vpop.f32.mrb[179].mxu1  ;;  %v4236_v25 = vadd.f32 %v4235_v24, %v4185_v48  ;;  %v4030_v61 = vadd.f32 %v4029_v56, %v7517_v38  ;;  %4082 = vst [vmem:[%s7712_s2 + $0x50] sm:$0xff] %v3405_v7 }
 0x292   :  { %v4151_v10 = vadd.f32 %v4150_v3, %v4149_v30  ;;  %v4131_v31 = vadd.f32 %v4130_v63, %v3405_v7  ;;  %v4188_v16 = vmul.f32 %v3405_v7, %v3405_v7  ;;  %v4219_v39 = vadd.f32 %v4218_v43, %v4187_v11 }
 0x293   :  { %v4256_v13 = vsel %vm2727_vm0, %v4186_v4, 0.0  ;;  %4083 = vst.msk [vmem:[%s7712_s2 + $0x58] sm:$0xff] %vm2727_vm0, %v4030_v61  ;;  %v4152_v15 = vsel %vm2727_vm0, %v4030_v61, 0.0  ;;  %v4189_v62 = vmul.f32 %v4030_v61, %v4030_v61 }
 0x294   :  { %v4257_v20 = vadd.f32 %v4256_v13, %v4255_v50  ;;  %v4153_v22 = vadd.f32 %v4152_v15, %v4151_v10  ;;  %v4237_v38 = vadd.f32 %v4236_v25, %v4188_v16 }
 0x295   :  { %v4258_v53 = vsel %vm2727_vm0, %v4189_v62, 0.0  ;;  %v3409_v49 = vpop.f32.mrb[8].mxu0 }
 0x296   :  { %v4034_v12 = vpop.f32.mrb[180].mxu1  ;;  %v4259_v32 = vadd.f32 %v4258_v53, %v4257_v20  ;;  %4084 = vst [vmem:[%s7712_s2 + $0x60] sm:$0xff] %v3409_v49  ;;  %v4114_v28 = vadd.f32 %v4113_v23, %v3409_v49  ;;  %v4190_v18 = vmul.f32 %v3409_v49, %v3409_v49  ;;  %v3411_v2 = vpop.f32.mrb[9].mxu0 }
 0x297   :  { %v4035_v0 = vadd.f32 %v4034_v12, %v7519_v14  ;;  %v4036_v41 = vpop.f32.mrb[181].mxu1  ;;  %4085 = vst [vmem:[%s7712_s2 + $0x68] sm:$0xff] %v3411_v2  ;;  %v4132_v5 = vadd.f32 %v4131_v31, %v3411_v2  ;;  %v4191_v26 = vmul.f32 %v3411_v2, %v3411_v2  ;;  %v3413_v6 = vpop.f32.mrb[10].mxu0 }
 0x298   :  { %v4037_v21 = vpop.f32.mrb[182].mxu1  ;;  %v4220_v27 = vadd.f32 %v4219_v39, %v4190_v18  ;;  %4087 = vst [vmem:[%s7712_s2 + $0x78] sm:$0xff] %v3413_v6  ;;  %v4115_v14 = vadd.f32 %v4114_v28, %v3413_v6  ;;  %v3415_v34 = vpop.f32.mrb[11].mxu0  ;;  %v4193_v51 = vmul.f32 %v3413_v6, %v3413_v6 }
 0x299   :  { %4086 = vst.msk [vmem:[%s7712_s2 + $0x70] sm:$0xff] %vm2727_vm0, %v4035_v0  ;;  %v4154_v37 = vsel %vm2727_vm0, %v4035_v0, 0.0  ;;  %v4192_v54 = vmul.f32 %v4035_v0, %v4035_v0  ;;  %v4039_v9 = vpop.f32.mrb[183].mxu1  ;;  %v4238_v30 = vadd.f32 %v4237_v38, %v4191_v26  ;;  %v4038_v44 = vadd.f32 %v4037_v21, %v7521_v19  ;;  %4088 = vst [vmem:[%s7712_s2 + $0x80] sm:$0xff] %v3415_v34 }
 0x29a   :  { %v4155_v24 = vadd.f32 %v4154_v37, %v4153_v22  ;;  %v4133_v46 = vadd.f32 %v4132_v5, %v3415_v34  ;;  %v4194_v50 = vmul.f32 %v3415_v34, %v3415_v34  ;;  %v4221_v29 = vadd.f32 %v4220_v27, %v4193_v51 }
 0x29b   :  { %v4260_v58 = vsel %vm2727_vm0, %v4192_v54, 0.0  ;;  %4089 = vst.msk [vmem:[%s7712_s2 + $0x88] sm:$0xff] %vm2727_vm0, %v4038_v44  ;;  %v4156_v59 = vsel %vm2727_vm0, %v4038_v44, 0.0  ;;  %v4195_v40 = vmul.f32 %v4038_v44, %v4038_v44 }
 0x29c   :  { %v4261_v33 = vadd.f32 %v4260_v58, %v4259_v32  ;;  %v4157_v57 = vadd.f32 %v4156_v59, %v4155_v24  ;;  %v4239_v19 = vadd.f32 %v4238_v30, %v4194_v50 }
 0x29d   :  { %v4262_v63 = vsel %vm2727_vm0, %v4195_v40, 0.0  ;;  %v3419_v48 = vpop.f32.mrb[12].mxu0 }
 0x29e   :  { %v4042_v36 = vpop.f32.mrb[184].mxu1  ;;  %v4263_v56 = vadd.f32 %v4262_v63, %v4261_v33  ;;  %4090 = vst [vmem:[%s7712_s2 + $0x90] sm:$0xff] %v3419_v48  ;;  %v4116_v43 = vadd.f32 %v4115_v14, %v3419_v48  ;;  %v4196_v3 = vmul.f32 %v3419_v48, %v3419_v48  ;;  %v3421_v23 = vpop.f32.mrb[13].mxu0 }
 0x29f   :  { %v4043_v4 = vadd.f32 %v4042_v36, %v7523_v17  ;;  %v4044_v7 = vpop.f32.mrb[185].mxu1  ;;  %4091 = vst [vmem:[%s7712_s2 + $0x98] sm:$0xff] %v3421_v23  ;;  %v4134_v55 = vadd.f32 %v4133_v46, %v3421_v23  ;;  %v4197_v10 = vmul.f32 %v3421_v23, %v3421_v23  ;;  %v3423_v25 = vpop.f32.mrb[14].mxu0 }
 0x2a0   :  { %v4045_v11 = vpop.f32.mrb[186].mxu1  ;;  %v4222_v61 = vadd.f32 %v4221_v29, %v4196_v3  ;;  %4093 = vst [vmem:[%s7712_s2 + $0xa8] sm:$0xff] %v3423_v25  ;;  %v4117_v17 = vadd.f32 %v4116_v43, %v3423_v25  ;;  %v3425_v16 = vpop.f32.mrb[15].mxu0  ;;  %v4199_v62 = vmul.f32 %v3423_v25, %v3423_v25 }
 0x2a1   :  { %4092 = vst.msk [vmem:[%s7712_s2 + $0xa0] sm:$0xff] %vm2727_vm0, %v4043_v4  ;;  %v4158_v13 = vsel %vm2727_vm0, %v4043_v4, 0.0  ;;  %v4198_v31 = vmul.f32 %v4043_v4, %v4043_v4  ;;  %v4047_v20 = vpop.f32.mrb[187].mxu1  ;;  %v4240_v15 = vadd.f32 %v4239_v19, %v4197_v10  ;;  %v4046_v22 = vadd.f32 %v4045_v11, %v7525_v42  ;;  %4094 = vst [vmem:[%s7712_s2 + $0xb0] sm:$0xff] %v3425_v16 }
 0x2a2   :  { %v4159_v39 = vadd.f32 %v4158_v13, %v4157_v57  ;;  %v4135_v53 = vadd.f32 %v4134_v55, %v3425_v16  ;;  %v4200_v49 = vmul.f32 %v3425_v16, %v3425_v16  ;;  %v4223_v32 = vadd.f32 %v4222_v61, %v4199_v62 }
 0x2a3   :  { %v4264_v38 = vsel %vm2727_vm0, %v4198_v31, 0.0  ;;  %4095 = vst.msk [vmem:[%s7712_s2 + $0xb8] sm:$0xff] %vm2727_vm0, %v4046_v22  ;;  %v4160_v28 = vsel %vm2727_vm0, %v4046_v22, 0.0  ;;  %v4201_v18 = vmul.f32 %v4046_v22, %v4046_v22 }
 0x2a4   :  { %v4265_v12 = vadd.f32 %v4264_v38, %v4263_v56  ;;  %v4161_v0 = vadd.f32 %v4160_v28, %v4159_v39  ;;  %v4241_v42 = vadd.f32 %v4240_v15, %v4200_v49 }
 0x2a5   :  { %v4266_v2 = vsel %vm2727_vm0, %v4201_v18, 0.0  ;;  %v3429_v41 = vpop.f32.mrb[16].mxu0 }
 0x2a6   :  { %v4050_v5 = vpop.f32.mrb[188].mxu1  ;;  %v4267_v26 = vadd.f32 %v4266_v2, %v4265_v12  ;;  %4096 = vst [vmem:[%s7712_s2 + $0xc0] sm:$0xff] %v3429_v41  ;;  %v4118_v6 = vadd.f32 %v4117_v17, %v3429_v41  ;;  %v4202_v21 = vmul.f32 %v3429_v41, %v3429_v41  ;;  %v3431_v37 = vpop.f32.mrb[17].mxu0 }
 0x2a7   :  { %v4051_v27 = vadd.f32 %v4050_v5, %v7527_v47  ;;  %v4052_v54 = vpop.f32.mrb[189].mxu1  ;;  %4097 = vst [vmem:[%s7712_s2 + $0xc8] sm:$0xff] %v3431_v37  ;;  %v4136_v14 = vadd.f32 %v4135_v53, %v3431_v37  ;;  %v4203_v34 = vmul.f32 %v3431_v37, %v3431_v37  ;;  %v3433_v9 = vpop.f32.mrb[18].mxu0 }
 0x2a8   :  { %v4053_v24 = vpop.f32.mrb[190].mxu1  ;;  %v4224_v30 = vadd.f32 %v4223_v32, %v4202_v21  ;;  %4099 = vst [vmem:[%s7712_s2 + $0xd8] sm:$0xff] %v3433_v9  ;;  %v4119_v47 = vadd.f32 %v4118_v6, %v3433_v9  ;;  %v3435_v58 = vpop.f32.mrb[19].mxu0  ;;  %v4205_v29 = vmul.f32 %v3433_v9, %v3433_v9 }
 0x2a9   :  { %4098 = vst.msk [vmem:[%s7712_s2 + $0xd0] sm:$0xff] %vm2727_vm0, %v4051_v27  ;;  %v4162_v51 = vsel %vm2727_vm0, %v4051_v27, 0.0  ;;  %v4204_v44 = vmul.f32 %v4051_v27, %v4051_v27  ;;  %v4055_v46 = vpop.f32.mrb[191].mxu1  ;;  %v4242_v33 = vadd.f32 %v4241_v42, %v4203_v34  ;;  %v4054_v59 = vadd.f32 %v4053_v24, %v7529_v52  ;;  %4100 = vst [vmem:[%s7712_s2 + $0xe0] sm:$0xff] %v3435_v58 }
 0x2aa   :  { %v4163_v50 = vadd.f32 %v4162_v51, %v4161_v0  ;;  %v4137_v57 = vadd.f32 %v4136_v14, %v3435_v58  ;;  %v4206_v19 = vmul.f32 %v3435_v58, %v3435_v58  ;;  %v4225_v48 = vadd.f32 %v4224_v30, %v4205_v29 }
 0x2ab   :  { %v4268_v40 = vsel %vm2727_vm0, %v4204_v44, 0.0  ;;  %4101 = vst.msk [vmem:[%s7712_s2 + $0xe8] sm:$0xff] %vm2727_vm0, %v4054_v59  ;;  %v4164_v36 = vsel %vm2727_vm0, %v4054_v59, 0.0  ;;  %v4207_v56 = vmul.f32 %v4054_v59, %v4054_v59 }
 0x2ac   :  { %v4269_v63 = vadd.f32 %v4268_v40, %v4267_v26  ;;  %v4165_v43 = vadd.f32 %v4164_v36, %v4163_v50  ;;  %v4243_v52 = vadd.f32 %v4242_v33, %v4206_v19 }
 0x2ad   :  { %v4270_v3 = vsel %vm2727_vm0, %v4207_v56, 0.0  ;;  %v3439_v4 = vpop.f32.mrb[20].mxu0 }
 0x2ae   :  { %v4058_v23 = vpop.f32.mrb[192].mxu1  ;;  %v4271_v7 = vadd.f32 %v4270_v3, %v4269_v63  ;;  %4102 = vst [vmem:[%s7712_s2 + $0xf0] sm:$0xff] %v3439_v4  ;;  %v4120_v55 = vadd.f32 %v4119_v47, %v3439_v4  ;;  %v4208_v10 = vmul.f32 %v3439_v4, %v3439_v4  ;;  %v3441_v11 = vpop.f32.mrb[21].mxu0 }
 0x2af   :  { %v4059_v25 = vadd.f32 %v4058_v23, %v7531_v60  ;;  %v4060_v61 = vpop.f32.mrb[193].mxu1  ;;  %4103 = vst [vmem:[%s7712_s2 + $0xf8] sm:$0xff] %v3441_v11  ;;  %v4138_v13 = vadd.f32 %v4137_v57, %v3441_v11  ;;  %v4209_v31 = vmul.f32 %v3441_v11, %v3441_v11  ;;  %v3443_v17 = vpop.f32.mrb[22].mxu0 }
 0x2b0   :  { %v4061_v16 = vpop.f32.mrb[194].mxu1  ;;  %v4226_v20 = vadd.f32 %v4225_v48, %v4208_v10  ;;  %4105 = vst [vmem:[%s7712_s2 + $0x108] sm:$0xff] %v3443_v17  ;;  %v4121_v60 = vadd.f32 %v4120_v55, %v3443_v17  ;;  %v3445_v62 = vpop.f32.mrb[23].mxu0  ;;  %v4211_v49 = vmul.f32 %v3443_v17, %v3443_v17  ;;  %v4295_v17 = vlaneseq }
 0x2b1   :  { %4104 = vst.msk [vmem:[%s7712_s2 + $0x100] sm:$0xff] %vm2727_vm0, %v4059_v25  ;;  %v4166_v39 = vsel %vm2727_vm0, %v4059_v25, 0.0  ;;  %v4210_v15 = vmul.f32 %v4059_v25, %v4059_v25  ;;  %v4063_v22 = vpop.f32.mrb[195].mxu1  ;;  %v4244_v53 = vadd.f32 %v4243_v52, %v4209_v31  ;;  %v4062_v12 = vadd.f32 %v4061_v16, %v7533_v1  ;;  %4106 = vst [vmem:[%s7712_s2 + $0x110] sm:$0xff] %v3445_v62 }
 0x2b2   :  { %v4167_v38 = vadd.f32 %v4166_v39, %v4165_v43  ;;  %v4139_v28 = vadd.f32 %v4138_v13, %v3445_v62  ;;  %v4212_v18 = vmul.f32 %v3445_v62, %v3445_v62  ;;  %v4227_v42 = vadd.f32 %v4226_v20, %v4211_v49 }
 0x2b3   :  { %v4272_v32 = vsel %vm2727_vm0, %v4210_v15, 0.0  ;;  %4107 = vst.msk [vmem:[%s7712_s2 + $0x118] sm:$0xff] %vm2727_vm0, %v4062_v12  ;;  %v4168_v2 = vsel %vm2727_vm0, %v4062_v12, 0.0  ;;  %v4213_v41 = vmul.f32 %v4062_v12, %v4062_v12  ;;  %v5909_v13 = vmov 1983009808  }
 0x2b4   :  { %v4273_v0 = vadd.f32 %v4272_v32, %v4271_v7  ;;  %v4169_v5 = vadd.f32 %v4168_v2, %v4167_v38  ;;  %v4245_v1 = vadd.f32 %v4244_v53, %v4212_v18  ;;  %v4293_v31 = vunpack.c.l.s4 %v5909_v13 }
 0x2b5   :  { %v4274_v26 = vsel %vm2727_vm0, %v4213_v41, 0.0  ;;  %v3449_v6 = vpop.f32.mrb[28].mxu0 }
 0x2b6   :  { %v4066_v21 = vpop.f32.mrb[196].mxu1  ;;  %v4275_v27 = vadd.f32 %v4274_v26, %v4273_v0  ;;  %v5139_v37 = vadd.f32 %v7508_v35, %v3449_v6  ;;  %v3451_v14 = vpop.f32.mrb[29].mxu0  ;;  %v4294_v32 = vunpack.c.0.s8 %v4293_v31 }
 0x2b7   :  { %v4067_v54 = vadd.f32 %v4066_v21, %v7535_v45  ;;  %v4068_v34 = vpop.f32.mrb[197].mxu1  ;;  %v5141_v9 = vadd.f32 %v7511_v8, %v3451_v14  ;;  %v3453_v24 = vpop.f32.mrb[30].mxu0 }
 0x2b8   :  { %v4069_v30 = vpop.f32.mrb[198].mxu1  ;;  %4108 = vst [vmem:[%s7712_s2 + $0x120] sm:$0xff] %v5139_v37  ;;  %v4122_v51 = vadd.f32 %v5139_v37, %v4121_v60  ;;  %v4214_v44 = vmul.f32 %v5139_v37, %v5139_v37  ;;  %v3454_v47 = vpop.f32.mrb[31].mxu0 }
 0x2b9   :  { %4110 = vst.msk [vmem:[%s7712_s2 + $0x130] sm:$0xff] %vm2727_vm0, %v4067_v54  ;;  %v4170_v35 = vsel %vm2727_vm0, %v4067_v54, 0.0  ;;  %v4216_v45 = vmul.f32 %v4067_v54, %v4067_v54  ;;  %v4070_v58 = vpop.f32.mrb[199].mxu1  ;;  %4109 = vst [vmem:[%s7712_s2 + $0x128] sm:$0xff] %v5141_v9  ;;  %v4140_v8 = vadd.f32 %v5141_v9, %v4139_v28  ;;  %v4215_v50 = vmul.f32 %v5141_v9, %v5141_v9 }
 0x2ba   :  { %v4171_v46 = vadd.f32 %v4170_v35, %v4169_v5  ;;  %v4123_v33 = vrot.slane %v4122_v51, 4  ;;  %v4228_v29 = vadd.f32 %v4227_v42, %v4214_v44  ;;  %v4296_v28 = vshrl.u32 %v4295_v17, 7 }
 0x2bb   :  { %v4276_v59 = vsel %vm2727_vm0, %v4216_v45, 0.0  ;;  %v4141_v19 = vrot.slane %v4140_v8, 4  ;;  %v4246_v63 = vadd.f32 %v4245_v1, %v4215_v50 }
 0x2bc   :  { %v4172_v40 = vrot.slane %v4171_v46, 4  ;;  %v4277_v57 = vadd.f32 %v4276_v59, %v4275_v27  ;;  %v4124_v48 = vadd.f32 %v4123_v33, %v4122_v51  ;;  %v4229_v36 = vrot.slane %v4228_v29, 4 }
 0x2bd   :  { %v4142_v52 = vadd.f32 %v4141_v19, %v4140_v8  ;;  %v4247_v3 = vrot.slane %v4246_v63, 4  ;;  %v4297_v21 = vsub.s32 %v4294_v32, %v4296_v28 }
 0x2be   :  { %v4173_v56 = vadd.f32 %v4172_v40, %v4171_v46  ;;  %v4278_v43 = vrot.slane %v4277_v57, 4  ;;  %v4125_v4 = vrot.slane %v4124_v48, 2  ;;  %v4230_v23 = vadd.f32 %v4229_v36, %v4228_v29 }
 0x2bf   :  { %v4143_v10 = vrot.slane %v4142_v52, 2  ;;  %v4248_v25 = vadd.f32 %v4247_v3, %v4246_v63 }
 0x2c0   :  { %v4174_v7 = vrot.slane %v4173_v56, 2  ;;  %v4279_v55 = vadd.f32 %v4278_v43, %v4277_v57  ;;  %v4126_v11 = vadd.f32 %v4125_v4, %v4124_v48  ;;  %v4231_v61 = vrot.slane %v4230_v23, 2 }
 0x2c1   :  { %v4144_v39 = vadd.f32 %v4143_v10, %v4142_v52  ;;  %v4249_v15 = vrot.slane %v4248_v25, 2 }
 0x2c2   :  { %v4175_v16 = vadd.f32 %v4174_v7, %v4173_v56  ;;  %v4280_v20 = vrot.slane %v4279_v55, 2  ;;  %v4127_v60 = vrot.slane %v4126_v11, 1  ;;  %v4232_v62 = vadd.f32 %v4231_v61, %v4230_v23 }
 0x2c3   :  { %v4145_v53 = vrot.slane %v4144_v39, 1  ;;  %v4250_v49 = vadd.f32 %v4249_v15, %v4248_v25 }
 0x2c4   :  { %v4176_v22 = vrot.slane %v4175_v16, 1  ;;  %v4281_v38 = vadd.f32 %v4280_v20, %v4279_v55  ;;  %v4233_v12 = vrot.slane %v4232_v62, 1  ;;  %v4128_v42 = vadd.f32 %v4127_v60, %v4126_v11 }
 0x2c5   :  { %v4251_v0 = vrot.slane %v4250_v49, 1  ;;  %v4146_v1 = vadd.f32 %v4145_v53, %v4144_v39 }
 0x2c6   :  { %v4282_v18 = vrot.slane %v4281_v38, 1  ;;  %v4234_v2 = vadd.f32 %v4233_v12, %v4232_v62  ;;  %v4177_v41 = vadd.f32 %v4176_v22, %v4175_v16 }
 0x2c7   :  { %v4252_v26 = vadd.f32 %v4251_v0, %v4250_v49 }
 0x2c8   :  { %v4283_v5 = vadd.f32 %v4282_v18, %v4281_v38  ;;  %v4285_v6 = vsel %vm4284_vm1, %v4128_v42, %v4234_v2 }
 0x2c9   :  { %v4286_v37 = vsel %vm4284_vm1, %v4146_v1, %v4252_v26 }
 0x2ca   :  { %v4287_v27 = vsel %vm4284_vm1, %v4177_v41, %v4283_v5  ;;  %v4291_v54 = vcombine.low %v4285_v6, %v4286_v37 }
 0x2cb   :  { %v4305_v14 = vrot.slane %v4287_v27, %v4297_v21 }
 0x2cc   :  { %v4298_v34 = vrot.slane %v4291_v54, %v4297_v21 }
 0x2ce   :  { %v4306_v9 = vcombine.low %v4298_v34, %v4305_v14 }
 0x2d0   :  { %4313 = vst.msk [vmem:[%s7713_s3] sm:$0x3f] %vm4312_vm6, %v4306_v9 }

// kernel: reduction_block_b.25
= control target key start
LH: loop header
LB: loop body
LE: loop exit
PB: predicated region body
PF: predicated region fallthrough
CT: control target
= control target key end

     0   :  { %vm125_vm0 = vcmask 64512   ;;  %s894_s0 = inlined_call_operand.vmem [shape: f32[9,104,8], index: 0, kind: input, shape index: {}]   ;;  %s895_s1 = inlined_call_operand.vmem [shape: f32[104,8], index: 1, kind: output, shape index: {}]  }
   0x1   :  { %v8_v0 = vld [vmem:[%s894_s0] sm:$0xff]  ;;  %v21_v1 = vld [vmem:[%s894_s0 + $0x68] sm:$0xff]  ;;  %v34_v2 = vld [vmem:[%s894_s0 + $0xd0] sm:$0xff] }
   0x2   :  { %v47_v3 = vld [vmem:[%s894_s0 + $0x138] sm:$0xff]  ;;  %v60_v4 = vld [vmem:[%s894_s0 + $0x1a0] sm:$0xff]  ;;  %v126_v5 = vsel %vm125_vm0, %v8_v0, -inf  ;;  %v127_v6 = vsel %vm125_vm0, %v21_v1, -inf  ;;  %v129_v7 = vsel %vm125_vm0, %v34_v2, -inf  ;;  %v73_v8 = vld [vmem:[%s894_s0 + $0x208] sm:$0xff] }
   0x3   :  { %v86_v9 = vld [vmem:[%s894_s0 + $0x270] sm:$0xff]  ;;  %v99_v10 = vld [vmem:[%s894_s0 + $0x2d8] sm:$0xff]  ;;  %v128_v11 = vmax.f32 %v126_v5, %v127_v6  ;;  %v131_v12 = vsel %vm125_vm0, %v47_v3, -inf  ;;  %v9_v13 = vld [vmem:[%s894_s0 + $0x8] sm:$0xff]  ;;  %v133_v22 = vsel %vm125_vm0, %v60_v4, -inf  ;;  %v135_v23 = vsel %vm125_vm0, %v73_v8, -inf }
   0x4   :  { %v22_v14 = vld [vmem:[%s894_s0 + $0x70] sm:$0xff]  ;;  %v35_v15 = vld [vmem:[%s894_s0 + $0xd8] sm:$0xff]  ;;  %v112_v16 = vld [vmem:[%s894_s0 + $0x340] sm:$0xff]  ;;  %v143_v19 = vsel %vm125_vm0, %v9_v13, -inf  ;;  %v137_v29 = vsel %vm125_vm0, %v86_v9, -inf  ;;  %v139_v30 = vsel %vm125_vm0, %v99_v10, -inf }
   0x5   :  { %v130_v17 = vmax.f32 %v128_v11, %v129_v7  ;;  %v48_v18 = vld [vmem:[%s894_s0 + $0x140] sm:$0xff]  ;;  %v144_v20 = vsel %vm125_vm0, %v22_v14, -inf  ;;  %v146_v21 = vsel %vm125_vm0, %v35_v15, -inf  ;;  %v61_v24 = vld [vmem:[%s894_s0 + $0x1a8] sm:$0xff]  ;;  %v74_v25 = vld [vmem:[%s894_s0 + $0x210] sm:$0xff]  ;;  %v141_v42 = vsel %vm125_vm0, %v112_v16, -inf }
   0x6   :  { %v87_v26 = vld [vmem:[%s894_s0 + $0x278] sm:$0xff]  ;;  %v145_v27 = vmax.f32 %v143_v19, %v144_v20  ;;  %v148_v31 = vsel %vm125_vm0, %v48_v18, -inf  ;;  %v10_v32 = vld [vmem:[%s894_s0 + $0x10] sm:$0xff]  ;;  %v36_v34 = vld [vmem:[%s894_s0 + $0xe0] sm:$0xff]  ;;  %v150_v44 = vsel %vm125_vm0, %v61_v24, -inf  ;;  %v152_v48 = vsel %vm125_vm0, %v74_v25, -inf }
   0x7   :  { %v132_v28 = vmax.f32 %v130_v17, %v131_v12  ;;  %v23_v33 = vld [vmem:[%s894_s0 + $0x78] sm:$0xff]  ;;  %v100_v35 = vld [vmem:[%s894_s0 + $0x2e0] sm:$0xff]  ;;  %v49_v37 = vld [vmem:[%s894_s0 + $0x148] sm:$0xff]  ;;  %v160_v38 = vsel %vm125_vm0, %v10_v32, -inf  ;;  %v163_v40 = vsel %vm125_vm0, %v36_v34, -inf  ;;  %v154_v49 = vsel %vm125_vm0, %v87_v26, -inf }
   0x8   :  { %v147_v36 = vmax.f32 %v145_v27, %v146_v21  ;;  %v161_v39 = vsel %vm125_vm0, %v23_v33, -inf  ;;  %v113_v43 = vld [vmem:[%s894_s0 + $0x348] sm:$0xff]  ;;  %v62_v45 = vld [vmem:[%s894_s0 + $0x1b0] sm:$0xff]  ;;  %v165_v50 = vsel %vm125_vm0, %v49_v37, -inf  ;;  %v11_v51 = vld [vmem:[%s894_s0 + $0x18] sm:$0xff]  ;;  %v156_v55 = vsel %vm125_vm0, %v100_v35, -inf }
   0x9   :  { %v134_v41 = vmax.f32 %v132_v28, %v133_v22  ;;  %v162_v46 = vmax.f32 %v160_v38, %v161_v39  ;;  %v24_v52 = vld [vmem:[%s894_s0 + $0x80] sm:$0xff]  ;;  %v37_v53 = vld [vmem:[%s894_s0 + $0xe8] sm:$0xff]  ;;  %v75_v56 = vld [vmem:[%s894_s0 + $0x218] sm:$0xff]  ;;  %v177_v60 = vsel %vm125_vm0, %v11_v51, -inf  ;;  %v167_v62 = vsel %vm125_vm0, %v62_v45, -inf }
   0xa   :  { %v149_v47 = vmax.f32 %v147_v36, %v148_v31  ;;  %v88_v57 = vld [vmem:[%s894_s0 + $0x280] sm:$0xff]  ;;  %v50_v59 = vld [vmem:[%s894_s0 + $0x150] sm:$0xff]  ;;  %v63_v63 = vld [vmem:[%s894_s0 + $0x1b8] sm:$0xff]  ;;  %v178_v0 = vsel %vm125_vm0, %v24_v52, -inf  ;;  %v180_v1 = vsel %vm125_vm0, %v37_v53, -inf  ;;  %v158_v3 = vsel %vm125_vm0, %v113_v43, -inf }
   0xb   :  { %v136_v54 = vmax.f32 %v134_v41, %v135_v23  ;;  %v164_v58 = vmax.f32 %v162_v46, %v163_v40  ;;  %v179_v5 = vmax.f32 %v177_v60, %v178_v0  ;;  %v12_v6 = vld [vmem:[%s894_s0 + $0x20] sm:$0xff]  ;;  %v25_v7 = vld [vmem:[%s894_s0 + $0x88] sm:$0xff]  ;;  %v38_v8 = vld [vmem:[%s894_s0 + $0xf0] sm:$0xff]  ;;  %v169_v10 = vsel %vm125_vm0, %v75_v56, -inf }
   0xc   :  { %v151_v61 = vmax.f32 %v149_v47, %v150_v44  ;;  %v171_v11 = vsel %vm125_vm0, %v88_v57, -inf  ;;  %v182_v12 = vsel %vm125_vm0, %v50_v59, -inf  ;;  %v101_v14 = vld [vmem:[%s894_s0 + $0x2e8] sm:$0xff]  ;;  %v76_v16 = vld [vmem:[%s894_s0 + $0x220] sm:$0xff]  ;;  %v184_v18 = vsel %vm125_vm0, %v63_v63, -inf  ;;  %v51_v19 = vld [vmem:[%s894_s0 + $0x158] sm:$0xff] }
   0xd   :  { %v138_v2 = vmax.f32 %v136_v54, %v137_v29  ;;  %v166_v4 = vmax.f32 %v164_v58, %v165_v50  ;;  %v181_v17 = vmax.f32 %v179_v5, %v180_v1  ;;  %v114_v21 = vld [vmem:[%s894_s0 + $0x350] sm:$0xff]  ;;  %v194_v22 = vsel %vm125_vm0, %v12_v6, -inf  ;;  %v89_v27 = vld [vmem:[%s894_s0 + $0x288] sm:$0xff]  ;;  %v64_v29 = vld [vmem:[%s894_s0 + $0x1c0] sm:$0xff] }
   0xe   :  { %v153_v9 = vmax.f32 %v151_v61, %v152_v48  ;;  %v195_v23 = vsel %vm125_vm0, %v25_v7, -inf  ;;  %v197_v24 = vsel %vm125_vm0, %v38_v8, -inf  ;;  %v13_v31 = vld [vmem:[%s894_s0 + $0x28] sm:$0xff]  ;;  %v173_v33 = vsel %vm125_vm0, %v101_v14, -inf  ;;  %v26_v36 = vld [vmem:[%s894_s0 + $0x90] sm:$0xff]  ;;  %v39_v43 = vld [vmem:[%s894_s0 + $0xf8] sm:$0xff] }
   0xf   :  { %v140_v13 = vmax.f32 %v138_v2, %v139_v30  ;;  %v168_v15 = vmax.f32 %v166_v4, %v167_v62  ;;  %v183_v28 = vmax.f32 %v181_v17, %v182_v12  ;;  %v196_v30 = vmax.f32 %v194_v22, %v195_v23  ;;  %v102_v39 = vld [vmem:[%s894_s0 + $0x2f0] sm:$0xff]  ;;  %v77_v41 = vld [vmem:[%s894_s0 + $0x228] sm:$0xff]  ;;  %v52_v47 = vld [vmem:[%s894_s0 + $0x160] sm:$0xff] }
  0x10   :  { %v155_v20 = vmax.f32 %v153_v9, %v154_v49  ;;  %v186_v34 = vsel %vm125_vm0, %v76_v16, -inf  ;;  %v199_v35 = vsel %vm125_vm0, %v51_v19, -inf  ;;  %v175_v38 = vsel %vm125_vm0, %v114_v21, -inf  ;;  %v115_v50 = vld [vmem:[%s894_s0 + $0x358] sm:$0xff]  ;;  %v90_v52 = vld [vmem:[%s894_s0 + $0x290] sm:$0xff]  ;;  %v65_v54 = vld [vmem:[%s894_s0 + $0x1c8] sm:$0xff] }
  0x11   :  { %v142_v25 = vmax.f32 %v140_v13, %v141_v42  ;;  %v170_v26 = vmax.f32 %v168_v15, %v169_v10  ;;  %v185_v40 = vmax.f32 %v183_v28, %v184_v18  ;;  %v198_v42 = vmax.f32 %v196_v30, %v197_v24  ;;  %v14_v60 = vld [vmem:[%s894_s0 + $0x30] sm:$0xff]  ;;  %v27_v61 = vld [vmem:[%s894_s0 + $0x98] sm:$0xff]  ;;  %v53_v9 = vld [vmem:[%s894_s0 + $0x168] sm:$0xff] }
  0x12   :  { %v157_v32 = vmax.f32 %v155_v20, %v156_v55  ;;  %v188_v45 = vsel %vm125_vm0, %v89_v27, -inf  ;;  %v201_v46 = vsel %vm125_vm0, %v64_v29, -inf  ;;  %v211_v48 = vsel %vm125_vm0, %v13_v31, -inf  ;;  %v103_v0 = vld [vmem:[%s894_s0 + $0x2f8] sm:$0xff]  ;;  %v78_v6 = vld [vmem:[%s894_s0 + $0x230] sm:$0xff]  ;;  %v28_v22 = vld [vmem:[%s894_s0 + $0xa0] sm:$0xff] }
  0x13   :  { %347 = vst.msk [vmem:[%s895_s1] sm:$0xff] %vm125_vm0, %v142_v25  ;;  %v172_v37 = vmax.f32 %v170_v26, %v171_v11  ;;  %v187_v51 = vmax.f32 %v185_v40, %v186_v34  ;;  %v200_v53 = vmax.f32 %v198_v42, %v199_v35  ;;  %v212_v55 = vsel %vm125_vm0, %v26_v36, -inf  ;;  %v116_v11 = vld [vmem:[%s894_s0 + $0x360] sm:$0xff]  ;;  %v91_v13 = vld [vmem:[%s894_s0 + $0x298] sm:$0xff]  ;;  %v66_v18 = vld [vmem:[%s894_s0 + $0x1d0] sm:$0xff] }
  0x14   :  { %v159_v44 = vmax.f32 %v157_v32, %v158_v3  ;;  %v190_v56 = vsel %vm125_vm0, %v102_v39, -inf  ;;  %v203_v57 = vsel %vm125_vm0, %v77_v41, -inf  ;;  %v213_v58 = vmax.f32 %v211_v48, %v212_v55  ;;  %v40_v3 = vld [vmem:[%s894_s0 + $0x100] sm:$0xff]  ;;  %v15_v21 = vld [vmem:[%s894_s0 + $0x38] sm:$0xff]  ;;  %v41_v27 = vld [vmem:[%s894_s0 + $0x108] sm:$0xff] }
  0x15   :  { %v174_v49 = vmax.f32 %v172_v37, %v173_v33  ;;  %v214_v59 = vsel %vm125_vm0, %v39_v43, -inf  ;;  %v189_v63 = vmax.f32 %v187_v51, %v188_v45  ;;  %v202_v1 = vmax.f32 %v200_v53, %v201_v46  ;;  %v104_v29 = vld [vmem:[%s894_s0 + $0x300] sm:$0xff]  ;;  %v79_v32 = vld [vmem:[%s894_s0 + $0x238] sm:$0xff]  ;;  %v54_v34 = vld [vmem:[%s894_s0 + $0x170] sm:$0xff] }
  0x16   :  { %348 = vst.msk [vmem:[%s895_s1 + $0x8] sm:$0xff] %vm125_vm0, %v159_v44  ;;  %v216_v2 = vsel %vm125_vm0, %v52_v47, -inf  ;;  %v192_v4 = vsel %vm125_vm0, %v115_v50, -inf  ;;  %v205_v5 = vsel %vm125_vm0, %v90_v52, -inf  ;;  %v215_v7 = vmax.f32 %v213_v58, %v214_v59  ;;  %v117_v36 = vld [vmem:[%s894_s0 + $0x368] sm:$0xff]  ;;  %v92_v37 = vld [vmem:[%s894_s0 + $0x2a0] sm:$0xff] }
  0x17   :  { %v176_v62 = vmax.f32 %v174_v49, %v175_v38  ;;  %v218_v8 = vsel %vm125_vm0, %v65_v54, -inf  ;;  %v191_v10 = vmax.f32 %v189_v63, %v190_v56  ;;  %v204_v12 = vmax.f32 %v202_v1, %v203_v57  ;;  %v67_v43 = vld [vmem:[%s894_s0 + $0x1d8] sm:$0xff]  ;;  %v16_v46 = vld [vmem:[%s894_s0 + $0x40] sm:$0xff]  ;;  %v29_v47 = vld [vmem:[%s894_s0 + $0xa8] sm:$0xff] }
  0x18   :  { %v228_v14 = vsel %vm125_vm0, %v14_v60, -inf  ;;  %v229_v15 = vsel %vm125_vm0, %v27_v61, -inf  ;;  %v207_v16 = vsel %vm125_vm0, %v103_v0, -inf  ;;  %v217_v17 = vmax.f32 %v215_v7, %v216_v2  ;;  %v105_v50 = vld [vmem:[%s894_s0 + $0x308] sm:$0xff]  ;;  %v80_v56 = vld [vmem:[%s894_s0 + $0x240] sm:$0xff]  ;;  %v42_v58 = vld [vmem:[%s894_s0 + $0x110] sm:$0xff] }
  0x19   :  { %349 = vst.msk [vmem:[%s895_s1 + $0x10] sm:$0xff] %vm125_vm0, %v176_v62  ;;  %v230_v19 = vmax.f32 %v228_v14, %v229_v15  ;;  %v231_v20 = vsel %vm125_vm0, %v40_v3, -inf  ;;  %v193_v23 = vmax.f32 %v191_v10, %v192_v4  ;;  %v206_v24 = vmax.f32 %v204_v12, %v205_v5  ;;  %v55_v59 = vld [vmem:[%s894_s0 + $0x178] sm:$0xff]  ;;  %v118_v60 = vld [vmem:[%s894_s0 + $0x370] sm:$0xff]  ;;  %v93_v3 = vld [vmem:[%s894_s0 + $0x2a8] sm:$0xff] }
  0x1a   :  { %v220_v25 = vsel %vm125_vm0, %v78_v6, -inf  ;;  %v233_v26 = vsel %vm125_vm0, %v53_v9, -inf  ;;  %v209_v28 = vsel %vm125_vm0, %v116_v11, -inf  ;;  %v219_v30 = vmax.f32 %v217_v17, %v218_v8  ;;  %v68_v5 = vld [vmem:[%s894_s0 + $0x1e0] sm:$0xff]  ;;  %v17_v7 = vld [vmem:[%s894_s0 + $0x48] sm:$0xff]  ;;  %v30_v12 = vld [vmem:[%s894_s0 + $0xb0] sm:$0xff] }
  0x1b   :  { %v222_v31 = vsel %vm125_vm0, %v91_v13, -inf  ;;  %v232_v33 = vmax.f32 %v230_v19, %v231_v20  ;;  %350 = vst.msk [vmem:[%s895_s1 + $0x18] sm:$0xff] %vm125_vm0, %v193_v23  ;;  %v208_v35 = vmax.f32 %v206_v24, %v207_v16  ;;  %v235_v38 = vsel %vm125_vm0, %v66_v18, -inf  ;;  %v106_v15 = vld [vmem:[%s894_s0 + $0x310] sm:$0xff]  ;;  %v81_v17 = vld [vmem:[%s894_s0 + $0x248] sm:$0xff]  ;;  %v43_v19 = vld [vmem:[%s894_s0 + $0x118] sm:$0xff] }
  0x1c   :  { %v245_v39 = vsel %vm125_vm0, %v15_v21, -inf  ;;  %v246_v40 = vsel %vm125_vm0, %v28_v22, -inf  ;;  %v221_v41 = vmax.f32 %v219_v30, %v220_v25  ;;  %v248_v45 = vsel %vm125_vm0, %v41_v27, -inf  ;;  %v56_v23 = vld [vmem:[%s894_s0 + $0x180] sm:$0xff]  ;;  %v69_v30 = vld [vmem:[%s894_s0 + $0x1e8] sm:$0xff] }
  0x1d   :  { %v234_v42 = vmax.f32 %v232_v33, %v233_v26  ;;  %v247_v44 = vmax.f32 %v245_v39, %v246_v40  ;;  %v210_v48 = vmax.f32 %v208_v35, %v209_v28  ;;  %v224_v49 = vsel %vm125_vm0, %v104_v29, -inf  ;;  %v119_v26 = vld [vmem:[%s894_s0 + $0x378] sm:$0xff]  ;;  %v94_v28 = vld [vmem:[%s894_s0 + $0x2b0] sm:$0xff] }
  0x1e   :  { %v237_v51 = vsel %vm125_vm0, %v79_v32, -inf  ;;  %v250_v52 = vsel %vm125_vm0, %v54_v34, -inf  ;;  %v223_v53 = vmax.f32 %v221_v41, %v222_v31  ;;  %v226_v54 = vsel %vm125_vm0, %v117_v36, -inf  ;;  %v18_v36 = vld [vmem:[%s894_s0 + $0x50] sm:$0xff]  ;;  %v107_v40 = vld [vmem:[%s894_s0 + $0x318] sm:$0xff] }
  0x1f   :  { %v236_v55 = vmax.f32 %v234_v42, %v235_v38  ;;  %v249_v57 = vmax.f32 %v247_v44, %v248_v45  ;;  %351 = vst.msk [vmem:[%s895_s1 + $0x20] sm:$0xff] %vm125_vm0, %v210_v48  ;;  %v239_v61 = vsel %vm125_vm0, %v92_v37, -inf  ;;  %v252_v62 = vsel %vm125_vm0, %v67_v43, -inf  ;;  %v31_v37 = vld [vmem:[%s894_s0 + $0xb8] sm:$0xff]  ;;  %v44_v43 = vld [vmem:[%s894_s0 + $0x120] sm:$0xff] }
  0x20   :  { %v262_v63 = vsel %vm125_vm0, %v16_v46, -inf  ;;  %v263_v0 = vsel %vm125_vm0, %v29_v47, -inf  ;;  %v225_v1 = vmax.f32 %v223_v53, %v224_v49  ;;  %v241_v8 = vsel %vm125_vm0, %v105_v50, -inf  ;;  %v82_v46 = vld [vmem:[%s894_s0 + $0x250] sm:$0xff]  ;;  %v57_v49 = vld [vmem:[%s894_s0 + $0x188] sm:$0xff]  ;;  %v95_v53 = vld [vmem:[%s894_s0 + $0x2b8] sm:$0xff] }
  0x21   :  { %v238_v2 = vmax.f32 %v236_v55, %v237_v51  ;;  %v251_v4 = vmax.f32 %v249_v57, %v250_v52  ;;  %v264_v6 = vmax.f32 %v262_v63, %v263_v0  ;;  %v254_v9 = vsel %vm125_vm0, %v80_v56, -inf  ;;  %v120_v51 = vld [vmem:[%s894_s0 + $0x380] sm:$0xff] }
  0x22   :  { %v265_v10 = vsel %vm125_vm0, %v42_v58, -inf  ;;  %v267_v11 = vsel %vm125_vm0, %v55_v59, -inf  ;;  %v227_v13 = vmax.f32 %v225_v1, %v226_v54  ;;  %v243_v20 = vsel %vm125_vm0, %v118_v60, -inf  ;;  %v70_v58 = vld [vmem:[%s894_s0 + $0x1f0] sm:$0xff] }
  0x23   :  { %v240_v14 = vmax.f32 %v238_v2, %v239_v61  ;;  %v253_v16 = vmax.f32 %v251_v4, %v252_v62  ;;  %v266_v18 = vmax.f32 %v264_v6, %v265_v10  ;;  %v256_v21 = vsel %vm125_vm0, %v93_v3, -inf  ;;  %v19_v61 = vld [vmem:[%s894_s0 + $0x58] sm:$0xff]  ;;  %v32_v62 = vld [vmem:[%s894_s0 + $0xc0] sm:$0xff]  ;;  %v45_v3 = vld [vmem:[%s894_s0 + $0x128] sm:$0xff] }
  0x24   :  { %v269_v22 = vsel %vm125_vm0, %v68_v5, -inf  ;;  %v279_v24 = vsel %vm125_vm0, %v17_v7, -inf  ;;  %352 = vst.msk [vmem:[%s895_s1 + $0x28] sm:$0xff] %vm125_vm0, %v227_v13  ;;  %v280_v31 = vsel %vm125_vm0, %v30_v12, -inf  ;;  %v258_v32 = vsel %vm125_vm0, %v106_v15, -inf  ;;  %v108_v5 = vld [vmem:[%s894_s0 + $0x320] sm:$0xff] }
  0x25   :  { %v242_v25 = vmax.f32 %v240_v14, %v241_v8  ;;  %v255_v27 = vmax.f32 %v253_v16, %v254_v9  ;;  %v268_v29 = vmax.f32 %v266_v18, %v267_v11  ;;  %v271_v33 = vsel %vm125_vm0, %v81_v17, -inf  ;;  %v83_v8 = vld [vmem:[%s894_s0 + $0x258] sm:$0xff]  ;;  %v58_v10 = vld [vmem:[%s894_s0 + $0x190] sm:$0xff]  ;;  %v121_v12 = vld [vmem:[%s894_s0 + $0x388] sm:$0xff] }
  0x26   :  { %v281_v34 = vmax.f32 %v279_v24, %v280_v31  ;;  %v282_v35 = vsel %vm125_vm0, %v43_v19, -inf  ;;  %v284_v42 = vsel %vm125_vm0, %v56_v23, -inf  ;;  %v260_v44 = vsel %vm125_vm0, %v119_v26, -inf  ;;  %v96_v13 = vld [vmem:[%s894_s0 + $0x2c0] sm:$0xff]  ;;  %v71_v19 = vld [vmem:[%s894_s0 + $0x1f8] sm:$0xff]  ;;  %v33_v23 = vld [vmem:[%s894_s0 + $0xc8] sm:$0xff] }
  0x27   :  { %v244_v38 = vmax.f32 %v242_v25, %v243_v20  ;;  %v257_v39 = vmax.f32 %v255_v27, %v256_v21  ;;  %v270_v41 = vmax.f32 %v268_v29, %v269_v22  ;;  %v273_v45 = vsel %vm125_vm0, %v94_v28, -inf  ;;  %v20_v22 = vld [vmem:[%s894_s0 + $0x60] sm:$0xff]  ;;  %v109_v26 = vld [vmem:[%s894_s0 + $0x328] sm:$0xff] }
  0x28   :  { %v283_v47 = vmax.f32 %v281_v34, %v282_v35  ;;  %v286_v48 = vsel %vm125_vm0, %v69_v30, -inf  ;;  %v296_v54 = vsel %vm125_vm0, %v18_v36, -inf  ;;  %v297_v55 = vsel %vm125_vm0, %v31_v37, -inf  ;;  %v46_v34 = vld [vmem:[%s894_s0 + $0x130] sm:$0xff]  ;;  %v59_v35 = vld [vmem:[%s894_s0 + $0x198] sm:$0xff] }
  0x29   :  { %353 = vst.msk [vmem:[%s895_s1 + $0x30] sm:$0xff] %vm125_vm0, %v244_v38  ;;  %v259_v50 = vmax.f32 %v257_v39, %v258_v32  ;;  %v272_v52 = vmax.f32 %v270_v41, %v271_v33  ;;  %v275_v56 = vsel %vm125_vm0, %v107_v40, -inf  ;;  %v298_v59 = vmax.f32 %v296_v54, %v297_v55  ;;  %v84_v32 = vld [vmem:[%s894_s0 + $0x260] sm:$0xff]  ;;  %v122_v41 = vld [vmem:[%s894_s0 + $0x390] sm:$0xff]  ;;  %v85_v55 = vld [vmem:[%s894_s0 + $0x268] sm:$0xff] }
  0x2a   :  { %v285_v57 = vmax.f32 %v283_v47, %v284_v42  ;;  %v299_v60 = vsel %vm125_vm0, %v44_v43, -inf  ;;  %v288_v1 = vsel %vm125_vm0, %v82_v46, -inf  ;;  %v301_v2 = vsel %vm125_vm0, %v57_v49, -inf  ;;  %v97_v43 = vld [vmem:[%s894_s0 + $0x2c8] sm:$0xff] }
  0x2b   :  { %v261_v63 = vmax.f32 %v259_v50, %v260_v44  ;;  %v274_v0 = vmax.f32 %v272_v52, %v273_v45  ;;  %v277_v4 = vsel %vm125_vm0, %v120_v51, -inf  ;;  %v290_v7 = vsel %vm125_vm0, %v95_v53, -inf  ;;  %v72_v45 = vld [vmem:[%s894_s0 + $0x200] sm:$0xff]  ;;  %v110_v53 = vld [vmem:[%s894_s0 + $0x330] sm:$0xff] }
  0x2c   :  { %v287_v6 = vmax.f32 %v285_v57, %v286_v48  ;;  %v300_v9 = vmax.f32 %v298_v59, %v299_v60  ;;  %v303_v14 = vsel %vm125_vm0, %v70_v58, -inf  ;;  %v313_v15 = vsel %vm125_vm0, %v19_v61, -inf  ;;  %v123_v61 = vld [vmem:[%s894_s0 + $0x398] sm:$0xff] }
  0x2d   :  { %354 = vst.msk [vmem:[%s895_s1 + $0x38] sm:$0xff] %vm125_vm0, %v261_v63  ;;  %v276_v11 = vmax.f32 %v274_v0, %v275_v56  ;;  %v314_v16 = vsel %vm125_vm0, %v32_v62, -inf  ;;  %v316_v21 = vsel %vm125_vm0, %v45_v3, -inf  ;;  %v292_v25 = vsel %vm125_vm0, %v108_v5, -inf  ;;  %v98_v63 = vld [vmem:[%s894_s0 + $0x2d0] sm:$0xff]  ;;  %v111_v5 = vld [vmem:[%s894_s0 + $0x338] sm:$0xff] }
  0x2e   :  { %v289_v17 = vmax.f32 %v287_v6, %v288_v1  ;;  %v302_v18 = vmax.f32 %v300_v9, %v301_v2  ;;  %v315_v20 = vmax.f32 %v313_v15, %v314_v16  ;;  %v305_v27 = vsel %vm125_vm0, %v83_v8, -inf }
  0x2f   :  { %v278_v24 = vmax.f32 %v276_v11, %v277_v4  ;;  %v318_v28 = vsel %vm125_vm0, %v58_v10, -inf  ;;  %v294_v30 = vsel %vm125_vm0, %v121_v12, -inf  ;;  %v307_v36 = vsel %vm125_vm0, %v96_v13, -inf  ;;  %v124_v10 = vld [vmem:[%s894_s0 + $0x3a0] sm:$0xff] }
  0x30   :  { %v291_v29 = vmax.f32 %v289_v17, %v290_v7  ;;  %v304_v31 = vmax.f32 %v302_v18, %v303_v14  ;;  %v317_v33 = vmax.f32 %v315_v20, %v316_v21  ;;  %v320_v37 = vsel %vm125_vm0, %v71_v19, -inf }
  0x31   :  { %355 = vst.msk [vmem:[%s895_s1 + $0x40] sm:$0xff] %vm125_vm0, %v278_v24  ;;  %v330_v38 = vsel %vm125_vm0, %v20_v22, -inf  ;;  %v331_v39 = vsel %vm125_vm0, %v33_v23, -inf  ;;  %v309_v47 = vsel %vm125_vm0, %v109_v26, -inf  ;;  %v322_v48 = vsel %vm125_vm0, %v84_v32, -inf }
  0x32   :  { %v293_v40 = vmax.f32 %v291_v29, %v292_v25  ;;  %v306_v42 = vmax.f32 %v304_v31, %v305_v27  ;;  %v319_v44 = vmax.f32 %v317_v33, %v318_v28  ;;  %v332_v46 = vmax.f32 %v330_v38, %v331_v39 }
  0x33   :  { %v333_v49 = vsel %vm125_vm0, %v46_v34, -inf  ;;  %v335_v50 = vsel %vm125_vm0, %v59_v35, -inf  ;;  %v311_v57 = vsel %vm125_vm0, %v122_v41, -inf  ;;  %v324_v58 = vsel %vm125_vm0, %v97_v43, -inf }
  0x34   :  { %v295_v51 = vmax.f32 %v293_v40, %v294_v30  ;;  %v308_v52 = vmax.f32 %v306_v42, %v307_v36  ;;  %v321_v54 = vmax.f32 %v319_v44, %v320_v37  ;;  %v334_v56 = vmax.f32 %v332_v46, %v333_v49 }
  0x35   :  { %v337_v59 = vsel %vm125_vm0, %v72_v45, -inf  ;;  %v326_v1 = vsel %vm125_vm0, %v110_v53, -inf  ;;  %v339_v2 = vsel %vm125_vm0, %v85_v55, -inf  ;;  %v328_v7 = vsel %vm125_vm0, %v123_v61, -inf }
  0x36   :  { %356 = vst.msk [vmem:[%s895_s1 + $0x48] sm:$0xff] %vm125_vm0, %v295_v51  ;;  %v310_v60 = vmax.f32 %v308_v52, %v309_v47  ;;  %v323_v62 = vmax.f32 %v321_v54, %v322_v48  ;;  %v336_v0 = vmax.f32 %v334_v56, %v335_v50  ;;  %v341_v8 = vsel %vm125_vm0, %v98_v63, -inf }
  0x37   :  { %v343_v12 = vsel %vm125_vm0, %v111_v5, -inf  ;;  %v345_v15 = vsel %vm125_vm0, %v124_v10, -inf }
  0x38   :  { %v312_v3 = vmax.f32 %v310_v60, %v311_v57  ;;  %v325_v4 = vmax.f32 %v323_v62, %v324_v58  ;;  %v338_v6 = vmax.f32 %v336_v0, %v337_v59 }
  0x3a   :  { %357 = vst.msk [vmem:[%s895_s1 + $0x50] sm:$0xff] %vm125_vm0, %v312_v3  ;;  %v327_v9 = vmax.f32 %v325_v4, %v326_v1  ;;  %v340_v11 = vmax.f32 %v338_v6, %v339_v2 }
  0x3c   :  { %v329_v13 = vmax.f32 %v327_v9, %v328_v7  ;;  %v342_v14 = vmax.f32 %v340_v11, %v341_v8 }
  0x3e   :  { %358 = vst.msk [vmem:[%s895_s1 + $0x58] sm:$0xff] %vm125_vm0, %v329_v13  ;;  %v344_v16 = vmax.f32 %v342_v14, %v343_v12 }
  0x40   :  { %v346_v17 = vmax.f32 %v344_v16, %v345_v15 }
  0x42   :  { %359 = vst.msk [vmem:[%s895_s1 + $0x60] sm:$0xff] %vm125_vm0, %v346_v17 }

</bundles_post_ra>
